<compile_context>
chip_gen: v5e
topology: v5e:2x2
jax: 0.10.0
libtpu: 0.0.40
codegen_flags: <defaults>
</compile_context>

<pallas_src>
import functools

import jax
import jax.numpy as jnp
from jax.experimental import pallas as pl
from jax.experimental.pallas import tpu as pltpu


def soft_attention_kernel(*refs, has_mask):
    """One grid step: a block of Bt batch rows.

    refs (in order):
      feats  (Bt, N, F) bf16  -- feature vectors (also reused for the output reduce)
      h      (Bt, A)    f32   -- key @ Wh + wh_b + wv_b (precomputed in wrapper)
      [mask  (Bt, N)    f32]  -- optional, 0 => masked out
      wv_w   (F, A)     bf16  -- resident weight
      wa_row (1, A)     f32   -- Wa^T as a lane-dense row
      wa_b   (1, 1)     f32
      att    (Bt, F)    f32   -- output
      alpha  (Bt, N)    f32   -- output
    """
    if has_mask:
        (feats_ref, h_ref, mask_ref, wv_w_ref, wa_row_ref, wa_b_ref,
         att_ref, alpha_ref) = refs
    else:
        (feats_ref, h_ref, wv_w_ref, wa_row_ref, wa_b_ref,
         att_ref, alpha_ref) = refs
        mask_ref = None

    Bt, N, F = feats_ref.shape
    A = wv_w_ref.shape[-1]

    feats = feats_ref[...]                                     # (Bt, N, F) bf16

    # v = feats @ Wv : one bf16 MXU pass over all Bt*N rows, f32 accumulation.
    v = jnp.dot(feats.reshape(Bt * N, F), wv_w_ref[...],
                preferred_element_type=jnp.float32)            # (Bt*N, A) f32

    # h already holds key @ Wh + wh_b + wv_b (key path hoisted to the wrapper).
    t = jnp.tanh(v.reshape(Bt, N, A) + h_ref[...][:, None, :])  # (Bt, N, A) f32

    # Logits: wa has a single output column, so an MXU matmul would waste a full
    # pass -> VPU multiply + cross-lane reduce against the lane-dense wa row.
    score = (jnp.sum(t * wa_row_ref[...].reshape(1, 1, A), axis=-1)
             + wa_b_ref[...])                                  # (Bt, N) f32

    if mask_ref is not None:
        # PyTorch: alpha.masked_fill(mask == 0, -1e9) before the softmax.
        score = jnp.where(mask_ref[...] == 0.0, -1.0e9, score)

    # Softmax over N (lane axis). EUP approx reciprocal + one Newton step gives
    # essentially exact f32 (alpha rows sum to 1 to f32 precision).
    m = jnp.max(score, axis=-1, keepdims=True)
    e = jnp.exp(score - m)
    s = jnp.sum(e, axis=-1, keepdims=True)
    r = pl.reciprocal(s, approx=True)
    r = r * (2.0 - s * r)
    alpha = e * r                                              # (Bt, N)

    # att = sum_n alpha[b, n] * feats[b, n, :]  (VPU multiply + sublane reduce).
    att = jnp.sum(alpha[:, :, None] * feats.astype(jnp.float32), axis=1)  # (Bt, F)

    att_ref[...] = att.astype(att_ref.dtype)
    alpha_ref[...] = alpha.astype(alpha_ref.dtype)


def _pick_block_b(B, N, F, A, has_mask, vmem_budget_bytes, min_grid=4):
    """Pick the per-step batch block Bt.

    Start from the smallest divisor of B with Bt*N >= 256 (fills the MXU M
    dimension on v6e/v7x; >= 128 already suffices on v5e), then grow the tile
    subject to (a) the VMEM budget and (b) keeping at least `min_grid` grid
    steps so the batch axis still shards across v7x's 2 TensorCores with slack.
    """
    divisors = [d for d in range(1, B + 1) if B % d == 0]

    def tile_bytes(bt):
        feats_t = 2 * bt * N * F * 2                 # bf16 feats, double-buffered
        h_t = 2 * bt * A * 4
        mask_t = 2 * bt * N * 4 if has_mask else 0
        out_t = 2 * bt * (F + N) * 4                 # att + alpha write-back buffers
        weights = F * A * 2 + A * 4 + 4              # resident wv (bf16) + wa row/bias
        interm = bt * N * (2 * A + F) * 4            # v, t (f32) + f32 promote of feats
        return feats_t + h_t + mask_t + out_t + weights + interm

    filling = [d for d in divisors if d * N >= 256]
    base = filling[0] if filling else divisors[-1]
    while base > 1 and tile_bytes(base) > vmem_budget_bytes:
        base = max(d for d in divisors if d < base)

    grid_floor = min(min_grid, B // base)
    best = base
    for d in divisors:
        if d <= best or tile_bytes(d) > vmem_budget_bytes or B // d < grid_floor:
            continue
        best = d
    return best


def soft_attention(feats, key, wv_w, wv_b, wh_w, wh_b, wa_w, wa_b,
                   mask=None, *, block_b=None):
    """Forward pass of SoftAttention.

    Weights must be (in_features, out_features), i.e. y = x @ W + b.
    Returns (att_feats (B, F) f32, alpha (B, N) f32).
    """
    B, N, F = feats.shape
    H = key.shape[-1]
    A = wv_w.shape[-1]
    assert wv_w.shape == (F, A), f"wv_w must be (F, A)={(F, A)}, got {wv_w.shape}"
    assert wh_w.shape == (H, A), f"wh_w must be (H, A)={(H, A)}, got {wh_w.shape}"
    assert wa_w.shape == (A, 1), f"wa_w must be (A, 1)={(A, 1)}, got {wa_w.shape}"
    # The in-kernel reshapes (Bt,N,F)->(Bt*N,F) and (Bt*N,A)->(Bt,N,A) are only
    # free when they don't cross the (8,128)/(16,128) VMEM tile.
    # TODO(synk): pad N/F/A (and awkward/prime B) instead of asserting.
    assert N % 8 == 0, f"N={N} must be a multiple of 8"
    assert F % 128 == 0 and A % 128 == 0, f"F={F}, A={A} must be multiples of 128"

    # Hoist the tiny key path out of the kernel: one (B,H)@(H,A) matmul with
    # both biases folded in; streamed per-block as a lane-dense (Bt, A) input.
    h = (jnp.dot(key.astype(jnp.float32), wh_w.astype(jnp.float32),
                 preferred_element_type=jnp.float32)
         + jnp.reshape(wh_b, (1, A)).astype(jnp.float32)
         + jnp.reshape(wv_b, (1, A)).astype(jnp.float32))            # (B, A)

    # bf16 MXU inputs (f32 accumulation in-kernel); also halves feats HBM read.
    # In a fused/jitted pipeline the caller should store feats as bf16 directly.
    feats_bf = feats.astype(jnp.bfloat16)
    wv_w_bf = wv_w.astype(jnp.bfloat16)
    # Lane-dense Wa^T row (avoids an in-kernel cross-lane relayout of (A, 1)).
    wa_row = jnp.reshape(wa_w, (1, A)).astype(jnp.float32)
    wa_b2 = jnp.reshape(wa_b, (1, 1)).astype(jnp.float32)

    has_mask = mask is not None
    if has_mask:
        mask_f = jnp.asarray(mask).astype(jnp.float32)
        assert mask_f.shape == (B, N), f"mask must be (B, N)={(B, N)}, got {mask_f.shape}"

    # VMEM budget: raise the scoped limit above the 16/32 MiB default and size
    # Bt against it (v5e/v6e have 128 MiB physical VMEM per core, v7x 64 MiB).
    try:
        vmem_cap = int(pltpu.get_tpu_info().vmem_capacity_bytes)
    except Exception:  # conservative fallback = v7x per-core VMEM
        vmem_cap = 64 * 1024 * 1024
    vmem_limit = min(int(vmem_cap * 0.8), 100 * 1024 * 1024)

    if block_b is None:
        block_b = _pick_block_b(B, N, F, A, has_mask,
                                vmem_budget_bytes=int(vmem_limit * 0.9))
    Bt = block_b
    assert B % Bt == 0, f"block_b={Bt} must divide B={B}"

    def build(single_buffer_weights):
        # Resident weights have a constant block index; single-buffering them
        # (pipeline_mode=pl.Buffered(1)) avoids a pointless second VMEM copy
        # (matters for v7x's 64 MiB budget at realistic F/A).
        weight_kwargs = (
            {"pipeline_mode": pl.Buffered(1)} if single_buffer_weights else {})

        def const_spec(shape):
            nd = len(shape)
            return pl.BlockSpec(shape, lambda b: (0,) * nd, **weight_kwargs)

        in_specs = [
            pl.BlockSpec((Bt, N, F), lambda b: (b, 0, 0)),   # feats (bf16)
            pl.BlockSpec((Bt, A), lambda b: (b, 0)),         # h = wh(key)+biases
        ]
        if has_mask:
            in_specs.append(pl.BlockSpec((Bt, N), lambda b: (b, 0)))
        in_specs += [const_spec((F, A)),                      # wv_w (bf16, resident)
                     const_spec((1, A)),                      # wa row
                     const_spec((1, 1))]                      # wa bias

        return pl.pallas_call(
            functools.partial(soft_attention_kernel, has_mask=has_mask),
            out_shape=(jax.ShapeDtypeStruct((B, F), jnp.float32),
                       jax.ShapeDtypeStruct((B, N), jnp.float32)),
            grid=(B // Bt,),
            in_specs=in_specs,
            out_specs=(pl.BlockSpec((Bt, F), lambda b: (b, 0)),   # att_feats
                       # TODO(synk): for N < 128 this is a masked partial-lane
                       # store; drop alpha when callers don't consume it.
                       pl.BlockSpec((Bt, N), lambda b: (b, 0))),  # alpha
            compiler_params=pltpu.CompilerParams(
                dimension_semantics=("parallel",),
                vmem_limit_bytes=vmem_limit),
        )

    args = [feats_bf, h]
    if has_mask:
        args.append(mask_f)
    args += [wv_w_bf, wa_row, wa_b2]

    try:
        att, alpha = build(single_buffer_weights=True)(*args)
    except Exception:
        # pl.Buffered(1) unsupported on this jax version -> fall back to the
        # default double-buffered weight specs (identical numerics).
        att, alpha = build(single_buffer_weights=False)(*args)
    return att, alpha


if __name__ == "__main__":
    # Shapes chosen so the auto-picked batch block gives >= 256 MXU rows per
    # grid step (Bt=16 -> 512 rows) while keeping 4 parallel grid steps.
    B, N, FEAT, HID, ATT = 64, 32, 256, 64, 128

    root = jax.random.PRNGKey(0)
    ks = jax.random.split(root, 9)
    feats = jax.random.normal(ks[0], (B, N, FEAT), jnp.float32)
    key_in = jax.random.normal(ks[1], (B, HID), jnp.float32)

    # Synthetic parameters, stored as (in_features, out_features).
    wv_w = jax.random.normal(ks[2], (FEAT, ATT), jnp.float32) * 0.1
    wv_b = jax.random.normal(ks[3], (1, ATT), jnp.float32) * 0.1
    wh_w = jax.random.normal(ks[4], (HID, ATT), jnp.float32) * 0.1
    wh_b = jax.random.normal(ks[5], (1, ATT), jnp.float32) * 0.1
    wa_w = jax.random.normal(ks[6], (ATT, 1), jnp.float32) * 0.1
    wa_b = jax.random.normal(ks[7], (1, 1), jnp.float32) * 0.1

    # Optional attention mask (mask == 0 -> masked); keep >=1 live slot per row.
    mask = (jax.random.uniform(ks[8], (B, N)) > 0.25).astype(jnp.float32)
    mask = mask.at[:, 0].set(1.0)

    def reference(feats_mm, msk):
        """Pure-JAX reference. feats_mm=bf16 mirrors the kernel's MXU precision;
        feats_mm=f32 is the exact PyTorch-semantics reference."""
        v = jnp.einsum("bnf,fa->bna", feats_mm, wv_w.astype(feats_mm.dtype),
                       preferred_element_type=jnp.float32) + wv_b
        hh = (key_in @ wh_w + wh_b)[:, None, :]
        t = jnp.tanh(v + hh)
        score = jnp.sum(t * wa_w[:, 0][None, None, :], axis=-1) + wa_b[0, 0]
        if msk is not None:
            score = jnp.where(msk == 0.0, -1.0e9, score)
        alpha = jax.nn.softmax(score, axis=-1)
        att = jnp.einsum("bn,bnf->bf", alpha, feats_mm.astype(jnp.float32))
        return att, alpha

    for msk in (None, mask):
        att, alpha = soft_attention(feats, key_in, wv_w, wv_b, wh_w, wh_b,
                                    wa_w, wa_b, mask=msk)
        jax.block_until_ready((att, alpha))

        # Tight check against a reference using the same bf16 MXU inputs.
        att_bf, alpha_bf = reference(feats.astype(jnp.bfloat16), msk)
        assert jnp.allclose(alpha, alpha_bf, atol=2e-3, rtol=2e-3), "alpha mismatch (bf16 ref)"
        assert jnp.allclose(att, att_bf, atol=2e-3, rtol=2e-3), "att_feats mismatch (bf16 ref)"

        # Looser sanity check against exact f32 PyTorch semantics (difference is
        # the deliberate bf16 cast of the MXU inputs).
        att_f32, alpha_f32 = reference(feats, msk)
        assert jnp.allclose(alpha, alpha_f32, atol=5e-2, rtol=5e-2), "alpha drift vs f32"
        assert jnp.allclose(att, att_f32, atol=5e-2, rtol=5e-2), "att_feats drift vs f32"

    print("KERNEL_OK")
</pallas_src>

<mosaic_0001>
module attributes {stable_mosaic.version = 11 : i64} {
  func.func @soft_attention_kernel(%arg0: i32, %arg1: memref<16x32x256xbf16, #tpu.memory_space<vmem>>, %arg2: memref<16x128xf32, #tpu.memory_space<vmem>>, %arg3: memref<256x128xbf16, #tpu.memory_space<vmem>>, %arg4: memref<1x128xf32, #tpu.memory_space<vmem>>, %arg5: memref<1x1xf32, #tpu.memory_space<vmem>>, %arg6: memref<16x256xf32, #tpu.memory_space<vmem>>, %arg7: memref<16x32xf32, #tpu.memory_space<vmem>>) attributes {dimension_semantics = [#tpu.dimension_semantics<parallel>], iteration_bounds = array<i64: 4>, scalar_prefetch = 0 : i64, scratch_operands = 0 : i64, tpu.core_type = #tpu.core_type<tc>, window_params = [{transform_indices = @transform_0, window_bounds = array<i64: 16, 32, 256>}, {transform_indices = @transform_1, window_bounds = array<i64: 16, 128>}, {pipeline_mode = #tpu.pipeline_mode<synchronous>, transform_indices = @transform_2, window_bounds = array<i64: 256, 128>}, {pipeline_mode = #tpu.pipeline_mode<synchronous>, transform_indices = @transform_3, window_bounds = array<i64: 1, 128>}, {pipeline_mode = #tpu.pipeline_mode<synchronous>, transform_indices = @transform_4, window_bounds = array<i64: 1, 1>}, {transform_indices = @transform_5, window_bounds = array<i64: 16, 256>}, {transform_indices = @transform_6, window_bounds = array<i64: 16, 32>}]} {
    %c0 = arith.constant 0 : index
    %c0_0 = arith.constant 0 : index
    %c0_1 = arith.constant 0 : index
    %0 = vector.load %arg1[%c0, %c0_0, %c0_1] : memref<16x32x256xbf16, #tpu.memory_space<vmem>>, vector<16x32x256xbf16>
    %1 = vector.shape_cast %0 : vector<16x32x256xbf16> to vector<512x256xbf16>
    %c0_2 = arith.constant 0 : index
    %c0_3 = arith.constant 0 : index
    %2 = vector.load %arg3[%c0_2, %c0_3] : memref<256x128xbf16, #tpu.memory_space<vmem>>, vector<256x128xbf16>
    %cst = arith.constant dense<0.000000e+00> : vector<512x128xf32>
    %3 = tpu.matmul %1, %2, %cst {dimension_numbers = #tpu.dot_dimension_numbers<[1], [0], [0], [1], [0, 0, 1, 1], [], []>} : vector<512x256xbf16>, vector<256x128xbf16>, vector<512x128xf32> -> vector<512x128xf32>
    %4 = vector.shape_cast %3 : vector<512x128xf32> to vector<16x32x128xf32>
    %c0_4 = arith.constant 0 : index
    %c0_5 = arith.constant 0 : index
    %5 = vector.load %arg2[%c0_4, %c0_5] : memref<16x128xf32, #tpu.memory_space<vmem>>, vector<16x128xf32>
    %6 = vector.shape_cast %5 : vector<16x128xf32> to vector<16x1x128xf32>
    %7 = vector.broadcast %6 : vector<16x1x128xf32> to vector<16x32x128xf32>
    %8 = arith.addf %4, %7 : vector<16x32x128xf32>
    %9 = math.tanh %8 : vector<16x32x128xf32>
    %c0_6 = arith.constant 0 : index
    %c0_7 = arith.constant 0 : index
    %10 = vector.load %arg4[%c0_6, %c0_7] : memref<1x128xf32, #tpu.memory_space<vmem>>, vector<1x128xf32>
    %11 = vector.shape_cast %10 : vector<1x128xf32> to vector<1x1x128xf32>
    %12 = vector.broadcast %11 : vector<1x1x128xf32> to vector<16x32x128xf32>
    %13 = arith.mulf %9, %12 : vector<16x32x128xf32>
    %cst_8 = arith.constant dense<0.000000e+00> : vector<16x32xf32>
    %14 = vector.multi_reduction <add>, %13, %cst_8 [2] : vector<16x32x128xf32> to vector<16x32xf32>
    %c0_9 = arith.constant 0 : index
    %c0_10 = arith.constant 0 : index
    %15 = vector.load %arg5[%c0_9, %c0_10] : memref<1x1xf32, #tpu.memory_space<vmem>>, vector<1x1xf32>
    %16 = vector.broadcast %15 : vector<1x1xf32> to vector<16x32xf32>
    %17 = arith.addf %14, %16 : vector<16x32xf32>
    %cst_11 = arith.constant dense<0xFF800000> : vector<16xf32>
    %18 = vector.multi_reduction <maximumf>, %17, %cst_11 [1] : vector<16x32xf32> to vector<16xf32>
    %19 = vector.shape_cast %18 : vector<16xf32> to vector<16x1xf32>
    %20 = vector.broadcast %19 : vector<16x1xf32> to vector<16x32xf32>
    %21 = arith.subf %17, %20 : vector<16x32xf32>
    %22 = math.exp %21 : vector<16x32xf32>
    %cst_12 = arith.constant dense<0.000000e+00> : vector<16xf32>
    %23 = vector.multi_reduction <add>, %22, %cst_12 [1] : vector<16x32xf32> to vector<16xf32>
    %24 = vector.shape_cast %23 : vector<16xf32> to vector<16x1xf32>
    %25 = tpu.reciprocal %24 {approx = true} : vector<16x1xf32> -> vector<16x1xf32>
    %26 = arith.mulf %24, %25 : vector<16x1xf32>
    %cst_13 = arith.constant 2.000000e+00 : f32
    %27 = vector.broadcast %cst_13 : f32 to vector<16x1xf32>
    %28 = arith.subf %27, %26 : vector<16x1xf32>
    %29 = arith.mulf %25, %28 : vector<16x1xf32>
    %30 = vector.broadcast %29 : vector<16x1xf32> to vector<16x32xf32>
    %31 = arith.mulf %22, %30 : vector<16x32xf32>
    %32 = vector.shape_cast %31 : vector<16x32xf32> to vector<16x32x1xf32>
    %33 = arith.extf %0 : vector<16x32x256xbf16> to vector<16x32x256xf32>
    %34 = vector.broadcast %32 : vector<16x32x1xf32> to vector<16x32x256xf32>
    %35 = arith.mulf %34, %33 : vector<16x32x256xf32>
    %cst_14 = arith.constant dense<0.000000e+00> : vector<16x256xf32>
    %36 = vector.multi_reduction <add>, %35, %cst_14 [1] : vector<16x32x256xf32> to vector<16x256xf32>
    %c0_15 = arith.constant 0 : index
    %c0_16 = arith.constant 0 : index
    %37 = vector.load %arg6[%c0_15, %c0_16] : memref<16x256xf32, #tpu.memory_space<vmem>>, vector<16x256xf32>
    tpu.vector_store %arg6[%c0_15, %c0_16], %36 {strides = array<i32>} : memref<16x256xf32, #tpu.memory_space<vmem>>, vector<16x256xf32>,
    %c0_17 = arith.constant 0 : index
    %c0_18 = arith.constant 0 : index
    %38 = vector.load %arg7[%c0_17, %c0_18] : memref<16x32xf32, #tpu.memory_space<vmem>>, vector<16x32xf32>
    tpu.vector_store %arg7[%c0_17, %c0_18], %31 {strides = array<i32>} : memref<16x32xf32, #tpu.memory_space<vmem>>, vector<16x32xf32>,
    return
  }
  func.func @transform_0(%arg0: i32) -> (i32, i32, i32) {
    %c0_i32 = arith.constant 0 : i32
    %c0_i32_0 = arith.constant 0 : i32
    %c0_i32_1 = arith.constant 0 : i32
    return %arg0, %c0_i32, %c0_i32_0 : i32, i32, i32
  }
  func.func @transform_1(%arg0: i32) -> (i32, i32) {
    %c0_i32 = arith.constant 0 : i32
    %c0_i32_0 = arith.constant 0 : i32
    return %arg0, %c0_i32 : i32, i32
  }
  func.func @transform_2(%arg0: i32) -> (i32, i32) {
    %c0_i32 = arith.constant 0 : i32
    %c0_i32_0 = arith.constant 0 : i32
    %c0_i32_1 = arith.constant 0 : i32
    return %c0_i32, %c0_i32_0 : i32, i32
  }
  func.func @transform_3(%arg0: i32) -> (i32, i32) {
    %c0_i32 = arith.constant 0 : i32
    %c0_i32_0 = arith.constant 0 : i32
    %c0_i32_1 = arith.constant 0 : i32
    return %c0_i32, %c0_i32_0 : i32, i32
  }
  func.func @transform_4(%arg0: i32) -> (i32, i32) {
    %c0_i32 = arith.constant 0 : i32
    %c0_i32_0 = arith.constant 0 : i32
    %c0_i32_1 = arith.constant 0 : i32
    return %c0_i32, %c0_i32_0 : i32, i32
  }
  func.func @transform_5(%arg0: i32) -> (i32, i32) {
    %c0_i32 = arith.constant 0 : i32
    %c0_i32_0 = arith.constant 0 : i32
    return %arg0, %c0_i32 : i32, i32
  }
  func.func @transform_6(%arg0: i32) -> (i32, i32) {
    %c0_i32 = arith.constant 0 : i32
    %c0_i32_0 = arith.constant 0 : i32
    return %arg0, %c0_i32 : i32, i32
  }
}

module attributes {stable_mosaic.version = 11 : i64} {
  func.func @soft_attention_kernel(%arg0: i32, %arg1: memref<16x32x256xbf16, #tpu.memory_space<vmem>>, %arg2: memref<16x128xf32, #tpu.memory_space<vmem>>, %arg3: memref<256x128xbf16, #tpu.memory_space<vmem>>, %arg4: memref<1x128xf32, #tpu.memory_space<vmem>>, %arg5: memref<1x1xf32, #tpu.memory_space<vmem>>, %arg6: memref<16x256xf32, #tpu.memory_space<vmem>>, %arg7: memref<16x32xf32, #tpu.memory_space<vmem>>) attributes {dimension_semantics = [#tpu.dimension_semantics<parallel>], iteration_bounds = array<i64: 4>, scalar_prefetch = 0 : i64, scratch_operands = 0 : i64, tpu.core_type = #tpu.core_type<tc>, window_params = [{transform_indices = @transform_0, window_bounds = array<i64: 16, 32, 256>}, {transform_indices = @transform_1, window_bounds = array<i64: 16, 128>}, {pipeline_mode = #tpu.pipeline_mode<synchronous>, transform_indices = @transform_2, window_bounds = array<i64: 256, 128>}, {pipeline_mode = #tpu.pipeline_mode<synchronous>, transform_indices = @transform_3, window_bounds = array<i64: 1, 128>}, {pipeline_mode = #tpu.pipeline_mode<synchronous>, transform_indices = @transform_4, window_bounds = array<i64: 1, 1>}, {transform_indices = @transform_5, window_bounds = array<i64: 16, 256>}, {transform_indices = @transform_6, window_bounds = array<i64: 16, 32>}]} {
    %c0 = arith.constant 0 : index
    %c0_0 = arith.constant 0 : index
    %c0_1 = arith.constant 0 : index
    %0 = vector.load %arg1[%c0, %c0_0, %c0_1] : memref<16x32x256xbf16, #tpu.memory_space<vmem>>, vector<16x32x256xbf16>
    %1 = vector.shape_cast %0 : vector<16x32x256xbf16> to vector<512x256xbf16>
    %c0_2 = arith.constant 0 : index
    %c0_3 = arith.constant 0 : index
    %2 = vector.load %arg3[%c0_2, %c0_3] : memref<256x128xbf16, #tpu.memory_space<vmem>>, vector<256x128xbf16>
    %cst = arith.constant dense<0.000000e+00> : vector<512x128xf32>
    %3 = tpu.matmul %1, %2, %cst {dimension_numbers = #tpu.dot_dimension_numbers<[1], [0], [0], [1], [0, 0, 1, 1], [], []>} : vector<512x256xbf16>, vector<256x128xbf16>, vector<512x128xf32> -> vector<512x128xf32>
    %4 = vector.shape_cast %3 : vector<512x128xf32> to vector<16x32x128xf32>
    %c0_4 = arith.constant 0 : index
    %c0_5 = arith.constant 0 : index
    %5 = vector.load %arg2[%c0_4, %c0_5] : memref<16x128xf32, #tpu.memory_space<vmem>>, vector<16x128xf32>
    %6 = vector.shape_cast %5 : vector<16x128xf32> to vector<16x1x128xf32>
    %7 = vector.broadcast %6 : vector<16x1x128xf32> to vector<16x32x128xf32>
    %8 = arith.addf %4, %7 : vector<16x32x128xf32>
    %9 = math.tanh %8 : vector<16x32x128xf32>
    %c0_6 = arith.constant 0 : index
    %c0_7 = arith.constant 0 : index
    %10 = vector.load %arg4[%c0_6, %c0_7] : memref<1x128xf32, #tpu.memory_space<vmem>>, vector<1x128xf32>
    %11 = vector.shape_cast %10 : vector<1x128xf32> to vector<1x1x128xf32>
    %12 = vector.broadcast %11 : vector<1x1x128xf32> to vector<16x32x128xf32>
    %13 = arith.mulf %9, %12 : vector<16x32x128xf32>
    %cst_8 = arith.constant dense<0.000000e+00> : vector<16x32xf32>
    %14 = vector.multi_reduction <add>, %13, %cst_8 [2] : vector<16x32x128xf32> to vector<16x32xf32>
    %c0_9 = arith.constant 0 : index
    %c0_10 = arith.constant 0 : index
    %15 = vector.load %arg5[%c0_9, %c0_10] : memref<1x1xf32, #tpu.memory_space<vmem>>, vector<1x1xf32>
    %16 = vector.broadcast %15 : vector<1x1xf32> to vector<16x32xf32>
    %17 = arith.addf %14, %16 : vector<16x32xf32>
    %cst_11 = arith.constant dense<0xFF800000> : vector<16xf32>
    %18 = vector.multi_reduction <maximumf>, %17, %cst_11 [1] : vector<16x32xf32> to vector<16xf32>
    %19 = vector.shape_cast %18 : vector<16xf32> to vector<16x1xf32>
    %20 = vector.broadcast %19 : vector<16x1xf32> to vector<16x32xf32>
    %21 = arith.subf %17, %20 : vector<16x32xf32>
    %22 = math.exp %21 : vector<16x32xf32>
    %cst_12 = arith.constant dense<0.000000e+00> : vector<16xf32>
    %23 = vector.multi_reduction <add>, %22, %cst_12 [1] : vector<16x32xf32> to vector<16xf32>
    %24 = vector.shape_cast %23 : vector<16xf32> to vector<16x1xf32>
    %25 = tpu.reciprocal %24 {approx = true} : vector<16x1xf32> -> vector<16x1xf32>
    %26 = arith.mulf %24, %25 : vector<16x1xf32>
    %cst_13 = arith.constant 2.000000e+00 : f32
    %27 = vector.broadcast %cst_13 : f32 to vector<16x1xf32>
    %28 = arith.subf %27, %26 : vector<16x1xf32>
    %29 = arith.mulf %25, %28 : vector<16x1xf32>
    %30 = vector.broadcast %29 : vector<16x1xf32> to vector<16x32xf32>
    %31 = arith.mulf %22, %30 : vector<16x32xf32>
    %32 = vector.shape_cast %31 : vector<16x32xf32> to vector<16x32x1xf32>
    %33 = arith.extf %0 : vector<16x32x256xbf16> to vector<16x32x256xf32>
    %34 = vector.broadcast %32 : vector<16x32x1xf32> to vector<16x32x256xf32>
    %35 = arith.mulf %34, %33 : vector<16x32x256xf32>
    %cst_14 = arith.constant dense<0.000000e+00> : vector<16x256xf32>
    %36 = vector.multi_reduction <add>, %35, %cst_14 [1] : vector<16x32x256xf32> to vector<16x256xf32>
    %c0_15 = arith.constant 0 : index
    %c0_16 = arith.constant 0 : index
    %37 = vector.load %arg6[%c0_15, %c0_16] : memref<16x256xf32, #tpu.memory_space<vmem>>, vector<16x256xf32>
    tpu.vector_store %arg6[%c0_15, %c0_16], %36 {strides = array<i32>} : memref<16x256xf32, #tpu.memory_space<vmem>>, vector<16x256xf32>,
    %c0_17 = arith.constant 0 : index
    %c0_18 = arith.constant 0 : index
    %38 = vector.load %arg7[%c0_17, %c0_18] : memref<16x32xf32, #tpu.memory_space<vmem>>, vector<16x32xf32>
    tpu.vector_store %arg7[%c0_17, %c0_18], %31 {strides = array<i32>} : memref<16x32xf32, #tpu.memory_space<vmem>>, vector<16x32xf32>,
    return
  }
  func.func @transform_0(%arg0: i32) -> (i32, i32, i32) {
    %c0_i32 = arith.constant 0 : i32
    %c0_i32_0 = arith.constant 0 : i32
    %c0_i32_1 = arith.constant 0 : i32
    return %arg0, %c0_i32, %c0_i32_0 : i32, i32, i32
  }
  func.func @transform_1(%arg0: i32) -> (i32, i32) {
    %c0_i32 = arith.constant 0 : i32
    %c0_i32_0 = arith.constant 0 : i32
    return %arg0, %c0_i32 : i32, i32
  }
  func.func @transform_2(%arg0: i32) -> (i32, i32) {
    %c0_i32 = arith.constant 0 : i32
    %c0_i32_0 = arith.constant 0 : i32
    %c0_i32_1 = arith.constant 0 : i32
    return %c0_i32, %c0_i32_0 : i32, i32
  }
  func.func @transform_3(%arg0: i32) -> (i32, i32) {
    %c0_i32 = arith.constant 0 : i32
    %c0_i32_0 = arith.constant 0 : i32
    %c0_i32_1 = arith.constant 0 : i32
    return %c0_i32, %c0_i32_0 : i32, i32
  }
  func.func @transform_4(%arg0: i32) -> (i32, i32) {
    %c0_i32 = arith.constant 0 : i32
    %c0_i32_0 = arith.constant 0 : i32
    %c0_i32_1 = arith.constant 0 : i32
    return %c0_i32, %c0_i32_0 : i32, i32
  }
  func.func @transform_5(%arg0: i32) -> (i32, i32) {
    %c0_i32 = arith.constant 0 : i32
    %c0_i32_0 = arith.constant 0 : i32
    return %arg0, %c0_i32 : i32, i32
  }
  func.func @transform_6(%arg0: i32) -> (i32, i32) {
    %c0_i32 = arith.constant 0 : i32
    %c0_i32_0 = arith.constant 0 : i32
    return %arg0, %c0_i32 : i32, i32
  }
}

</mosaic_0001>

<bundles_post_ra>
// kernel: tpu_custom_call.1
= control target key start
LH: loop header
LB: loop body
LE: loop exit
PB: predicated region body
PF: predicated region fallthrough
CT: control target
= control target key end

     0   :  { %s7307_s0 = inlined_call_operand.hbm [shape: bf16[64,32,256], index: 0, kind: input, shape index: {}]   ;;  %s7308_s1 = inlined_call_operand.hbm [shape: f32[64,128], index: 1, kind: input, shape index: {}]   ;;  %s7309_s2 = inlined_call_operand.hbm [shape: bf16[256,128], index: 2, kind: input, shape index: {}]   ;;  %s7310_s3 = inlined_call_operand.vmem [shape: f32[1,128], index: 3, kind: input, shape index: {}]   ;;  %s7311_s4 = inlined_call_operand.<no memory space> [shape: f32[1,1], index: 4, kind: input, shape index: {}]   ;;  %s7312_s5 = inlined_call_operand.hbm [shape: f32[64,256], index: 5, kind: output, shape index: {0}]   ;;  %s7313_s6 = inlined_call_operand.vmem [shape: f32[64,32], index: 6, kind: output, shape index: {1}]  }
   0x1   :  { %7392 = sst [smem:[#allocation57_spill]] %s7307_s0  ;;  %v12_v0 = vstv %s7311_s4 }
   0x2   :  { %7393 = sst [smem:[#allocation58_spill]] %s7309_s2  ;;  %13 = vst [vmem:[#allocation2] sm:$0x1] %v12_v0 }
   0x3   :  { %14 = vsyncpa [#allocation4], 0 }
   0x4   :  { %16 = vsyncpa [#allocation4 + $0x1], 0 }
   0x5   :  { %17 = vsyncpa [#allocation7], 0 }
   0x6   :  { %19 = vsyncpa [#allocation7 + $0x1], 0 }
   0x7   :  { %20 = vsyncpa [#allocation5], 0 }
   0x8   :  { %22 = vsyncpa [#allocation5 + $0x1], 0  ;;  %s4793_s23 = smov 0   ;;  %s4795_s24 = smov 0  }
   0x9   :  { %s4797_s25 = smov 0   ;;  %s4799_s26 = smov 0  }
   0xa LB: > { %7394 = sst [smem:[#allocation14_spill]] %s4741_s25  ;;  %s4814_s4 = sadd.s32 4294967295, %s4745_s26   ;;  %s4745_s26 = sphi %s4799_s26, %s7601_s26   ;;  %s4741_s25 = sphi %s4797_s25, %s7603_s25   ;;  %s4737_s24 = sphi %s4795_s24, %s7605_s24   ;;  %s4733_s23 = sphi %s4793_s23, %s7604_s23  }
   0xb   : > { %s3799_s27 = sadd.s32 4294967294, %s4745_s26   ;;  %p48_p0 = scmp.ne.s32.totalorder %s4737_s24, %s4733_s23 }
   0xc   : > { %p49_p1 = scmp.eq.s32.totalorder %s4814_s4, 0  ;;  %p161_p2 = scmp.eq.s32.totalorder %s4814_s4, 3 }
   0xd   : > { %p167_p3 = scmp.eq.s32.totalorder %s3799_s27, 3  ;;  %p3800_p5 = scmp.ge.s32.totalorder %s4745_s26, 1 }
   0xe   : > { %p4823_p4 = por %p49_p1, %p48_p0  ;;  %p200_p7 = scmp.lt.s32.totalorder %s4745_s26, 5 }
   0xf   : > { %p4828_p6 = por %p167_p3, %p48_p0  ;;  %s7397_s2 = sld [smem:[#allocation58_spill]] }
  0x10   : > { %p4836_p8 = pnand %p3800_p5, %p200_p7  ;;  %s4747_s10 = smov [#allocation8]  }
  0x11   : > { %s213_s11 = sshll.u32 %s4747_s10, 4  ;;  %s4845_s12 = sadd.s32 1, %s4745_s26   ;;  %s214_s11 = int_to_ptr.vmem [resolvable:$true] %s213_s11 }
  0x12   : > { %p4254_p9 = pneg %p4836_p8  ;;  %7399 = sst [smem:[#allocation15_spill]] %s4845_s12 }
  0x13   : > { %s4748_s13 = smov 64   ;;  %s4749_s14 = smov 4  }
  0x14   : > { %p4255_p10 = pnand %p4254_p9, %p49_p1  ;;  %s32_s15 = ssub.s32 %s4745_s26, %s4845_s12 }
  0x15   : > { %s211_s8 = sshll.u32 %s7397_s2, 4  ;;  %s35_s16 = sadd.s32 1, %s4741_s25  ;;  %s212_s8 = int_to_ptr.hbm [resolvable:$true] %s211_s8 }
  0x16   : > { %4257 = dma.hbm_to_vmem [thread:$0]  (!%p4255_p10), %s212_s8, 2048, %s214_s11, [#allocation7], %s4748_s13, %s4748_s13, %s4749_s14  }
  0x17   : > { %p33_p11 = scmp.eq.s32.totalorder %s32_s15, 0  ;;  %p42_p12 = scmp.ne.s32.totalorder %s4741_s25, %s4737_s24 }
  0x18   : > { %p43_p13 = scmp.eq.s32.totalorder %s4745_s26, 0  ;;  %p4270_p0 = scmp.lt.s32.totalorder %s4745_s26, 4 }
  0x19   : > { %s4855_s17 = scalar_select %p33_p11, %s4741_s25, %s35_s16  }
  0x1a   : > { %p44_p3 = por %p43_p13, %p42_p12  ;;  %p4859_p5 = por %p161_p2, %p42_p12 }
  0x1b   : > { %7400 = sst [smem:[#allocation16_spill]] %s4855_s17  ;;  %s4864_s19 = sand.u32 1, %s4741_s25  }
  0x1c   : > { %s4144_s20 = sshll.u32 %s4745_s26, 9  ;;  %s3803_s21 = sshll.u32 %s4864_s19, 9 }
  0x1d   : > { %s7402_s0 = sld [smem:[#allocation57_spill]]  ;;  %s237_s8 = scalar_lea.vmem [#allocation3], %s3803_s21 }
  0x1e   : > { %s246_s10 = sshll.u32 %s237_s8, 4  ;;  %p4873_p2 = pnand %p4270_p0, %p44_p3  ;;  %s247_s10 = int_to_ptr.vmem [resolvable:$true] %s246_s10 }
  0x1f   : > { %s256_s13 = sand.u32 1, %s4745_s26   ;;  %s234_s14 = scalar_lea.sflag [#allocation4], %s4864_s19 }
  0x20   : > { %p4615_p9 = pneg %p4873_p2 }
  0x23   : > { %s243_s30 = scalar_lea.hbm %s7402_s0, %s4144_s20  ;;  %s4618_s22 = scalar_lea.hbm %s7402_s0, 2048 }
  0x24   : > { %s244_s7 = sshll.u32 %s243_s30, 4  ;;  %s245_s7 = int_to_ptr.hbm [resolvable:$true] %s244_s7 }
  0x25   : > { %s4611_s15 = sshra.s32 %s245_s7, 4  ;;  %s4612_s15 = int_to_ptr.hbm [resolvable:$true] %s4611_s15 }
  0x26   : > { %s4613_s16 = scalar_lea.hbm %s4612_s15, 512  ;;  %p4619_p12 = scmp.lt.s32.totalorder %s4612_s15, %s7402_s0 }
  0x27   : > { %p4614_p7 = scmp.ne.s32.totalorder %s4612_s15, %s4613_s16  ;;  %p4620_p13 = scmp.lt.s32.totalorder %s4618_s22, %s4613_s16 }
  0x29   : > { %p4616_p10 = pnand %p4615_p9, %p4614_p7  ;;  %p4621_p0 = por %p4620_p13, %p4619_p12 }
  0x2b   : > { %p4617_p11 = pneg %p4616_p10 }
  0x2d   : > { %p4622_p3 = pnand %p4621_p0, %p4617_p11 }
  0x2f   : > { %4625 = shalt.err (!%p4622_p3)
}
  0x30   : > { %s4750_s8 = smov 128   ;;  %s4751_s2 = smov 8  }
  0x31   : > { %4261 = dma.hbm_to_vmem [thread:$0]  (!%p4873_p2), %s245_s7, 8192, %s247_s10, %s234_s14, %s4750_s8, %s4750_s8, %s4751_s2  }
  0x32   : > { %s3807_s17 = sshll.u32 %s4864_s19, 4  ;;  %s4145_s25 = sshll.u32 %s4745_s26, 4 }
  0x33   : > { %s265_s12 = scalar_lea.hbm %s7308_s1, %s4145_s25  ;;  %s260_s15 = scalar_lea.vmem [#allocation6], %s3807_s17 }
  0x34   : > { %s266_s27 = sshll.u32 %s265_s12, 4  ;;  %s268_s16 = sshll.u32 %s260_s15, 4  ;;  %s267_s27 = int_to_ptr.hbm [resolvable:$true] %s266_s27  ;;  %s269_s16 = int_to_ptr.vmem [resolvable:$true] %s268_s16 }
  0x35   : > { %s257_s22 = scalar_lea.sflag [#allocation7], %s256_s13  ;;  %s4641_s30 = sshra.s32 %s267_s27, 4  ;;  %s4642_s30 = int_to_ptr.hbm [resolvable:$true] %s4641_s30 }
  0x36   : > { %s4643_s0 = scalar_lea.hbm %s4642_s30, 16  ;;  %s4648_s10 = scalar_lea.hbm %s7308_s1, 64 }
  0x37   : > { %p4644_p7 = scmp.ne.s32.totalorder %s4642_s30, %s4643_s0  ;;  %p4649_p12 = scmp.lt.s32.totalorder %s4642_s30, %s7308_s1 }
  0x38   : > { %p4650_p13 = scmp.lt.s32.totalorder %s4648_s10, %s4643_s0 }
  0x39   : > { %p4646_p10 = pnand %p4644_p7, %p4615_p9 }
  0x3a   : > { %p4651_p0 = por %p4650_p13, %p4649_p12 }
  0x3b   : > { %p4647_p11 = pneg %p4646_p10 }
  0x3d   : > { %p4652_p3 = pnand %p4651_p0, %p4647_p11 }
  0x3f   : > { %4655 = shalt.err (!%p4652_p3)
}
  0x40   : > { %4264 = dma.hbm_to_vmem [thread:$0]  (!%p4873_p2), %s267_s27, 256, %s269_s16, %s257_s22, %s4750_s8, %s4750_s8, %s4751_s2  }
  0x41   : > { %280 = sbr.rel (%p4836_p8) target bundleno = 1431 (0x597), region = 40 }
  0x46   : > { %s4911_s12 = sand.u32 1, %s4737_s24  }
  0x47   : > { %s3811_s17 = sshll.u32 %s4911_s12, 9  ;;  %s283_s13 = scalar_lea.sflag [#allocation4], %s4911_s12 }
  0x48   : > { %s4915_s20 = scalar_lea.vmem [#allocation3], %s3811_s17 }
  0x49   : > { %4716 = dma.done.wait (%p4823_p4), %s283_s13, 8192  }
  0x4a   : > { %4718 = vsyncadd (%p4823_p4), %s283_s13, 4294959104  ;;  %s292_s0 = sand.u32 1, %s4814_s4   ;;  %s3812_s2 = sshll.u32 %s4911_s12, 4 }
  0x4b   : > { %s293_s9 = scalar_lea.sflag [#allocation7], %s292_s0  ;;  %s4923_s11 = scalar_lea.vmem [#allocation6], %s3812_s2 }
  0x4c   : > { %4720 = dma.done.wait (%p4823_p4), %s293_s9, 256  }
  0x4d   : > { %4722 = vsyncadd (%p4823_p4), %s293_s9, 4294967040 }
  0x4e   : > { %4724 = dma.done.wait (%p49_p1), [#allocation7], 2048  }
  0x4f   : > { %4726 = vsyncadd (%p49_p1), [#allocation7], 4294965248  ;;  %v4217_v1 = vld [vmem:[#allocation8 + $0x38] sm:$0xff]  ;;  %v4216_v3 = vld [vmem:[#allocation8 + $0x30] sm:$0xff]  ;;  %vm1714_vm0 = vcmask 130112   ;;  %vm1718_vm1 = vcmask 195712  }
  0x50   : > { %v4225_v2 = vld [vmem:[#allocation8 + $0x78] sm:$0xff]  ;;  %862 = vmatpush.bf16.msra.mxu0 %v4217_v1  ;;  %4228 = vmatpush.bf16.msra.mxu2 %v4217_v1  ;;  %v4224_v4 = vld [vmem:[#allocation8 + $0x70] sm:$0xff]  ;;  %v4215_v5 = vld [vmem:[#allocation8 + $0x28] sm:$0xff]  ;;  %vm1722_vm2 = vcmask 261312   ;;  %vm1829_vm3 = vcmask 1041409   ;;  %vm1831_vm4 = vcmask 1042434  }
  0x51   : > { %1031 = vmatpush.bf16.msra.mxu1 %v4225_v2  ;;  %4236 = vmatpush.bf16.msra.mxu3 %v4225_v2  ;;  %v4223_v6 = vld [vmem:[#allocation8 + $0x68] sm:$0xff]  ;;  %v4214_v7 = vld [vmem:[#allocation8 + $0x20] sm:$0xff]  ;;  %v4213_v9 = vld [vmem:[#allocation8 + $0x18] sm:$0xff]  ;;  %vm1833_vm5 = vcmask 1043459   ;;  %vm1835_vm6 = vcmask 1044484   ;;  %vm1837_vm7 = vcmask 1045509  }
  0x52   : > { %v4222_v8 = vld [vmem:[#allocation8 + $0x60] sm:$0xff]  ;;  %v4221_v10 = vld [vmem:[#allocation8 + $0x58] sm:$0xff]  ;;  %v4212_v11 = vld [vmem:[#allocation8 + $0x10] sm:$0xff]  ;;  %vm1839_vm8 = vcmask 1046534   ;;  %vm1841_vm9 = vcmask 1047559   ;;  %vm1852_vm10 = vcmask 261120  }
  0x53   : > { %v4220_v12 = vld [vmem:[#allocation8 + $0x50] sm:$0xff]  ;;  %v4211_v13 = vld [vmem:[#allocation8 + $0x8] sm:$0xff]  ;;  %v4210_v15 = vld [vmem:[#allocation8] sm:$0xff]  ;;  %s3815_s15 = sshll.u32 %s4814_s4, 1  ;;  %s3814_s10 = sshll.u32 %s4911_s12, 5 }
  0x54   : > { %863 = vmatpush.bf16.msra.mxu0 %v4216_v3  ;;  %4229 = vmatpush.bf16.msra.mxu2 %v4216_v3  ;;  %v4219_v14 = vld [vmem:[#allocation8 + $0x48] sm:$0xff]  ;;  %v4218_v16 = vld [vmem:[#allocation8 + $0x40] sm:$0xff]  ;;  %v3827_v29 = vld [vmem:[%s4915_s20 + $0x10] sm:$0xf]  ;;  %p6778_p1 = scmp.lt.s32.totalorder %s3815_s15, 7  ;;  %s6901_s14 = scalar_lea.vmem [#allocation9], %s3814_s10 }
  0x55   : > { %1032 = vmatpush.bf16.msra.mxu1 %v4224_v4  ;;  %4237 = vmatpush.bf16.msra.mxu3 %v4224_v4  ;;  %v3819_v17 = vld [vmem:[%s4915_s20] sm:$0xf]  ;;  %v4147_v18 = vld [vmem:[%s4915_s20 + $0x4] sm:$0xf0]  ;;  %v4146_v21 = vld [vmem:[%s4915_s20 + $0x4] sm:$0xf] }
  0x56   : > { %v3947_v19 = vld [vmem:[%s4915_s20 + $0x100] sm:$0xf]  ;;  %v4179_v20 = vld [vmem:[%s4915_s20 + $0x104] sm:$0xf0]  ;;  %v3821_v22 = vld [vmem:[%s4915_s20 + $0x8] sm:$0xf0]  ;;  %v3820_v25 = vor.u32 %v4147_v18, %v3819_v17 }
  0x57   : > { %v4178_v23 = vld [vmem:[%s4915_s20 + $0x104] sm:$0xf]  ;;  %v3949_v24 = vld [vmem:[%s4915_s20 + $0x108] sm:$0xf0]  ;;  %v3948_v26 = vor.u32 %v4179_v20, %v3947_v19  ;;  %v3824_v27 = vor.u32 %v4146_v21, %v3821_v22  ;;  %v4149_v30 = vld [vmem:[%s4915_s20 + $0x14] sm:$0xf0] }
  0x58   : > { %864 = vmatpush.bf16.msra.mxu0 %v4215_v5  ;;  %4230 = vmatpush.bf16.msra.mxu2 %v4215_v5  ;;  %v3952_v28 = vor.u32 %v4178_v23, %v3949_v24  ;;  %v3955_v31 = vld [vmem:[%s4915_s20 + $0x110] sm:$0xf]  ;;  %v4181_v32 = vld [vmem:[%s4915_s20 + $0x114] sm:$0xf0]  ;;  %v4148_v33 = vld [vmem:[%s4915_s20 + $0x14] sm:$0xf]  ;;  %v3828_v37 = vor.u32 %v4149_v30, %v3827_v29 }
  0x59   : > { %1033 = vmatpush.bf16.msra.mxu1 %v4223_v6  ;;  %4238 = vmatpush.bf16.msra.mxu3 %v4223_v6  ;;  %v3829_v34 = vld [vmem:[%s4915_s20 + $0x18] sm:$0xf0]  ;;  %v4180_v35 = vld [vmem:[%s4915_s20 + $0x114] sm:$0xf]  ;;  %v3956_v38 = vor.u32 %v4181_v32, %v3955_v31  ;;  %v3835_v41 = vld [vmem:[%s4915_s20 + $0x20] sm:$0xf] }
  0x5a   : > { %v3957_v36 = vld [vmem:[%s4915_s20 + $0x118] sm:$0xf0]  ;;  %v3832_v39 = vor.u32 %v4148_v33, %v3829_v34  ;;  %v4151_v42 = vld [vmem:[%s4915_s20 + $0x24] sm:$0xf0]  ;;  %v3963_v43 = vld [vmem:[%s4915_s20 + $0x120] sm:$0xf] }
  0x5b   : > { %v3960_v40 = vor.u32 %v4180_v35, %v3957_v36  ;;  %v4183_v44 = vld [vmem:[%s4915_s20 + $0x124] sm:$0xf0]  ;;  %v4150_v45 = vld [vmem:[%s4915_s20 + $0x24] sm:$0xf]  ;;  %v3837_v46 = vld [vmem:[%s4915_s20 + $0x28] sm:$0xf0]  ;;  %v3836_v49 = vor.u32 %v4151_v42, %v3835_v41 }
  0x5c   : > { %865 = vmatpush.bf16.msra.mxu0 %v4214_v7  ;;  %4231 = vmatpush.bf16.msra.mxu2 %v4214_v7  ;;  %v4182_v47 = vld [vmem:[%s4915_s20 + $0x124] sm:$0xf]  ;;  %v3965_v48 = vld [vmem:[%s4915_s20 + $0x128] sm:$0xf0]  ;;  %v3964_v50 = vor.u32 %v4183_v44, %v3963_v43  ;;  %v3840_v51 = vor.u32 %v4150_v45, %v3837_v46  ;;  %v3843_v53 = vld [vmem:[%s4915_s20 + $0x30] sm:$0xf] }
  0x5d   : > { %1034 = vmatpush.bf16.msra.mxu1 %v4222_v8  ;;  %4239 = vmatpush.bf16.msra.mxu3 %v4222_v8  ;;  %v3968_v52 = vor.u32 %v4182_v47, %v3965_v48  ;;  %v4153_v54 = vld [vmem:[%s4915_s20 + $0x34] sm:$0xf0]  ;;  %v3971_v55 = vld [vmem:[%s4915_s20 + $0x130] sm:$0xf]  ;;  %v4152_v57 = vld [vmem:[%s4915_s20 + $0x34] sm:$0xf] }
  0x5e   : > { %v4185_v56 = vld [vmem:[%s4915_s20 + $0x134] sm:$0xf0]  ;;  %v3845_v58 = vld [vmem:[%s4915_s20 + $0x38] sm:$0xf0]  ;;  %v4184_v59 = vld [vmem:[%s4915_s20 + $0x134] sm:$0xf]  ;;  %v3844_v61 = vor.u32 %v4153_v54, %v3843_v53 }
  0x5f   : > { %v3973_v60 = vld [vmem:[%s4915_s20 + $0x138] sm:$0xf0]  ;;  %v3972_v62 = vor.u32 %v4185_v56, %v3971_v55  ;;  %v3848_v63 = vor.u32 %v4152_v57, %v3845_v58  ;;  %v3851_v1 = vld [vmem:[%s4915_s20 + $0x40] sm:$0xf]  ;;  %v4155_v2 = vld [vmem:[%s4915_s20 + $0x44] sm:$0xf0] }
  0x60   : > { %866 = vmatpush.bf16.msra.mxu0 %v4213_v9  ;;  %4232 = vmatpush.bf16.msra.mxu2 %v4213_v9  ;;  %v3976_v0 = vor.u32 %v4184_v59, %v3973_v60  ;;  %v3979_v3 = vld [vmem:[%s4915_s20 + $0x140] sm:$0xf]  ;;  %v4187_v4 = vld [vmem:[%s4915_s20 + $0x144] sm:$0xf0]  ;;  %v4154_v5 = vld [vmem:[%s4915_s20 + $0x44] sm:$0xf]  ;;  %v3852_v9 = vor.u32 %v4155_v2, %v3851_v1 }
  0x61   : > { %1035 = vmatpush.bf16.msra.mxu1 %v4221_v10  ;;  %4240 = vmatpush.bf16.msra.mxu3 %v4221_v10  ;;  %v3853_v6 = vld [vmem:[%s4915_s20 + $0x48] sm:$0xf0]  ;;  %v4186_v7 = vld [vmem:[%s4915_s20 + $0x144] sm:$0xf]  ;;  %v3980_v10 = vor.u32 %v4187_v4, %v3979_v3  ;;  %v4189_v17 = vld [vmem:[%s4915_s20 + $0x154] sm:$0xf0] }
  0x62   : > { %v3981_v8 = vld [vmem:[%s4915_s20 + $0x148] sm:$0xf0]  ;;  %v4156_v18 = vld [vmem:[%s4915_s20 + $0x54] sm:$0xf]  ;;  %v3861_v19 = vld [vmem:[%s4915_s20 + $0x58] sm:$0xf0] }
  0x63   : > { %v4188_v20 = vld [vmem:[%s4915_s20 + $0x154] sm:$0xf]  ;;  %v3989_v21 = vld [vmem:[%s4915_s20 + $0x158] sm:$0xf0]  ;;  %v3864_v24 = vor.u32 %v4156_v18, %v3861_v19  ;;  %v3995_v29 = vld [vmem:[%s4915_s20 + $0x160] sm:$0xf] }
  0x64   : > { %867 = vmatpush.bf16.msra.mxu0 %v4212_v11  ;;  %4233 = vmatpush.bf16.msra.mxu2 %v4212_v11  ;;  %v3856_v11 = vor.u32 %v4154_v5, %v3853_v6  ;;  %v4191_v30 = vld [vmem:[%s4915_s20 + $0x164] sm:$0xf0]  ;;  %v4158_v31 = vld [vmem:[%s4915_s20 + $0x64] sm:$0xf]  ;;  %v3869_v32 = vld [vmem:[%s4915_s20 + $0x68] sm:$0xf0] }
  0x65   : > { %1036 = vmatpush.bf16.msra.mxu1 %v4220_v12  ;;  %4241 = vmatpush.bf16.msra.mxu3 %v4220_v12  ;;  %v3984_v12 = vor.u32 %v4186_v7, %v3981_v8  ;;  %v4190_v33 = vld [vmem:[%s4915_s20 + $0x164] sm:$0xf]  ;;  %v3997_v34 = vld [vmem:[%s4915_s20 + $0x168] sm:$0xf0]  ;;  %v3996_v36 = vor.u32 %v4191_v30, %v3995_v29  ;;  %v4003_v41 = vld [vmem:[%s4915_s20 + $0x170] sm:$0xf] }
  0x66   : > { %v4193_v42 = vld [vmem:[%s4915_s20 + $0x174] sm:$0xf0]  ;;  %v4160_v43 = vld [vmem:[%s4915_s20 + $0x74] sm:$0xf]  ;;  %v3877_v44 = vld [vmem:[%s4915_s20 + $0x78] sm:$0xf0] }
  0x67   : > { %v4192_v45 = vld [vmem:[%s4915_s20 + $0x174] sm:$0xf]  ;;  %v4005_v46 = vld [vmem:[%s4915_s20 + $0x178] sm:$0xf0]  ;;  %v4004_v48 = vor.u32 %v4193_v42, %v4003_v41  ;;  %v4163_v53 = vld [vmem:[%s4915_s20 + $0x84] sm:$0xf0] }
  0x68   : > { %868 = vmatpush.bf16.msra.mxu0 %v4211_v13  ;;  %4234 = vmatpush.bf16.msra.mxu2 %v4211_v13  ;;  %v4752_v13 = vmov 0   ;;  %v4011_v54 = vld [vmem:[%s4915_s20 + $0x180] sm:$0xf]  ;;  %v4195_v55 = vld [vmem:[%s4915_s20 + $0x184] sm:$0xf0]  ;;  %s7607_s15 = smov (!%p6778_p1, %s3815_s15), 7 }
  0x69   : > { %1037 = vmatpush.bf16.msra.mxu1 %v4219_v14  ;;  %4242 = vmatpush.bf16.msra.mxu3 %v4219_v14  ;;  %v3859_v14 = vld [vmem:[%s4915_s20 + $0x50] sm:$0xf]  ;;  %v4162_v56 = vld [vmem:[%s4915_s20 + $0x84] sm:$0xf]  ;;  %v3885_v57 = vld [vmem:[%s4915_s20 + $0x88] sm:$0xf0] }
  0x6a   : > { %4313 = vset.pattern.permute.xlu1 %v4752_v13  ;;  %4315 = vset.pattern.permute.xlu0 %v4752_v13  ;;  %v4194_v58 = vld [vmem:[%s4915_s20 + $0x184] sm:$0xf]  ;;  %v4013_v59 = vld [vmem:[%s4915_s20 + $0x188] sm:$0xf0]  ;;  %v4019_v19 = vld [vmem:[%s4915_s20 + $0x190] sm:$0xf] }
  0x6b   : > { %4314 = vset.pattern.permute.xlu2 %v4752_v13  ;;  %v4016_v1 = vor.u32 %v4194_v58, %v4013_v59  ;;  %v5012_v4 = vld [vmem:[%s4923_s11 + $0x8] sm:$0xff]  ;;  %s3816_s22 = sshll.u32 %s7607_s15, 3  ;;  %s4227_s25 = sshll.u32 %s4814_s4, 5 }
  0x6c   : > { %869 = vmatpush.bf16.msra.mxu0 %v4210_v15  ;;  %4235 = vmatpush.bf16.msra.mxu2 %v4210_v15  ;;  %v4157_v15 = vld [vmem:[%s4915_s20 + $0x54] sm:$0xf0]  ;;  %v5016_v7 = vperm.slane %v5012_v4, 0  ;;  %v3901_v59 = vld [vmem:[%s4915_s20 + $0xa8] sm:$0xf0]  ;;  %s6841_s7 = scalar_lea.vmem %s7313_s6, %s3816_s22  ;;  %s3661_s13 = scalar_lea.hbm %s7312_s5, %s4227_s25 }
  0x6d   : > { %1038 = vmatpush.bf16.msra.mxu1 %v4218_v16  ;;  %4243 = vmatpush.bf16.msra.mxu3 %v4218_v16  ;;  %v3987_v16 = vld [vmem:[%s4915_s20 + $0x150] sm:$0xf]  ;;  %v3860_v22 = vor.u32 %v4157_v15, %v3859_v14  ;;  %s3664_s0 = sshll.u32 %s3661_s13, 4  ;;  %s3644_s2 = scalar_lea.sflag [#allocation5], %s4911_s12  ;;  %s3665_s0 = int_to_ptr.hbm [resolvable:$true] %s3664_s0 }
  0x6e   : > { %v3988_v23 = vor.u32 %v4189_v17, %v3987_v16  ;;  %v3891_v15 = vld [vmem:[%s4915_s20 + $0x90] sm:$0xf]  ;;  %v4165_v16 = vld [vmem:[%s4915_s20 + $0x94] sm:$0xf0]  ;;  %s4685_s9 = sshra.s32 %s3665_s0, 4  ;;  %s4691_s21 = scalar_lea.hbm %s7312_s5, 128  ;;  %s4686_s9 = int_to_ptr.hbm [resolvable:$true] %s4685_s9 }
  0x6f   : > { %870 = vmatmul.bf16.vlgmr.msra.gmra.mxu0 %v3820_v25  ;;  %950 = vmatmul.bf16.vlgmr.msra.gmra.mxu2 %v3948_v26  ;;  %v3992_v25 = vor.u32 %v4188_v20, %v3989_v21  ;;  %v4316_v26 = vld [vmem:[#allocation2] ss:$0 sm:$0xff]  ;;  %v4197_v20 = vld [vmem:[%s4915_s20 + $0x194] sm:$0xf0]  ;;  %v4164_v21 = vld [vmem:[%s4915_s20 + $0x94] sm:$0xf]  ;;  %p4692_p9 = scmp.lt.s32.totalorder %s4686_s9, %s7312_s5 }
  0x70   : > { %1039 = vmatmul.bf16.vlgmr.msra.gmra.mxu1 %v3824_v27  ;;  %1119 = vmatmul.bf16.vlgmr.msra.gmra.mxu3 %v3952_v28  ;;  %v3867_v27 = vld [vmem:[%s4915_s20 + $0x60] sm:$0xf]  ;;  %v4159_v28 = vld [vmem:[%s4915_s20 + $0x64] sm:$0xf0]  ;;  %v4020_v29 = vor.u32 %v4197_v20, %v4019_v19 }
  0x71   : > { %1578 = vperm.xlu1 %4313, %v4316_v26   ;;  %v3868_v35 = vor.u32 %v4159_v28, %v3867_v27  ;;  %v3892_v28 = vor.u32 %v4165_v16, %v3891_v15 }
  0x7f   : > { %875 = vmatmul.bf16.gmra.mxu0 %v3828_v37  ;;  %955 = vmatmul.bf16.gmra.mxu2 %v3956_v38  ;;  %v3872_v37 = vor.u32 %v4158_v31, %v3869_v32  ;;  %v4000_v38 = vor.u32 %v4190_v33, %v3997_v34 }
  0x80   : > { %1044 = vmatmul.bf16.gmra.mxu1 %v3832_v39  ;;  %1124 = vmatmul.bf16.gmra.mxu3 %v3960_v40  ;;  %v3875_v39 = vld [vmem:[%s4915_s20 + $0x70] sm:$0xf]  ;;  %v4161_v40 = vld [vmem:[%s4915_s20 + $0x74] sm:$0xf0] }
  0x81   : > { %v3876_v47 = vor.u32 %v4161_v40, %v3875_v39 }
  0x8f   : > { %880 = vmatmul.bf16.gmra.mxu0 %v3836_v49  ;;  %960 = vmatmul.bf16.gmra.mxu2 %v3964_v50  ;;  %v3880_v49 = vor.u32 %v4160_v43, %v3877_v44  ;;  %v4008_v50 = vor.u32 %v4192_v45, %v4005_v46 }
  0x90   : > { %1049 = vmatmul.bf16.gmra.mxu1 %v3840_v51  ;;  %1129 = vmatmul.bf16.gmra.mxu3 %v3968_v52  ;;  %v4998_v51 = vld [vmem:[%s4923_s11] sm:$0xff] }
  0x91   : > { %v3883_v52 = vld [vmem:[%s4915_s20 + $0x80] sm:$0xf] }
  0x92   : > { %v3884_v60 = vor.u32 %v4163_v53, %v3883_v52  ;;  %v4167_v52 = vld [vmem:[%s4915_s20 + $0xa4] sm:$0xf0] }
  0x9f   : > { %885 = vmatmul.bf16.gmra.mxu0 %v3844_v61  ;;  %965 = vmatmul.bf16.gmra.mxu2 %v3972_v62  ;;  %v4012_v61 = vor.u32 %v4195_v55, %v4011_v54  ;;  %v4027_v54 = vld [vmem:[%s4915_s20 + $0x1a0] sm:$0xf]  ;;  %v4199_v55 = vld [vmem:[%s4915_s20 + $0x1a4] sm:$0xf0] }
  0xa0   : > { %1054 = vmatmul.bf16.gmra.mxu1 %v3848_v63  ;;  %1134 = vmatmul.bf16.gmra.mxu3 %v3976_v0  ;;  %v5009_v63 = vperm.slane %v4998_v51, 0  ;;  %v3888_v0 = vor.u32 %v4162_v56, %v3885_v57  ;;  %v4166_v56 = vld [vmem:[%s4915_s20 + $0xa4] sm:$0xf] }
  0xaf   : > { %890 = vmatmul.bf16.gmra.mxu0 %v3852_v9  ;;  %970 = vmatmul.bf16.gmra.mxu2 %v3980_v10 }
  0xb0   : > { %1059 = vmatmul.bf16.gmra.mxu1 %v3856_v11  ;;  %1139 = vmatmul.bf16.gmra.mxu3 %v3984_v12  ;;  %v5021_v12 = vld [vmem:[%s7310_s3] ss:$0 sm:$0xff] }
  0xbf   : > { %895 = vmatmul.bf16.gmra.mxu0 %v3860_v22  ;;  %975 = vmatmul.bf16.gmra.mxu2 %v3988_v23  ;;  %v3893_v23 = vld [vmem:[%s4915_s20 + $0x98] sm:$0xf0] }
  0xc0   : > { %1064 = vmatmul.bf16.gmra.mxu1 %v3864_v24  ;;  %1144 = vmatmul.bf16.gmra.mxu3 %v3992_v25  ;;  %v4196_v24 = vld [vmem:[%s4915_s20 + $0x194] sm:$0xf]  ;;  %v4021_v25 = vld [vmem:[%s4915_s20 + $0x198] sm:$0xf0]  ;;  %v3896_v32 = vor.u32 %v4164_v21, %v3893_v23 }
  0xc1   : > { %v4024_v33 = vor.u32 %v4196_v24, %v4021_v25 }
  0xcf   : > { %900 = vmatmul.bf16.gmra.mxu0 %v3868_v35  ;;  %980 = vmatmul.bf16.gmra.mxu2 %v3996_v36 }
  0xd0   : > { %1069 = vmatmul.bf16.gmra.mxu1 %v3872_v37  ;;  %1149 = vmatmul.bf16.gmra.mxu3 %v4000_v38 }
  0xdf   : > { %905 = vmatmul.bf16.gmra.mxu0 %v3876_v47  ;;  %985 = vmatmul.bf16.gmra.mxu2 %v4004_v48 }
  0xe0   : > { %1074 = vmatmul.bf16.gmra.mxu1 %v3880_v49  ;;  %1154 = vmatmul.bf16.gmra.mxu3 %v4008_v50  ;;  %v3899_v50 = vld [vmem:[%s4915_s20 + $0xa0] sm:$0xf] }
  0xec   : > { %v871_v62 = vpop.f32.mrf.mxu0 }
  0xed   : > { %v1040_v2 = vpop.f32.mrf.mxu1 }
  0xee   : > { %v1041_v3 = vadd.f32 %v1040_v2, %v871_v62 }
  0xef   : > { %910 = vmatmul.bf16.gmra.mxu0 %v3884_v60  ;;  %990 = vmatmul.bf16.gmra.mxu2 %v4012_v61  ;;  %v4198_v60 = vld [vmem:[%s4915_s20 + $0x1a4] sm:$0xf]  ;;  %v4029_v61 = vld [vmem:[%s4915_s20 + $0x1a8] sm:$0xf0] }
  0xf0   : > { %v1250_v5 = vadd.f32 %v5009_v63, %v1041_v3  ;;  %1079 = vmatmul.bf16.gmra.mxu1 %v3888_v0  ;;  %1159 = vmatmul.bf16.gmra.mxu3 %v4016_v1  ;;  %v1204_v0 = vrot.slane %v4998_v51, 1  ;;  %v3900_v3 = vor.u32 %v4167_v52, %v3899_v50 }
  0xf2   : > { %4318 = vtanh.f32 %v1250_v5  ;;  %v951_v6 = vpop.f32.mrf.mxu2  ;;  %v4028_v5 = vor.u32 %v4199_v55, %v4027_v54  ;;  %v5052_v16 = vperm.slane %v1204_v0, 0 }
  0xf3   : > { %v1120_v8 = vpop.f32.mrf.mxu3 }
  0xf4   : > { %v1121_v9 = vadd.f32 %v1120_v8, %v951_v6  ;;  %v873_v10 = vpop.f32.mrf.mxu0 }
  0xf5   : > { %v1042_v11 = vpop.f32.mrf.mxu1 }
  0xf6   : > { %v1282_v13 = vadd.f32 %v5016_v7, %v1121_v9  ;;  %v1043_v14 = vadd.f32 %v1042_v11, %v873_v10  ;;  %v3904_v9 = vor.u32 %v4166_v56, %v3901_v59  ;;  %v4032_v10 = vor.u32 %v4198_v60, %v4029_v61 }
  0xf8   : > { %v4319_v17 = vpop.eup %4318  ;;  %4320 = vtanh.f32 %v1282_v13  ;;  %v1251_v18 = vadd.f32 %v5009_v63, %v1043_v14 }
  0xf9   : > { %v1382_v22 = vmul.f32 %v4319_v17, %v5021_v12  ;;  %v1211_v17 = vrot.slane %v5012_v4, 1 }
  0xfa   : > { %4322 = vtanh.f32 %v1251_v18  ;;  %v953_v26 = vpop.f32.mrf.mxu2 }
  0xfb   : > { %v1122_v27 = vpop.f32.mrf.mxu3  ;;  %1446 = vadd.xlane.f32.xlu0 %v1382_v22 }
  0xfc   : > { %v1123_v30 = vadd.f32 %v1122_v27, %v953_v26  ;;  %v876_v31 = vpop.f32.mrf.mxu0 }
  0xfd   : > { %v1045_v34 = vpop.f32.mrf.mxu1 }
  0xfe   : > { %v4321_v35 = vpop.eup %4320  ;;  %v1283_v36 = vadd.f32 %v5016_v7, %v1123_v30  ;;  %v1046_v37 = vadd.f32 %v1045_v34, %v876_v31  ;;  %v4169_v30 = vld [vmem:[%s4915_s20 + $0xb4] sm:$0xf0]  ;;  %v4035_v31 = vld [vmem:[%s4915_s20 + $0x1b0] sm:$0xf] }
  0xff   : > { %915 = vmatmul.bf16.gmra.mxu0 %v3892_v28  ;;  %995 = vmatmul.bf16.gmra.mxu2 %v4020_v29  ;;  %v1414_v38 = vmul.f32 %v4321_v35, %v5021_v12  ;;  %v3907_v29 = vld [vmem:[%s4915_s20 + $0xb0] sm:$0xf]  ;;  %v3909_v35 = vld [vmem:[%s4915_s20 + $0xb8] sm:$0xf0] }
 0x100   : > { %v4323_v39 = vpop.eup %4322  ;;  %4324 = vtanh.f32 %v1283_v36  ;;  %v1252_v40 = vadd.f32 %v5009_v63, %v1046_v37  ;;  %1084 = vmatmul.bf16.gmra.mxu1 %v3896_v32  ;;  %1164 = vmatmul.bf16.gmra.mxu3 %v4024_v33  ;;  %v4201_v32 = vld [vmem:[%s4915_s20 + $0x1b4] sm:$0xf0]  ;;  %v4168_v33 = vld [vmem:[%s4915_s20 + $0xb4] sm:$0xf]  ;;  %v4037_v37 = vld [vmem:[%s4915_s20 + $0x1b8] sm:$0xf0] }
 0x101   : > { %1510 = vadd.xlane.f32.xlu2 %v1414_v38  ;;  %v1383_v41 = vmul.f32 %v4323_v39, %v5021_v12  ;;  %v4200_v36 = vld [vmem:[%s4915_s20 + $0x1b4] sm:$0xf] }
 0x102   : > { %4326 = vtanh.f32 %v1252_v40  ;;  %v956_v42 = vpop.f32.mrf.mxu2 }
 0x103   : > { %v1125_v43 = vpop.f32.mrf.mxu3  ;;  %1448 = vadd.xlane.f32.xlu0 %v1383_v41  ;;  %v3908_v41 = vor.u32 %v4169_v30, %v3907_v29 }
 0x104   : > { %v1126_v44 = vadd.f32 %v1125_v43, %v956_v42  ;;  %v878_v45 = vpop.f32.mrf.mxu0  ;;  %v4036_v42 = vor.u32 %v4201_v32, %v4035_v31  ;;  %v1212_v31 = vrot.slane %v5012_v4, 2 }
 0x105   : > { %v1047_v46 = vpop.f32.mrf.mxu1 }
 0x106   : > { %v4325_v47 = vpop.eup %4324  ;;  %v1284_v48 = vadd.f32 %v5016_v7, %v1126_v44  ;;  %v1048_v49 = vadd.f32 %v1047_v46, %v878_v45  ;;  %v3912_v46 = vor.u32 %v4168_v33, %v3909_v35 }
 0x107   : > { %v1415_v58 = vmul.f32 %v4325_v47, %v5021_v12  ;;  %v4040_v47 = vor.u32 %v4200_v36, %v4037_v37  ;;  %v5096_v36 = vperm.slane %v1212_v31, 0  ;;  %v3933_v31 = vld [vmem:[%s4915_s20 + $0xe8] sm:$0xf0] }
 0x108   : > { %v4327_v53 = vpop.eup %4326  ;;  %4328 = vtanh.f32 %v1284_v48  ;;  %v1253_v1 = vadd.f32 %v5009_v63, %v1048_v49 }
 0x109   : > { %v1384_v57 = vmul.f32 %v4327_v53, %v5021_v12 }
 0x10a   : > { %v958_v62 = vpop.f32.mrf.mxu2  ;;  %4330 = vtanh.f32 %v1253_v1 }
 0x10b   : > { %v1127_v2 = vpop.f32.mrf.mxu3  ;;  %1450 = vadd.xlane.f32.xlu1 %v1384_v57  ;;  %1512 = vadd.xlane.f32.xlu0 %v1415_v58 }
 0x10c   : > { %v1128_v6 = vadd.f32 %v1127_v2, %v958_v62  ;;  %v881_v8 = vpop.f32.mrf.mxu0 }
 0x10d   : > { %v1050_v11 = vpop.f32.mrf.mxu1 }
 0x10e   : > { %v4329_v13 = vpop.eup %4328  ;;  %v1285_v14 = vadd.f32 %v5016_v7, %v1128_v6  ;;  %v1051_v15 = vadd.f32 %v1050_v11, %v881_v8  ;;  %v5057_v7 = vperm.slane %v1211_v17, 0  ;;  %v3915_v6 = vld [vmem:[%s4915_s20 + $0xc0] sm:$0xf]  ;;  %v4171_v8 = vld [vmem:[%s4915_s20 + $0xc4] sm:$0xf0] }
 0x10f   : > { %920 = vmatmul.bf16.gmra.mxu0 %v3900_v3  ;;  %1000 = vmatmul.bf16.gmra.mxu2 %v4028_v5  ;;  %v1416_v63 = vmul.f32 %v4329_v13, %v5021_v12  ;;  %v1205_v5 = vrot.slane %v4998_v51, 2  ;;  %v4043_v11 = vld [vmem:[%s4915_s20 + $0x1c0] sm:$0xf]  ;;  %v4203_v13 = vld [vmem:[%s4915_s20 + $0x1c4] sm:$0xf0] }
 0x110   : > { %4332 = vtanh.f32 %v1285_v14  ;;  %1089 = vmatmul.bf16.gmra.mxu1 %v3904_v9  ;;  %1169 = vmatmul.bf16.gmra.mxu3 %v4032_v10  ;;  %v1254_v18 = vadd.f32 %v5052_v16, %v1051_v15  ;;  %v4331_v23 = vpop.eup %4330  ;;  %v4170_v14 = vld [vmem:[%s4915_s20 + $0xc4] sm:$0xf]  ;;  %v3917_v17 = vld [vmem:[%s4915_s20 + $0xc8] sm:$0xf0] }
 0x111   : > { %v1385_v34 = vmul.f32 %v4331_v23, %v5021_v12 }
 0x112   : > { %v961_v19 = vpop.f32.mrf.mxu2  ;;  %4334 = vtanh.f32 %v1254_v18  ;;  %v4045_v18 = vld [vmem:[%s4915_s20 + $0x1c8] sm:$0xf0] }
 0x113   : > { %v1130_v20 = vpop.f32.mrf.mxu3  ;;  %1514 = vadd.xlane.f32.xlu1 %v1416_v63  ;;  %v4202_v63 = vld [vmem:[%s4915_s20 + $0x1c4] sm:$0xf] }
 0x114   : > { %v1131_v21 = vadd.f32 %v1130_v20, %v961_v19  ;;  %v883_v22 = vpop.f32.mrf.mxu0 }
 0x115   : > { %v1052_v24 = vpop.f32.mrf.mxu1 }
 0x116   : > { %v4333_v25 = vpop.eup %4332  ;;  %v1286_v26 = vadd.f32 %v5057_v7, %v1131_v21  ;;  %v1053_v27 = vadd.f32 %v1052_v24, %v883_v22  ;;  %v3916_v21 = vor.u32 %v4171_v8, %v3915_v6  ;;  %v4044_v22 = vor.u32 %v4203_v13, %v4043_v11 }
 0x117   : > { %v1417_v28 = vmul.f32 %v4333_v25, %v5021_v12  ;;  %v5089_v25 = vperm.slane %v1205_v5, 0 }
 0x118   : > { %4336 = vtanh.f32 %v1286_v26  ;;  %v1255_v38 = vadd.f32 %v5052_v16, %v1053_v27  ;;  %v4335_v43 = vpop.eup %4334  ;;  %v4048_v26 = vor.u32 %v4202_v63, %v4045_v18 }
 0x119   : > { %1516 = vadd.xlane.f32.xlu2 %v1417_v28  ;;  %v1386_v53 = vmul.f32 %v4335_v43, %v5021_v12 }
 0x11a   : > { %v963_v39 = vpop.f32.mrf.mxu2  ;;  %4338 = vtanh.f32 %v1255_v38 }
 0x11b   : > { %v1132_v40 = vpop.f32.mrf.mxu3  ;;  %1452 = vadd.xlane.f32.xlu1 %v1385_v34 }
 0x11c   : > { %v1133_v44 = vadd.f32 %v1132_v40, %v963_v39  ;;  %v886_v45 = vpop.f32.mrf.mxu0 }
 0x11d   : > { %v1055_v48 = vpop.f32.mrf.mxu1 }
 0x11e   : > { %v4337_v49 = vpop.eup %4336  ;;  %v1287_v50 = vadd.f32 %v5057_v7, %v1133_v44  ;;  %v1056_v52 = vadd.f32 %v1055_v48, %v886_v45  ;;  %v3923_v45 = vld [vmem:[%s4915_s20 + $0xd0] sm:$0xf] }
 0x11f   : > { %925 = vmatmul.bf16.gmra.mxu0 %v3908_v41  ;;  %1005 = vmatmul.bf16.gmra.mxu2 %v4036_v42  ;;  %v1418_v54 = vmul.f32 %v4337_v49, %v5021_v12  ;;  %v4051_v49 = vld [vmem:[%s4915_s20 + $0x1d0] sm:$0xf] }
 0x120   : > { %4340 = vtanh.f32 %v1287_v50  ;;  %v1256_v55 = vadd.f32 %v5052_v16, %v1056_v52  ;;  %1094 = vmatmul.bf16.gmra.mxu1 %v3912_v46  ;;  %1174 = vmatmul.bf16.gmra.mxu3 %v4040_v47  ;;  %v4339_v58 = vpop.eup %4338  ;;  %v4173_v46 = vld [vmem:[%s4915_s20 + $0xd4] sm:$0xf0]  ;;  %v4172_v52 = vld [vmem:[%s4915_s20 + $0xd4] sm:$0xf] }
 0x121   : > { %1454 = vadd.xlane.f32.xlu2 %v1386_v53  ;;  %1518 = vadd.xlane.f32.xlu0 %v1418_v54  ;;  %v1387_v2 = vmul.f32 %v4339_v58, %v5021_v12  ;;  %v4205_v50 = vld [vmem:[%s4915_s20 + $0x1d4] sm:$0xf0]  ;;  %v3925_v54 = vld [vmem:[%s4915_s20 + $0xd8] sm:$0xf0] }
 0x122   : > { %4342 = vtanh.f32 %v1256_v55  ;;  %v966_v56 = vpop.f32.mrf.mxu2  ;;  %v4204_v55 = vld [vmem:[%s4915_s20 + $0x1d4] sm:$0xf] }
 0x123   : > { %v1135_v57 = vpop.f32.mrf.mxu3 }
 0x124   : > { %v1136_v59 = vadd.f32 %v1135_v57, %v966_v56  ;;  %v888_v60 = vpop.f32.mrf.mxu0  ;;  %v4053_v56 = vld [vmem:[%s4915_s20 + $0x1d8] sm:$0xf0] }
 0x125   : > { %v1057_v61 = vpop.f32.mrf.mxu1 }
 0x126   : > { %v4341_v62 = vpop.eup %4340  ;;  %v1288_v0 = vadd.f32 %v5057_v7, %v1136_v59  ;;  %v1058_v1 = vadd.f32 %v1057_v61, %v888_v60  ;;  %v3924_v59 = vor.u32 %v4173_v46, %v3923_v45  ;;  %v4052_v60 = vor.u32 %v4205_v50, %v4051_v49 }
 0x127   : > { %v1419_v3 = vmul.f32 %v4341_v62, %v5021_v12  ;;  %v1213_v46 = vrot.slane %v5012_v4, 3 }
 0x128   : > { %v4343_v9 = vpop.eup %4342  ;;  %4344 = vtanh.f32 %v1288_v0  ;;  %v1257_v10 = vadd.f32 %v5052_v16, %v1058_v1  ;;  %v3920_v16 = vor.u32 %v4170_v14, %v3917_v17  ;;  %v3928_v0 = vor.u32 %v4172_v52, %v3925_v54 }
 0x129   : > { %1456 = vadd.xlane.f32.xlu2 %v1387_v2  ;;  %1520 = vadd.xlane.f32.xlu1 %v1419_v3  ;;  %v1388_v15 = vmul.f32 %v4343_v9, %v5021_v12  ;;  %v4056_v1 = vor.u32 %v4204_v55, %v4053_v56  ;;  %v5134_v52 = vperm.slane %v1213_v46, 0 }
 0x12a   : > { %4346 = vtanh.f32 %v1257_v10  ;;  %v968_v19 = vpop.f32.mrf.mxu2 }
 0x12b   : > { %v1137_v20 = vpop.f32.mrf.mxu3  ;;  %1458 = vadd.xlane.f32.xlu0 %v1388_v15 }
 0x12c   : > { %v1138_v23 = vadd.f32 %v1137_v20, %v968_v19  ;;  %v891_v24 = vpop.f32.mrf.mxu0 }
 0x12d   : > { %v1060_v27 = vpop.f32.mrf.mxu1 }
 0x12e   : > { %v4345_v28 = vpop.eup %4344  ;;  %v1289_v29 = vadd.f32 %v5057_v7, %v1138_v23  ;;  %v1061_v30 = vadd.f32 %v1060_v27, %v891_v24  ;;  %v3931_v23 = vld [vmem:[%s4915_s20 + $0xe0] sm:$0xf]  ;;  %v4175_v24 = vld [vmem:[%s4915_s20 + $0xe4] sm:$0xf0] }
 0x12f   : > { %930 = vmatmul.bf16.gmra.mxu0 %v3916_v21  ;;  %1010 = vmatmul.bf16.gmra.mxu2 %v4044_v22  ;;  %v1420_v32 = vmul.f32 %v4345_v28, %v5021_v12  ;;  %v1206_v22 = vrot.slane %v4998_v51, 3  ;;  %v4059_v27 = vld [vmem:[%s4915_s20 + $0x1e0] sm:$0xf]  ;;  %v4207_v28 = vld [vmem:[%s4915_s20 + $0x1e4] sm:$0xf0] }
 0x130   : > { %v4347_v33 = vpop.eup %4346  ;;  %4348 = vtanh.f32 %v1289_v29  ;;  %v1258_v34 = vadd.f32 %v5089_v25, %v1061_v30  ;;  %1099 = vmatmul.bf16.gmra.mxu1 %v3920_v16  ;;  %1179 = vmatmul.bf16.gmra.mxu3 %v4048_v26  ;;  %v4174_v29 = vld [vmem:[%s4915_s20 + $0xe4] sm:$0xf] }
 0x131   : > { %1522 = vadd.xlane.f32.xlu2 %v1420_v32  ;;  %v1389_v35 = vmul.f32 %v4347_v33, %v5021_v12  ;;  %v4206_v32 = vld [vmem:[%s4915_s20 + $0x1e4] sm:$0xf]  ;;  %v4061_v33 = vld [vmem:[%s4915_s20 + $0x1e8] sm:$0xf0] }
 0x132   : > { %4350 = vtanh.f32 %v1258_v34  ;;  %v971_v7 = vpop.f32.mrf.mxu2 }
 0x133   : > { %v1140_v37 = vpop.f32.mrf.mxu3  ;;  %1460 = vadd.xlane.f32.xlu1 %v1389_v35 }
 0x134   : > { %v1141_v38 = vadd.f32 %v1140_v37, %v971_v7  ;;  %v893_v39 = vpop.f32.mrf.mxu0  ;;  %v3932_v7 = vor.u32 %v4175_v24, %v3931_v23  ;;  %v4060_v37 = vor.u32 %v4207_v28, %v4059_v27 }
 0x135   : > { %v1062_v40 = vpop.f32.mrf.mxu1 }
 0x136   : > { %v4349_v41 = vpop.eup %4348  ;;  %v1290_v42 = vadd.f32 %v5096_v36, %v1141_v38  ;;  %v1063_v43 = vadd.f32 %v1062_v40, %v893_v39  ;;  %v5127_v40 = vperm.slane %v1206_v22, 0 }
 0x137   : > { %v1421_v44 = vmul.f32 %v4349_v41, %v5021_v12  ;;  %v4064_v41 = vor.u32 %v4206_v32, %v4061_v33 }
 0x138   : > { %v4351_v47 = vpop.eup %4350  ;;  %4352 = vtanh.f32 %v1290_v42  ;;  %v1259_v48 = vadd.f32 %v5089_v25, %v1063_v43 }
 0x139   : > { %1524 = vadd.xlane.f32.xlu0 %v1421_v44  ;;  %v1390_v53 = vmul.f32 %v4351_v47, %v5021_v12 }
 0x13a   : > { %4354 = vtanh.f32 %v1259_v48  ;;  %v973_v57 = vpop.f32.mrf.mxu2 }
 0x13b   : > { %v1142_v58 = vpop.f32.mrf.mxu3  ;;  %1462 = vadd.xlane.f32.xlu2 %v1390_v53 }
 0x13c   : > { %v1143_v61 = vadd.f32 %v1142_v58, %v973_v57  ;;  %v896_v62 = vpop.f32.mrf.mxu0 }
 0x13d   : > { %v1065_v2 = vpop.f32.mrf.mxu1 }
 0x13e   : > { %v4353_v3 = vpop.eup %4352  ;;  %v1291_v5 = vadd.f32 %v5096_v36, %v1143_v61  ;;  %v1066_v6 = vadd.f32 %v1065_v2, %v896_v62  ;;  %v3939_v61 = vld [vmem:[%s4915_s20 + $0xf0] sm:$0xf]  ;;  %v4177_v62 = vld [vmem:[%s4915_s20 + $0xf4] sm:$0xf0] }
 0x13f   : > { %935 = vmatmul.bf16.gmra.mxu0 %v3924_v59  ;;  %1015 = vmatmul.bf16.gmra.mxu2 %v4052_v60  ;;  %v1422_v8 = vmul.f32 %v4353_v3, %v5021_v12  ;;  %v4067_v2 = vld [vmem:[%s4915_s20 + $0x1f0] sm:$0xf]  ;;  %v4209_v3 = vld [vmem:[%s4915_s20 + $0x1f4] sm:$0xf0] }
 0x140   : > { %v4355_v9 = vpop.eup %4354  ;;  %4356 = vtanh.f32 %v1291_v5  ;;  %v1260_v10 = vadd.f32 %v5089_v25, %v1066_v6  ;;  %1104 = vmatmul.bf16.gmra.mxu1 %v3928_v0  ;;  %1184 = vmatmul.bf16.gmra.mxu3 %v4056_v1  ;;  %v4176_v5 = vld [vmem:[%s4915_s20 + $0xf4] sm:$0xf] }
 0x141   : > { %1526 = vadd.xlane.f32.xlu1 %v1422_v8  ;;  %v1391_v11 = vmul.f32 %v4355_v9, %v5021_v12  ;;  %v3941_v8 = vld [vmem:[%s4915_s20 + $0xf8] sm:$0xf0]  ;;  %v4208_v9 = vld [vmem:[%s4915_s20 + $0x1f4] sm:$0xf] }
 0x142   : > { %4358 = vtanh.f32 %v1260_v10  ;;  %v976_v13 = vpop.f32.mrf.mxu2  ;;  %v4069_v10 = vld [vmem:[%s4915_s20 + $0x1f8] sm:$0xf0] }
 0x143   : > { %v1145_v14 = vpop.f32.mrf.mxu3  ;;  %1464 = vadd.xlane.f32.xlu0 %v1391_v11 }
 0x144   : > { %v1146_v15 = vadd.f32 %v1145_v14, %v976_v13  ;;  %v898_v17 = vpop.f32.mrf.mxu0  ;;  %v3940_v14 = vor.u32 %v4177_v62, %v3939_v61 }
 0x145   : > { %v1067_v63 = vpop.f32.mrf.mxu1 }
 0x146   : > { %v4357_v18 = vpop.eup %4356  ;;  %v1292_v19 = vadd.f32 %v5096_v36, %v1146_v15  ;;  %v1068_v20 = vadd.f32 %v1067_v63, %v898_v17  ;;  %v4068_v15 = vor.u32 %v4209_v3, %v4067_v2 }
 0x147   : > { %v1423_v21 = vmul.f32 %v4357_v18, %v5021_v12  ;;  %v3944_v18 = vor.u32 %v4176_v5, %v3941_v8 }
 0x148   : > { %v4359_v16 = vpop.eup %4358  ;;  %4360 = vtanh.f32 %v1292_v19  ;;  %v1261_v26 = vadd.f32 %v5089_v25, %v1068_v20  ;;  %v3936_v25 = vor.u32 %v4174_v29, %v3933_v31  ;;  %v4072_v19 = vor.u32 %v4208_v9, %v4069_v10 }
 0x149   : > { %1528 = vadd.xlane.f32.xlu2 %v1423_v21  ;;  %v1392_v30 = vmul.f32 %v4359_v16, %v5021_v12 }
 0x14a   : > { %4362 = vtanh.f32 %v1261_v26  ;;  %v978_v34 = vpop.f32.mrf.mxu2 }
 0x14b   : > { %v1147_v35 = vpop.f32.mrf.mxu3  ;;  %1466 = vadd.xlane.f32.xlu1 %v1392_v30 }
 0x14c   : > { %v1148_v38 = vadd.f32 %v1147_v35, %v978_v34  ;;  %v901_v39 = vpop.f32.mrf.mxu0 }
 0x14d   : > { %v1070_v42 = vpop.f32.mrf.mxu1 }
 0x14e   : > { %v4361_v43 = vpop.eup %4360  ;;  %v1293_v44 = vadd.f32 %v5096_v36, %v1148_v38  ;;  %v1071_v45 = vadd.f32 %v1070_v42, %v901_v39  ;;  %v1207_v39 = vrot.slane %v4998_v51, 4 }
 0x14f   : > { %940 = vmatmul.bf16.gmra.mxu0 %v3932_v7  ;;  %1020 = vmatmul.bf16.gmra.mxu2 %v4060_v37  ;;  %v1424_v47 = vmul.f32 %v4361_v43, %v5021_v12 }
 0x150   : > { %v4363_v48 = vpop.eup %4362  ;;  %4364 = vtanh.f32 %v1293_v44  ;;  %v1262_v49 = vadd.f32 %v5127_v40, %v1071_v45  ;;  %1109 = vmatmul.bf16.gmra.mxu1 %v3936_v25  ;;  %1189 = vmatmul.bf16.gmra.mxu3 %v4064_v41  ;;  %v1222_v45 = vperm.slane %v1207_v39, 0 }
 0x151   : > { %1530 = vadd.xlane.f32.xlu0 %v1424_v47  ;;  %v1393_v50 = vmul.f32 %v4363_v48, %v5021_v12 }
 0x152   : > { %4366 = vtanh.f32 %v1262_v49  ;;  %v981_v36 = vpop.f32.mrf.mxu2 }
 0x153   : > { %v1150_v53 = vpop.f32.mrf.mxu3  ;;  %1468 = vadd.xlane.f32.xlu2 %v1393_v50  ;;  %v1214_v50 = vrot.slane %v5012_v4, 4 }
 0x154   : > { %v1151_v54 = vadd.f32 %v1150_v53, %v981_v36  ;;  %v903_v55 = vpop.f32.mrf.mxu0 }
 0x155   : > { %v1072_v56 = vpop.f32.mrf.mxu1 }
 0x156   : > { %v4365_v57 = vpop.eup %4364  ;;  %v1294_v58 = vadd.f32 %v5134_v52, %v1151_v54  ;;  %v1073_v59 = vadd.f32 %v1072_v56, %v903_v55  ;;  %v1230_v56 = vperm.slane %v1214_v50, 0 }
 0x157   : > { %v1425_v60 = vmul.f32 %v4365_v57, %v5021_v12 }
 0x158   : > { %v4367_v0 = vpop.eup %4366  ;;  %4368 = vtanh.f32 %v1294_v58  ;;  %v1263_v1 = vadd.f32 %v5127_v40, %v1073_v59 }
 0x159   : > { %1532 = vadd.xlane.f32.xlu1 %v1425_v60  ;;  %v1394_v6 = vmul.f32 %v4367_v0, %v5021_v12 }
 0x15a   : > { %4370 = vtanh.f32 %v1263_v1  ;;  %v983_v11 = vpop.f32.mrf.mxu2 }
 0x15b   : > { %v1152_v13 = vpop.f32.mrf.mxu3  ;;  %1470 = vadd.xlane.f32.xlu0 %v1394_v6 }
 0x15c   : > { %v1153_v17 = vadd.f32 %v1152_v13, %v983_v11  ;;  %v906_v63 = vpop.f32.mrf.mxu0 }
 0x15d   : > { %v1075_v20 = vpop.f32.mrf.mxu1 }
 0x15e   : > { %v4369_v21 = vpop.eup %4368  ;;  %v1295_v22 = vadd.f32 %v5134_v52, %v1153_v17  ;;  %v1076_v23 = vadd.f32 %v1075_v20, %v906_v63 }
 0x15f   : > { %945 = vmatmul.bf16.gmra.mxu0 %v3940_v14  ;;  %1025 = vmatmul.bf16.gmra.mxu2 %v4068_v15  ;;  %v1426_v24 = vmul.f32 %v4369_v21, %v5021_v12 }
 0x160   : > { %v4371_v16 = vpop.eup %4370  ;;  %4372 = vtanh.f32 %v1295_v22  ;;  %v1264_v26 = vadd.f32 %v5127_v40, %v1076_v23  ;;  %1114 = vmatmul.bf16.gmra.mxu1 %v3944_v18  ;;  %1194 = vmatmul.bf16.gmra.mxu3 %v4072_v19 }
 0x161   : > { %1534 = vadd.xlane.f32.xlu2 %v1426_v24  ;;  %v1395_v27 = vmul.f32 %v4371_v16, %v5021_v12 }
 0x162   : > { %4374 = vtanh.f32 %v1264_v26  ;;  %v986_v28 = vpop.f32.mrf.mxu2 }
 0x163   : > { %v1155_v29 = vpop.f32.mrf.mxu3  ;;  %1472 = vadd.xlane.f32.xlu1 %v1395_v27 }
 0x164   : > { %v1156_v30 = vadd.f32 %v1155_v29, %v986_v28  ;;  %v908_v31 = vpop.f32.mrf.mxu0 }
 0x165   : > { %v1077_v32 = vpop.f32.mrf.mxu1 }
 0x166   : > { %v4373_v33 = vpop.eup %4372  ;;  %v1296_v34 = vadd.f32 %v5134_v52, %v1156_v30  ;;  %v1078_v35 = vadd.f32 %v1077_v32, %v908_v31  ;;  %v1208_v30 = vrot.slane %v4998_v51, 5 }
 0x167   : > { %v1427_v7 = vmul.f32 %v4373_v33, %v5021_v12 }
 0x168   : > { %v4375_v37 = vpop.eup %4374  ;;  %4376 = vtanh.f32 %v1296_v34  ;;  %v1265_v38 = vadd.f32 %v5127_v40, %v1078_v35 }
 0x169   : > { %1536 = vadd.xlane.f32.xlu0 %v1427_v7  ;;  %v1396_v25 = vmul.f32 %v4375_v37, %v5021_v12  ;;  %v1223_v7 = vperm.slane %v1208_v30, 0 }
 0x16a   : > { %4378 = vtanh.f32 %v1265_v38  ;;  %v988_v41 = vpop.f32.mrf.mxu2 }
 0x16b   : > { %v1157_v42 = vpop.f32.mrf.mxu3  ;;  %1474 = vadd.xlane.f32.xlu2 %v1396_v25 }
 0x16c   : > { %v1158_v43 = vadd.f32 %v1157_v42, %v988_v41  ;;  %v911_v44 = vpop.f32.mrf.mxu0  ;;  %v1215_v41 = vrot.slane %v5012_v4, 5 }
 0x16d   : > { %v1080_v46 = vpop.f32.mrf.mxu1 }
 0x16e   : > { %v4377_v47 = vpop.eup %4376  ;;  %v1297_v48 = vadd.f32 %v5134_v52, %v1158_v43  ;;  %v1081_v49 = vadd.f32 %v1080_v46, %v911_v44  ;;  %v1231_v46 = vperm.slane %v1215_v41, 0 }
 0x16f   : > { %v1428_v40 = vmul.f32 %v4377_v47, %v5021_v12 }
 0x170   : > { %v4379_v36 = vpop.eup %4378  ;;  %4380 = vtanh.f32 %v1297_v48  ;;  %v1266_v53 = vadd.f32 %v1222_v45, %v1081_v49 }
 0x171   : > { %1538 = vadd.xlane.f32.xlu1 %v1428_v40  ;;  %v1397_v54 = vmul.f32 %v4379_v36, %v5021_v12 }
 0x172   : > { %4382 = vtanh.f32 %v1266_v53  ;;  %v991_v55 = vpop.f32.mrf.mxu2 }
 0x173   : > { %v1160_v57 = vpop.f32.mrf.mxu3  ;;  %1476 = vadd.xlane.f32.xlu0 %v1397_v54 }
 0x174   : > { %v1161_v58 = vadd.f32 %v1160_v57, %v991_v55  ;;  %v913_v59 = vpop.f32.mrf.mxu0 }
 0x175   : > { %v1082_v60 = vpop.f32.mrf.mxu1 }
 0x176   : > { %v4381_v52 = vpop.eup %4380  ;;  %v1298_v61 = vadd.f32 %v1230_v56, %v1161_v58  ;;  %v1083_v62 = vadd.f32 %v1082_v60, %v913_v59 }
 0x177   : > { %v1429_v0 = vmul.f32 %v4381_v52, %v5021_v12 }
 0x178   : > { %v4383_v1 = vpop.eup %4382  ;;  %4384 = vtanh.f32 %v1298_v61  ;;  %v1267_v2 = vadd.f32 %v1222_v45, %v1083_v62 }
 0x179   : > { %1540 = vadd.xlane.f32.xlu2 %v1429_v0  ;;  %v1398_v3 = vmul.f32 %v4383_v1, %v5021_v12 }
 0x17a   : > { %4386 = vtanh.f32 %v1267_v2  ;;  %v993_v5 = vpop.f32.mrf.mxu2 }
 0x17b   : > { %v1162_v6 = vpop.f32.mrf.mxu3  ;;  %1478 = vadd.xlane.f32.xlu1 %v1398_v3 }
 0x17c   : > { %v1163_v8 = vadd.f32 %v1162_v6, %v993_v5  ;;  %v916_v9 = vpop.f32.mrf.mxu0 }
 0x17d   : > { %v1085_v10 = vpop.f32.mrf.mxu1 }
 0x17e   : > { %v4385_v11 = vpop.eup %4384  ;;  %v1299_v13 = vadd.f32 %v1230_v56, %v1163_v8  ;;  %v1086_v14 = vadd.f32 %v1085_v10, %v916_v9 }
 0x17f   : > { %v1430_v15 = vmul.f32 %v4385_v11, %v5021_v12 }
 0x180   : > { %v4387_v17 = vpop.eup %4386  ;;  %4388 = vtanh.f32 %v1299_v13  ;;  %v1268_v63 = vadd.f32 %v1222_v45, %v1086_v14 }
 0x181   : > { %1542 = vadd.xlane.f32.xlu0 %v1430_v15  ;;  %v1399_v18 = vmul.f32 %v4387_v17, %v5021_v12 }
 0x182   : > { %4390 = vtanh.f32 %v1268_v63  ;;  %v996_v19 = vpop.f32.mrf.mxu2 }
 0x183   : > { %v1165_v20 = vpop.f32.mrf.mxu3  ;;  %1480 = vadd.xlane.f32.xlu2 %v1399_v18 }
 0x184   : > { %v1166_v21 = vadd.f32 %v1165_v20, %v996_v19  ;;  %v918_v22 = vpop.f32.mrf.mxu0  ;;  %v5177_v19 = vld [vmem:[%s4923_s11] sm:$0xff] }
 0x185   : > { %v1087_v23 = vpop.f32.mrf.mxu1  ;;  %v1209_v20 = vrot.slane %v5177_v19, 6 }
 0x186   : > { %v4389_v24 = vpop.eup %4388  ;;  %v1300_v16 = vadd.f32 %v1230_v56, %v1166_v21  ;;  %v1088_v26 = vadd.f32 %v1087_v23, %v918_v22 }
 0x187   : > { %v1431_v27 = vmul.f32 %v4389_v24, %v5021_v12 }
 0x188   : > { %v4391_v28 = vpop.eup %4390  ;;  %4392 = vtanh.f32 %v1300_v16  ;;  %v1269_v29 = vadd.f32 %v1222_v45, %v1088_v26  ;;  %v5181_v16 = vperm.slane %v1209_v20, 0 }
 0x189   : > { %1544 = vadd.xlane.f32.xlu1 %v1431_v27  ;;  %v1400_v31 = vmul.f32 %v4391_v28, %v5021_v12 }
 0x18a   : > { %4394 = vtanh.f32 %v1269_v29  ;;  %v998_v32 = vpop.f32.mrf.mxu2 }
 0x18b   : > { %v1167_v33 = vpop.f32.mrf.mxu3  ;;  %1482 = vadd.xlane.f32.xlu0 %v1400_v31  ;;  %v5184_v31 = vld [vmem:[%s4923_s11 + $0x8] sm:$0xff]  ;;  %s4687_s11 = scalar_lea.hbm %s4686_s9, 32 }
 0x18c   : > { %v1168_v34 = vadd.f32 %v1167_v33, %v998_v32  ;;  %v921_v35 = vpop.f32.mrf.mxu0  ;;  %v1216_v32 = vrot.slane %v5184_v31, 6  ;;  %p4688_p4 = scmp.ne.s32.totalorder %s4686_s9, %s4687_s11  ;;  %p4693_p7 = scmp.lt.s32.totalorder %s4691_s21, %s4687_s11 }
 0x18d   : > { %v1090_v37 = vpop.f32.mrf.mxu1 }
 0x18e   : > { %v4393_v38 = vpop.eup %4392  ;;  %v1301_v39 = vadd.f32 %v1230_v56, %v1168_v34  ;;  %v1091_v25 = vadd.f32 %v1090_v37, %v921_v35  ;;  %p4689_p8 = pnand %p4688_p4, %p4859_p5  ;;  %p4694_p10 = por %p4693_p7, %p4692_p9 }
 0x18f   : > { %v1432_v42 = vmul.f32 %v4393_v38, %v5021_v12  ;;  %v5190_v38 = vperm.slane %v1216_v32, 0 }
 0x190   : > { %v4395_v43 = vpop.eup %4394  ;;  %4396 = vtanh.f32 %v1301_v39  ;;  %v1270_v51 = vadd.f32 %v1223_v7, %v1091_v25  ;;  %p4690_p2 = pneg %p4689_p8 }
 0x191   : > { %1546 = vadd.xlane.f32.xlu2 %v1432_v42  ;;  %v1401_v44 = vmul.f32 %v4395_v43, %v5021_v12 }
 0x192   : > { %4398 = vtanh.f32 %v1270_v51  ;;  %v1001_v45 = vpop.f32.mrf.mxu2  ;;  %p4695_p11 = pnand %p4694_p10, %p4690_p2 }
 0x193   : > { %v1170_v47 = vpop.f32.mrf.mxu3  ;;  %1484 = vadd.xlane.f32.xlu1 %v1401_v44 }
 0x194   : > { %v1171_v48 = vadd.f32 %v1170_v47, %v1001_v45  ;;  %v923_v49 = vpop.f32.mrf.mxu0  ;;  %v5193_v45 = vpop.xlane.xlu0 %1446 }
 0x195   : > { %v1092_v50 = vpop.f32.mrf.mxu1 }
 0x196   : > { %v4397_v40 = vpop.eup %4396  ;;  %v1302_v36 = vadd.f32 %v1231_v46, %v1171_v48  ;;  %v1093_v53 = vadd.f32 %v1092_v50, %v923_v49  ;;  %v5203_v50 = vpop.permute.xlu1 %1578 }
 0x197   : > { %v1433_v4 = vmul.f32 %v4397_v40, %v5021_v12 }
 0x198   : > { %v4399_v54 = vpop.eup %4398  ;;  %4400 = vtanh.f32 %v1302_v36  ;;  %v1271_v55 = vadd.f32 %v1223_v7, %v1093_v53 }
 0x199   : > { %1548 = vadd.xlane.f32.xlu0 %v1433_v4  ;;  %v1402_v56 = vmul.f32 %v4399_v54, %v5021_v12 }
 0x19a   : > { %4402 = vtanh.f32 %v1271_v55  ;;  %v1003_v57 = vpop.f32.mrf.mxu2 }
 0x19b   : > { %v1172_v58 = vpop.f32.mrf.mxu3  ;;  %1486 = vadd.xlane.f32.xlu2 %v1402_v56  ;;  %v5205_v56 = vpop.xlane.xlu2 %1510 }
 0x19c   : > { %v1173_v59 = vadd.f32 %v1172_v58, %v1003_v57  ;;  %v926_v60 = vpop.f32.mrf.mxu0 }
 0x19d   : > { %v1095_v52 = vpop.f32.mrf.mxu1 }
 0x19e   : > { %v4401_v61 = vpop.eup %4400  ;;  %v1303_v62 = vadd.f32 %v1231_v46, %v1173_v59  ;;  %v1096_v0 = vadd.f32 %v1095_v52, %v926_v60 }
 0x19f   : > { %v1434_v1 = vmul.f32 %v4401_v61, %v5021_v12  ;;  %v5210_v61 = vpop.xlane.xlu0 %1448 }
 0x1a0   : > { %v4403_v2 = vpop.eup %4402  ;;  %4404 = vtanh.f32 %v1303_v62  ;;  %v1272_v3 = vadd.f32 %v1223_v7, %v1096_v0  ;;  %v5213_v0 = vpop.xlane.xlu1 %1450 }
 0x1a1   : > { %1550 = vadd.xlane.f32.xlu1 %v1434_v1  ;;  %v1403_v5 = vmul.f32 %v4403_v2, %v5021_v12 }
 0x1a2   : > { %4406 = vtanh.f32 %v1272_v3  ;;  %v1006_v6 = vpop.f32.mrf.mxu2 }
 0x1a3   : > { %v1175_v8 = vpop.f32.mrf.mxu3  ;;  %1488 = vadd.xlane.f32.xlu0 %v1403_v5 }
 0x1a4   : > { %v1176_v9 = vadd.f32 %v1175_v8, %v1006_v6  ;;  %v928_v10 = vpop.f32.mrf.mxu0 }
 0x1a5   : > { %v1097_v11 = vpop.f32.mrf.mxu1 }
 0x1a6   : > { %v4405_v13 = vpop.eup %4404  ;;  %v1304_v14 = vadd.f32 %v1231_v46, %v1176_v9  ;;  %v1098_v15 = vadd.f32 %v1097_v11, %v928_v10  ;;  %v5215_v9 = vpop.xlane.xlu2 %1516 }
 0x1a7   : > { %v1435_v17 = vmul.f32 %v4405_v13, %v5021_v12 }
 0x1a8   : > { %v4407_v63 = vpop.eup %4406  ;;  %4408 = vtanh.f32 %v1304_v14  ;;  %v1273_v18 = vadd.f32 %v1223_v7, %v1098_v15 }
 0x1a9   : > { %1552 = vadd.xlane.f32.xlu2 %v1435_v17  ;;  %v1404_v21 = vmul.f32 %v4407_v63, %v5021_v12  ;;  %v1210_v17 = vrot.slane %v5177_v19, 7 }
 0x1aa   : > { %4410 = vtanh.f32 %v1273_v18  ;;  %v1008_v22 = vpop.f32.mrf.mxu2 }
 0x1ab   : > { %v1177_v23 = vpop.f32.mrf.mxu3  ;;  %1490 = vadd.xlane.f32.xlu1 %v1404_v21  ;;  %v5222_v21 = vpop.xlane.xlu0 %1512 }
 0x1ac   : > { %v1178_v24 = vadd.f32 %v1177_v23, %v1008_v22  ;;  %v931_v26 = vpop.f32.mrf.mxu0  ;;  %v5224_v22 = vpop.xlane.xlu1 %1514 }
 0x1ad   : > { %v1100_v27 = vpop.f32.mrf.mxu1 }
 0x1ae   : > { %v4409_v28 = vpop.eup %4408  ;;  %v1305_v29 = vadd.f32 %v1231_v46, %v1178_v24  ;;  %v1101_v30 = vadd.f32 %v1100_v27, %v931_v26  ;;  %v5198_v46 = vld [vmem:[%s7310_s3] ss:$0 sm:$0xff]  ;;  %v5226_v24 = vperm.slane %v1210_v17, 0 }
 0x1af   : > { %v1436_v33 = vmul.f32 %v4409_v28, %v5021_v12 }
 0x1b0   : > { %v4411_v34 = vpop.eup %4410  ;;  %4412 = vtanh.f32 %v1305_v29  ;;  %v1274_v35 = vadd.f32 %v5181_v16, %v1101_v30  ;;  %v1217_v29 = vrot.slane %v5184_v31, 7 }
 0x1b1   : > { %1554 = vadd.xlane.f32.xlu0 %v1436_v33  ;;  %v1405_v7 = vmul.f32 %v4411_v34, %v5021_v12  ;;  %v5231_v33 = vpop.xlane.xlu2 %1454 }
 0x1b2   : > { %4414 = vtanh.f32 %v1274_v35  ;;  %v1011_v37 = vpop.f32.mrf.mxu2 }
 0x1b3   : > { %v1180_v39 = vpop.f32.mrf.mxu3  ;;  %1492 = vadd.xlane.f32.xlu2 %v1405_v7 }
 0x1b4   : > { %v1181_v25 = vadd.f32 %v1180_v39, %v1011_v37  ;;  %v933_v41 = vpop.f32.mrf.mxu0  ;;  %v5235_v37 = vperm.slane %v1217_v29, 0 }
 0x1b5   : > { %v1102_v42 = vpop.f32.mrf.mxu1 }
 0x1b6   : > { %v4413_v43 = vpop.eup %4412  ;;  %v1306_v51 = vadd.f32 %v5190_v38, %v1181_v25  ;;  %v1103_v44 = vadd.f32 %v1102_v42, %v933_v41 }
 0x1b7   : > { %v1437_v12 = vmul.f32 %v5198_v46, %v4413_v43  ;;  %v5239_v43 = vpop.xlane.xlu1 %1452 }
 0x1b8   : > { %v4415_v47 = vpop.eup %4414  ;;  %4416 = vtanh.f32 %v1306_v51  ;;  %v1275_v48 = vadd.f32 %v5181_v16, %v1103_v44 }
 0x1b9   : > { %1556 = vadd.xlane.f32.xlu1 %v1437_v12  ;;  %v1406_v49 = vmul.f32 %v5198_v46, %v4415_v47 }
 0x1ba   : > { %4418 = vtanh.f32 %v1275_v48  ;;  %v1013_v40 = vpop.f32.mrf.mxu2 }
 0x1bb   : > { %v1182_v36 = vpop.f32.mrf.mxu3  ;;  %1494 = vadd.xlane.f32.xlu0 %v1406_v49 }
 0x1bc   : > { %v1183_v53 = vadd.f32 %v1182_v36, %v1013_v40  ;;  %v936_v4 = vpop.f32.mrf.mxu0  ;;  %v5245_v40 = vpop.xlane.xlu2 %1456 }
 0x1bd   : > { %v1105_v54 = vpop.f32.mrf.mxu1 }
 0x1be   : > { %v4417_v55 = vpop.eup %4416  ;;  %v1307_v57 = vadd.f32 %v5190_v38, %v1183_v53  ;;  %v1106_v58 = vadd.f32 %v1105_v54, %v936_v4 }
 0x1bf   : > { %v1438_v59 = vmul.f32 %v5198_v46, %v4417_v55 }
 0x1c0   : > { %v4419_v60 = vpop.eup %4418  ;;  %4420 = vtanh.f32 %v1307_v57  ;;  %v1276_v52 = vadd.f32 %v5181_v16, %v1106_v58  ;;  %v5247_v58 = vpop.xlane.xlu1 %1520 }
 0x1c1   : > { %1558 = vadd.xlane.f32.xlu2 %v1438_v59  ;;  %v1407_v62 = vmul.f32 %v5198_v46, %v4419_v60 }
 0x1c2   : > { %4422 = vtanh.f32 %v1276_v52  ;;  %v1016_v1 = vpop.f32.mrf.mxu2 }
 0x1c3   : > { %v1185_v2 = vpop.f32.mrf.mxu3  ;;  %1496 = vadd.xlane.f32.xlu1 %v1407_v62 }
 0x1c4   : > { %v1186_v3 = vadd.f32 %v1185_v2, %v1016_v1  ;;  %v938_v5 = vpop.f32.mrf.mxu0 }
 0x1c5   : > { %v1107_v6 = vpop.f32.mrf.mxu1 }
 0x1c6   : > { %v4421_v8 = vpop.eup %4420  ;;  %v1308_v10 = vadd.f32 %v5190_v38, %v1186_v3  ;;  %v1108_v11 = vadd.f32 %v1107_v6, %v938_v5 }
 0x1c7   : > { %v1439_v13 = vmul.f32 %v5198_v46, %v4421_v8  ;;  %v5255_v8 = vpop.xlane.xlu2 %1522 }
 0x1c8   : > { %v4423_v14 = vpop.eup %4422  ;;  %4424 = vtanh.f32 %v1308_v10  ;;  %v1277_v15 = vadd.f32 %v5181_v16, %v1108_v11 }
 0x1c9   : > { %1560 = vadd.xlane.f32.xlu0 %v1439_v13  ;;  %v1408_v63 = vmul.f32 %v5198_v46, %v4423_v14 }
 0x1ca   : > { %4426 = vtanh.f32 %v1277_v15  ;;  %v1018_v18 = vpop.f32.mrf.mxu2  ;;  %v5257_v15 = vpop.xlane.xlu1 %1460 }
 0x1cb   : > { %v1187_v20 = vpop.f32.mrf.mxu3  ;;  %1498 = vadd.xlane.f32.xlu2 %v1408_v63 }
 0x1cc   : > { %v1188_v23 = vadd.f32 %v1187_v20, %v1018_v18  ;;  %v941_v26 = vpop.f32.mrf.mxu0 }
 0x1cd   : > { %v1110_v27 = vpop.f32.mrf.mxu1 }
 0x1ce   : > { %v4425_v28 = vpop.eup %4424  ;;  %v1309_v16 = vadd.f32 %v5190_v38, %v1188_v23  ;;  %v1111_v19 = vadd.f32 %v1110_v27, %v941_v26  ;;  %v5237_v38 = vpop.xlane.xlu0 %1518 }
 0x1cf   : > { %v1440_v30 = vmul.f32 %v5198_v46, %v4425_v28  ;;  %v5265_v29 = vpop.xlane.xlu2 %1462 }
 0x1d0   : > { %v4427_v32 = vpop.eup %4426  ;;  %4428 = vtanh.f32 %v1309_v16  ;;  %v1278_v34 = vadd.f32 %v5226_v24, %v1111_v19 }
 0x1d1   : > { %1562 = vadd.xlane.f32.xlu1 %v1440_v30  ;;  %v1409_v35 = vmul.f32 %v5198_v46, %v4427_v32 }
 0x1d2   : > { %4430 = vtanh.f32 %v1278_v34  ;;  %v1021_v7 = vpop.f32.mrf.mxu2  ;;  %v5267_v32 = vpop.xlane.xlu1 %1526 }
 0x1d3   : > { %v1190_v39 = vpop.f32.mrf.mxu3  ;;  %1500 = vadd.xlane.f32.xlu0 %v1409_v35 }
 0x1d4   : > { %v1191_v31 = vadd.f32 %v1190_v39, %v1021_v7  ;;  %v943_v25 = vpop.f32.mrf.mxu0 }
 0x1d5   : > { %v1112_v41 = vpop.f32.mrf.mxu1 }
 0x1d6   : > { %v4429_v42 = vpop.eup %4428  ;;  %v1310_v51 = vadd.f32 %v5235_v37, %v1191_v31  ;;  %v1113_v44 = vadd.f32 %v1112_v41, %v943_v25  ;;  %v5250_v52 = vpop.xlane.xlu0 %1458 }
 0x1d7   : > { %v1441_v12 = vmul.f32 %v5198_v46, %v4429_v42  ;;  %v5274_v31 = vpop.xlane.xlu2 %1528 }
 0x1d8   : > { %v4431_v47 = vpop.eup %4430  ;;  %4432 = vtanh.f32 %v1310_v51  ;;  %v1279_v48 = vadd.f32 %v5226_v24, %v1113_v44 }
 0x1d9   : > { %1564 = vadd.xlane.f32.xlu2 %v1441_v12  ;;  %v1410_v49 = vmul.f32 %v5198_v46, %v4431_v47 }
 0x1da   : > { %4434 = vtanh.f32 %v1279_v48  ;;  %v1023_v36 = vpop.f32.mrf.mxu2  ;;  %v5276_v41 = vpop.xlane.xlu1 %1466 }
 0x1db   : > { %v1192_v53 = vpop.f32.mrf.mxu3  ;;  %1502 = vadd.xlane.f32.xlu1 %v1410_v49 }
 0x1dc   : > { %v1193_v4 = vadd.f32 %v1192_v53, %v1023_v36  ;;  %v946_v54 = vpop.f32.mrf.mxu0 }
 0x1dd   : > { %v1115_v55 = vpop.f32.mrf.mxu1 }
 0x1de   : > { %v4433_v57 = vpop.eup %4432  ;;  %v1311_v59 = vadd.f32 %v5235_v37, %v1193_v4  ;;  %v1116_v60 = vadd.f32 %v1115_v55, %v946_v54  ;;  %v5260_v18 = vpop.xlane.xlu0 %1524 }
 0x1df   : > { %v1442_v62 = vmul.f32 %v5198_v46, %v4433_v57 }
 0x1e0   : > { %v4435_v1 = vpop.eup %4434  ;;  %4436 = vtanh.f32 %v1311_v59  ;;  %v1280_v2 = vadd.f32 %v5226_v24, %v1116_v60 }
 0x1e1   : > { %1566 = vadd.xlane.f32.xlu0 %v1442_v62  ;;  %v1411_v3 = vmul.f32 %v5198_v46, %v4435_v1 }
 0x1e2   : > { %4438 = vtanh.f32 %v1280_v2  ;;  %v1026_v5 = vpop.f32.mrf.mxu2  ;;  %v5283_v44 = vpop.xlane.xlu1 %1532 }
 0x1e3   : > { %v1195_v6 = vpop.f32.mrf.mxu3  ;;  %1504 = vadd.xlane.f32.xlu2 %v1411_v3 }
 0x1e4   : > { %v1196_v10 = vadd.f32 %v1195_v6, %v1026_v5  ;;  %v948_v11 = vpop.f32.mrf.mxu0 }
 0x1e5   : > { %v1117_v13 = vpop.f32.mrf.mxu1 }
 0x1e6   : > { %v4437_v14 = vpop.eup %4436  ;;  %v1312_v17 = vadd.f32 %v5235_v37, %v1196_v10  ;;  %v1118_v63 = vadd.f32 %v1117_v13, %v948_v11  ;;  %v5270_v35 = vpop.xlane.xlu0 %1464  ;;  %v1709_v10 = vlaneseq }
 0x1e7   : > { %v1443_v20 = vmul.f32 %v5198_v46, %v4437_v14 }
 0x1e8   : > { %v4439_v23 = vpop.eup %4438  ;;  %4440 = vtanh.f32 %v1312_v17  ;;  %v1281_v26 = vadd.f32 %v5226_v24, %v1118_v63  ;;  %v5329_v17 = vand.u32 127, %v1709_v10  ;;  %v5400_v10 = vadd.f32 %v5203_v50, %v5237_v38 }
 0x1e9   : > { %1568 = vadd.xlane.f32.xlu1 %v1443_v20  ;;  %v1412_v27 = vmul.f32 %v5198_v46, %v4439_v23  ;;  %v5336_v20 = vadd.f32 %v5203_v50, %v5210_v61  ;;  %v5340_v23 = vadd.f32 %v5203_v50, %v5193_v45  ;;  %v5361_v45 = vadd.f32 %v5203_v50, %v5224_v22 }
 0x1ea   : > { %4442 = vtanh.f32 %v1281_v26  ;;  %v1028_v28 = vpop.f32.mrf.mxu2  ;;  %v5289_v48 = vpop.xlane.xlu1 %1472  ;;  %v5332_v63 = vadd.s32 4294967288, %v5329_v17  ;;  %v5343_v26 = vadd.s32 4294967280, %v5329_v17  ;;  %7409 = vst [vmem:[#allocation22_spill] sm:$0xff] %v5400_v10 }
 0x1eb   : > { %v1197_v16 = vpop.f32.mrf.mxu3  ;;  %1506 = vadd.xlane.f32.xlu0 %v1412_v27  ;;  %v5347_v27 = vadd.f32 %v5203_v50, %v5213_v0  ;;  %7406 = vst [vmem:[#allocation19_spill] sm:$0xff] %v5361_v45 }
 0x1ec   : > { %v1198_v19 = vadd.f32 %v1197_v16, %v1028_v28  ;;  %v5351_v28 = vadd.f32 %v5203_v50, %v5205_v56  ;;  %v5355_v16 = vadd.f32 %v5203_v50, %v5222_v21  ;;  %v1713_v0 = vperm.slane %v5336_v20, %v5332_v63 }
 0x1ed   : > { %v5369_v56 = vadd.f32 %v5203_v50, %v5245_v40  ;;  %v1711_v21 = vperm.slane %v5340_v23, %v5329_v17  ;;  %v1717_v22 = vperm.slane %v5347_v27, %v5343_v26  ;;  %v5386_v40 = vadd.f32 %v5203_v50, %v5215_v9 }
 0x1ee   : > { %v4441_v30 = vpop.eup %4440  ;;  %v1313_v34 = vadd.f32 %v5235_v37, %v1198_v19  ;;  %v5278_v42 = vpop.xlane.xlu0 %1530  ;;  %7404 = vst [vmem:[#allocation17_spill] sm:$0xff] %v5351_v28 }
 0x1ef   : > { %v1444_v7 = vmul.f32 %v5198_v46, %v4441_v30  ;;  %v5281_v37 = vpop.xlane.xlu2 %1468  ;;  %7405 = vst [vmem:[#allocation18_spill] sm:$0xff] %v5355_v16  ;;  %v1715_v9 = vsel %vm1714_vm0, %v1713_v0, %v1711_v21  ;;  %v5424_v0 = vadd.f32 %v5203_v50, %v5260_v18  ;;  %v1780_v18 = vperm.slane %v5400_v10, %v5329_v17 }
 0x1f0   : > { %v4443_v24 = vpop.eup %4442  ;;  %4444 = vtanh.f32 %v1313_v34  ;;  %7407 = vst [vmem:[#allocation20_spill] sm:$0xff] %v5369_v56  ;;  %v5378_v34 = vadd.s32 4294967272, %v5329_v17  ;;  %v1719_v38 = vsel %vm1718_vm1, %v1717_v22, %v1715_v9 }
 0x1f1   : > { %1570 = vadd.xlane.f32.xlu2 %v1444_v7  ;;  %v1413_v39 = vmul.f32 %v5198_v46, %v4443_v24  ;;  %v1773_v7 = vperm.slane %v5351_v28, %v5329_v17  ;;  %v1774_v24 = vperm.slane %v5355_v16, %v5332_v63  ;;  %7408 = vst [vmem:[#allocation21_spill] sm:$0xff] %v5386_v40 }
 0x1f2   : > { %v5295_v53 = vpop.xlane.xlu1 %1538  ;;  %v5404_v28 = vadd.f32 %v5203_v50, %v5247_v58  ;;  %v5420_v58 = vadd.f32 %v5203_v50, %v5257_v15  ;;  %7414 = vst [vmem:[#allocation27_spill] sm:$0xff] %v5424_v0 }
 0x1f3   : > { %1508 = vadd.xlane.f32.xlu1 %v1413_v39  ;;  %v5390_v39 = vadd.f32 %v5203_v50, %v5231_v33  ;;  %v1725_v33 = vperm.slane %v5369_v56, %v5332_v63  ;;  %v1775_v21 = vsel %vm1714_vm0, %v1774_v24, %v1773_v7 }
 0x1f4   : > { %7410 = vst [vmem:[#allocation23_spill] sm:$0xff] %v5404_v28  ;;  %v1781_v7 = vperm.slane %v5404_v28, %v5332_v63  ;;  %v1729_v10 = vperm.slane %v5420_v58, %v5378_v34  ;;  %v1785_v28 = vperm.slane %v5424_v0, %v5378_v34  ;;  %v5476_v0 = vadd.f32 %v5203_v50, %v5281_v37 }
 0x1f5   : > { %7413 = vst [vmem:[#allocation26_spill] sm:$0xff] %v5420_v58  ;;  %v5472_v58 = vadd.f32 %v5203_v50, %v5278_v42 }
 0x1f6   : > { %v4445_v25 = vpop.eup %4444  ;;  %v5285_v12 = vpop.xlane.xlu0 %1470 }
 0x1f7   : > { %v1445_v51 = vmul.f32 %v5198_v46, %v4445_v25  ;;  %v5287_v47 = vpop.xlane.xlu2 %1534  ;;  %v1776_v25 = vperm.slane %v5361_v45, %v5343_v26  ;;  %v5411_v45 = vadd.f32 %v5203_v50, %v5250_v52  ;;  %v1778_v52 = vperm.slane %v5386_v40, %v5378_v34  ;;  %7417 = vst [vmem:[#allocation30_spill] sm:$0xff] %v5472_v58 }
 0x1f9   : > { %1572 = vadd.xlane.f32.xlu0 %v1445_v51  ;;  %v5396_v51 = vadd.f32 %v5203_v50, %v5239_v43  ;;  %7411 = vst [vmem:[#allocation24_spill] sm:$0xff] %v5411_v45  ;;  %v5415_v43 = vadd.f32 %v5203_v50, %v5255_v8  ;;  %v1724_v8 = vperm.slane %v5390_v39, %v5329_v17 }
 0x1fa   : > { %v5301_v54 = vpop.xlane.xlu1 %1478  ;;  %v1777_v22 = vsel %vm1718_vm1, %v1776_v25, %v1775_v21  ;;  %v1727_v40 = vperm.slane %v5411_v45, %v5343_v26  ;;  %v5449_v25 = vadd.f32 %v5203_v50, %v5270_v35  ;;  %v5468_v35 = vadd.f32 %v5203_v50, %v5265_v29 }
 0x1fb   : > { %7412 = vst [vmem:[#allocation25_spill] sm:$0xff] %v5415_v43  ;;  %v1721_v15 = vperm.slane %v5396_v51, %v5378_v34  ;;  %v1726_v9 = vsel %vm1714_vm0, %v1725_v33, %v1724_v8  ;;  %v1783_v56 = vperm.slane %v5415_v43, %v5343_v26  ;;  %v5459_v33 = vadd.f32 %v5203_v50, %v5274_v31 }
 0x1fc   : > { %v5463_v8 = vadd.f32 %v5203_v50, %v5276_v41  ;;  %v1779_v43 = vsel %vm1722_vm2, %v1778_v52, %v1777_v22  ;;  %v1782_v45 = vsel %vm1714_vm0, %v1781_v7, %v1780_v18  ;;  %v5482_v41 = vadd.f32 %v5203_v50, %v5267_v32 }
 0x1fd   : > { %7415 = vst [vmem:[#allocation28_spill] sm:$0xff] %v5459_v33  ;;  %v1723_v31 = vsel %vm1722_vm2, %v1721_v15, %v1719_v38  ;;  %v5486_v29 = vadd.f32 %v5203_v50, %v5283_v44  ;;  %v1728_v52 = vsel %vm1718_vm1, %v1727_v40, %v1726_v9  ;;  %v1784_v42 = vsel %vm1718_vm1, %v1783_v56, %v1782_v45 }
 0x1fe   : > { %v5291_v49 = vpop.xlane.xlu0 %1536  ;;  %7416 = vst [vmem:[#allocation29_spill] sm:$0xff] %v5463_v8  ;;  %v1732_v37 = vperm.slane %v5449_v25, %v5332_v63  ;;  %v1730_v38 = vsel %vm1722_vm2, %v1729_v10, %v1728_v52  ;;  %v1786_v22 = vsel %vm1722_vm2, %v1785_v28, %v1784_v42  ;;  %v1788_v32 = vperm.slane %v5459_v33, %v5332_v63 }
 0x1ff   : > { %v5293_v36 = vpop.xlane.xlu2 %1474  ;;  %7418 = vst [vmem:[#allocation31_spill] sm:$0xff] %v5482_v41  ;;  %v1734_v15 = vperm.slane %v5463_v8, %v5343_v26  ;;  %v1731_v44 = vperm.slane %v5468_v35, %v5329_v17  ;;  %v1790_v45 = vperm.slane %v5472_v58, %v5343_v26  ;;  %v1736_v56 = vperm.slane %v5476_v0, %v5378_v34 }
 0x200   : > { %7419 = vst [vmem:[#allocation32_spill] sm:$0xff] %v5486_v29  ;;  %v5506_v40 = vadd.f32 %v5203_v50, %v5289_v48  ;;  %v1787_v10 = vperm.slane %v5482_v41, %v5329_v17  ;;  %v1792_v18 = vperm.slane %v5486_v29, %v5378_v34  ;;  %v5516_v7 = vadd.f32 %v5203_v50, %v5291_v49 }
 0x201   : > { %v5520_v9 = vadd.f32 %v5203_v50, %v5293_v36  ;;  %v1733_v48 = vsel %vm1714_vm0, %v1732_v37, %v1731_v44  ;;  %v5527_v42 = vadd.f32 %v5203_v50, %v5285_v12  ;;  %v5531_v41 = vadd.f32 %v5203_v50, %v5295_v53 }
 0x202   : > { %v5307_v59 = vpop.xlane.xlu1 %1544  ;;  %v1830_v36 = vsel %vm1829_vm3, %v1730_v38, %v1723_v31  ;;  %v1789_v33 = vsel %vm1714_vm0, %v1788_v32, %v1787_v10  ;;  %v1735_v37 = vsel %vm1718_vm1, %v1734_v15, %v1733_v48  ;;  %v5544_v12 = vadd.f32 %v5203_v50, %v5287_v47 }
 0x203   : > { %7420 = vst [vmem:[#allocation33_spill] sm:$0xff] %v5531_v41  ;;  %v1843_v44 = vsel %vm1829_vm3, %v1786_v22, %v1779_v43  ;;  %v1791_v53 = vsel %vm1718_vm1, %v1790_v45, %v1789_v33  ;;  %v1737_v58 = vsel %vm1722_vm2, %v1736_v56, %v1735_v37  ;;  %v1795_v31 = vperm.slane %v5516_v7, %v5332_v63 }
 0x204   : > { %v1793_v8 = vsel %vm1722_vm2, %v1792_v18, %v1791_v53  ;;  %v1741_v38 = vperm.slane %v5520_v9, %v5343_v26  ;;  %v1738_v47 = vperm.slane %v5527_v42, %v5329_v17  ;;  %v1797_v43 = vperm.slane %v5531_v41, %v5343_v26 }
 0x205   : > { %v1794_v32 = vperm.slane %v5544_v12, %v5329_v17  ;;  %v5574_v45 = vadd.f32 %v5203_v50, %v5307_v59  ;;  %v1832_v48 = vsel %vm1831_vm4, %v1737_v58, %v1830_v36 }
 0x206   : > { %v5297_v4 = vpop.xlane.xlu0 %1476 }
 0x207   : > { %v5299_v46 = vpop.xlane.xlu2 %1540  ;;  %v5535_v49 = vadd.f32 %v5203_v50, %v5297_v4  ;;  %v1739_v4 = vperm.slane %v5506_v40, %v5332_v63  ;;  %7422 = vst [vmem:[#allocation35_spill] sm:$0xff] %v5574_v45 }
 0x208   : > { %v5570_v15 = vadd.f32 %v5203_v50, %v5299_v46 }
 0x209   : > { %v1743_v33 = vperm.slane %v5535_v49, %v5378_v34  ;;  %v1740_v10 = vsel %vm1714_vm0, %v1739_v4, %v1738_v47 }
 0x20a   : > { %v5313_v1 = vpop.xlane.xlu1 %1484  ;;  %7421 = vst [vmem:[#allocation34_spill] sm:$0xff] %v5570_v15  ;;  %v1742_v37 = vsel %vm1718_vm1, %v1741_v38, %v1740_v10  ;;  %v1799_v36 = vperm.slane %v5570_v15, %v5378_v34 }
 0x20b   : > { %v5591_v46 = vadd.f32 %v5203_v50, %v5313_v1  ;;  %v1744_v1 = vsel %vm1722_vm2, %v1743_v33, %v1742_v37 }
 0x20e   : > { %v5303_v55 = vpop.xlane.xlu0 %1542 }
 0x20f   : > { %v5305_v57 = vpop.xlane.xlu2 %1480 }
 0x210   : > { %v5564_v22 = vadd.f32 %v5203_v50, %v5305_v57  ;;  %v5583_v57 = vadd.f32 %v5203_v50, %v5301_v54  ;;  %v5600_v54 = vadd.f32 %v5203_v50, %v5303_v55  ;;  %v1802_v55 = vperm.slane %v5574_v45, %v5332_v63 }
 0x211   : > { %v1834_v45 = vsel %vm1833_vm5, %v1744_v1, %v1832_v48 }
 0x212   : > { %v1746_v47 = vperm.slane %v5564_v22, %v5332_v63 }
 0x214   : > { %v5319_v5 = vpop.xlane.xlu1 %1550 }
 0x216   : > { %v5309_v60 = vpop.xlane.xlu0 %1482 }
 0x217   : > { %v5311_v62 = vpop.xlane.xlu2 %1546  ;;  %v5578_v56 = vadd.f32 %v5203_v50, %v5309_v60  ;;  %v1796_v60 = vsel %vm1714_vm0, %v1795_v31, %v1794_v32  ;;  %v1801_v32 = vperm.slane %v5600_v54, %v5329_v17 }
 0x218   : > { %v5587_v18 = vadd.f32 %v5203_v50, %v5311_v62  ;;  %v5603_v62 = vsel %vm1831_vm4, %v1793_v8, %v1843_v44  ;;  %v1798_v4 = vsel %vm1718_vm1, %v1797_v43, %v1796_v60  ;;  %v1745_v44 = vperm.slane %v5583_v57, %v5329_v17 }
 0x219   : > { %v1748_v31 = vperm.slane %v5578_v56, %v5343_v26  ;;  %v1750_v43 = vperm.slane %v5591_v46, %v5378_v34 }
 0x21a   : > { %7423 = vst [vmem:[#allocation36_spill] sm:$0xff] %v5587_v18  ;;  %v1804_v38 = vperm.slane %v5587_v18, %v5343_v26  ;;  %v1747_v37 = vsel %vm1714_vm0, %v1746_v47, %v1745_v44  ;;  %v1803_v18 = vsel %vm1714_vm0, %v1802_v55, %v1801_v32 }
 0x21c   : > { %v1805_v41 = vsel %vm1718_vm1, %v1804_v38, %v1803_v18 }
 0x21e   : > { %v5315_v2 = vpop.xlane.xlu0 %1548  ;;  %v5325_v13 = vpop.xlane.xlu1 %1490 }
 0x21f   : > { %v5317_v3 = vpop.xlane.xlu2 %1486  ;;  %v5629_v33 = vadd.f32 %v5203_v50, %v5325_v13 }
 0x220   : > { %v5639_v10 = vadd.f32 %v5203_v50, %v5317_v3  ;;  %v1749_v3 = vsel %vm1718_vm1, %v1748_v31, %v1747_v37 }
 0x221   : > { %v1751_v47 = vsel %vm1722_vm2, %v1750_v43, %v1749_v3  ;;  %v1755_v48 = vperm.slane %v5629_v33, %v5343_v26 }
 0x222   : > { %v1836_v3 = vsel %vm1835_vm6, %v1751_v47, %v1834_v45 }
 0x226   : > { %v5321_v6 = vpop.xlane.xlu0 %1488 }
 0x227   : > { %v5323_v11 = vpop.xlane.xlu2 %1552  ;;  %v5619_v8 = vadd.f32 %v5203_v50, %v5321_v6  ;;  %v5635_v6 = vadd.f32 %v5203_v50, %v5315_v2  ;;  %v5652_v2 = vsel %vm1722_vm2, %v1799_v36, %v1798_v4  ;;  %v1752_v36 = vperm.slane %v5639_v10, %v5329_v17 }
 0x228   : > { %v5648_v13 = vadd.f32 %v5203_v50, %v5323_v11  ;;  %v5662_v11 = vadd.f32 %v5203_v50, %v5319_v5 }
 0x229   : > { %v1806_v1 = vperm.slane %v5635_v6, %v5378_v34 }
 0x22a   : > { %7424 = vst [vmem:[#allocation37_spill] sm:$0xff] %v5648_v13  ;;  %v1809_v5 = vperm.slane %v5648_v13, %v5332_v63 }
 0x22b   : > { %7425 = vst [vmem:[#allocation38_spill] sm:$0xff] %v5662_v11 }
 0x22c   : > { %v5363_v19 = vpop.xlane.xlu1 %1556 }
 0x22d   : > { %v5701_v13 = vadd.f32 %v5203_v50, %v5363_v19 }
 0x22e   : > { %v5327_v14 = vpop.xlane.xlu0 %1554 }
 0x22f   : > { %v5357_v61 = vpop.xlane.xlu2 %1492  ;;  %v5680_v44 = vadd.f32 %v5203_v50, %v5327_v14  ;;  %v1808_v14 = vperm.slane %v5662_v11, %v5329_v17  ;;  %7427 = vst [vmem:[#allocation40_spill] sm:$0xff] %v5701_v13 }
 0x230   : > { %v5643_v60 = vadd.f32 %v5203_v50, %v5357_v61  ;;  %v1753_v61 = vperm.slane %v5619_v8, %v5332_v63 }
 0x231   : > { %7426 = vst [vmem:[#allocation39_spill] sm:$0xff] %v5680_v44  ;;  %v1810_v47 = vsel %vm1714_vm0, %v1809_v5, %v1808_v14 }
 0x232   : > { %v1757_v55 = vperm.slane %v5643_v60, %v5378_v34  ;;  %v1754_v32 = vsel %vm1714_vm0, %v1753_v61, %v1752_v36 }
 0x236   : > { %v5371_v30 = vpop.xlane.xlu0 %1494  ;;  %v5440_v24 = vpop.xlane.xlu1 %1496 }
 0x237   : > { %v5431_v16 = vpop.xlane.xlu2 %1558  ;;  %v5674_v18 = vadd.f32 %v5203_v50, %v5440_v24  ;;  %v5689_v24 = vadd.f32 %v5203_v50, %v5371_v30  ;;  %v1807_v30 = vsel %vm1722_vm2, %v1806_v1, %v1805_v41 }
 0x239   : > { %v1759_v41 = vperm.slane %v5689_v24, %v5329_v17 }
 0x23e   : > { %v5451_v21 = vpop.xlane.xlu0 %1560 }
 0x23f   : > { %v5508_v28 = vpop.xlane.xlu2 %1498  ;;  %v5725_v1 = vadd.f32 %v5203_v50, %v5451_v21  ;;  %v5740_v21 = vadd.f32 %v5203_v50, %v5431_v16 }
 0x240   : > { %v5684_v38 = vadd.f32 %v5203_v50, %v5508_v28  ;;  %v1756_v28 = vsel %vm1718_vm1, %v1755_v48, %v1754_v32  ;;  %v1811_v48 = vperm.slane %v5680_v44, %v5343_v26 }
 0x241   : > { %v1758_v36 = vsel %vm1722_vm2, %v1757_v55, %v1756_v28  ;;  %7428 = vst [vmem:[#allocation41_spill] sm:$0xff] %v5725_v1 }
 0x242   : > { %v1762_v19 = vperm.slane %v5684_v38, %v5343_v26  ;;  %v1838_v14 = vsel %vm1837_vm7, %v1758_v36, %v1836_v3  ;;  %7430 = vst [vmem:[#allocation43_spill] sm:$0xff] %v5740_v21 }
 0x244   : > { %v5522_v52 = vpop.xlane.xlu1 %1562 }
 0x245   : > { %v5729_v55 = vadd.f32 %v5203_v50, %v5522_v52 }
 0x246   : > { %v5537_v29 = vpop.xlane.xlu0 %1500 }
 0x247   : > { %v5693_v37 = vadd.f32 %v5203_v50, %v5537_v29  ;;  %v1760_v29 = vperm.slane %v5674_v18, %v5332_v63  ;;  %7429 = vst [vmem:[#allocation42_spill] sm:$0xff] %v5729_v55 }
 0x249   : > { %v1764_v5 = vperm.slane %v5693_v37, %v5378_v34  ;;  %v1761_v52 = vsel %vm1714_vm0, %v1760_v29, %v1759_v41  ;;  %v1816_v29 = vperm.slane %v5725_v1, %v5332_v63  ;;  %v1815_v1 = vperm.slane %v5740_v21, %v5329_v17 }
 0x24a   : > { %v1763_v44 = vsel %vm1718_vm1, %v1762_v19, %v1761_v52 }
 0x24b   : > { %v1765_v19 = vsel %vm1722_vm2, %v1764_v5, %v1763_v44  ;;  %v1812_v44 = vsel %vm1718_vm1, %v1811_v48, %v1810_v47  ;;  %v1817_v15 = vsel %vm1714_vm0, %v1816_v29, %v1815_v1  ;;  %v1845_v1 = vsel %vm1833_vm5, %v5652_v2, %v5603_v62 }
 0x24c   : > { %v5593_v59 = vpop.xlane.xlu2 %1564 }
 0x24d   : > { %v5745_v28 = vadd.f32 %v5203_v50, %v5593_v59  ;;  %v1818_v59 = vperm.slane %v5729_v55, %v5343_v26 }
 0x24e   : > { %v1503_v53 = vpop.xlane.xlu1 %1502 }
 0x24f   : > { %7431 = vst [vmem:[#allocation44_spill] sm:$0xff] %v5745_v28  ;;  %v1820_v55 = vperm.slane %v5745_v28, %v5378_v34 }
 0x254   : > { %v5609_v58 = vpop.xlane.xlu0 %1566 }
 0x255   : > { %v5768_v52 = vadd.f32 %v5203_v50, %v5609_v58 }
 0x256   : > { %v1505_v4 = vpop.xlane.xlu2 %1504 }
 0x257   : > { %v5704_v61 = vadd.f32 %v5203_v50, %v1505_v4  ;;  %v5719_v4 = vadd.f32 %v5203_v50, %v1503_v53  ;;  %v1822_v47 = vperm.slane %v5768_v52, %v5329_v17 }
 0x259   : > { %v1767_v53 = vperm.slane %v5704_v61, %v5332_v63  ;;  %v1766_v3 = vperm.slane %v5719_v4, %v5329_v17 }
 0x25c   : > { %v1569_v31 = vpop.xlane.xlu1 %1568 }
 0x25d   : > { %v5753_v36 = vadd.f32 %v5203_v50, %v1569_v31  ;;  %v1768_v31 = vsel %vm1714_vm0, %v1767_v53, %v1766_v3  ;;  %v1840_v53 = vsel %vm1839_vm8, %v1765_v19, %v1838_v14 }
 0x25e   : > { %v1507_v43 = vpop.xlane.xlu0 %1506 }
 0x25f   : > { %v5711_v45 = vadd.f32 %v5203_v50, %v1507_v43  ;;  %v1813_v43 = vperm.slane %v5701_v13, %v5378_v34  ;;  %v1823_v58 = vperm.slane %v5753_v36, %v5332_v63 }
 0x261   : > { %v1769_v13 = vperm.slane %v5711_v45, %v5343_v26  ;;  %v1814_v3 = vsel %vm1722_vm2, %v1813_v43, %v1812_v44  ;;  %v1824_v29 = vsel %vm1714_vm0, %v1823_v58, %v1822_v47 }
 0x264   : > { %v1571_v32 = vpop.xlane.xlu2 %1570 }
 0x265   : > { %v5763_v41 = vadd.f32 %v5203_v50, %v1571_v32  ;;  %v1770_v32 = vsel %vm1718_vm1, %v1769_v13, %v1768_v31  ;;  %v1819_v31 = vsel %vm1718_vm1, %v1818_v59, %v1817_v15  ;;  %v1846_v59 = vsel %vm1835_vm6, %v1807_v30, %v1845_v1 }
 0x266   : > { %v1509_v11 = vpop.xlane.xlu1 %1508  ;;  %v1821_v43 = vsel %vm1722_vm2, %v1820_v55, %v1819_v31 }
 0x267   : > { %v5756_v16 = vadd.f32 %v5203_v50, %v1509_v11  ;;  %v1825_v21 = vperm.slane %v5763_v41, %v5343_v26 }
 0x269   : > { %v1771_v11 = vperm.slane %v5756_v16, %v5378_v34  ;;  %v1826_v19 = vsel %vm1718_vm1, %v1825_v21, %v1824_v29 }
 0x26b   : > { %v1772_v5 = vsel %vm1722_vm2, %v1771_v11, %v1770_v32 }
 0x26c   : > { %v1573_v28 = vpop.xlane.xlu0 %1572  ;;  %v1842_v13 = vsel %vm1841_vm9, %v1772_v5, %v1840_v53 }
 0x26d   : > { %v5792_v48 = vadd.f32 %v5203_v50, %v1573_v28  ;;  %v1853_v14 = vsel %vm1852_vm10, %v1842_v13, -inf  ;;  %v1847_v50 = vsel %vm1837_vm7, %v1814_v3, %v1846_v59 }
 0x26e   : > { %1854 = vmax.xlane.f32.xlu2 %v1853_v14  ;;  %v1848_v11 = vsel %vm1839_vm8, %v1821_v43, %v1847_v50 }
 0x26f   : > { %v1827_v15 = vperm.slane %v5792_v48, %v5378_v34 }
 0x271   : > { %v1828_v28 = vsel %vm1722_vm2, %v1827_v15, %v1826_v19 }
 0x272   : > { %v1849_v55 = vsel %vm1841_vm9, %v1828_v28, %v1848_v11 }
 0x273   : > { %v1856_v32 = vsel %vm1852_vm10, %v1849_v55, -inf }
 0x274   : > { %1857 = vmax.xlane.f32.xlu0 %v1856_v32 }
 0x2e1   : > { %v5809_v62 = vpop.xlane.xlu2 %1854 }
 0x2e2   : > { %v1861_v2 = vperm.slane %v5809_v62, 0  ;;  %v1862_v58 = vperm.slane %v5809_v62, 1  ;;  %v1863_v3 = vperm.slane %v5809_v62, 2 }
 0x2e4   : > { %v1895_v44 = vsub.f32 %v5347_v27, %v1861_v2  ;;  %v1893_v30 = vsub.f32 %v5340_v23, %v1861_v2  ;;  %v1894_v21 = vsub.f32 %v5336_v20, %v1861_v2  ;;  %v1897_v31 = vsub.f32 %v5390_v39, %v1862_v58  ;;  %v7432_v39 = vld [vmem:[#allocation24_spill] sm:$0xff] }
 0x2e5   : > { %v1896_v47 = vsub.f32 %v5396_v51, %v1861_v2  ;;  %v1902_v27 = vsub.f32 %v5449_v25, %v1863_v3  ;;  %v1864_v20 = vperm.slane %v5809_v62, 3  ;;  %v1899_v51 = vsub.f32 %v7432_v39, %v1862_v58  ;;  %v7433_v25 = vld [vmem:[#allocation20_spill] sm:$0xff] }
 0x2e6   : > { %v1961_v5 = vmul.f32 1.442695, %v1895_v44  ;;  %v1957_v53 = vmul.f32 1.442695, %v1893_v30  ;;  %v1959_v13 = vmul.f32 1.442695, %v1894_v21  ;;  %v1898_v59 = vsub.f32 %v7433_v25, %v1862_v58 }
 0x2e7   : > { %v1965_v14 = vmul.f32 1.442695, %v1897_v31  ;;  %v1963_v23 = vmul.f32 1.442695, %v1896_v47  ;;  %v1975_v1 = vmul.f32 1.442695, %v1902_v27  ;;  %v1905_v19 = vsub.f32 %v5527_v42, %v1864_v20 }
 0x2e8   : > { %4446 = vpow2.f32 %v1961_v5  ;;  %v1969_v50 = vmul.f32 1.442695, %v1899_v51  ;;  %v1967_v28 = vmul.f32 1.442695, %v1898_v59  ;;  %v1901_v44 = vsub.f32 %v5468_v35, %v1863_v3  ;;  %v7434_v42 = vld [vmem:[#allocation26_spill] sm:$0xff] }
 0x2e9   : > { %4448 = vpow2.f32 %v1957_v53  ;;  %v1981_v55 = vmul.f32 1.442695, %v1905_v19  ;;  %v1900_v30 = vsub.f32 %v7434_v42, %v1862_v58  ;;  %v1908_v21 = vsub.f32 %v5535_v49, %v1864_v20  ;;  %v7436_v49 = vld [vmem:[#allocation29_spill] sm:$0xff] }
 0x2ea   : > { %4450 = vpow2.f32 %v1959_v13  ;;  %v1973_v5 = vmul.f32 1.442695, %v1901_v44  ;;  %v1865_v31 = vperm.slane %v5809_v62, 4  ;;  %v1904_v58 = vsub.f32 %v5476_v0, %v1863_v3 }
 0x2eb   : > { %4452 = vpow2.f32 %v1965_v14  ;;  %v1971_v53 = vmul.f32 1.442695, %v1900_v30  ;;  %v1987_v47 = vmul.f32 1.442695, %v1908_v21  ;;  %v1903_v14 = vsub.f32 %v7436_v49, %v1863_v3 }
 0x2ec   : > { %4454 = vpow2.f32 %v1963_v23  ;;  %v1911_v23 = vsub.f32 %v5578_v56, %v1865_v31  ;;  %v1866_v25 = vperm.slane %v5809_v62, 5  ;;  %v1907_v3 = vsub.f32 %v5520_v9, %v1864_v20 }
 0x2ed   : > { %4456 = vpow2.f32 %v1975_v1  ;;  %v1979_v1 = vmul.f32 1.442695, %v1904_v58  ;;  %v1977_v39 = vmul.f32 1.442695, %v1903_v14  ;;  %v1906_v56 = vsub.f32 %v5506_v40, %v1864_v20 }
 0x2ee   : > { %v5820_v43 = vpop.eup %4446  ;;  %4458 = vpow2.f32 %v1969_v50  ;;  %v1993_v59 = vmul.f32 1.442695, %v1911_v23  ;;  %v1914_v50 = vsub.f32 %v5619_v8, %v1866_v25  ;;  %v1867_v42 = vperm.slane %v5809_v62, 6 }
 0x2ef   : > { %v5823_v29 = vpop.eup %4448  ;;  %2156 = vperm.xlu1 %4313, %v5820_v43   ;;  %4460 = vpow2.f32 %v1967_v28  ;;  %v1985_v28 = vmul.f32 1.442695, %v1907_v3  ;;  %v1910_v40 = vsub.f32 %v5564_v22, %v1865_v31  ;;  %v1909_v8 = vsub.f32 %v5583_v57, %v1865_v31 }
 0x2f0   : > { %v5826_v15 = vpop.eup %4450  ;;  %2150 = vperm.xlu2 %4314, %v5823_v29   ;;  %4462 = vpow2.f32 %v1981_v55  ;;  %v1983_v55 = vmul.f32 1.442695, %v1906_v56  ;;  %v1999_v30 = vmul.f32 1.442695, %v1914_v50  ;;  %v1917_v20 = vsub.f32 %v5689_v24, %v1867_v42 }
 0x2f1   : > { %2153 = vperm.xlu0 %4315, %v5826_v15   ;;  %v5833_v11 = vpop.eup %4452  ;;  %4464 = vpow2.f32 %v1973_v5  ;;  %v1991_v5 = vmul.f32 1.442695, %v1910_v40  ;;  %v1913_v22 = vsub.f32 %v5639_v10, %v1866_v25  ;;  %v1912_v57 = vsub.f32 %v5591_v46, %v1865_v31  ;;  %v5909_v31 = vpop.xlane.xlu0 %1857 }
 0x2f2   : > { %v5835_v32 = vpop.eup %4454  ;;  %4466 = vpow2.f32 %v1971_v53  ;;  %v1989_v53 = vmul.f32 1.442695, %v1909_v8  ;;  %v2005_v58 = vmul.f32 1.442695, %v1917_v20  ;;  %v1920_v24 = vsub.f32 %v5693_v37, %v1867_v42 }
 0x2f3   : > { %v5838_v2 = vpop.eup %4456  ;;  %4468 = vpow2.f32 %v1987_v47  ;;  %v1997_v23 = vmul.f32 1.442695, %v1913_v22  ;;  %v1916_v46 = vsub.f32 %v5643_v60, %v1866_v25  ;;  %v1915_v37 = vsub.f32 %v5629_v33, %v1866_v25  ;;  %v7442_v25 = vld [vmem:[#allocation18_spill] sm:$0xff] }
 0x2f4   : > { %v5845_v13 = vpop.eup %4458  ;;  %4470 = vpow2.f32 %v1979_v1  ;;  %v1995_v1 = vmul.f32 1.442695, %v1912_v57  ;;  %v2011_v3 = vmul.f32 1.442695, %v1920_v24  ;;  %v1919_v33 = vsub.f32 %v5684_v38, %v1867_v42 }
 0x2f5   : > { %v5848_v27 = vpop.eup %4460  ;;  %4472 = vpow2.f32 %v1977_v39  ;;  %v2003_v50 = vmul.f32 1.442695, %v1916_v46  ;;  %v1870_v22 = vperm.slane %v5909_v31, 1 }
 0x2f6   : > { %v5851_v35 = vpop.eup %4462  ;;  %4474 = vpow2.f32 %v1993_v59  ;;  %v1868_v59 = vperm.slane %v5809_v62, 7 }
 0x2f7   : > { %2162 = vperm.xlu1 %4313, %v5833_v11   ;;  %7435 = vst [vmem:[#allocation24_spill] sm:$0xff] %v5851_v35  ;;  %v5858_v51 = vpop.eup %4464  ;;  %4476 = vpow2.f32 %v1985_v28  ;;  %v2001_v28 = vmul.f32 1.442695, %v1915_v37 }
 0x2f8   : > { %2159 = vperm.xlu2 %4314, %v5835_v32   ;;  %v5861_v19 = vpop.eup %4466  ;;  %4478 = vpow2.f32 %v1983_v55  ;;  %v1923_v62 = vsub.f32 %v5711_v45, %v1868_v59  ;;  %v1918_v45 = vsub.f32 %v5674_v18, %v1867_v42  ;;  %v1922_v18 = vsub.f32 %v5704_v61, %v1868_v59  ;;  %v7446_v61 = vld [vmem:[#allocation17_spill] sm:$0xff] }
 0x2f9   : > { %2177 = vperm.xlu0 %4315, %v5838_v2   ;;  %v5864_v0 = vpop.eup %4468  ;;  %4480 = vpow2.f32 %v1999_v30  ;;  %v1869_v30 = vperm.slane %v5909_v31, 0  ;;  %v1921_v42 = vsub.f32 %v5719_v4, %v1868_v59  ;;  %v1924_v4 = vsub.f32 %v5756_v16, %v1868_v59  ;;  %v7449_v16 = vld [vmem:[#allocation21_spill] sm:$0xff] }
 0x2fa   : > { %7437 = vst [vmem:[#allocation20_spill] sm:$0xff] %v5864_v0  ;;  %v5871_v44 = vpop.eup %4470  ;;  %4482 = vpow2.f32 %v1991_v5  ;;  %v2017_v40 = vmul.f32 1.442695, %v1923_v62  ;;  %v2009_v5 = vmul.f32 1.442695, %v1919_v33  ;;  %v7447_v33 = vld [vmem:[#allocation27_spill] sm:$0xff] }
 0x2fb   : > { %v5874_v21 = vpop.eup %4472  ;;  %4484 = vpow2.f32 %v1989_v53  ;;  %v1926_v20 = vsub.f32 %v7442_v25, %v1869_v30  ;;  %v2007_v53 = vmul.f32 1.442695, %v1918_v45  ;;  %v2013_v46 = vmul.f32 1.442695, %v1921_v42 }
 0x2fc   : > { %v5877_v9 = vpop.eup %4474  ;;  %4486 = vpow2.f32 %v2005_v58  ;;  %v1932_v45 = vsub.f32 %v7447_v33, %v1870_v22  ;;  %v1928_v59 = vsub.f32 %v7449_v16, %v1869_v30 }
 0x2fd   : > { %7438 = vst [vmem:[#allocation26_spill] sm:$0xff] %v5877_v9  ;;  %v5884_v47 = vpop.eup %4476  ;;  %4488 = vpow2.f32 %v1997_v23  ;;  %v2023_v57 = vmul.f32 1.442695, %v1926_v20  ;;  %v7444_v23 = vld [vmem:[#allocation22_spill] sm:$0xff]  ;;  %v2019_v20 = vmul.f32 1.442695, %v1924_v4 }
 0x2fe   : > { %v5886_v49 = vpop.eup %4478  ;;  %4490 = vpow2.f32 %v1995_v1  ;;  %v1929_v1 = vsub.f32 %v7444_v23, %v1870_v22  ;;  %v7450_v23 = vld [vmem:[#allocation19_spill] sm:$0xff]  ;;  %v5968_v4 = vperm.slane %v5909_v31, 3 }
 0x2ff   : > { %2168 = vperm.xlu1 %4313, %v5845_v13   ;;  %v5889_v14 = vpop.eup %4480  ;;  %4492 = vpow2.f32 %v2011_v3  ;;  %v2015_v3 = vmul.f32 1.442695, %v1922_v18 }
 0x300   : > { %2165 = vperm.xlu2 %4314, %v5848_v27   ;;  %7439 = vst [vmem:[#allocation29_spill] sm:$0xff] %v5889_v14  ;;  %v5896_v39 = vpop.eup %4482  ;;  %4494 = vpow2.f32 %v2003_v50  ;;  %v2029_v62 = vmul.f32 1.442695, %v1929_v1  ;;  %v1927_v1 = vsub.f32 %v7450_v23, %v1869_v30  ;;  %v1938_v23 = vsub.f32 %v5516_v7, %v5968_v4 }
 0x301   : > { %2186 = vperm.xlu0 %4315, %v5851_v35   ;;  %v5899_v56 = vpop.eup %4484  ;;  %4496 = vpow2.f32 %v2001_v28 }
 0x302   : > { %v5902_v10 = vpop.eup %4486  ;;  %4498 = vpow2.f32 %v2017_v40  ;;  %v1925_v40 = vsub.f32 %v7446_v61, %v1869_v30  ;;  %v2025_v61 = vmul.f32 1.442695, %v1927_v1  ;;  %v7455_v30 = vld [vmem:[#allocation25_spill] sm:$0xff] }
 0x303   : > { %7440 = vst [vmem:[#allocation45_spill] sm:$0xff] %v5902_v10  ;;  %v5911_v55 = vpop.eup %4488  ;;  %4500 = vpow2.f32 %v2009_v5 }
 0x304   : > { %v5914_v8 = vpop.eup %4490  ;;  %4502 = vpow2.f32 %v2007_v53  ;;  %v2021_v25 = vmul.f32 1.442695, %v1925_v40  ;;  %v5952_v53 = vperm.slane %v5909_v31, 2 }
 0x305   : > { %v5917_v60 = vpop.eup %4492  ;;  %4504 = vpow2.f32 %v2023_v57  ;;  %v2035_v57 = vmul.f32 1.442695, %v1932_v45 }
 0x306   : > { %7441 = vst [vmem:[#allocation46_spill] sm:$0xff] %v5917_v60  ;;  %v5924_v58 = vpop.eup %4494  ;;  %4506 = vpow2.f32 %v2015_v3  ;;  %v7451_v3 = vld [vmem:[#allocation30_spill] sm:$0xff] }
 0x307   : > { %2174 = vperm.xlu1 %4313, %v5858_v51   ;;  %v5927_v24 = vpop.eup %4496  ;;  %4508 = vpow2.f32 %v2013_v46  ;;  %v1935_v46 = vsub.f32 %v7451_v3, %v5952_v53 }
 0x308   : > { %2171 = vperm.xlu2 %4314, %v5861_v19   ;;  %v5930_v38 = vpop.eup %4498  ;;  %4510 = vpow2.f32 %v2029_v62  ;;  %v2027_v62 = vmul.f32 1.442695, %v1928_v59 }
 0x309   : > { %2195 = vperm.xlu0 %4315, %v5864_v0   ;;  %7443 = vst [vmem:[#allocation18_spill] sm:$0xff] %v5930_v38  ;;  %v5937_v37 = vpop.eup %4500  ;;  %4512 = vpow2.f32 %v2021_v25  ;;  %v2041_v33 = vmul.f32 1.442695, %v1935_v46 }
 0x30a   : > { %v5939_v50 = vpop.eup %4502  ;;  %4514 = vpow2.f32 %v2019_v20  ;;  %v1931_v20 = vsub.f32 %v7455_v30, %v1870_v22 }
 0x30b   : > { %v5942_v28 = vpop.eup %4504  ;;  %4516 = vpow2.f32 %v2035_v57  ;;  %v7456_v57 = vld [vmem:[#allocation23_spill] sm:$0xff] }
 0x30c   : > { %7445 = vst [vmem:[#allocation22_spill] sm:$0xff] %v5942_v28  ;;  %v5949_v5 = vpop.eup %4506  ;;  %4518 = vpow2.f32 %v2027_v62  ;;  %v1930_v16 = vsub.f32 %v7456_v57, %v1870_v22  ;;  %v2033_v1 = vmul.f32 1.442695, %v1931_v20  ;;  %v2047_v62 = vmul.f32 1.442695, %v1938_v23  ;;  %v7460_v22 = vld [vmem:[#allocation28_spill] sm:$0xff] }
 0x30d   : > { %v5954_v18 = vpop.eup %4508  ;;  %4520 = vpow2.f32 %v2025_v61  ;;  %v1934_v7 = vsub.f32 %v7460_v22, %v5952_v53 }
 0x30e   : > { %v5957_v42 = vpop.eup %4510  ;;  %4522 = vpow2.f32 %v2041_v33  ;;  %v2031_v3 = vmul.f32 1.442695, %v1930_v16  ;;  %v7461_v33 = vld [vmem:[#allocation31_spill] sm:$0xff] }
 0x30f   : > { %2183 = vperm.xlu1 %4313, %v5871_v44   ;;  %7448 = vst [vmem:[#allocation17_spill] sm:$0xff] %v5957_v42  ;;  %v5965_v40 = vpop.eup %4512  ;;  %4524 = vpow2.f32 %v2033_v1  ;;  %v1933_v20 = vsub.f32 %v7461_v33, %v5952_v53  ;;  %v2039_v23 = vmul.f32 1.442695, %v1934_v7 }
 0x310   : > { %2180 = vperm.xlu2 %4314, %v5874_v21   ;;  %7452 = vst [vmem:[#allocation27_spill] sm:$0xff] %v5965_v40  ;;  %v5970_v45 = vpop.eup %4514  ;;  %4526 = vpow2.f32 %v2031_v3  ;;  %v1937_v3 = vsub.f32 %v5544_v12, %v5968_v4 }
 0x311   : > { %2204 = vperm.xlu0 %4315, %v5877_v9   ;;  %7453 = vst [vmem:[#allocation21_spill] sm:$0xff] %v5970_v45  ;;  %v5973_v25 = vpop.eup %4516  ;;  %4528 = vpow2.f32 %v2047_v62 }
 0x312   : > { %7454 = vst [vmem:[#allocation19_spill] sm:$0xff] %v5973_v25  ;;  %v5983_v46 = vpop.eup %4518  ;;  %4530 = vpow2.f32 %v2039_v23  ;;  %v6019_v23 = vperm.slane %v5909_v31, 5 }
 0x313   : > { %7457 = vst [vmem:[#allocation30_spill] sm:$0xff] %v5983_v46  ;;  %v5988_v30 = vpop.eup %4520 }
 0x314   : > { %7458 = vst [vmem:[#allocation25_spill] sm:$0xff] %v5988_v30  ;;  %v5991_v61 = vpop.eup %4522 }
 0x315   : > { %7459 = vst [vmem:[#allocation23_spill] sm:$0xff] %v5991_v61 }
 0x317   : > { %2192 = vperm.xlu1 %4313, %v5884_v47  }
 0x318   : > { %2189 = vperm.xlu2 %4314, %v5886_v49  }
 0x319   : > { %2213 = vperm.xlu0 %4315, %v5889_v14  }
 0x31f   : > { %2201 = vperm.xlu1 %4313, %v5896_v39  }
 0x320   : > { %2198 = vperm.xlu2 %4314, %v5899_v56  }
 0x321   : > { %2222 = vperm.xlu0 %4315, %v5902_v10  }
 0x327   : > { %2210 = vperm.xlu1 %4313, %v5911_v55  }
 0x328   : > { %2207 = vperm.xlu2 %4314, %v5914_v8  }
 0x329   : > { %2231 = vperm.xlu0 %4315, %v5917_v60  }
 0x32f   : > { %2219 = vperm.xlu1 %4313, %v5924_v58  }
 0x330   : > { %2216 = vperm.xlu2 %4314, %v5927_v24  }
 0x331   : > { %2240 = vperm.xlu0 %4315, %v5930_v38  }
 0x337   : > { %2228 = vperm.xlu1 %4313, %v5937_v37  }
 0x338   : > { %2225 = vperm.xlu2 %4314, %v5939_v50  }
 0x339   : > { %2249 = vperm.xlu0 %4315, %v5942_v28   ;;  %v6001_v28 = vpop.eup %4524 }
 0x33a   : > { %7462 = vst [vmem:[#allocation28_spill] sm:$0xff] %v6001_v28  ;;  %v6003_v1 = vpop.eup %4526 }
 0x33b   : > { %7463 = vst [vmem:[#allocation31_spill] sm:$0xff] %v6003_v1  ;;  %v6006_v22 = vpop.eup %4528 }
 0x33c   : > { %7464 = vst [vmem:[#allocation47_spill] sm:$0xff] %v6006_v22 }
 0x33f   : > { %2237 = vperm.xlu1 %4313, %v5949_v5  }
 0x340   : > { %2234 = vperm.xlu2 %4314, %v5954_v18  }
 0x341   : > { %2258 = vperm.xlu0 %4315, %v5957_v42   ;;  %v5986_v42 = vperm.slane %v5909_v31, 4 }
 0x343   : > { %v1941_v16 = vsub.f32 %v5600_v54, %v5986_v42  ;;  %v7465_v54 = vld [vmem:[#allocation32_spill] sm:$0xff]  ;;  %v1944_v33 = vsub.f32 %v5635_v6, %v5986_v42 }
 0x344   : > { %v1936_v62 = vsub.f32 %v7465_v54, %v5952_v53 }
 0x345   : > { %v2053_v38 = vmul.f32 1.442695, %v1941_v16  ;;  %v2059_v60 = vmul.f32 1.442695, %v1944_v33  ;;  %v7471_v33 = vld [vmem:[#allocation39_spill] sm:$0xff] }
 0x346   : > { %v2043_v16 = vmul.f32 1.442695, %v1936_v62 }
 0x347   : > { %2246 = vperm.xlu1 %4313, %v5965_v40  }
 0x348   : > { %2243 = vperm.xlu2 %4314, %v5970_v45  }
 0x349   : > { %2267 = vperm.xlu0 %4315, %v5973_v25   ;;  %v2037_v25 = vmul.f32 1.442695, %v1933_v20  ;;  %v2045_v20 = vmul.f32 1.442695, %v1937_v3  ;;  %v7470_v3 = vld [vmem:[#allocation33_spill] sm:$0xff] }
 0x34a   : > { %v5979_v59 = vpop.permute.xlu2 %2150  ;;  %v1939_v54 = vsub.f32 %v7470_v3, %v5968_v4 }
 0x34b   : > { %4532 = vpow2.f32 %v2037_v25 }
 0x34c   : > { %4534 = vpow2.f32 %v2053_v38  ;;  %v7469_v38 = vld [vmem:[#allocation34_spill] sm:$0xff] }
 0x34d   : > { %4536 = vpow2.f32 %v2045_v20  ;;  %v1940_v6 = vsub.f32 %v7469_v38, %v5968_v4  ;;  %v2341_v20 = vperm.slane %v5979_v59, %v5329_v17 }
 0x34e   : > { %4538 = vpow2.f32 %v2043_v16  ;;  %v6041_v16 = vperm.slane %v5909_v31, 6 }
 0x34f   : > { %2255 = vperm.xlu1 %4313, %v5983_v46   ;;  %4540 = vpow2.f32 %v2059_v60 }
 0x350   : > { %2252 = vperm.xlu2 %4314, %v5988_v30  }
 0x351   : > { %2276 = vperm.xlu0 %4315, %v5991_v61   ;;  %v6016_v61 = vpop.eup %4530 }
 0x352   : > { %v2160_v57 = vpop.permute.xlu2 %2159  ;;  %7466 = vst [vmem:[#allocation32_spill] sm:$0xff] %v6016_v61  ;;  %v6021_v12 = vpop.eup %4532 }
 0x353   : > { %7467 = vst [vmem:[#allocation48_spill] sm:$0xff] %v6021_v12  ;;  %v6024_v25 = vpop.eup %4534  ;;  %v2346_v60 = vperm.slane %v2160_v57, %v5378_v34 }
 0x354   : > { %7468 = vst [vmem:[#allocation49_spill] sm:$0xff] %v6024_v25 }
 0x357   : > { %2264 = vperm.xlu1 %4313, %v6001_v28   ;;  %v2051_v28 = vmul.f32 1.442695, %v1940_v6  ;;  %v7475_v6 = vld [vmem:[#allocation36_spill] sm:$0xff] }
 0x358   : > { %2261 = vperm.xlu2 %4314, %v6003_v1  }
 0x359   : > { %2285 = vperm.xlu0 %4315, %v6006_v22   ;;  %v1947_v22 = vsub.f32 %v7471_v33, %v6019_v23  ;;  %4542 = vpow2.f32 %v2051_v28 }
 0x35a   : > { %v2166_v7 = vpop.permute.xlu2 %2165 }
 0x35b   : > { %v2065_v3 = vmul.f32 1.442695, %v1947_v22  ;;  %v7476_v22 = vld [vmem:[#allocation35_spill] sm:$0xff] }
 0x35f   : > { %2273 = vperm.xlu1 %4313, %v6016_v61  }
 0x360   : > { %2270 = vperm.xlu2 %4314, %v6021_v12   ;;  %v6038_v12 = vpop.eup %4536 }
 0x361   : > { %2294 = vperm.xlu0 %4315, %v6024_v25   ;;  %v2157_v53 = vpop.permute.xlu1 %2156  ;;  %v2049_v25 = vmul.f32 1.442695, %v1939_v54  ;;  %7472 = vst [vmem:[#allocation34_spill] sm:$0xff] %v6038_v12  ;;  %v6045_v33 = vpop.eup %4538  ;;  %v1943_v54 = vsub.f32 %v7475_v6, %v5986_v42 }
 0x362   : > { %v2172_v62 = vpop.permute.xlu2 %2171  ;;  %v2344_v61 = vperm.slane %v2157_v53, %v5343_v26  ;;  %7473 = vst [vmem:[#allocation33_spill] sm:$0xff] %v6045_v33  ;;  %v6049_v59 = vpop.eup %4540 }
 0x363   : > { %v2154_v10 = vpop.permute.xlu0 %2153  ;;  %7474 = vst [vmem:[#allocation39_spill] sm:$0xff] %v6049_v59  ;;  %4544 = vpow2.f32 %v2049_v25  ;;  %v6067_v25 = vpop.eup %4542 }
 0x364   : > { %v2342_v38 = vperm.slane %v2154_v10, %v5332_v63  ;;  %4546 = vpow2.f32 %v2065_v3  ;;  %7478 = vst [vmem:[#allocation36_spill] sm:$0xff] %v6067_v25 }
 0x366   : > { %v2343_v4 = vsel %vm1714_vm0, %v2342_v38, %v2341_v20  ;;  %v1942_v20 = vsub.f32 %v7476_v22, %v5986_v42  ;;  %v6070_v42 = vperm.slane %v5909_v31, 7  ;;  %v7482_v31 = vld [vmem:[#allocation38_spill] sm:$0xff] }
 0x367   : > { %v2345_v53 = vsel %vm1718_vm1, %v2344_v61, %v2343_v4  ;;  %2282 = vperm.xlu1 %4313, %v6038_v12   ;;  %v2349_v61 = vperm.slane %v2166_v7, %v5332_v63 }
 0x368   : > { %v2347_v10 = vsel %vm1722_vm2, %v2346_v60, %v2345_v53  ;;  %2279 = vperm.xlu2 %4314, %v6045_v33   ;;  %v7477_v60 = vld [vmem:[#allocation41_spill] sm:$0xff]  ;;  %v2055_v12 = vmul.f32 1.442695, %v1942_v20  ;;  %v1945_v20 = vsub.f32 %v7482_v31, %v6019_v23 }
 0x369   : > { %2303 = vperm.xlu0 %4315, %v6049_v59   ;;  %v2163_v57 = vpop.permute.xlu1 %2162  ;;  %v1950_v28 = vsub.f32 %v7477_v60, %v6041_v16  ;;  %v2057_v59 = vmul.f32 1.442695, %v1943_v54  ;;  %v6072_v22 = vpop.eup %4544 }
 0x36a   : > { %v2348_v38 = vperm.slane %v2163_v57, %v5329_v17  ;;  %v6060_v4 = vpop.permute.xlu2 %2180  ;;  %7479 = vst [vmem:[#allocation35_spill] sm:$0xff] %v6072_v22  ;;  %v6075_v3 = vpop.eup %4546  ;;  %v7481_v57 = vld [vmem:[#allocation37_spill] sm:$0xff] }
 0x36b   : > { %v6064_v53 = vpop.permute.xlu0 %2177  ;;  %v2071_v7 = vmul.f32 1.442695, %v1950_v28  ;;  %7480 = vst [vmem:[#allocation41_spill] sm:$0xff] %v6075_v3  ;;  %4548 = vpow2.f32 %v2057_v59  ;;  %v1953_v28 = vsub.f32 %v5768_v52, %v6070_v42  ;;  %v2353_v59 = vperm.slane %v2172_v62, %v5378_v34  ;;  %v7486_v62 = vld [vmem:[#allocation43_spill] sm:$0xff] }
 0x36c   : > { %v2350_v6 = vsel %vm1714_vm0, %v2349_v61, %v2348_v38  ;;  %v1946_v61 = vsub.f32 %v7481_v57, %v6019_v23  ;;  %4550 = vpow2.f32 %v2055_v12  ;;  %v2356_v9 = vperm.slane %v6064_v53, %v5332_v63 }
 0x36d   : > { %4552 = vpow2.f32 %v2071_v7  ;;  %v2077_v31 = vmul.f32 1.442695, %v1953_v28  ;;  %v1956_v28 = vsub.f32 %v5792_v48, %v6070_v42  ;;  %v2358_v40 = vperm.slane %v6060_v4, %v5343_v26 }
 0x36f   : > { %2291 = vperm.xlu1 %4313, %v6067_v25  }
 0x370   : > { %2288 = vperm.xlu2 %4314, %v6072_v22   ;;  %v2061_v22 = vmul.f32 1.442695, %v1945_v20 }
 0x371   : > { %2312 = vperm.xlu0 %4315, %v6075_v3   ;;  %v2169_v54 = vpop.permute.xlu1 %2168  ;;  %v2063_v3 = vmul.f32 1.442695, %v1946_v61  ;;  %v6093_v33 = vpop.eup %4548 }
 0x372   : > { %v2351_v38 = vperm.slane %v2169_v54, %v5343_v26  ;;  %v6084_v60 = vpop.permute.xlu2 %2189  ;;  %7483 = vst [vmem:[#allocation37_spill] sm:$0xff] %v6093_v33  ;;  %v6098_v7 = vpop.eup %4550 }
 0x373   : > { %v6089_v25 = vpop.permute.xlu0 %2186  ;;  %7484 = vst [vmem:[#allocation38_spill] sm:$0xff] %v6098_v7  ;;  %v6101_v52 = vpop.eup %4552  ;;  %4554 = vpow2.f32 %v2063_v3 }
 0x374   : > { %v2352_v57 = vsel %vm1718_vm1, %v2351_v38, %v2350_v6  ;;  %7485 = vst [vmem:[#allocation50_spill] sm:$0xff] %v6101_v52  ;;  %v1949_v6 = vsub.f32 %v7486_v62, %v6041_v16  ;;  %4556 = vpow2.f32 %v2061_v22  ;;  %v2083_v62 = vmul.f32 1.442695, %v1956_v28 }
 0x375   : > { %v2354_v12 = vsel %vm1722_vm2, %v2353_v59, %v2352_v57  ;;  %4558 = vpow2.f32 %v2077_v31  ;;  %v2362_v1 = vperm.slane %v6089_v25, %v5329_v17 }
 0x376   : > { %v6096_v54 = vsel %vm1829_vm3, %v2354_v12, %v2347_v10  ;;  %v7487_v10 = vld [vmem:[#allocation40_spill] sm:$0xff]  ;;  %v2069_v3 = vmul.f32 1.442695, %v1949_v6  ;;  %v7492_v6 = vld [vmem:[#allocation42_spill] sm:$0xff] }
 0x377   : > { %2300 = vperm.xlu1 %4313, %v6093_v33   ;;  %v1948_v20 = vsub.f32 %v7487_v10, %v6019_v23  ;;  %v7491_v23 = vld [vmem:[#allocation44_spill] sm:$0xff]  ;;  %v1951_v10 = vsub.f32 %v7492_v6, %v6041_v16 }
 0x378   : > { %2297 = vperm.xlu2 %4314, %v6098_v7   ;;  %4560 = vpow2.f32 %v2069_v3  ;;  %v1952_v31 = vsub.f32 %v7491_v23, %v6041_v16  ;;  %v1955_v16 = vsub.f32 %v5763_v41, %v6070_v42 }
 0x379   : > { %2321 = vperm.xlu0 %4315, %v6101_v52   ;;  %v6107_v61 = vpop.permute.xlu1 %2174  ;;  %v2067_v57 = vmul.f32 1.442695, %v1948_v20  ;;  %v6117_v12 = vpop.eup %4554  ;;  %v2073_v33 = vmul.f32 1.442695, %v1951_v10 }
 0x37a   : > { %v6111_v38 = vpop.permute.xlu2 %2198  ;;  %7488 = vst [vmem:[#allocation43_spill] sm:$0xff] %v6117_v12  ;;  %v6119_v52 = vpop.eup %4556  ;;  %v2081_v10 = vmul.f32 1.442695, %v1955_v16 }
 0x37b   : > { %v6115_v59 = vpop.permute.xlu0 %2195  ;;  %7489 = vst [vmem:[#allocation40_spill] sm:$0xff] %v6119_v52  ;;  %v6122_v22 = vpop.eup %4558  ;;  %4562 = vpow2.f32 %v2067_v57  ;;  %v2369_v30 = vperm.slane %v6111_v38, %v5329_v17 }
 0x37c   : > { %7490 = vst [vmem:[#allocation51_spill] sm:$0xff] %v6122_v22  ;;  %4564 = vpow2.f32 %v2083_v62  ;;  %v1954_v62 = vsub.f32 %v5753_v36, %v6070_v42 }
 0x37f   : > { %2309 = vperm.xlu1 %4313, %v6117_v12   ;;  %v2075_v12 = vmul.f32 1.442695, %v1952_v31 }
 0x380   : > { %2306 = vperm.xlu2 %4314, %v6119_v52   ;;  %v6136_v52 = vpop.eup %4560 }
 0x381   : > { %2330 = vperm.xlu0 %4315, %v6122_v22   ;;  %v6128_v48 = vpop.permute.xlu1 %2183  ;;  %7493 = vst [vmem:[#allocation44_spill] sm:$0xff] %v6136_v52  ;;  %v6138_v3 = vpop.eup %4562  ;;  %4566 = vpow2.f32 %v2075_v12  ;;  %v2079_v22 = vmul.f32 1.442695, %v1954_v62 }
 0x382   : > { %v6132_v20 = vpop.permute.xlu2 %2207  ;;  %7494 = vst [vmem:[#allocation42_spill] sm:$0xff] %v6138_v3  ;;  %v6141_v23 = vpop.eup %4564  ;;  %4568 = vpow2.f32 %v2073_v33 }
 0x383   : > { %v6134_v28 = vpop.permute.xlu0 %2204  ;;  %7495 = vst [vmem:[#allocation52_spill] sm:$0xff] %v6141_v23  ;;  %4570 = vpow2.f32 %v2081_v10 }
 0x384   : > { %4572 = vpow2.f32 %v2079_v22  ;;  %v2363_v22 = vperm.slane %v6084_v60, %v5332_v63  ;;  %v2372_v53 = vperm.slane %v6134_v28, %v5343_v26 }
 0x386   : > { %v2364_v60 = vsel %vm1714_vm0, %v2363_v22, %v2362_v1 }
 0x387   : > { %2318 = vperm.xlu1 %4313, %v6136_v52   ;;  %v6151_v52 = vpop.eup %4566 }
 0x388   : > { %2315 = vperm.xlu2 %4314, %v6138_v3   ;;  %7496 = vst [vmem:[#allocation53_spill] sm:$0xff] %v6151_v52  ;;  %v6153_v7 = vpop.eup %4568 }
 0x389   : > { %2339 = vperm.xlu0 %4315, %v6141_v23   ;;  %v2193_v57 = vpop.permute.xlu1 %2192  ;;  %7497 = vst [vmem:[#allocation54_spill] sm:$0xff] %v6153_v7  ;;  %v6157_v23 = vpop.eup %4570 }
 0x38a   : > { %v6149_v31 = vpop.permute.xlu2 %2216  ;;  %7498 = vst [vmem:[#allocation55_spill] sm:$0xff] %v6157_v23  ;;  %v6159_v36 = vpop.eup %4572  ;;  %v2365_v0 = vperm.slane %v2193_v57, %v5343_v26 }
 0x38b   : > { %v2214_v6 = vpop.permute.xlu0 %2213  ;;  %7499 = vst [vmem:[#allocation56_spill] sm:$0xff] %v6159_v36 }
 0x38c   : > { %v2377_v57 = vperm.slane %v2214_v6, %v5332_v63 }
 0x38f   : > { %2327 = vperm.xlu1 %4313, %v6151_v52  }
 0x390   : > { %2324 = vperm.xlu2 %4314, %v6153_v7  }
 0x391   : > { %v2202_v41 = vpop.permute.xlu1 %2201 }
 0x392   : > { %v2226_v33 = vpop.permute.xlu2 %2225 }
 0x393   : > { %v2223_v12 = vpop.permute.xlu0 %2222  ;;  %v2384_v4 = vperm.slane %v2226_v33, %v5332_v63  ;;  %v2366_v33 = vsel %vm1718_vm1, %v2365_v0, %v2364_v60 }
 0x394   : > { %v2383_v38 = vperm.slane %v2223_v12, %v5329_v17 }
 0x397   : > { %2336 = vperm.xlu1 %4313, %v6157_v23   ;;  %v2355_v23 = vperm.slane %v6107_v61, %v5329_v17  ;;  %v2360_v61 = vperm.slane %v6128_v48, %v5378_v34 }
 0x398   : > { %2333 = vperm.xlu2 %4314, %v6159_v36   ;;  %v2370_v36 = vperm.slane %v2202_v41, %v5332_v63 }
 0x399   : > { %v2211_v42 = vpop.permute.xlu1 %2210  ;;  %v2357_v25 = vsel %vm1714_vm0, %v2356_v9, %v2355_v23  ;;  %v2367_v23 = vperm.slane %v6115_v59, %v5378_v34  ;;  %v2385_v59 = vsel %vm1714_vm0, %v2384_v4, %v2383_v38 }
 0x39a   : > { %v2235_v16 = vpop.permute.xlu2 %2234  ;;  %v2376_v41 = vperm.slane %v2211_v42, %v5329_v17  ;;  %v2371_v35 = vsel %vm1714_vm0, %v2370_v36, %v2369_v30  ;;  %v2359_v28 = vsel %vm1718_vm1, %v2358_v40, %v2357_v25  ;;  %v2374_v30 = vperm.slane %v6132_v20, %v5378_v34 }
 0x39b   : > { %v2232_v62 = vpop.permute.xlu0 %2231  ;;  %v2390_v1 = vperm.slane %v2235_v16, %v5329_v17  ;;  %v2373_v36 = vsel %vm1718_vm1, %v2372_v53, %v2371_v35  ;;  %v2361_v16 = vsel %vm1722_vm2, %v2360_v61, %v2359_v28  ;;  %v2379_v40 = vperm.slane %v6149_v31, %v5343_v26 }
 0x39c   : > { %v2378_v6 = vsel %vm1714_vm0, %v2377_v57, %v2376_v41  ;;  %v2368_v0 = vsel %vm1722_vm2, %v2367_v23, %v2366_v33  ;;  %v2375_v22 = vsel %vm1722_vm2, %v2374_v30, %v2373_v36  ;;  %v2454_v61 = vsel %vm1831_vm4, %v2361_v16, %v6096_v54 }
 0x39d   : > { %v2380_v60 = vsel %vm1718_vm1, %v2379_v40, %v2378_v6 }
 0x3a1   : > { %v2220_v3 = vpop.permute.xlu1 %2219 }
 0x3a2   : > { %v2244_v52 = vpop.permute.xlu2 %2243  ;;  %v2381_v42 = vperm.slane %v2220_v3, %v5378_v34  ;;  %v2388_v3 = vperm.slane %v2232_v62, %v5378_v34 }
 0x3a3   : > { %v2241_v14 = vpop.permute.xlu0 %2240  ;;  %v2395_v41 = vperm.slane %v2244_v52, %v5378_v34 }
 0x3a4   : > { %v2393_v20 = vperm.slane %v2241_v14, %v5343_v26  ;;  %v2382_v31 = vsel %vm1722_vm2, %v2381_v42, %v2380_v60  ;;  %v2455_v14 = vsel %vm1833_vm5, %v2368_v0, %v2454_v61 }
 0x3a9   : > { %v2229_v7 = vpop.permute.xlu1 %2228 }
 0x3aa   : > { %v2253_v10 = vpop.permute.xlu2 %2252  ;;  %v2386_v9 = vperm.slane %v2229_v7, %v5343_v26 }
 0x3ab   : > { %v2250_v46 = vpop.permute.xlu0 %2249 }
 0x3ac   : > { %v2387_v35 = vsel %vm1718_vm1, %v2386_v9, %v2385_v59  ;;  %v2398_v38 = vperm.slane %v2250_v46, %v5332_v63  ;;  %v2400_v9 = vperm.slane %v2253_v10, %v5343_v26 }
 0x3ad   : > { %v2389_v4 = vsel %vm1722_vm2, %v2388_v3, %v2387_v35 }
 0x3b1   : > { %v2238_v45 = vpop.permute.xlu1 %2237 }
 0x3b2   : > { %v2391_v48 = vperm.slane %v2238_v45, %v5332_v63  ;;  %v2262_v45 = vpop.permute.xlu2 %2261 }
 0x3b3   : > { %v2259_v12 = vpop.permute.xlu0 %2258 }
 0x3b4   : > { %v2392_v7 = vsel %vm1714_vm0, %v2391_v48, %v2390_v1  ;;  %v2456_v1 = vsel %vm1835_vm6, %v2375_v22, %v2455_v14  ;;  %v2404_v16 = vperm.slane %v2259_v12, %v5329_v17 }
 0x3b5   : > { %v2394_v25 = vsel %vm1718_vm1, %v2393_v20, %v2392_v7  ;;  %v2457_v48 = vsel %vm1837_vm7, %v2382_v31, %v2456_v1  ;;  %v2405_v7 = vperm.slane %v2262_v45, %v5332_v63 }
 0x3b6   : > { %v2396_v57 = vsel %vm1722_vm2, %v2395_v41, %v2394_v25  ;;  %v2458_v23 = vsel %vm1839_vm8, %v2389_v4, %v2457_v48 }
 0x3b7   : > { %v2459_v28 = vsel %vm1841_vm9, %v2396_v57, %v2458_v23  ;;  %v2406_v0 = vsel %vm1714_vm0, %v2405_v7, %v2404_v16 }
 0x3b8   : > { %v2469_v33 = vsel %vm1852_vm10, %v2459_v28, 0.0 }
 0x3b9   : > { %v2247_v53 = vpop.permute.xlu1 %2246 }
 0x3ba   : > { %v2397_v62 = vperm.slane %v2247_v53, %v5329_v17  ;;  %v2271_v46 = vpop.permute.xlu2 %2270 }
 0x3bb   : > { %v2268_v54 = vpop.permute.xlu0 %2267  ;;  %v2411_v23 = vperm.slane %v2271_v46, %v5329_v17 }
 0x3bc   : > { %v2399_v52 = vsel %vm1714_vm0, %v2398_v38, %v2397_v62  ;;  %v2409_v35 = vperm.slane %v2268_v54, %v5378_v34 }
 0x3bd   : > { %v2401_v30 = vsel %vm1718_vm1, %v2400_v9, %v2399_v52 }
 0x3c1   : > { %2470 = vadd.xlane.f32.xlu2 %v2469_v33  ;;  %v2256_v36 = vpop.permute.xlu1 %2255 }
 0x3c2   : > { %v2402_v6 = vperm.slane %v2256_v36, %v5378_v34  ;;  %v2280_v40 = vpop.permute.xlu2 %2279 }
 0x3c3   : > { %v2277_v42 = vpop.permute.xlu0 %2276 }
 0x3c4   : > { %v2403_v10 = vsel %vm1722_vm2, %v2402_v6, %v2401_v30  ;;  %v2414_v6 = vperm.slane %v2277_v42, %v5343_v26 }
 0x3c9   : > { %v2265_v59 = vpop.permute.xlu1 %2264 }
 0x3ca   : > { %v2407_v20 = vperm.slane %v2265_v59, %v5343_v26  ;;  %v2289_v31 = vpop.permute.xlu2 %2288 }
 0x3cb   : > { %v2286_v3 = vpop.permute.xlu0 %2285  ;;  %v2421_v42 = vperm.slane %v2289_v31, %v5343_v26 }
 0x3cc   : > { %v2408_v22 = vsel %vm1718_vm1, %v2407_v20, %v2406_v0 }
 0x3cd   : > { %v2410_v60 = vsel %vm1722_vm2, %v2409_v35, %v2408_v22 }
 0x3ce   : > { %v2460_v25 = vsel %vm1829_vm3, %v2410_v60, %v2403_v10  ;;  %v2419_v10 = vperm.slane %v2286_v3, %v5332_v63  ;;  %v2416_v60 = vperm.slane %v2280_v40, %v5378_v34 }
 0x3d1   : > { %v2274_v61 = vpop.permute.xlu1 %2273 }
 0x3d2   : > { %v2298_v12 = vpop.permute.xlu2 %2297  ;;  %v2412_v52 = vperm.slane %v2274_v61, %v5332_v63 }
 0x3d3   : > { %v2295_v45 = vpop.permute.xlu0 %2294  ;;  %v2426_v7 = vperm.slane %v2298_v12, %v5332_v63 }
 0x3d4   : > { %v2413_v33 = vsel %vm1714_vm0, %v2412_v52, %v2411_v23  ;;  %v2425_v16 = vperm.slane %v2295_v45, %v5329_v17 }
 0x3d5   : > { %v2415_v0 = vsel %vm1718_vm1, %v2414_v6, %v2413_v33 }
 0x3d6   : > { %v2427_v45 = vsel %vm1714_vm0, %v2426_v7, %v2425_v16 }
 0x3d9   : > { %v2283_v41 = vpop.permute.xlu1 %2282 }
 0x3da   : > { %v2307_v4 = vpop.permute.xlu2 %2306  ;;  %v2418_v28 = vperm.slane %v2283_v41, %v5329_v17 }
 0x3db   : > { %v2304_v14 = vpop.permute.xlu0 %2303  ;;  %v2432_v59 = vperm.slane %v2307_v4, %v5329_v17 }
 0x3dc   : > { %v2420_v35 = vsel %vm1714_vm0, %v2419_v10, %v2418_v28 }
 0x3e1   : > { %v2292_v53 = vpop.permute.xlu1 %2291 }
 0x3e2   : > { %v2316_v57 = vpop.permute.xlu2 %2315  ;;  %v2423_v3 = vperm.slane %v2292_v53, %v5378_v34 }
 0x3e3   : > { %v2313_v62 = vpop.permute.xlu0 %2312  ;;  %v2437_v31 = vperm.slane %v2316_v57, %v5378_v34 }
 0x3e4   : > { %v2435_v41 = vperm.slane %v2313_v62, %v5343_v26 }
 0x3e9   : > { %v2301_v38 = vpop.permute.xlu1 %2300 }
 0x3ea   : > { %v2325_v48 = vpop.permute.xlu2 %2324  ;;  %v2428_v20 = vperm.slane %v2301_v38, %v5343_v26  ;;  %v2417_v38 = vsel %vm1722_vm2, %v2416_v60, %v2415_v0 }
 0x3eb   : > { %v2322_v9 = vpop.permute.xlu0 %2321  ;;  %v2461_v6 = vsel %vm1831_vm4, %v2417_v38, %v2460_v25 }
 0x3ec   : > { %v2440_v12 = vperm.slane %v2322_v9, %v5332_v63  ;;  %v2429_v40 = vsel %vm1718_vm1, %v2428_v20, %v2427_v45  ;;  %v2442_v9 = vperm.slane %v2325_v48, %v5343_v26 }
 0x3f1   : > { %v2310_v1 = vpop.permute.xlu1 %2309 }
 0x3f2   : > { %v2433_v36 = vperm.slane %v2310_v1, %v5332_v63  ;;  %v2334_v4 = vpop.permute.xlu2 %2333  ;;  %v2430_v1 = vperm.slane %v2304_v14, %v5378_v34 }
 0x3f3   : > { %v2331_v30 = vpop.permute.xlu0 %2330  ;;  %v2447_v28 = vperm.slane %v2334_v4, %v5332_v63 }
 0x3f4   : > { %v2434_v61 = vsel %vm1714_vm0, %v2433_v36, %v2432_v59  ;;  %v2446_v14 = vperm.slane %v2331_v30, %v5329_v17  ;;  %v2431_v33 = vsel %vm1722_vm2, %v2430_v1, %v2429_v40 }
 0x3f5   : > { %v2436_v53 = vsel %vm1718_vm1, %v2435_v41, %v2434_v61 }
 0x3f6   : > { %v2438_v7 = vsel %vm1722_vm2, %v2437_v31, %v2436_v53  ;;  %v2448_v20 = vsel %vm1714_vm0, %v2447_v28, %v2446_v14 }
 0x3f9   : > { %v2319_v54 = vpop.permute.xlu1 %2318 }
 0x3fa   : > { %v2439_v22 = vperm.slane %v2319_v54, %v5329_v17  ;;  %v2422_v54 = vsel %vm1718_vm1, %v2421_v42, %v2420_v35 }
 0x3fb   : > { %v2424_v62 = vsel %vm1722_vm2, %v2423_v3, %v2422_v54  ;;  %v2340_v36 = vpop.permute.xlu0 %2339 }
 0x3fc   : > { %v2441_v52 = vsel %vm1714_vm0, %v2440_v12, %v2439_v22  ;;  %v2462_v16 = vsel %vm1833_vm5, %v2424_v62, %v2461_v6  ;;  %v2451_v30 = vperm.slane %v2340_v36, %v5378_v34 }
 0x3fd   : > { %v2443_v57 = vsel %vm1718_vm1, %v2442_v9, %v2441_v52 }
 0x401   : > { %v2328_v46 = vpop.permute.xlu1 %2327 }
 0x402   : > { %v2444_v23 = vperm.slane %v2328_v46, %v5378_v34  ;;  %v2463_v46 = vsel %vm1835_vm6, %v2431_v33, %v2462_v16 }
 0x403   : > { %v2464_v25 = vsel %vm1837_vm7, %v2438_v7, %v2463_v46  ;;  %v7502_v7 = vld [vmem:[#allocation20_spill] sm:$0xff]  ;;  %v7505_v46 = vld [vmem:[#allocation26_spill] sm:$0xff] }
 0x404   : > { %v2445_v59 = vsel %vm1722_vm2, %v2444_v23, %v2443_v57 }
 0x405   : > { %v2465_v22 = vsel %vm1839_vm8, %v2445_v59, %v2464_v25  ;;  %v7503_v59 = vld [vmem:[#allocation25_spill] sm:$0xff] }
 0x409   : > { %v2337_v10 = vpop.permute.xlu1 %2336 }
 0x40a   : > { %v2449_v48 = vperm.slane %v2337_v10, %v5343_v26 }
 0x40c   : > { %v2450_v0 = vsel %vm1718_vm1, %v2449_v48, %v2448_v20  ;;  %v7504_v20 = vld [vmem:[#allocation27_spill] sm:$0xff] }
 0x40d   : > { %v2452_v35 = vsel %vm1722_vm2, %v2451_v30, %v2450_v0 }
 0x40e   : > { %v2466_v60 = vsel %vm1841_vm9, %v2452_v35, %v2465_v22  ;;  %v7506_v35 = vld [vmem:[#allocation31_spill] sm:$0xff] }
 0x40f   : > { %v2472_v42 = vsel %vm1852_vm10, %v2466_v60, 0.0  ;;  %v7507_v60 = vld [vmem:[#allocation30_spill] sm:$0xff] }
 0x410   : > { %2473 = vadd.xlane.f32.xlu1 %v2472_v42 }
 0x434   : > { %v2471_v3 = vpop.xlane.xlu2 %2470 }
 0x435   : > { %4574 = vrcp.f32 %v2471_v3 }
 0x43b   : > { %v4575_v61 = vpop.eup %4574 }
 0x43c   : > { %v2477_v45 = vmul.f32 %v4575_v61, %v2471_v3  ;;  %v7508_v3 = vld [vmem:[#allocation29_spill] sm:$0xff] }
 0x43e   : > { %v2479_v41 = vsub.f32 2.0, %v2477_v45 }
 0x440   : > { %v2481_v12 = vmul.f32 %v4575_v61, %v2479_v41  ;;  %v7509_v41 = vld [vmem:[#allocation48_spill] sm:$0xff] }
 0x442   : > { %v2486_v4 = vperm.slane %v2481_v12, 1  ;;  %v2485_v38 = vperm.slane %v2481_v12, 0  ;;  %v2487_v31 = vperm.slane %v2481_v12, 2  ;;  %v2488_v62 = vperm.slane %v2481_v12, 3 }
 0x443   : > { %v2489_v9 = vperm.slane %v2481_v12, 4  ;;  %v2490_v28 = vperm.slane %v2481_v12, 5 }
 0x444   : > { %v2522_v1 = vmul.f32 %v5848_v27, %v2486_v4  ;;  %v2517_v54 = vmul.f32 %v5823_v29, %v2485_v38  ;;  %v2523_v40 = vmul.f32 %v5845_v13, %v2486_v4  ;;  %v2527_v53 = vmul.f32 %v5874_v21, %v2487_v31 }
 0x445   : > { %v2518_v52 = vmul.f32 %v5826_v15, %v2485_v38  ;;  %v2528_v23 = vmul.f32 %v5871_v44, %v2487_v31  ;;  %v2530_v27 = vmul.f32 %v5886_v49, %v2488_v62  ;;  %v2519_v29 = vmul.f32 %v5820_v43, %v2485_v38 }
 0x446   : > { %2736 = vperm.xlu2 %4314, %v2522_v1   ;;  %2711 = vperm.xlu0 %4315, %v2517_v54   ;;  %v2531_v13 = vmul.f32 %v5884_v47, %v2488_v62  ;;  %v2533_v21 = vmul.f32 %v5899_v56, %v2489_v9  ;;  %v2520_v15 = vmul.f32 %v5835_v32, %v2485_v38  ;;  %v7511_v1 = vld [vmem:[#allocation45_spill] sm:$0xff] }
 0x447   : > { %2741 = vperm.xlu1 %4313, %v2523_v40   ;;  %v2534_v44 = vmul.f32 %v5896_v39, %v2489_v9  ;;  %v2536_v49 = vmul.f32 %v5914_v8, %v2489_v9  ;;  %v2521_v43 = vmul.f32 %v5833_v11, %v2486_v4  ;;  %v2537_v47 = vmul.f32 %v5911_v55, %v2490_v28 }
 0x448   : > { %v2539_v14 = vmul.f32 %v5927_v24, %v2490_v28  ;;  %v2524_v56 = vmul.f32 %v5861_v19, %v2486_v4  ;;  %v2540_v32 = vmul.f32 %v5924_v58, %v2490_v28  ;;  %v2491_v39 = vperm.slane %v2481_v12, 6  ;;  %v7510_v4 = vld [vmem:[#allocation28_spill] sm:$0xff] }
 0x449   : > { %v2525_v8 = vmul.f32 %v5858_v51, %v2487_v31  ;;  %v2492_v55 = vperm.slane %v2481_v12, 7  ;;  %v2526_v19 = vmul.f32 %v5838_v2, %v2487_v31  ;;  %v7501_v51 = vld [vmem:[#allocation24_spill] sm:$0xff]  ;;  %v2532_v16 = vmul.f32 %v7502_v7, %v2488_v62  ;;  %v7512_v31 = vld [vmem:[#allocation33_spill] sm:$0xff] }
 0x44a   : > { %v2542_v33 = vmul.f32 %v5939_v50, %v2491_v39  ;;  %v2543_v11 = vmul.f32 %v5937_v37, %v2491_v39  ;;  %v7500_v50 = vld [vmem:[#allocation21_spill] sm:$0xff]  ;;  %v2529_v57 = vmul.f32 %v7501_v51, %v2488_v62  ;;  %v2535_v0 = vmul.f32 %v7505_v46, %v2489_v9  ;;  %v7514_v62 = vld [vmem:[#allocation46_spill] sm:$0xff]  ;;  %v7515_v9 = vld [vmem:[#allocation35_spill] sm:$0xff] }
 0x44b   : > { %v2545_v24 = vmul.f32 %v5954_v18, %v2492_v55  ;;  %v2546_v58 = vmul.f32 %v5949_v5, %v2492_v55  ;;  %v2548_v6 = vmul.f32 %v7500_v50, %v2492_v55  ;;  %v2538_v61 = vmul.f32 %v7508_v3, %v2490_v28  ;;  %v7517_v28 = vld [vmem:[#allocation18_spill] sm:$0xff]  ;;  %v7522_v46 = vld [vmem:[#allocation40_spill] sm:$0xff] }
 0x44c   : > { %v2541_v54 = vmul.f32 %v7511_v1, %v2491_v39 }
 0x44e   : > { %2761 = vperm.xlu2 %4314, %v2527_v53   ;;  %2716 = vperm.xlu0 %4315, %v2518_v52   ;;  %v7513_v52 = vld [vmem:[#allocation32_spill] sm:$0xff] }
 0x44f   : > { %2766 = vperm.xlu1 %4313, %v2528_v23  }
 0x456   : > { %2776 = vperm.xlu2 %4314, %v2530_v27   ;;  %2721 = vperm.xlu0 %4315, %v2519_v29   ;;  %v2544_v27 = vmul.f32 %v7514_v62, %v2491_v39  ;;  %v7518_v39 = vld [vmem:[#allocation38_spill] sm:$0xff] }
 0x457   : > { %2781 = vperm.xlu1 %4313, %v2531_v13  }
 0x45e   : > { %2791 = vperm.xlu2 %4314, %v2533_v21   ;;  %2726 = vperm.xlu0 %4315, %v2520_v15   ;;  %v7516_v15 = vld [vmem:[#allocation34_spill] sm:$0xff] }
 0x45f   : > { %2796 = vperm.xlu1 %4313, %v2534_v44  }
 0x466   : > { %2806 = vperm.xlu2 %4314, %v2536_v49   ;;  %2731 = vperm.xlu0 %4315, %v2521_v43   ;;  %v2547_v49 = vmul.f32 %v7517_v28, %v2492_v55 }
 0x467   : > { %2811 = vperm.xlu1 %4313, %v2537_v47  }
 0x46e   : > { %2821 = vperm.xlu2 %4314, %v2539_v14   ;;  %2746 = vperm.xlu0 %4315, %v2524_v56   ;;  %v350_v56 = vld [vmem:[%s4915_s20] sm:$0xff] }
 0x46f   : > { %2826 = vperm.xlu1 %4313, %v2540_v32   ;;  %v351_v32 = vld [vmem:[%s4915_s20 + $0x8] sm:$0xff]  ;;  %v2581_v55 = vunpack.c.l.bf16 %v350_v56  ;;  %v2582_v50 = vunpack.c.h.bf16 %v350_v56 }
 0x476   : > { %2836 = vperm.xlu2 %4314, %v2542_v33   ;;  %2751 = vperm.xlu0 %4315, %v2525_v8   ;;  %v7519_v8 = vld [vmem:[#allocation36_spill] sm:$0xff] }
 0x477   : > { %2841 = vperm.xlu1 %4313, %v2543_v11  }
 0x47e   : > { %2851 = vperm.xlu2 %4314, %v2545_v24   ;;  %2756 = vperm.xlu0 %4315, %v2526_v19   ;;  %v7520_v24 = vld [vmem:[#allocation22_spill] sm:$0xff] }
 0x47f   : > { %2856 = vperm.xlu1 %4313, %v2546_v58   ;;  %v2583_v58 = vunpack.c.l.bf16 %v351_v32 }
 0x483   : > { %v2474_v36 = vpop.xlane.xlu1 %2473 }
 0x484   : > { %4576 = vrcp.f32 %v2474_v36 }
 0x486   : > { %2866 = vperm.xlu2 %4314, %v2548_v6   ;;  %2771 = vperm.xlu0 %4315, %v2529_v57   ;;  %v2584_v6 = vunpack.c.h.bf16 %v351_v32 }
 0x48a   : > { %v4577_v37 = vpop.eup %4576 }
 0x48b   : > { %v2478_v10 = vmul.f32 %v4577_v37, %v2474_v36 }
 0x48d   : > { %v2480_v18 = vsub.f32 2.0, %v2478_v10 }
 0x48e   : > { %2786 = vperm.xlu0 %4315, %v2532_v16  }
 0x48f   : > { %v6315_v2 = vmul.f32 %v4577_v37, %v2480_v18  ;;  %v7521_v18 = vld [vmem:[#allocation37_spill] sm:$0xff] }
 0x491   : > { %v2493_v5 = vperm.slane %v6315_v2, 0  ;;  %v6322_v25 = vperm.slane %v6315_v2, 1  ;;  %v6329_v45 = vperm.slane %v6315_v2, 2  ;;  %v6344_v29 = vperm.slane %v6315_v2, 3 }
 0x492   : > { %v6354_v43 = vperm.slane %v6315_v2, 4  ;;  %v6368_v51 = vperm.slane %v6315_v2, 5  ;;  %v6399_v32 = vperm.slane %v6315_v2, 7 }
 0x493   : > { %v2551_v48 = vmul.f32 %v7503_v59, %v2493_v5  ;;  %v2549_v30 = vmul.f32 %v7504_v20, %v2493_v5  ;;  %v2554_v22 = vmul.f32 %v7506_v35, %v6322_v25  ;;  %v2552_v42 = vmul.f32 %v7507_v60, %v2493_v5  ;;  %v352_v59 = vld [vmem:[%s4915_s20 + $0x10] sm:$0xff]  ;;  %v7523_v60 = vld [vmem:[#allocation17_spill] sm:$0xff] }
 0x494   : > { %v2557_v12 = vmul.f32 %v7509_v41, %v6329_v45  ;;  %v2555_v38 = vmul.f32 %v7510_v4, %v6322_v25  ;;  %v2560_v53 = vmul.f32 %v7512_v31, %v6329_v45  ;;  %v2558_v23 = vmul.f32 %v7513_v52, %v6329_v45  ;;  %v353_v31 = vld [vmem:[%s4915_s20 + $0x18] sm:$0xff] }
 0x495   : > { %2881 = vperm.xlu2 %4314, %v2551_v48   ;;  %2871 = vperm.xlu1 %4313, %v2549_v30   ;;  %v2563_v21 = vmul.f32 %v7515_v9, %v6344_v29  ;;  %v2561_v44 = vmul.f32 %v7516_v15, %v6344_v29  ;;  %v2566_v33 = vmul.f32 %v7518_v39, %v6354_v43  ;;  %v2586_v41 = vunpack.c.h.bf16 %v352_v59  ;;  %v7526_v15 = vld [vmem:[#allocation19_spill] sm:$0xff] }
 0x496   : > { %2801 = vperm.xlu0 %4315, %v2535_v0   ;;  %v2564_v11 = vmul.f32 %v7519_v8, %v6344_v29  ;;  %v2550_v19 = vmul.f32 %v7520_v24, %v2493_v5  ;;  %v2567_v5 = vmul.f32 %v7521_v18, %v6354_v43  ;;  %v2569_v0 = vmul.f32 %v7522_v46, %v6368_v51  ;;  %v356_v18 = vld [vmem:[%s4915_s20 + $0x30] sm:$0xff] }
 0x497   : > { %v2588_v56 = vunpack.c.h.bf16 %v353_v31 }
 0x49d   : > { %2896 = vperm.xlu2 %4314, %v2554_v22   ;;  %2886 = vperm.xlu1 %4313, %v2552_v42   ;;  %v2553_v42 = vmul.f32 %v7523_v60, %v6322_v25  ;;  %v357_v60 = vld [vmem:[%s4915_s20 + $0x38] sm:$0xff] }
 0x49e   : > { %2816 = vperm.xlu0 %4315, %v2538_v61   ;;  %v2585_v61 = vunpack.c.l.bf16 %v352_v59 }
 0x4a0   : > { %v6336_v40 = vpop.permute.xlu2 %2736 }
 0x4a5   : > { %2911 = vperm.xlu2 %4314, %v2557_v12   ;;  %2901 = vperm.xlu1 %4313, %v2555_v38   ;;  %v6383_v12 = vperm.slane %v6315_v2, 6  ;;  %v7530_v2 = vld [vmem:[#allocation23_spill] sm:$0xff] }
 0x4a6   : > { %2831 = vperm.xlu0 %4315, %v2541_v54  }
 0x4a8   : > { %v6346_v13 = vpop.permute.xlu2 %2761 }
 0x4ad   : > { %2926 = vperm.xlu2 %4314, %v2560_v53   ;;  %2916 = vperm.xlu1 %4313, %v2558_v23   ;;  %v7524_v23 = vld [vmem:[#allocation50_spill] sm:$0xff] }
 0x4ae   : > { %2846 = vperm.xlu0 %4315, %v2544_v27   ;;  %v2574_v62 = vmul.f32 %v7524_v23, %v6383_v12  ;;  %v7525_v27 = vld [vmem:[#allocation43_spill] sm:$0xff] }
 0x4af   : > { %v2570_v9 = vmul.f32 %v7525_v27, %v6368_v51 }
 0x4b0   : > { %v6356_v14 = vpop.permute.xlu2 %2776 }
 0x4b5   : > { %2941 = vperm.xlu2 %4314, %v2563_v21   ;;  %2931 = vperm.xlu1 %4313, %v2561_v44   ;;  %v2556_v44 = vmul.f32 %v7526_v15, %v6322_v25  ;;  %v355_v25 = vld [vmem:[%s4915_s20 + $0x28] sm:$0xff]  ;;  %v2596_v15 = vunpack.c.h.bf16 %v357_v60 }
 0x4b6   : > { %2861 = vperm.xlu0 %4315, %v2547_v49   ;;  %v2587_v49 = vunpack.c.l.bf16 %v353_v31 }
 0x4b8   : > { %v2712_v47 = vpop.permute.xlu0 %2711  ;;  %v6377_v35 = vpop.permute.xlu2 %2791 }
 0x4b9   : > { %v6365_v36 = vpop.permute.xlu1 %2741  ;;  %v3029_v37 = vmul.f32 %v2712_v47, %v2581_v55  ;;  %v3030_v7 = vmul.f32 %v2712_v47, %v2582_v50  ;;  %v3513_v48 = vperm.slane %v2712_v47, %v5329_v17  ;;  %v7528_v55 = vld [vmem:[#allocation56_spill] sm:$0xff]  ;;  %v7529_v50 = vld [vmem:[#allocation41_spill] sm:$0xff] }
 0x4bd   : > { %2956 = vperm.xlu2 %4314, %v2566_v33   ;;  %2946 = vperm.xlu1 %4313, %v2564_v11  }
 0x4be   : > { %2876 = vperm.xlu0 %4315, %v2550_v19  }
 0x4c0   : > { %v2717_v57 = vpop.permute.xlu0 %2716  ;;  %v6396_v47 = vpop.permute.xlu2 %2806 }
 0x4c1   : > { %v3031_v10 = vmul.f32 %v2717_v57, %v2583_v58  ;;  %v3032_v16 = vmul.f32 %v2717_v57, %v2584_v6  ;;  %v3514_v30 = vperm.slane %v2717_v57, %v5332_v63  ;;  %v6385_v4 = vpop.permute.xlu1 %2766  ;;  %7527 = vst [vmem:[#allocation21_spill] sm:$0xff] %v6396_v47  ;;  %v2578_v58 = vmul.f32 %v7528_v55, %v6399_v32 }
 0x4c2   : > { %v2571_v6 = vmul.f32 %v7529_v50, %v6368_v51 }
 0x4c3   : > { %v3157_v20 = vadd.f32 %v3031_v10, %v3029_v37  ;;  %v3166_v22 = vadd.f32 %v3032_v16, %v3030_v7  ;;  %v3515_v3 = vsel %vm1714_vm0, %v3514_v30, %v3513_v48  ;;  %v2559_v37 = vmul.f32 %v7530_v2, %v6329_v45  ;;  %v354_v10 = vld [vmem:[%s4915_s20 + $0x20] sm:$0xff]  ;;  %v7532_v45 = vld [vmem:[#allocation55_spill] sm:$0xff] }
 0x4c4   : > { %v2591_v16 = vunpack.c.l.bf16 %v355_v25  ;;  %v2590_v59 = vunpack.c.h.bf16 %v354_v10  ;;  %v2592_v48 = vunpack.c.h.bf16 %v355_v25 }
 0x4c5   : > { %2971 = vperm.xlu2 %4314, %v2569_v0   ;;  %2961 = vperm.xlu1 %4313, %v2567_v5   ;;  %v2589_v5 = vunpack.c.l.bf16 %v354_v10  ;;  %v2593_v0 = vunpack.c.l.bf16 %v356_v18 }
 0x4c6   : > { %2891 = vperm.xlu0 %4315, %v2553_v42   ;;  %v3039_v46 = vmul.f32 %v6336_v40, %v2591_v16 }
 0x4c8   : > { %v2722_v38 = vpop.permute.xlu0 %2721 }
 0x4c9   : > { %v3033_v1 = vmul.f32 %v2722_v38, %v2585_v61  ;;  %v3034_v54 = vmul.f32 %v2722_v38, %v2586_v41  ;;  %v3516_v52 = vperm.slane %v2722_v38, %v5343_v26  ;;  %v6401_v8 = vpop.permute.xlu1 %2781  ;;  %v7533_v41 = vld [vmem:[#allocation54_spill] sm:$0xff] }
 0x4ca   : > { %v2575_v38 = vmul.f32 %v7533_v41, %v6383_v12 }
 0x4cb   : > { %v3158_v53 = vadd.f32 %v3157_v20, %v3033_v1  ;;  %v3167_v21 = vadd.f32 %v3166_v22, %v3034_v54  ;;  %v3517_v28 = vsel %vm1718_vm1, %v3516_v52, %v3515_v3  ;;  %v6414_v20 = vpop.permute.xlu2 %2821  ;;  %v2579_v22 = vmul.f32 %v7532_v45, %v6399_v32  ;;  %v7534_v52 = vld [vmem:[#allocation47_spill] sm:$0xff] }
 0x4cc   : > { %7531 = vst [vmem:[#allocation24_spill] sm:$0xff] %v6414_v20  ;;  %v3040_v1 = vmul.f32 %v6336_v40, %v2592_v48  ;;  %v2594_v54 = vunpack.c.h.bf16 %v356_v18  ;;  %v2562_v23 = vmul.f32 %v7534_v52, %v6344_v29  ;;  %v7537_v18 = vld [vmem:[#allocation49_spill] sm:$0xff] }
 0x4cd   : > { %2996 = vperm.xlu2 %4314, %v2574_v62   ;;  %2976 = vperm.xlu1 %4313, %v2570_v9   ;;  %v2595_v9 = vunpack.c.l.bf16 %v357_v60 }
 0x4ce   : > { %2906 = vperm.xlu0 %4315, %v2556_v44   ;;  %v3521_v44 = vperm.slane %v6336_v40, %v5332_v63 }
 0x4d0   : > { %v2727_v39 = vpop.permute.xlu0 %2726 }
 0x4d1   : > { %v3035_v33 = vmul.f32 %v2727_v39, %v2587_v49  ;;  %v3036_v11 = vmul.f32 %v2727_v39, %v2588_v56  ;;  %v3518_v19 = vperm.slane %v2727_v39, %v5378_v34  ;;  %v6423_v31 = vpop.permute.xlu1 %2796  ;;  %v3042_v56 = vmul.f32 %v6365_v36, %v2594_v54 }
 0x4d3   : > { %v3159_v24 = vadd.f32 %v3158_v53, %v3035_v33  ;;  %v3168_v57 = vadd.f32 %v3167_v21, %v3036_v11  ;;  %v3519_v7 = vsel %vm1722_vm2, %v3518_v19, %v3517_v28  ;;  %v3041_v28 = vmul.f32 %v6365_v36, %v2593_v0  ;;  %v6435_v55 = vpop.permute.xlu2 %2836 }
 0x4d4   : > { %v3523_v19 = vperm.slane %v6365_v36, %v5343_v26  ;;  %7535 = vst [vmem:[#allocation20_spill] sm:$0xff] %v6435_v55 }
 0x4d5   : > { %3016 = vperm.xlu2 %4314, %v2578_v58   ;;  %2981 = vperm.xlu1 %4313, %v2571_v6   ;;  %v3160_v42 = vrot.slane %v3159_v24, 4  ;;  %v3169_v53 = vrot.slane %v3168_v57, 4 }
 0x4d6   : > { %2921 = vperm.xlu0 %4315, %v2559_v37  }
 0x4d7   : > { %v3161_v49 = vadd.f32 %v3160_v42, %v3159_v24  ;;  %v3170_v39 = vadd.f32 %v3169_v53, %v3168_v57  ;;  %v7536_v24 = vld [vmem:[#allocation53_spill] sm:$0xff]  ;;  %v7538_v53 = vld [vmem:[#allocation39_spill] sm:$0xff] }
 0x4d8   : > { %v2732_v30 = vpop.permute.xlu0 %2731  ;;  %v2576_v37 = vmul.f32 %v7536_v24, %v6383_v12  ;;  %v2568_v52 = vmul.f32 %v7538_v53, %v6354_v43 }
 0x4d9   : > { %v3037_v3 = vmul.f32 %v2732_v30, %v2589_v5  ;;  %v3038_v61 = vmul.f32 %v2732_v30, %v2590_v59  ;;  %v3520_v27 = vperm.slane %v2732_v30, %v5329_v17  ;;  %v3162_v6 = vrot.slane %v3161_v49, 2  ;;  %v6444_v48 = vpop.permute.xlu1 %2811 }
 0x4da   : > { %v3171_v57 = vrot.slane %v3170_v39, 2  ;;  %v2565_v5 = vmul.f32 %v7537_v18, %v6354_v43  ;;  %v6476_v18 = vld [vmem:[%s4915_s20 + $0x70] sm:$0xff] }
 0x4db   : > { %v3175_v62 = vadd.f32 %v3039_v46, %v3037_v3  ;;  %v3184_v21 = vadd.f32 %v3040_v1, %v3038_v61  ;;  %v3522_v29 = vsel %vm1714_vm0, %v3521_v44, %v3520_v27  ;;  %v3163_v0 = vadd.f32 %v3162_v6, %v3161_v49  ;;  %v6451_v54 = vpop.permute.xlu2 %2851  ;;  %v359_v44 = vld [vmem:[%s4915_s20 + $0x48] sm:$0xff]  ;;  %v369_v49 = vld [vmem:[%s4915_s20 + $0x98] sm:$0xff]  ;;  %v6470_v6 = vld [vmem:[%s4915_s20 + $0xb0] sm:$0xff] }
 0x4dc   : > { %v3524_v10 = vsel %vm1718_vm1, %v3523_v19, %v3522_v29 }
 0x4dd   : > { %3021 = vperm.xlu2 %4314, %v2579_v22   ;;  %3001 = vperm.xlu1 %4313, %v2575_v38   ;;  %v3176_v11 = vadd.f32 %v3175_v62, %v3041_v28  ;;  %v3185_v58 = vadd.f32 %v3184_v21, %v3042_v56  ;;  %v3172_v22 = vadd.f32 %v3171_v57, %v3170_v39  ;;  %v3164_v41 = vrot.slane %v3163_v0, 1  ;;  %v360_v62 = vld [vmem:[%s4915_s20 + $0x50] sm:$0xff]  ;;  %v366_v28 = vld [vmem:[%s4915_s20 + $0x80] sm:$0xff] }
 0x4de   : > { %2936 = vperm.xlu0 %4315, %v2562_v23   ;;  %v2601_v43 = vunpack.c.l.bf16 %v360_v62  ;;  %v2602_v19 = vunpack.c.h.bf16 %v360_v62  ;;  %v2614_v57 = vunpack.c.h.bf16 %v366_v28  ;;  %v367_v62 = vld [vmem:[%s4915_s20 + $0x88] sm:$0xff] }
 0x4df   : > { %v3173_v1 = vrot.slane %v3172_v22, 1  ;;  %v3165_v21 = vadd.f32 %v3164_v41, %v3163_v0 }
 0x4e0   : > { %v2747_v33 = vpop.permute.xlu0 %2746  ;;  %v3050_v41 = vmul.f32 %v6346_v13, %v2602_v19 }
 0x4e1   : > { %v3043_v25 = vmul.f32 %v2747_v33, %v2595_v9  ;;  %v3044_v50 = vmul.f32 %v2747_v33, %v2596_v15  ;;  %v3525_v2 = vperm.slane %v2747_v33, %v5378_v34  ;;  %v363_v9 = vld [vmem:[%s4915_s20 + $0x68] sm:$0xff]  ;;  %v3174_v56 = vadd.f32 %v3173_v1, %v3172_v22  ;;  %v6460_v39 = vpop.permute.xlu1 %2826 }
 0x4e2   : > { %v2608_v24 = vunpack.c.h.bf16 %v363_v9 }
 0x4e3   : > { %v3177_v40 = vadd.f32 %v3176_v11, %v3043_v25  ;;  %v3186_v16 = vadd.f32 %v3185_v58, %v3044_v50  ;;  %v3526_v36 = vsel %vm1722_vm2, %v3525_v2, %v3524_v10  ;;  %v358_v25 = vld [vmem:[%s4915_s20 + $0x40] sm:$0xff]  ;;  %v2607_v58 = vunpack.c.l.bf16 %v363_v9  ;;  %v361_v50 = vld [vmem:[%s4915_s20 + $0x58] sm:$0xff] }
 0x4e4   : > { %v6447_v46 = vsel %vm1829_vm3, %v3526_v36, %v3519_v7  ;;  %v2599_v2 = vunpack.c.l.bf16 %v359_v44  ;;  %v2619_v10 = vunpack.c.l.bf16 %v369_v49  ;;  %v2600_v36 = vunpack.c.h.bf16 %v359_v44  ;;  %v7543_v44 = vld [vmem:[#allocation51_spill] sm:$0xff] }
 0x4e5   : > { %v3178_v59 = vrot.slane %v3177_v40, 4  ;;  %3006 = vperm.xlu1 %4313, %v2576_v37   ;;  %v3187_v30 = vrot.slane %v3186_v16, 4  ;;  %v2613_v37 = vunpack.c.l.bf16 %v366_v28  ;;  %v2604_v22 = vunpack.c.h.bf16 %v361_v50 }
 0x4e6   : > { %2951 = vperm.xlu0 %4315, %v2565_v5   ;;  %v6479_v5 = vld [vmem:[%s4915_s20 + $0xc8] sm:$0xff]  ;;  %v2598_v1 = vunpack.c.h.bf16 %v358_v25  ;;  %v2577_v28 = vmul.f32 %v7543_v44, %v6399_v32 }
 0x4e7   : > { %v3179_v45 = vadd.f32 %v3178_v59, %v3177_v40  ;;  %v3188_v60 = vadd.f32 %v3187_v30, %v3186_v16  ;;  %v2620_v16 = vunpack.c.h.bf16 %v369_v49  ;;  %v2597_v59 = vunpack.c.l.bf16 %v358_v25  ;;  %v7541_v30 = vld [vmem:[#allocation44_spill] sm:$0xff] }
 0x4e8   : > { %v6449_v42 = vpop.permute.xlu0 %2751  ;;  %v2573_v0 = vmul.f32 %v7541_v30, %v6383_v12  ;;  %v2609_v12 = vunpack.c.l.bf16 %v6476_v18  ;;  %v6504_v49 = vmul.f32 %v6356_v14, %v2607_v58  ;;  %v7545_v25 = vld [vmem:[#allocation52_spill] sm:$0xff]  ;;  %v6528_v30 = vld [vmem:[%s4915_s20 + $0xe0] sm:$0xff] }
 0x4e9   : > { %v3180_v3 = vrot.slane %v3179_v45, 2  ;;  %v3189_v61 = vrot.slane %v3188_v60, 2  ;;  %v3045_v9 = vmul.f32 %v6449_v42, %v2597_v59  ;;  %v6515_v19 = vmul.f32 %v7545_v25, %v6399_v32 }
 0x4ea   : > { %v3046_v58 = vmul.f32 %v6449_v42, %v2598_v1  ;;  %v3062_v59 = vmul.f32 %v6377_v35, %v2614_v57  ;;  %v3541_v32 = vperm.slane %v6377_v35, %v5329_v17  ;;  %v6534_v44 = vmul.f32 %v6396_v47, %v2620_v16 }
 0x4eb   : > { %v3181_v38 = vadd.f32 %v3180_v3, %v3179_v45  ;;  %v3190_v7 = vadd.f32 %v3189_v61, %v3188_v60  ;;  %v2603_v45 = vunpack.c.l.bf16 %v361_v50  ;;  %v2625_v60 = vunpack.c.l.bf16 %v6470_v6 }
 0x4ec   : > { %v2626_v3 = vunpack.c.h.bf16 %v6470_v6  ;;  %v3049_v61 = vmul.f32 %v6346_v13, %v2601_v43  ;;  %v2615_v6 = vunpack.c.l.bf16 %v367_v62  ;;  %v2637_v25 = vunpack.c.l.bf16 %v6528_v30 }
 0x4ed   : > { %v3182_v23 = vrot.slane %v3181_v38, 1  ;;  %v3191_v27 = vrot.slane %v3190_v7, 1  ;;  %v2638_v1 = vunpack.c.h.bf16 %v6528_v30 }
 0x4ee   : > { %2966 = vperm.xlu0 %4315, %v2568_v52   ;;  %v2610_v52 = vunpack.c.h.bf16 %v6476_v18  ;;  %v362_v18 = vld [vmem:[%s4915_s20 + $0x60] sm:$0xff]  ;;  %v3063_v16 = vmul.f32 %v6423_v31, %v2615_v6 }
 0x4ef   : > { %v3183_v15 = vadd.f32 %v3182_v23, %v3181_v38  ;;  %v3192_v33 = vadd.f32 %v3191_v27, %v3190_v7  ;;  %v6487_v38 = vpop.permute.xlu2 %2866  ;;  %v2632_v27 = vunpack.c.h.bf16 %v6479_v5 }
 0x4f0   : > { %v6462_v29 = vpop.permute.xlu0 %2756  ;;  %7542 = vst [vmem:[#allocation26_spill] sm:$0xff] %v6487_v38 }
 0x4f1   : > { %v6465_v11 = vsel %vm1829_vm3, %v3183_v15, %v3165_v21  ;;  %v6473_v40 = vsel %vm1829_vm3, %v3192_v33, %v3174_v56  ;;  %v3047_v7 = vmul.f32 %v6462_v29, %v2599_v2  ;;  %v3048_v21 = vmul.f32 %v6462_v29, %v2600_v36  ;;  %v7544_v33 = vld [vmem:[#allocation42_spill] sm:$0xff]  ;;  %v6519_v2 = vpop.permute.xlu1 %2841 }
 0x4f2   : > { %7539 = vst [vmem:[#allocation25_spill] sm:$0xff] %v6465_v11  ;;  %v6507_v56 = vmul.f32 %v6356_v14, %v2608_v24  ;;  %v6511_v43 = vmul.f32 %v7544_v33, %v6368_v51  ;;  %v3061_v51 = vmul.f32 %v6377_v35, %v2613_v37  ;;  %v2616_v36 = vunpack.c.h.bf16 %v367_v62  ;;  %v6542_v37 = vld [vmem:[%s4915_s20 + $0xf8] sm:$0xff] }
 0x4f3   : > { %7540 = vst [vmem:[#allocation27_spill] sm:$0xff] %v6473_v40  ;;  %v3193_v24 = vadd.f32 %v3047_v7, %v3045_v9  ;;  %v6539_v7 = vld [vmem:[%s4915_s20 + $0xa0] sm:$0xff]  ;;  %v3202_v57 = vadd.f32 %v3048_v21, %v3046_v58  ;;  %v3051_v9 = vmul.f32 %v6385_v4, %v2603_v45  ;;  %v3052_v35 = vmul.f32 %v6385_v4, %v2604_v22  ;;  %v6547_v62 = vld [vmem:[%s4915_s20 + $0xb8] sm:$0xff] }
 0x4f4   : > { %v2605_v33 = vunpack.c.l.bf16 %v362_v18  ;;  %v2621_v45 = vunpack.c.l.bf16 %v6539_v7  ;;  %v2622_v22 = vunpack.c.h.bf16 %v6539_v7  ;;  %v2643_v21 = vunpack.c.l.bf16 %v6542_v37 }
 0x4f5   : > { %v3194_v53 = vadd.f32 %v3193_v24, %v3049_v61  ;;  %v3203_v23 = vadd.f32 %v3202_v57, %v3050_v41  ;;  %v3057_v58 = vmul.f32 %v6401_v8, %v2609_v12  ;;  %v3064_v41 = vmul.f32 %v6423_v31, %v2616_v36  ;;  %v6578_v57 = vld [vmem:[%s4915_s20 + $0xd0] sm:$0xff] }
 0x4f6   : > { %2991 = vperm.xlu0 %4315, %v2573_v0   ;;  %v6531_v0 = vmul.f32 %v6396_v47, %v2619_v10  ;;  %v2606_v10 = vunpack.c.h.bf16 %v362_v18  ;;  %v6560_v18 = vmul.f32 %v6414_v20, %v2625_v60  ;;  %v365_v47 = vld [vmem:[%s4915_s20 + $0x78] sm:$0xff]  ;;  %v3542_v40 = vperm.slane %v6423_v31, %v5332_v63 }
 0x4f7   : > { %v6553_v50 = vpop.permute.xlu2 %2881  ;;  %v3195_v30 = vadd.f32 %v3194_v53, %v3051_v9  ;;  %v2611_v24 = vunpack.c.l.bf16 %v365_v47  ;;  %v7546_v12 = vunpack.c.l.bf16 %v6479_v5  ;;  %v6591_v36 = vmul.f32 %v6435_v55, %v2632_v27  ;;  %v379_v9 = vld [vmem:[%s4915_s20 + $0xe8] sm:$0xff] }
 0x4f8   : > { %v6499_v15 = vpop.permute.xlu0 %2771  ;;  %v6606_v11 = vadd.f32 %v3064_v41, %v3062_v59  ;;  %v2634_v27 = vunpack.c.h.bf16 %v6578_v57  ;;  %v2640_v59 = vunpack.c.h.bf16 %v379_v9 }
 0x4f9   : > { %v3053_v7 = vmul.f32 %v6499_v15, %v2605_v33  ;;  %v3054_v60 = vmul.f32 %v6499_v15, %v2606_v10  ;;  %v6588_v6 = vmul.f32 %v6435_v55, %v7546_v12  ;;  %7547 = vst [vmem:[#allocation31_spill] sm:$0xff] %v6591_v36  ;;  %v6594_v10 = vld [vmem:[%s4915_s20 + $0x110] sm:$0xff]  ;;  %v6596_v53 = vpop.permute.xlu1 %2856  ;;  %v6604_v12 = vadd.f32 %v3063_v16, %v3061_v51 }
 0x4fa   : > { %v3196_v36 = vrot.slane %v3195_v30, 4  ;;  %v2639_v51 = vunpack.c.l.bf16 %v379_v9  ;;  %v3528_v9 = vperm.slane %v6462_v29, %v5332_v63  ;;  %v7549_v29 = vunpack.c.h.bf16 %v6542_v37 }
 0x4fb   : > { %v3211_v33 = vadd.f32 %v6504_v49, %v3053_v7  ;;  %v3220_v5 = vadd.f32 %v6507_v56, %v3054_v60  ;;  %v2650_v56 = vunpack.c.h.bf16 %v6594_v10 }
 0x4fe   : > { %3011 = vperm.xlu0 %4315, %v2577_v28   ;;  %v6568_v28 = vmul.f32 %v6414_v20, %v2626_v3  ;;  %v3058_v3 = vmul.f32 %v6401_v8, %v2610_v52  ;;  %v2612_v20 = vunpack.c.h.bf16 %v365_v47  ;;  %v3204_v52 = vadd.f32 %v3203_v23, %v3052_v35 }
 0x4ff   : > { %v2633_v47 = vunpack.c.l.bf16 %v6578_v57  ;;  %v6611_v23 = vsel %vm1714_vm0, %v3542_v40, %v3541_v32  ;;  %v2649_v35 = vunpack.c.l.bf16 %v6594_v10  ;;  %v6617_v7 = vpop.permute.xlu2 %2896  ;;  %v3086_v40 = vmul.f32 %v6451_v54, %v2638_v1  ;;  %v368_v57 = vld [vmem:[%s4915_s20 + $0x90] sm:$0xff] }
 0x500   : > { %v6565_v61 = vpop.permute.xlu0 %2786  ;;  %v3205_v16 = vrot.slane %v3204_v52, 4  ;;  %7548 = vst [vmem:[#allocation30_spill] sm:$0xff] %v6617_v7  ;;  %v3212_v32 = vadd.f32 %v3211_v33, %v3057_v58  ;;  %v3221_v41 = vadd.f32 %v3220_v5, %v3058_v3  ;;  %v3197_v10 = vadd.f32 %v3196_v36, %v3195_v30  ;;  %v371_v30 = vld [vmem:[%s4915_s20 + $0xa8] sm:$0xff] }
 0x501   : > { %v3059_v31 = vmul.f32 %v6565_v61, %v2611_v24  ;;  %v3060_v49 = vmul.f32 %v6565_v61, %v2612_v20  ;;  %v3069_v24 = vmul.f32 %v6444_v48, %v2621_v45  ;;  %v3070_v7 = vmul.f32 %v6444_v48, %v2622_v22 }
 0x502   : > { %v6633_v58 = vmul.f32 %v6487_v38, %v2643_v21  ;;  %v3527_v3 = vperm.slane %v6449_v42, %v5329_v17  ;;  %v3206_v33 = vadd.f32 %v3205_v16, %v3204_v52  ;;  %v2617_v45 = vunpack.c.l.bf16 %v368_v57 }
 0x503   : > { %v3213_v55 = vadd.f32 %v3212_v32, %v3059_v31  ;;  %v3222_v1 = vadd.f32 %v3221_v41, %v3060_v49  ;;  %v6643_v22 = vmul.f32 %v6487_v38, %v7549_v29  ;;  %v7550_v31 = vunpack.c.l.bf16 %v6547_v62 }
 0x504   : > { %v7551_v42 = vunpack.c.h.bf16 %v6547_v62  ;;  %v6660_v37 = vmul.f32 %v6519_v2, %v2633_v47  ;;  %v3198_v16 = vrot.slane %v3197_v10, 2  ;;  %v3529_v32 = vsel %vm1714_vm0, %v3528_v9, %v3527_v3 }
 0x505   : > { %v6650_v21 = vmul.f32 %v6460_v39, %v7550_v31  ;;  %v3214_v41 = vrot.slane %v3213_v55, 4  ;;  %v3223_v29 = vrot.slane %v3222_v1, 4  ;;  %v2623_v31 = vunpack.c.l.bf16 %v371_v30 }
 0x506   : > { %2986 = vperm.xlu0 %4315, %v6511_v43   ;;  %v3085_v43 = vmul.f32 %v6451_v54, %v2637_v25  ;;  %v6655_v52 = vmul.f32 %v6460_v39, %v7551_v42  ;;  %v2624_v36 = vunpack.c.h.bf16 %v371_v30  ;;  %v6665_v62 = vmul.f32 %v6519_v2, %v2634_v27 }
 0x507   : > { %v6637_v5 = vpop.permute.xlu1 %2871  ;;  %v3207_v42 = vrot.slane %v3206_v33, 2  ;;  %v2618_v25 = vunpack.c.h.bf16 %v368_v57  ;;  %v6673_v9 = vmul.f32 %v6553_v50, %v2649_v35  ;;  %v3087_v3 = vmul.f32 %v6596_v53, %v2639_v51  ;;  %v6686_v38 = vpop.permute.xlu2 %2911 }
 0x508   : > { %v6619_v60 = vpop.permute.xlu0 %2801  ;;  %v3088_v27 = vmul.f32 %v6596_v53, %v2640_v59  ;;  %v3199_v30 = vadd.f32 %v3198_v16, %v3197_v10  ;;  %v7554_v57 = vperm.slane %v6346_v13, %v5343_v26  ;;  %v3534_v47 = vperm.slane %v6499_v15, %v5329_v17  ;;  %v374_v16 = vld [vmem:[%s4915_s20 + $0xc0] sm:$0xff] }
 0x509   : > { %v3065_v20 = vmul.f32 %v6619_v60, %v2617_v45  ;;  %7552 = vst [vmem:[#allocation29_spill] sm:$0xff] %v6673_v9  ;;  %v3215_v35 = vadd.f32 %v3214_v41, %v3213_v55  ;;  %v3224_v9 = vadd.f32 %v3223_v29, %v3222_v1  ;;  %v3563_v51 = vperm.slane %v6596_v53, %v5332_v63 }
 0x50a   : > { %v3531_v45 = vsel %vm1718_vm1, %v7554_v57, %v3529_v32  ;;  %v3208_v59 = vadd.f32 %v3207_v42, %v3206_v33  ;;  %v3066_v13 = vmul.f32 %v6619_v60, %v2618_v25  ;;  %v3572_v15 = vperm.slane %v6553_v50, %v5343_v26 }
 0x50b   : > { %v3230_v10 = vadd.f32 %v6604_v12, %v3065_v20  ;;  %v6697_v32 = vadd.f32 %v3087_v3, %v3085_v43  ;;  %v6699_v41 = vadd.f32 %v3088_v27, %v3086_v40  ;;  %v7555_v53 = vperm.slane %v6385_v4, %v5378_v34 }
 0x50c   : > { %v7556_v25 = vperm.slane %v6356_v14, %v5332_v63  ;;  %v3216_v29 = vrot.slane %v3215_v35, 2  ;;  %v3225_v43 = vrot.slane %v3224_v9, 2  ;;  %v2630_v40 = vunpack.c.h.bf16 %v374_v16 }
 0x50d   : > { %v3533_v33 = vsel %vm1722_vm2, %v7555_v53, %v3531_v45  ;;  %v3209_v42 = vrot.slane %v3208_v59, 1  ;;  %v3231_v14 = vadd.f32 %v3230_v10, %v6531_v0  ;;  %v3539_v27 = vperm.slane %v6565_v61, %v5378_v34 }
 0x50e   : > { %3026 = vperm.xlu0 %4315, %v6515_v19   ;;  %v6676_v19 = vmul.f32 %v6553_v50, %v2650_v56  ;;  %v3536_v12 = vsel %vm1714_vm0, %v7556_v25, %v3534_v47  ;;  %v3239_v47 = vadd.f32 %v6606_v11, %v3066_v13  ;;  %v3626_v3 = vsel %vm1831_vm4, %v3533_v33, %v6447_v46  ;;  %v6737_v13 = vld [vmem:[%s4915_s20 + $0x118] sm:$0xff]  ;;  %v7559_v25 = vld [vmem:[#allocation31_spill] sm:$0xff] }
 0x50f   : > { %v6709_v20 = vpop.permute.xlu1 %2886  ;;  %v3217_v46 = vadd.f32 %v3216_v29, %v3215_v35  ;;  %v3226_v10 = vadd.f32 %v3225_v43, %v3224_v9  ;;  %v2651_v53 = vunpack.c.l.bf16 %v6737_v13 }
 0x510   : > { %v6668_v49 = vpop.permute.xlu0 %2816  ;;  %7553 = vst [vmem:[#allocation48_spill] sm:$0xff] %v6676_v19 }
 0x511   : > { %v3071_v56 = vmul.f32 %v6668_v49, %v2623_v31  ;;  %v3072_v19 = vmul.f32 %v6668_v49, %v2624_v36  ;;  %v3200_v36 = vrot.slane %v3199_v30, 1  ;;  %v6712_v31 = vld [vmem:[%s4915_s20 + $0x100] sm:$0xff]  ;;  %v3218_v43 = vrot.slane %v3217_v46, 1 }
 0x512   : > { %v2645_v11 = vunpack.c.l.bf16 %v6712_v31 }
 0x513   : > { %v3247_v55 = vadd.f32 %v3071_v56, %v3069_v24  ;;  %v3256_v1 = vadd.f32 %v3072_v19, %v3070_v7  ;;  %v2629_v7 = vunpack.c.l.bf16 %v374_v16  ;;  %v7557_v24 = vperm.slane %v6451_v54, %v5329_v17  ;;  %v377_v16 = vld [vmem:[%s4915_s20 + $0xd8] sm:$0xff] }
 0x514   : > { %v3201_v45 = vadd.f32 %v3200_v36, %v3199_v30  ;;  %v7558_v56 = vperm.slane %v6401_v8, %v5343_v26  ;;  %v6742_v30 = vpop.permute.xlu2 %2926  ;;  %v3240_v8 = vadd.f32 %v3239_v47, %v6534_v44  ;;  %v2636_v29 = vunpack.c.h.bf16 %v377_v16 }
 0x515   : > { %v6718_v4 = vsel %vm1714_vm0, %v3563_v51, %v7557_v24  ;;  %v3248_v57 = vadd.f32 %v3247_v55, %v6560_v18  ;;  %v3257_v54 = vadd.f32 %v3256_v1, %v6568_v28  ;;  %v2646_v51 = vunpack.c.h.bf16 %v6712_v31  ;;  %v7560_v31 = vld [vmem:[#allocation25_spill] sm:$0xff] }
 0x516   : > { %v3538_v0 = vsel %vm1718_vm1, %v7558_v56, %v3536_v12  ;;  %v3210_v28 = vadd.f32 %v3209_v42, %v3208_v59  ;;  %v3232_v55 = vrot.slane %v3231_v14, 4  ;;  %v3544_v1 = vperm.slane %v6619_v60, %v5343_v26 }
 0x517   : > { %v3540_v36 = vsel %vm1722_vm2, %v3539_v27, %v3538_v0  ;;  %v3249_v9 = vadd.f32 %v3248_v57, %v6650_v21  ;;  %v3258_v35 = vadd.f32 %v3257_v54, %v6655_v52  ;;  %v2635_v12 = vunpack.c.l.bf16 %v377_v16  ;;  %v6760_v52 = vpop.permute.xlu1 %2901 }
 0x518   : > { %v6722_v19 = vpop.permute.xlu0 %2831  ;;  %v3227_v44 = vrot.slane %v3226_v10, 1  ;;  %v3478_v60 = vsel %vm1831_vm4, %v3201_v45, %v7560_v31  ;;  %v3233_v21 = vadd.f32 %v3232_v55, %v3231_v14  ;;  %v3241_v42 = vrot.slane %v3240_v8, 4 }
 0x519   : > { %v3077_v61 = vmul.f32 %v6722_v19, %v2629_v7  ;;  %v3078_v18 = vmul.f32 %v6722_v19, %v2630_v40  ;;  %v2652_v7 = vunpack.c.h.bf16 %v6737_v13  ;;  %v7561_v40 = vld [vmem:[#allocation27_spill] sm:$0xff]  ;;  %v3627_v27 = vsel %vm1833_vm5, %v3540_v36, %v3626_v3 }
 0x51a   : > { %v3485_v24 = vsel %vm1831_vm4, %v3210_v28, %v7561_v40  ;;  %v3250_v57 = vrot.slane %v3249_v9, 4  ;;  %v3259_v54 = vrot.slane %v3258_v35, 4  ;;  %v3549_v45 = vperm.slane %v6668_v49, %v5332_v63  ;;  %v7562_v28 = vld [vmem:[#allocation21_spill] sm:$0xff]  ;;  %v7566_v40 = vld [vmem:[#allocation24_spill] sm:$0xff] }
 0x51b   : > { %v3265_v33 = vadd.f32 %v6588_v6, %v3077_v61  ;;  %v3274_v59 = vadd.f32 %v7559_v25, %v3078_v18  ;;  %v3545_v6 = vsel %vm1718_vm1, %v3544_v1, %v6611_v23  ;;  %v3219_v23 = vadd.f32 %v3218_v43, %v3217_v46  ;;  %v380_v1 = vld [vmem:[%s4915_s20 + $0xf0] sm:$0xff] }
 0x51c   : > { %v3228_v18 = vadd.f32 %v3227_v44, %v3226_v10  ;;  %v6769_v16 = vmul.f32 %v6637_v5, %v2645_v11  ;;  %v7563_v3 = vperm.slane %v7562_v28, %v5378_v34  ;;  %v3234_v36 = vrot.slane %v3233_v21, 2 }
 0x51d   : > { %v3266_v56 = vadd.f32 %v3265_v33, %v6660_v37  ;;  %v3275_v14 = vadd.f32 %v3274_v59, %v6665_v62  ;;  %v3242_v49 = vadd.f32 %v3241_v42, %v3240_v8  ;;  %v3251_v37 = vadd.f32 %v3250_v57, %v3249_v9  ;;  %v6788_v8 = vpop.permute.xlu2 %2941 }
 0x51e   : > { %v3547_v55 = vsel %vm1722_vm2, %v7563_v3, %v3545_v6  ;;  %v3260_v62 = vadd.f32 %v3259_v54, %v3258_v35  ;;  %v7565_v11 = vperm.slane %v6444_v48, %v5329_v17  ;;  %v3555_v10 = vperm.slane %v6722_v19, %v5329_v17 }
 0x51f   : > { %v6791_v43 = vsel %vm1833_vm5, %v3219_v23, %v3478_v60  ;;  %v6794_v9 = vmul.f32 %v6637_v5, %v2646_v51  ;;  %v3569_v48 = vperm.slane %v6637_v5, %v5329_v17  ;;  %v3628_v35 = vsel %vm1835_vm6, %v3547_v55, %v3627_v27  ;;  %v6817_v23 = vpop.permute.xlu1 %2916  ;;  %v7576_v5 = vld [vmem:[#allocation48_spill] sm:$0xff] }
 0x520   : > { %v2847_v47 = vpop.permute.xlu0 %2846  ;;  %v3550_v46 = vsel %vm1714_vm0, %v3549_v45, %v7565_v11  ;;  %v3243_v44 = vrot.slane %v3242_v49, 2  ;;  %v7567_v19 = vperm.slane %v7566_v40, %v5343_v26  ;;  %v3252_v51 = vrot.slane %v3251_v37, 2  ;;  %v7568_v45 = vld [vmem:[#allocation20_spill] sm:$0xff] }
 0x521   : > { %v3083_v0 = vmul.f32 %v2847_v47, %v2635_v12  ;;  %v3084_v61 = vmul.f32 %v2847_v47, %v2636_v29  ;;  %v2641_v12 = vunpack.c.l.bf16 %v380_v1  ;;  %v2642_v29 = vunpack.c.h.bf16 %v380_v1 }
 0x522   : > { %v3552_v42 = vsel %vm1718_vm1, %v7567_v19, %v3550_v46  ;;  %v3261_v54 = vrot.slane %v3260_v62, 2  ;;  %v7570_v55 = vperm.slane %v6460_v39, %v5378_v34  ;;  %v3244_v46 = vadd.f32 %v3243_v44, %v3242_v49 }
 0x523   : > { %v3267_v25 = vadd.f32 %v3266_v56, %v3083_v0  ;;  %v3276_v31 = vadd.f32 %v3275_v14, %v3084_v61  ;;  %v7569_v56 = vperm.slane %v7568_v45, %v5332_v63  ;;  %v3560_v14 = vperm.slane %v2847_v47, %v5378_v34 }
 0x524   : > { %v6815_v0 = vsel %vm1833_vm5, %v3228_v18, %v3485_v24  ;;  %v3235_v61 = vadd.f32 %v3234_v36, %v3233_v21  ;;  %v3554_v1 = vsel %vm1722_vm2, %v7570_v55, %v3552_v42  ;;  %v7571_v47 = vperm.slane %v6519_v2, %v5343_v26  ;;  %v383_v36 = vld [vmem:[%s4915_s20 + $0x108] sm:$0xff] }
 0x525   : > { %v3268_v33 = vrot.slane %v3267_v25, 4  ;;  %v3277_v59 = vrot.slane %v3276_v31, 4  ;;  %v3557_v27 = vsel %vm1714_vm0, %v7569_v56, %v3555_v10  ;;  %v3253_v10 = vadd.f32 %v3252_v51, %v3251_v37 }
 0x526   : > { %v3559_v24 = vsel %vm1718_vm1, %v7571_v47, %v3557_v27  ;;  %v3262_v39 = vadd.f32 %v3261_v54, %v3260_v62  ;;  %v3629_v49 = vsel %vm1837_vm7, %v3554_v1, %v3628_v35  ;;  %v6847_v62 = vpop.permute.xlu2 %2956  ;;  %v2648_v19 = vunpack.c.h.bf16 %v383_v36 }
 0x527   : > { %v3269_v6 = vadd.f32 %v3268_v33, %v3267_v25  ;;  %v3278_v57 = vadd.f32 %v3277_v59, %v3276_v31  ;;  %v3561_v33 = vsel %vm1722_vm2, %v3560_v14, %v3559_v24  ;;  %7574 = vst [vmem:[#allocation28_spill] sm:$0xff] %v6847_v62  ;;  %v3099_v54 = vmul.f32 %v6709_v20, %v2651_v53  ;;  %v6859_v1 = vpop.permute.xlu1 %2931 }
 0x528   : > { %v2862_v60 = vpop.permute.xlu0 %2861  ;;  %v3100_v45 = vmul.f32 %v6709_v20, %v2652_v7 }
 0x529   : > { %v3089_v28 = vmul.f32 %v2862_v60, %v2641_v12  ;;  %v3090_v3 = vmul.f32 %v2862_v60, %v2642_v29  ;;  %v3270_v25 = vrot.slane %v3269_v6, 2  ;;  %v3279_v31 = vrot.slane %v3278_v57, 2 }
 0x52a   : > { %v3565_v11 = vperm.slane %v2862_v60, %v5343_v26  ;;  %v3236_v12 = vrot.slane %v3235_v61, 1  ;;  %v3263_v60 = vrot.slane %v3262_v39, 1 }
 0x52b   : > { %v3284_v21 = vadd.f32 %v6697_v32, %v3089_v28  ;;  %v3293_v18 = vadd.f32 %v6699_v41, %v3090_v3  ;;  %v3271_v44 = vadd.f32 %v3270_v25, %v3269_v6  ;;  %v3280_v40 = vadd.f32 %v3279_v31, %v3278_v57  ;;  %v7572_v32 = vld [vmem:[#allocation26_spill] sm:$0xff] }
 0x52c   : > { %v3566_v59 = vsel %vm1718_vm1, %v3565_v11, %v6718_v4  ;;  %v7573_v41 = vperm.slane %v7572_v32, %v5378_v34  ;;  %v2647_v4 = vunpack.c.l.bf16 %v383_v36  ;;  %v3245_v6 = vrot.slane %v3244_v46, 1 }
 0x52d   : > { %v3285_v2 = vadd.f32 %v3284_v21, %v6633_v58  ;;  %v3294_v29 = vadd.f32 %v3293_v18, %v6643_v22  ;;  %v3630_v58 = vsel %vm1839_vm8, %v3561_v33, %v3629_v49  ;;  %v3254_v57 = vrot.slane %v3253_v10, 1 }
 0x52e   : > { %v3568_v37 = vsel %vm1722_vm2, %v7573_v41, %v3566_v59  ;;  %v3237_v14 = vadd.f32 %v3236_v12, %v3235_v61  ;;  %v3272_v28 = vrot.slane %v3271_v44, 1  ;;  %v3281_v3 = vrot.slane %v3280_v40, 1  ;;  %v7575_v12 = vld [vmem:[#allocation29_spill] sm:$0xff]  ;;  %v6884_v50 = vpop.permute.xlu2 %2971  ;;  %v387_v41 = vld [vmem:[%s4915_s20 + $0x128] sm:$0xff] }
 0x52f   : > { %v3286_v35 = vrot.slane %v3285_v2, 4  ;;  %v3295_v22 = vrot.slane %v3294_v29, 4  ;;  %v3631_v51 = vsel %vm1841_vm9, %v3568_v37, %v3630_v58  ;;  %v3246_v47 = vadd.f32 %v3245_v6, %v3244_v46  ;;  %v390_v58 = vld [vmem:[%s4915_s20 + $0x140] sm:$0xff] }
 0x530   : > { %v2877_v42 = vpop.permute.xlu0 %2876  ;;  %3641 = vst.msk [vmem:[%s6841_s7] sm:$0xff] %vm1852_vm10, %v3631_v51  ;;  %v3255_v13 = vadd.f32 %v3254_v57, %v3253_v10  ;;  %v3264_v24 = vadd.f32 %v3263_v60, %v3262_v39  ;;  %v3273_v33 = vadd.f32 %v3272_v28, %v3271_v44  ;;  %v3282_v59 = vadd.f32 %v3281_v3, %v3280_v40  ;;  %v393_v51 = vld [vmem:[%s4915_s20 + $0x158] sm:$0xff] }
 0x531   : > { %v3287_v56 = vadd.f32 %v3286_v35, %v3285_v2  ;;  %v3296_v27 = vadd.f32 %v3295_v22, %v3294_v29  ;;  %v3095_v55 = vmul.f32 %v2877_v42, %v2647_v4  ;;  %v3096_v11 = vmul.f32 %v2877_v42, %v2648_v19 }
 0x532   : > { %v3570_v53 = vperm.slane %v2877_v42, %v5332_v63  ;;  %v3480_v46 = vsel %vm1835_vm6, %v3237_v14, %v6791_v43  ;;  %v3487_v2 = vsel %vm1835_vm6, %v3246_v47, %v6815_v0  ;;  %v3574_v37 = vperm.slane %v6709_v20, %v5378_v34  ;;  %v7577_v42 = vld [vmem:[#allocation30_spill] sm:$0xff]  ;;  %v396_v14 = vld [vmem:[%s4915_s20 + $0x170] sm:$0xff] }
 0x533   : > { %v3288_v25 = vrot.slane %v3287_v56, 2  ;;  %v3297_v31 = vrot.slane %v3296_v27, 2  ;;  %v3301_v7 = vadd.f32 %v3095_v55, %v6769_v16  ;;  %v3310_v61 = vadd.f32 %v3096_v11, %v6794_v9 }
 0x534   : > { %v3571_v36 = vsel %vm1714_vm0, %v3570_v53, %v3569_v48  ;;  %v3481_v29 = vsel %vm1837_vm7, %v3255_v13, %v3480_v46  ;;  %v3577_v6 = vperm.slane %v7577_v42, %v5332_v63  ;;  %v2655_v57 = vunpack.c.l.bf16 %v387_v41  ;;  %v399_v13 = vld [vmem:[%s4915_s20 + $0x188] sm:$0xff] }
 0x535   : > { %v3289_v21 = vadd.f32 %v3288_v25, %v3287_v56  ;;  %v3298_v18 = vadd.f32 %v3297_v31, %v3296_v27  ;;  %v3302_v49 = vadd.f32 %v3301_v7, %v7575_v12  ;;  %v3573_v16 = vsel %vm1718_vm1, %v3572_v15, %v3571_v36  ;;  %v391_v25 = vld [vmem:[%s4915_s20 + $0x148] sm:$0xff]  ;;  %v402_v12 = vld [vmem:[%s4915_s20 + $0x1a0] sm:$0xff] }
 0x536   : > { %v3311_v39 = vadd.f32 %v3310_v61, %v7576_v5  ;;  %v3488_v15 = vsel %vm1837_vm7, %v3264_v24, %v3487_v2  ;;  %v3482_v4 = vsel %vm1839_vm8, %v3273_v33, %v3481_v29  ;;  %v3575_v20 = vsel %vm1722_vm2, %v3574_v37, %v3573_v16  ;;  %v388_v24 = vld [vmem:[%s4915_s20 + $0x130] sm:$0xff]  ;;  %v6933_v16 = vpop.permute.xlu2 %2996  ;;  %v407_v2 = vld [vmem:[%s4915_s20 + $0x1c8] sm:$0xff]  ;;  %v386_v29 = vld [vmem:[%s4915_s20 + $0x120] sm:$0xff] }
 0x537   : > { %v3290_v9 = vrot.slane %v3289_v21, 1  ;;  %v3299_v10 = vrot.slane %v3298_v18, 1  ;;  %v6882_v44 = vadd.f32 %v3302_v49, %v3099_v54  ;;  %v3489_v0 = vsel %vm1839_vm8, %v3282_v59, %v3488_v15  ;;  %v6907_v54 = vpop.permute.xlu1 %2946  ;;  %7578 = vst [vmem:[#allocation45_spill] sm:$0xff] %v6933_v16 }
 0x538   : > { %v6877_v48 = vpop.permute.xlu0 %2891  ;;  %v6887_v32 = vadd.f32 %v3311_v39, %v3100_v45  ;;  %v2656_v60 = vunpack.c.h.bf16 %v387_v41  ;;  %v2661_v45 = vunpack.c.l.bf16 %v390_v58  ;;  %v2662_v27 = vunpack.c.h.bf16 %v390_v58  ;;  %v394_v58 = vld [vmem:[%s4915_s20 + $0x160] sm:$0xff] }
 0x539   : > { %v3291_v40 = vadd.f32 %v3290_v9, %v3289_v21  ;;  %v3300_v43 = vadd.f32 %v3299_v10, %v3298_v18  ;;  %v3576_v19 = vperm.slane %v6877_v48, %v5329_v17  ;;  %v3579_v28 = vperm.slane %v6760_v52, %v5343_v26 }
 0x53a   : > { %v2667_v55 = vunpack.c.l.bf16 %v393_v51  ;;  %v6919_v11 = vmul.f32 %v7577_v42, %v2655_v57  ;;  %v6922_v53 = vmul.f32 %v7577_v42, %v2656_v60  ;;  %v2668_v47 = vunpack.c.h.bf16 %v393_v51 }
 0x53b   : > { %v3483_v35 = vsel %vm1841_vm9, %v3291_v40, %v3482_v4  ;;  %v3490_v22 = vsel %vm1841_vm9, %v3300_v43, %v3489_v0  ;;  %v3578_v56 = vsel %vm1714_vm0, %v3577_v6, %v3576_v19  ;;  %v3109_v21 = vmul.f32 %v6686_v38, %v2661_v45 }
 0x53c   : > { %3509 = vst [vmem:[%s6901_s14] sm:$0xff] %v3483_v35  ;;  %v3580_v7 = vsel %vm1718_vm1, %v3579_v28, %v3578_v56  ;;  %v2673_v18 = vunpack.c.l.bf16 %v396_v14  ;;  %v2674_v61 = vunpack.c.h.bf16 %v396_v14  ;;  %v3110_v33 = vmul.f32 %v6686_v38, %v2662_v27 }
 0x53d   : > { %3510 = vst [vmem:[%s6901_s14 + $0x8] sm:$0xff] %v3490_v22  ;;  %v3583_v59 = vperm.slane %v6686_v38, %v5329_v17  ;;  %v2663_v49 = vunpack.c.l.bf16 %v391_v25  ;;  %v2679_v9 = vunpack.c.l.bf16 %v399_v13  ;;  %v2680_v10 = vunpack.c.h.bf16 %v399_v13  ;;  %v389_v13 = vld [vmem:[%s4915_s20 + $0x138] sm:$0xff] }
 0x53e   : > { %v2657_v5 = vunpack.c.l.bf16 %v388_v24  ;;  %v2664_v39 = vunpack.c.h.bf16 %v391_v25  ;;  %v6941_v15 = vmul.f32 %v6742_v30, %v2667_v55  ;;  %v6944_v40 = vmul.f32 %v6742_v30, %v2668_v47  ;;  %v411_v55 = vld [vmem:[%s4915_s20 + $0x1e8] sm:$0xff] }
 0x53f   : > { %v2658_v43 = vunpack.c.h.bf16 %v388_v24  ;;  %v6949_v41 = vmul.f32 %v6788_v8, %v2673_v18  ;;  %v6952_v37 = vmul.f32 %v6788_v8, %v2674_v61  ;;  %v2685_v4 = vunpack.c.l.bf16 %v402_v12  ;;  %v6958_v42 = vpop.permute.xlu1 %2961  ;;  %v397_v61 = vld [vmem:[%s4915_s20 + $0x178] sm:$0xff] }
 0x540   : > { %v6913_v3 = vpop.permute.xlu0 %2906  ;;  %v2686_v0 = vunpack.c.h.bf16 %v402_v12  ;;  %v3111_v22 = vmul.f32 %v6817_v23, %v2663_v49  ;;  %v2695_v19 = vunpack.c.l.bf16 %v407_v2  ;;  %v2653_v6 = vunpack.c.l.bf16 %v386_v29 }
 0x541   : > { %v3581_v31 = vperm.slane %v6913_v3, %v5378_v34  ;;  %v3112_v57 = vmul.f32 %v6817_v23, %v2664_v39  ;;  %v3584_v60 = vperm.slane %v6817_v23, %v5332_v63  ;;  %v2696_v51 = vunpack.c.h.bf16 %v407_v2 }
 0x542   : > { %v2654_v45 = vunpack.c.h.bf16 %v386_v29  ;;  %v6966_v56 = vmul.f32 %v6847_v62, %v2679_v9  ;;  %v6969_v27 = vmul.f32 %v6847_v62, %v2680_v10  ;;  %v2669_v14 = vunpack.c.l.bf16 %v394_v58  ;;  %v392_v29 = vld [vmem:[%s4915_s20 + $0x150] sm:$0xff] }
 0x543   : > { %v3582_v36 = vsel %vm1722_vm2, %v3581_v31, %v3580_v7  ;;  %v2670_v28 = vunpack.c.h.bf16 %v394_v58  ;;  %v3105_v31 = vmul.f32 %v6760_v52, %v2657_v5  ;;  %v3106_v47 = vmul.f32 %v6760_v52, %v2658_v43  ;;  %v6995_v5 = vpop.permute.xlu2 %3016 }
 0x544   : > { %v6936_v46 = vsel %vm1829_vm3, %v3582_v36, %v3575_v20  ;;  %v6977_v23 = vmul.f32 %v6884_v50, %v2685_v4  ;;  %v6981_v24 = vmul.f32 %v6884_v50, %v2686_v0  ;;  %v6985_v18 = vadd.f32 %v3111_v22, %v3109_v21  ;;  %v412_v22 = vld [vmem:[%s4915_s20 + $0x1f0] sm:$0xff] }
 0x545   : > { %7579 = vst [vmem:[#allocation33_spill] sm:$0xff] %v6936_v46  ;;  %v3101_v36 = vmul.f32 %v6877_v48, %v2653_v6  ;;  %v6989_v12 = vadd.f32 %v3112_v57, %v3110_v33  ;;  %v6992_v52 = vsel %vm1714_vm0, %v3584_v60, %v3583_v59  ;;  %v2703_v49 = vunpack.c.l.bf16 %v411_v55  ;;  %v400_v6 = vld [vmem:[%s4915_s20 + $0x190] sm:$0xff] }
 0x546   : > { %v3102_v9 = vmul.f32 %v6877_v48, %v2654_v45  ;;  %v2704_v10 = vunpack.c.h.bf16 %v411_v55  ;;  %v3304_v39 = vrot.slane %v6882_v44, 4  ;;  %v3313_v21 = vrot.slane %v6887_v32, 4 }
 0x547   : > { %v2659_v2 = vunpack.c.l.bf16 %v389_v13  ;;  %v7001_v33 = vmul.f32 %v6933_v16, %v2695_v19  ;;  %v2675_v59 = vunpack.c.l.bf16 %v397_v61  ;;  %v2676_v43 = vunpack.c.h.bf16 %v397_v61  ;;  %v7022_v25 = vpop.permute.xlu1 %2976 }
 0x548   : > { %v6960_v20 = vpop.permute.xlu0 %2921  ;;  %v2660_v4 = vunpack.c.h.bf16 %v389_v13  ;;  %v7004_v0 = vmul.f32 %v6933_v16, %v2696_v51  ;;  %v3117_v58 = vmul.f32 %v6859_v1, %v2669_v14  ;;  %v3319_v57 = vadd.f32 %v6919_v11, %v3101_v36  ;;  %v395_v13 = vld [vmem:[%s4915_s20 + $0x168] sm:$0xff] }
 0x549   : > { %v3118_v19 = vmul.f32 %v6859_v1, %v2670_v28  ;;  %v3328_v55 = vadd.f32 %v6922_v53, %v3102_v9  ;;  %v2665_v51 = vunpack.c.l.bf16 %v392_v29  ;;  %v3305_v61 = vadd.f32 %v3304_v39, %v6882_v44  ;;  %v403_v14 = vld [vmem:[%s4915_s20 + $0x1a8] sm:$0xff] }
 0x54a   : > { %7580 = vst [vmem:[#allocation32_spill] sm:$0xff] %v7004_v0  ;;  %v3314_v48 = vadd.f32 %v3313_v21, %v6887_v32  ;;  %v3107_v11 = vmul.f32 %v6913_v3, %v2659_v2  ;;  %v2666_v36 = vunpack.c.h.bf16 %v392_v29  ;;  %v2705_v35 = vunpack.c.l.bf16 %v412_v22  ;;  %v7028_v2 = vld [vmem:[%s4915_s20 + $0x1b0] sm:$0xff] }
 0x54b   : > { %v2706_v28 = vunpack.c.h.bf16 %v412_v22  ;;  %v2681_v38 = vunpack.c.l.bf16 %v400_v6  ;;  %v3108_v45 = vmul.f32 %v6913_v3, %v2660_v4  ;;  %v2682_v7 = vunpack.c.h.bf16 %v400_v6 }
 0x54c   : > { %v3320_v53 = vadd.f32 %v3319_v57, %v3105_v31  ;;  %v2671_v9 = vunpack.c.l.bf16 %v395_v13  ;;  %v2672_v16 = vunpack.c.h.bf16 %v395_v13  ;;  %v2687_v62 = vunpack.c.l.bf16 %v403_v14  ;;  %v7041_v57 = vpop.permute.xlu2 %3021 }
 0x54d   : > { %v2688_v44 = vunpack.c.h.bf16 %v403_v14  ;;  %v3329_v39 = vadd.f32 %v3328_v55, %v3106_v47  ;;  %v3113_v32 = vmul.f32 %v6960_v20, %v2665_v51  ;;  %v3306_v21 = vrot.slane %v3305_v61, 2 }
 0x54e   : > { %v3315_v46 = vrot.slane %v3314_v48, 2  ;;  %v3321_v0 = vadd.f32 %v3320_v53, %v3107_v11  ;;  %v3114_v29 = vmul.f32 %v6960_v20, %v2666_v36  ;;  %v7032_v22 = vmul.f32 %v6995_v5, %v2703_v49 }
 0x54f   : > { %v7035_v3 = vmul.f32 %v6995_v5, %v2704_v10  ;;  %v3330_v4 = vadd.f32 %v3329_v39, %v3108_v45  ;;  %v3123_v47 = vmul.f32 %v6907_v54, %v2675_v59  ;;  %v3124_v6 = vmul.f32 %v6907_v54, %v2676_v43 }
 0x550   : > { %v7012_v60 = vpop.permute.xlu0 %2936  ;;  %v2689_v10 = vunpack.c.l.bf16 %v7028_v2  ;;  %v2690_v45 = vunpack.c.h.bf16 %v7028_v2  ;;  %v3338_v59 = vadd.f32 %v6985_v18, %v3113_v32  ;;  %v3307_v43 = vadd.f32 %v3306_v21, %v3305_v61  ;;  %v7063_v18 = vpop.permute.xlu1 %2981  ;;  %v398_v61 = vld [vmem:[%s4915_s20 + $0x180] sm:$0xff] }
 0x551   : > { %v3119_v55 = vmul.f32 %v7012_v60, %v2671_v9  ;;  %v3120_v51 = vmul.f32 %v7012_v60, %v2672_v16  ;;  %v3316_v14 = vadd.f32 %v3315_v46, %v3314_v48  ;;  %v3322_v11 = vrot.slane %v3321_v0, 4  ;;  %v7066_v46 = vld [vmem:[%s4915_s20 + $0x1d0] sm:$0xff] }
 0x552   : > { %v3347_v36 = vadd.f32 %v6989_v12, %v3114_v29  ;;  %v7054_v16 = vmul.f32 %v7041_v57, %v2705_v35  ;;  %v7057_v53 = vmul.f32 %v7041_v57, %v2706_v28  ;;  %v3331_v39 = vrot.slane %v3330_v4, 4 }
 0x553   : > { %v3135_v2 = vmul.f32 %v7022_v25, %v2687_v62  ;;  %v3136_v31 = vmul.f32 %v7022_v25, %v2688_v44  ;;  %v3355_v48 = vadd.f32 %v3119_v55, %v3117_v58  ;;  %v3364_v12 = vadd.f32 %v3120_v51, %v3118_v19  ;;  %v406_v19 = vld [vmem:[%s4915_s20 + $0x1c0] sm:$0xff] }
 0x554   : > { %v7070_v35 = vmul.f32 %v6958_v42, %v2681_v38  ;;  %v7073_v28 = vmul.f32 %v6958_v42, %v2682_v7  ;;  %v3605_v32 = vperm.slane %v7022_v25, %v5332_v63  ;;  %v3339_v62 = vadd.f32 %v3338_v59, %v6941_v15 }
 0x555   : > { %v3308_v44 = vrot.slane %v3307_v43, 1  ;;  %v3317_v21 = vrot.slane %v3316_v14, 1  ;;  %v3323_v29 = vadd.f32 %v3322_v11, %v3321_v0  ;;  %v3348_v58 = vadd.f32 %v3347_v36, %v6944_v40  ;;  %v7087_v0 = vld [vmem:[%s4915_s20 + $0x1d8] sm:$0xff] }
 0x556   : > { %v3332_v38 = vadd.f32 %v3331_v39, %v3330_v4  ;;  %v2677_v51 = vunpack.c.l.bf16 %v398_v61  ;;  %v3391_v7 = vadd.f32 %v3135_v2, %v6977_v23  ;;  %v3400_v9 = vadd.f32 %v3136_v31, %v6981_v24  ;;  %v401_v39 = vld [vmem:[%s4915_s20 + $0x198] sm:$0xff] }
 0x557   : > { %v3356_v25 = vadd.f32 %v3355_v48, %v6949_v41  ;;  %v3365_v15 = vadd.f32 %v3364_v12, %v6952_v37  ;;  %v7581_v40 = vperm.slane %v6884_v50, %v5329_v17  ;;  %v3340_v11 = vrot.slane %v3339_v62, 4 }
 0x558   : > { %v7045_v13 = vpop.permute.xlu0 %2951  ;;  %v2678_v23 = vunpack.c.h.bf16 %v398_v61  ;;  %v7097_v24 = vadd.f32 %v3308_v44, %v3307_v43  ;;  %v7099_v41 = vadd.f32 %v3317_v21, %v3316_v14  ;;  %v3324_v37 = vrot.slane %v3323_v29, 2  ;;  %v7110_v55 = vpop.permute.xlu1 %3001 }
 0x559   : > { %v3606_v4 = vsel %vm1714_vm0, %v3605_v32, %v7581_v40  ;;  %v3349_v31 = vrot.slane %v3348_v58, 4  ;;  %v3333_v2 = vrot.slane %v3332_v38, 2  ;;  %v3125_v50 = vmul.f32 %v7045_v13, %v2677_v51 }
 0x55a   : > { %7582 = vst [vmem:[#allocation46_spill] sm:$0xff] %v7099_v41  ;;  %v3137_v32 = vmul.f32 %v7063_v18, %v2689_v10  ;;  %v3357_v40 = vadd.f32 %v3356_v25, %v3123_v47  ;;  %v3366_v49 = vadd.f32 %v3365_v15, %v3124_v6  ;;  %v2683_v61 = vunpack.c.l.bf16 %v401_v39 }
 0x55b   : > { %v3138_v43 = vmul.f32 %v7063_v18, %v2690_v45  ;;  %v3341_v44 = vadd.f32 %v3340_v11, %v3339_v62  ;;  %v3586_v14 = vperm.slane %v6960_v20, %v5343_v26  ;;  %v3126_v21 = vmul.f32 %v7045_v13, %v2678_v23 }
 0x55c   : > { %v3325_v36 = vadd.f32 %v3324_v37, %v3323_v29  ;;  %v3350_v48 = vadd.f32 %v3349_v31, %v3348_v58  ;;  %v2693_v12 = vunpack.c.l.bf16 %v406_v19  ;;  %v2694_v51 = vunpack.c.h.bf16 %v406_v19 }
 0x55d   : > { %v3334_v41 = vadd.f32 %v3333_v2, %v3332_v38  ;;  %v3591_v47 = vperm.slane %v7012_v60, %v5332_v63  ;;  %v3373_v6 = vadd.f32 %v6966_v56, %v3125_v50  ;;  %v2684_v10 = vunpack.c.h.bf16 %v401_v39 }
 0x55e   : > { %v7115_v45 = vadd.f32 %v3391_v7, %v3137_v32  ;;  %v3607_v20 = vperm.slane %v7063_v18, %v5343_v26  ;;  %v3358_v62 = vrot.slane %v3357_v40, 4  ;;  %v3367_v25 = vrot.slane %v3366_v49, 4 }
 0x55f   : > { %v3342_v58 = vrot.slane %v3341_v44, 2  ;;  %v3587_v19 = vsel %vm1718_vm1, %v3586_v14, %v6992_v52  ;;  %v3382_v38 = vadd.f32 %v6969_v27, %v3126_v21  ;;  %v3326_v15 = vrot.slane %v3325_v36, 1 }
 0x560   : > { %v7089_v59 = vpop.permute.xlu0 %2966  ;;  %v3351_v56 = vrot.slane %v3350_v48, 2  ;;  %v3335_v23 = vrot.slane %v3334_v41, 1  ;;  %v7583_v18 = vperm.slane %v6859_v1, %v5329_v17  ;;  %v3374_v37 = vadd.f32 %v3373_v6, %v7070_v35 }
 0x561   : > { %v3131_v60 = vmul.f32 %v7089_v59, %v2683_v61  ;;  %v3132_v52 = vmul.f32 %v7089_v59, %v2684_v10  ;;  %v7133_v31 = vadd.f32 %v3400_v9, %v3138_v43  ;;  %v7136_v27 = vsel %vm1718_vm1, %v3607_v20, %v3606_v4  ;;  %v7163_v10 = vpop.permute.xlu1 %3006 }
 0x562   : > { %v3592_v39 = vsel %vm1714_vm0, %v3591_v47, %v7583_v18  ;;  %v3359_v2 = vadd.f32 %v3358_v62, %v3357_v40  ;;  %v3368_v50 = vadd.f32 %v3367_v25, %v3366_v49  ;;  %v7584_v32 = vperm.slane %v6742_v30, %v5378_v34  ;;  %v7586_v40 = vld [vmem:[#allocation32_spill] sm:$0xff] }
 0x563   : > { %v3383_v1 = vadd.f32 %v3382_v38, %v7073_v28  ;;  %v3375_v14 = vadd.f32 %v3374_v37, %v3131_v60  ;;  %v7143_v21 = vadd.f32 %v3351_v56, %v3350_v48  ;;  %v7585_v9 = vperm.slane %v6788_v8, %v5343_v26  ;;  %v405_v56 = vld [vmem:[%s4915_s20 + $0x1b8] sm:$0xff] }
 0x564   : > { %v3589_v61 = vsel %vm1722_vm2, %v7584_v32, %v3587_v19  ;;  %v7151_v43 = vadd.f32 %v3326_v15, %v3325_v36  ;;  %v7153_v30 = vadd.f32 %v3335_v23, %v3334_v41  ;;  %v3597_v28 = vperm.slane %v7045_v13, %v5329_v17  ;;  %v7589_v41 = vld [vmem:[#allocation33_spill] sm:$0xff]  ;;  %v7593_v18 = vld [vmem:[#allocation28_spill] sm:$0xff] }
 0x565   : > { %v3594_v35 = vsel %vm1718_vm1, %v7585_v9, %v3592_v39  ;;  %v7587_v48 = vunpack.c.l.bf16 %v7066_v46  ;;  %v3360_v47 = vrot.slane %v3359_v2, 2  ;;  %v3369_v6 = vrot.slane %v3368_v50, 2 }
 0x566   : > { %v3633_v20 = vsel %vm1831_vm4, %v3589_v61, %v7589_v41  ;;  %v3614_v13 = vperm.slane %v7110_v55, %v5343_v26  ;;  %v7590_v62 = vperm.slane %v6907_v54, %v5378_v34  ;;  %v3353_v38 = vrot.slane %v7143_v21, 1 }
 0x567   : > { %v3145_v8 = vmul.f32 %v7110_v55, %v7587_v48  ;;  %v7592_v23 = vunpack.c.h.bf16 %v7087_v0  ;;  %v7594_v54 = vperm.slane %v7593_v18, %v5332_v63  ;;  %v7190_v32 = vadd.f32 %v3369_v6, %v3368_v50 }
 0x568   : > { %v7119_v29 = vpop.permute.xlu0 %2991  ;;  %v3596_v25 = vsel %vm1722_vm2, %v7590_v62, %v3594_v35  ;;  %v3602_v35 = vperm.slane %v7089_v59, %v5378_v34  ;;  %v3616_v50 = vperm.slane %v7163_v10, %v5378_v34  ;;  %v413_v62 = vld [vmem:[%s4915_s20 + $0x1f8] sm:$0xff] }
 0x569   : > { %v3141_v7 = vmul.f32 %v7119_v29, %v2693_v12  ;;  %v3142_v11 = vmul.f32 %v7119_v29, %v2694_v51  ;;  %v3343_v12 = vadd.f32 %v3342_v58, %v3341_v44  ;;  %v3384_v44 = vadd.f32 %v3383_v1, %v3132_v52  ;;  %v410_v58 = vld [vmem:[%s4915_s20 + $0x1e0] sm:$0xff]  ;;  %s3662_s20 = sshll.u32 %s6901_s14, 4  ;;  %s3663_s20 = int_to_ptr.vmem [resolvable:$true] %s3662_s20 }
 0x56a   : > { %v7588_v51 = vunpack.c.h.bf16 %v7066_v46  ;;  %v3376_v46 = vrot.slane %v3375_v14, 4  ;;  %v3599_v39 = vsel %vm1714_vm0, %v7594_v54, %v3597_v28  ;;  %v7188_v52 = vadd.f32 %v3360_v47, %v3359_v2 }
 0x56b   : > { %v3409_v4 = vadd.f32 %v7001_v33, %v3141_v7  ;;  %v3418_v49 = vadd.f32 %v7586_v40, %v3142_v11  ;;  %v3344_v19 = vrot.slane %v3343_v12, 1  ;;  %v7591_v7 = vunpack.c.l.bf16 %v7087_v0 }
 0x56c   : > { %v3146_v33 = vmul.f32 %v7110_v55, %v7588_v51  ;;  %v3148_v55 = vmul.f32 %v7163_v10, %v7592_v23  ;;  %v3385_v37 = vrot.slane %v3384_v44, 4  ;;  %v2701_v61 = vunpack.c.l.bf16 %v410_v58 }
 0x56d   : > { %v3410_v60 = vadd.f32 %v3409_v4, %v3145_v8  ;;  %v3147_v11 = vmul.f32 %v7163_v10, %v7591_v7  ;;  %v2702_v1 = vunpack.c.h.bf16 %v410_v58  ;;  %v3377_v9 = vadd.f32 %v3376_v46, %v3375_v14  ;;  %v7596_v46 = vld [vmem:[#allocation45_spill] sm:$0xff] }
 0x56e   : > { %v3419_v15 = vadd.f32 %v3418_v49, %v3146_v33  ;;  %v2691_v4 = vunpack.c.l.bf16 %v405_v56  ;;  %v2692_v0 = vunpack.c.h.bf16 %v405_v56  ;;  %v3634_v40 = vsel %vm1833_vm5, %v3596_v25, %v3633_v20 }
 0x56f   : > { %v3411_v49 = vadd.f32 %v3410_v60, %v3147_v11  ;;  %v3611_v28 = vperm.slane %v7119_v29, %v5329_v17  ;;  %v7197_v2 = vadd.f32 %v3344_v19, %v3343_v12  ;;  %v7595_v14 = vperm.slane %v6958_v42, %v5343_v26 }
 0x570   : > { %v7165_v36 = vpop.permute.xlu0 %3011  ;;  %v3420_v48 = vadd.f32 %v3419_v15, %v3148_v55  ;;  %v3386_v8 = vadd.f32 %v3385_v37, %v3384_v44  ;;  %v3362_v51 = vrot.slane %v7188_v52, 1  ;;  %v3371_v33 = vrot.slane %v7190_v32, 1 }
 0x571   : > { %v3601_v59 = vsel %vm1718_vm1, %v7595_v14, %v3599_v39  ;;  %v3149_v47 = vmul.f32 %v7165_v36, %v2701_v61  ;;  %v3150_v6 = vmul.f32 %v7165_v36, %v2702_v1  ;;  %v3378_v12 = vrot.slane %v3377_v9, 2 }
 0x572   : > { %v3603_v41 = vsel %vm1722_vm2, %v3602_v35, %v3601_v59  ;;  %v3412_v25 = vrot.slane %v3411_v49, 4  ;;  %v3421_v42 = vrot.slane %v3420_v48, 4  ;;  %v7597_v44 = vperm.slane %v7596_v46, %v5332_v63 }
 0x573   : > { %v3387_v60 = vrot.slane %v3386_v8, 2  ;;  %v3618_v15 = vperm.slane %v7165_v36, %v5329_v17  ;;  %v3427_v11 = vadd.f32 %v7032_v22, %v3149_v47  ;;  %v3436_v23 = vadd.f32 %v7035_v3, %v3150_v6 }
 0x574   : > { %v3613_v58 = vsel %vm1714_vm0, %v7597_v44, %v3611_v28  ;;  %v2707_v55 = vunpack.c.l.bf16 %v413_v62  ;;  %v2708_v18 = vunpack.c.h.bf16 %v413_v62  ;;  %v3379_v1 = vadd.f32 %v3378_v12, %v3377_v9 }
 0x575   : > { %v3615_v54 = vsel %vm1718_vm1, %v3614_v13, %v3613_v58  ;;  %v3635_v17 = vsel %vm1835_vm6, %v3603_v41, %v3634_v40  ;;  %v3413_v36 = vadd.f32 %v3412_v25, %v3411_v49  ;;  %v3388_v35 = vadd.f32 %v3387_v60, %v3386_v8 }
 0x576   : > { %v7598_v22 = vperm.slane %v6995_v5, %v5332_v63  ;;  %v3617_v13 = vsel %vm1722_vm2, %v3616_v50, %v3615_v54  ;;  %v3428_v28 = vadd.f32 %v3427_v11, %v7054_v16  ;;  %v7599_v63 = vperm.slane %v7041_v57, %v5343_v26 }
 0x577   : > { %v3414_v59 = vrot.slane %v3413_v36, 2  ;;  %v3380_v12 = vrot.slane %v3379_v1, 1  ;;  %v3363_v44 = vadd.f32 %v3362_v51, %v7188_v52  ;;  %v3372_v58 = vadd.f32 %v3371_v33, %v7190_v32 }
 0x578   : > { %v2987_v29 = vpop.permute.xlu0 %2986  ;;  %v3620_v3 = vsel %vm1714_vm0, %v7598_v22, %v3618_v15 }
 0x579   : > { %v3139_v20 = vmul.f32 %v2987_v29, %v2691_v4  ;;  %v3140_v10 = vmul.f32 %v2987_v29, %v2692_v0  ;;  %v3609_v19 = vperm.slane %v2987_v29, %v5378_v34  ;;  %v3622_v5 = vsel %vm1718_vm1, %v7599_v63, %v3620_v3 }
 0x57a   : > { %v3415_v57 = vadd.f32 %v3414_v59, %v3413_v36 }
 0x57b   : > { %v3393_v56 = vadd.f32 %v7115_v45, %v3139_v20  ;;  %v3402_v7 = vadd.f32 %v7133_v31, %v3140_v10  ;;  %v3610_v61 = vsel %vm1722_vm2, %v3609_v19, %v7136_v27  ;;  %v3422_v45 = vadd.f32 %v3421_v42, %v3420_v48 }
 0x57c   : > { %v3636_v0 = vsel %vm1837_vm7, %v3610_v61, %v3635_v17  ;;  %v3437_v27 = vadd.f32 %v3436_v23, %v7057_v53  ;;  %v3389_v53 = vrot.slane %v3388_v35, 1 }
 0x57d   : > { %v3394_v39 = vrot.slane %v3393_v56, 4  ;;  %v3403_v37 = vrot.slane %v3402_v7, 4  ;;  %v3423_v8 = vrot.slane %v3422_v45, 2  ;;  %v3637_v41 = vsel %vm1839_vm8, %v3617_v13, %v3636_v0 }
 0x57f   : > { %v3395_v31 = vadd.f32 %v3394_v39, %v3393_v56  ;;  %v3404_v4 = vadd.f32 %v3403_v37, %v3402_v7  ;;  %v3424_v42 = vadd.f32 %v3423_v8, %v3422_v45  ;;  %v3381_v56 = vadd.f32 %v3380_v12, %v3379_v1 }
 0x580   : > { %v3027_v9 = vpop.permute.xlu0 %3026  ;;  %v3390_v7 = vadd.f32 %v3389_v53, %v3388_v35 }
 0x581   : > { %v3396_v40 = vrot.slane %v3395_v31, 2  ;;  %v3405_v49 = vrot.slane %v3404_v4, 2  ;;  %v3155_v48 = vmul.f32 %v3027_v9, %v2707_v55  ;;  %v3156_v14 = vmul.f32 %v3027_v9, %v2708_v18 }
 0x582   : > { %v3623_v50 = vperm.slane %v3027_v9, %v5378_v34  ;;  %v3354_v34 = vadd.f32 %v3353_v38, %v7143_v21  ;;  %v3491_v21 = vsel %vm1829_vm3, %v7151_v43, %v7097_v24  ;;  %v7600_v38 = vld [vmem:[#allocation46_spill] sm:$0xff]  ;;  %v3416_v55 = vrot.slane %v3415_v57, 1 }
 0x583   : > { %v3397_v47 = vadd.f32 %v3396_v40, %v3395_v31  ;;  %v3406_v6 = vadd.f32 %v3405_v49, %v3404_v4  ;;  %v3429_v29 = vadd.f32 %v3428_v28, %v3155_v48  ;;  %v3438_v16 = vadd.f32 %v3437_v27, %v3156_v14 }
 0x584   : > { %v3624_v20 = vsel %vm1722_vm2, %v3623_v50, %v3622_v5  ;;  %v3498_v15 = vsel %vm1829_vm3, %v7153_v30, %v7600_v38  ;;  %v3492_v32 = vsel %vm1831_vm4, %v7197_v2, %v3491_v21  ;;  %v3425_v18 = vrot.slane %v3424_v42, 1 }
 0x585   : > { %v3398_v10 = vrot.slane %v3397_v47, 1  ;;  %v3407_v62 = vrot.slane %v3406_v6, 1  ;;  %v3430_v25 = vrot.slane %v3429_v29, 4  ;;  %v3439_v26 = vrot.slane %v3438_v16, 4 }
 0x586   : > { %v3638_v46 = vsel %vm1841_vm9, %v3624_v20, %v3637_v41  ;;  %v3499_v33 = vsel %vm1831_vm4, %v3354_v34, %v3498_v15  ;;  %v3493_v24 = vsel %vm1833_vm5, %v3363_v44, %v3492_v32  ;;  %v3417_v36 = vadd.f32 %v3416_v55, %v3415_v57 }
 0x587   : > { %v3431_v19 = vadd.f32 %v3430_v25, %v3429_v29  ;;  %v3440_v60 = vadd.f32 %v3439_v26, %v3438_v16  ;;  %3642 = vst.msk [vmem:[%s6841_s7 + $0x8] sm:$0xff] %vm1852_vm10, %v3638_v46  ;;  %v3399_v52 = vadd.f32 %v3398_v10, %v3397_v47  ;;  %v3408_v51 = vadd.f32 %v3407_v62, %v3406_v6 }
 0x588   : > { %v3500_v43 = vsel %vm1833_vm5, %v3372_v58, %v3499_v33  ;;  %v3494_v39 = vsel %vm1835_vm6, %v3381_v56, %v3493_v24  ;;  %v3426_v45 = vadd.f32 %v3425_v18, %v3424_v42 }
 0x589   : > { %v3432_v11 = vrot.slane %v3431_v19, 2  ;;  %v3441_v23 = vrot.slane %v3440_v60, 2  ;;  %v3501_v37 = vsel %vm1835_vm6, %v3390_v7, %v3500_v43  ;;  %v3495_v2 = vsel %vm1837_vm7, %v3399_v52, %v3494_v39 }
 0x58a   : > { %v3502_v61 = vsel %vm1837_vm7, %v3408_v51, %v3501_v37  ;;  %v3496_v3 = vsel %vm1839_vm8, %v3417_v36, %v3495_v2 }
 0x58b   : > { %v3433_v30 = vadd.f32 %v3432_v11, %v3431_v19  ;;  %v3442_v54 = vadd.f32 %v3441_v23, %v3440_v60  ;;  %v3503_v31 = vsel %vm1839_vm8, %v3426_v45, %v3502_v61 }
 0x58d   : > { %v3434_v1 = vrot.slane %v3433_v30, 1  ;;  %v3443_v17 = vrot.slane %v3442_v54, 1 }
 0x58f   : > { %v3435_v35 = vadd.f32 %v3434_v1, %v3433_v30  ;;  %v3444_v22 = vadd.f32 %v3443_v17, %v3442_v54 }
 0x591   : > { %v3497_v4 = vsel %vm1841_vm9, %v3435_v35, %v3496_v3  ;;  %v3504_v13 = vsel %vm1841_vm9, %v3444_v22, %v3503_v31 }
 0x592   : > { %3511 = vst [vmem:[%s6901_s14 + $0x10] sm:$0xff] %v3497_v4 }
 0x593   : > { %3512 = vst [vmem:[%s6901_s14 + $0x18] sm:$0xff] %v3504_v13 }
 0x594   : > { %4698 = shalt.err (!%p4695_p11)
}
 0x595   : > { %s4753_s12 = smov 256   ;;  %s4754_s16 = smov 16  }
 0x596   : > { %4252 = dma.vmem_to_hbm [thread:$0]  (%p4859_p5), %s3663_s20, 512, %s3665_s0, %s3644_s2, %s4753_s12, %s4753_s12, %s4754_s16  }
 0x597 PF: > { %p4272_p12 = scmp.ge.s32.totalorder %s4745_s26, 2  ;;  %s3683_s22 = sand.u32 1, %s4733_s23  }
 0x598   : > { %s3684_s30 = scalar_lea.sflag [#allocation5], %s3683_s22 }
 0x599   : > { %p4266_p13 = pnand %p4272_p12, %p4828_p6 }
 0x59b   : > { %p4267_p0 = pneg %p4266_p13 }
 0x59d   : > { %4728 = dma.done.wait (%p4267_p0), %s3684_s30, 512  }
 0x59e   : > { %4730 = vsyncadd (%p4267_p0), %s3684_s30, 4294966784  ;;  %s7601_s26 = sld [smem:[#allocation15_spill]]  ;;  %s7604_s23 = smov %s4737_s24 }
 0x59f   : > { %s7602_s19 = sld [smem:[#allocation14_spill]] }
 0x5a0   : > { %s7603_s25 = sld [smem:[#allocation16_spill]] }
 0x5a4   : > { %p25_p3 = scmp.ge.s32.totalorder %s7601_s26, 6  }
 0x5a5   : > { %s7605_s24 = smov %s7602_s19 }
 0x5a6   :  { %27 = sbr.rel (!%p25_p3) target bundleno = 10 (0xa), region = 114 }
 0x5ab   :  { %3698 = vsyncpa [#allocation4], 1 }
 0x5ac   :  { %3700 = vsyncpa [#allocation4 + $0x1], 1 }
 0x5ad   :  { %3701 = vsyncpa [#allocation7], 1 }
 0x5ae   :  { %3703 = vsyncpa [#allocation7 + $0x1], 1 }
 0x5af   :  { %3704 = vsyncpa [#allocation5], 1 }
 0x5b0   :  { %3706 = vsyncpa [#allocation5 + $0x1], 1 }

// kernel: tpu_custom_call.1
= control target key start
LH: loop header
LB: loop body
LE: loop exit
PB: predicated region body
PF: predicated region fallthrough
CT: control target
= control target key end

     0   :  { %s7307_s0 = inlined_call_operand.hbm [shape: bf16[64,32,256], index: 0, kind: input, shape index: {}]   ;;  %s7308_s1 = inlined_call_operand.hbm [shape: f32[64,128], index: 1, kind: input, shape index: {}]   ;;  %s7309_s2 = inlined_call_operand.hbm [shape: bf16[256,128], index: 2, kind: input, shape index: {}]   ;;  %s7310_s3 = inlined_call_operand.vmem [shape: f32[1,128], index: 3, kind: input, shape index: {}]   ;;  %s7311_s4 = inlined_call_operand.<no memory space> [shape: f32[1,1], index: 4, kind: input, shape index: {}]   ;;  %s7312_s5 = inlined_call_operand.hbm [shape: f32[64,256], index: 5, kind: output, shape index: {0}]   ;;  %s7313_s6 = inlined_call_operand.vmem [shape: f32[64,32], index: 6, kind: output, shape index: {1}]  }
   0x1   :  { %7392 = sst [smem:[#allocation57_spill]] %s7307_s0  ;;  %v12_v0 = vstv %s7311_s4 }
   0x2   :  { %7393 = sst [smem:[#allocation58_spill]] %s7309_s2  ;;  %13 = vst [vmem:[#allocation2] sm:$0x1] %v12_v0 }
   0x3   :  { %14 = vsyncpa [#allocation4], 0 }
   0x4   :  { %16 = vsyncpa [#allocation4 + $0x1], 0 }
   0x5   :  { %17 = vsyncpa [#allocation7], 0 }
   0x6   :  { %19 = vsyncpa [#allocation7 + $0x1], 0 }
   0x7   :  { %20 = vsyncpa [#allocation5], 0 }
   0x8   :  { %22 = vsyncpa [#allocation5 + $0x1], 0  ;;  %s4793_s23 = smov 0   ;;  %s4795_s24 = smov 0  }
   0x9   :  { %s4797_s25 = smov 0   ;;  %s4799_s26 = smov 0  }
   0xa LB: > { %7394 = sst [smem:[#allocation14_spill]] %s4741_s25  ;;  %s4814_s4 = sadd.s32 4294967295, %s4745_s26   ;;  %s4745_s26 = sphi %s4799_s26, %s7601_s26   ;;  %s4741_s25 = sphi %s4797_s25, %s7603_s25   ;;  %s4737_s24 = sphi %s4795_s24, %s7605_s24   ;;  %s4733_s23 = sphi %s4793_s23, %s7604_s23  }
   0xb   : > { %s3799_s27 = sadd.s32 4294967294, %s4745_s26   ;;  %p48_p0 = scmp.ne.s32.totalorder %s4737_s24, %s4733_s23 }
   0xc   : > { %p49_p1 = scmp.eq.s32.totalorder %s4814_s4, 0  ;;  %p161_p2 = scmp.eq.s32.totalorder %s4814_s4, 3 }
   0xd   : > { %p167_p3 = scmp.eq.s32.totalorder %s3799_s27, 3  ;;  %p3800_p5 = scmp.ge.s32.totalorder %s4745_s26, 1 }
   0xe   : > { %p4823_p4 = por %p49_p1, %p48_p0  ;;  %p200_p7 = scmp.lt.s32.totalorder %s4745_s26, 5 }
   0xf   : > { %p4828_p6 = por %p167_p3, %p48_p0  ;;  %s7397_s2 = sld [smem:[#allocation58_spill]] }
  0x10   : > { %p4836_p8 = pnand %p3800_p5, %p200_p7  ;;  %s4747_s10 = smov [#allocation8]  }
  0x11   : > { %s213_s11 = sshll.u32 %s4747_s10, 4  ;;  %s4845_s12 = sadd.s32 1, %s4745_s26   ;;  %s214_s11 = int_to_ptr.vmem [resolvable:$true] %s213_s11 }
  0x12   : > { %p4254_p9 = pneg %p4836_p8  ;;  %7399 = sst [smem:[#allocation15_spill]] %s4845_s12 }
  0x13   : > { %s4748_s13 = smov 64   ;;  %s4749_s14 = smov 4  }
  0x14   : > { %p4255_p10 = pnand %p4254_p9, %p49_p1  ;;  %s32_s15 = ssub.s32 %s4745_s26, %s4845_s12 }
  0x15   : > { %s211_s8 = sshll.u32 %s7397_s2, 4  ;;  %s35_s16 = sadd.s32 1, %s4741_s25  ;;  %s212_s8 = int_to_ptr.hbm [resolvable:$true] %s211_s8 }
  0x16   : > { %4257 = dma.hbm_to_vmem [thread:$0]  (!%p4255_p10), %s212_s8, 2048, %s214_s11, [#allocation7], %s4748_s13, %s4748_s13, %s4749_s14  }
  0x17   : > { %p33_p11 = scmp.eq.s32.totalorder %s32_s15, 0  ;;  %p42_p12 = scmp.ne.s32.totalorder %s4741_s25, %s4737_s24 }
  0x18   : > { %p43_p13 = scmp.eq.s32.totalorder %s4745_s26, 0  ;;  %p4270_p0 = scmp.lt.s32.totalorder %s4745_s26, 4 }
  0x19   : > { %s4855_s17 = scalar_select %p33_p11, %s4741_s25, %s35_s16  }
  0x1a   : > { %p44_p3 = por %p43_p13, %p42_p12  ;;  %p4859_p5 = por %p161_p2, %p42_p12 }
  0x1b   : > { %7400 = sst [smem:[#allocation16_spill]] %s4855_s17  ;;  %s4864_s19 = sand.u32 1, %s4741_s25  }
  0x1c   : > { %s4144_s20 = sshll.u32 %s4745_s26, 9  ;;  %s3803_s21 = sshll.u32 %s4864_s19, 9 }
  0x1d   : > { %s7402_s0 = sld [smem:[#allocation57_spill]]  ;;  %s237_s8 = scalar_lea.vmem [#allocation3], %s3803_s21 }
  0x1e   : > { %s246_s10 = sshll.u32 %s237_s8, 4  ;;  %p4873_p2 = pnand %p4270_p0, %p44_p3  ;;  %s247_s10 = int_to_ptr.vmem [resolvable:$true] %s246_s10 }
  0x1f   : > { %s256_s13 = sand.u32 1, %s4745_s26   ;;  %s234_s14 = scalar_lea.sflag [#allocation4], %s4864_s19 }
  0x20   : > { %p4615_p9 = pneg %p4873_p2 }
  0x23   : > { %s243_s30 = scalar_lea.hbm %s7402_s0, %s4144_s20  ;;  %s4618_s22 = scalar_lea.hbm %s7402_s0, 2048 }
  0x24   : > { %s244_s7 = sshll.u32 %s243_s30, 4  ;;  %s245_s7 = int_to_ptr.hbm [resolvable:$true] %s244_s7 }
  0x25   : > { %s4611_s15 = sshra.s32 %s245_s7, 4  ;;  %s4612_s15 = int_to_ptr.hbm [resolvable:$true] %s4611_s15 }
  0x26   : > { %s4613_s16 = scalar_lea.hbm %s4612_s15, 512  ;;  %p4619_p12 = scmp.lt.s32.totalorder %s4612_s15, %s7402_s0 }
  0x27   : > { %p4614_p7 = scmp.ne.s32.totalorder %s4612_s15, %s4613_s16  ;;  %p4620_p13 = scmp.lt.s32.totalorder %s4618_s22, %s4613_s16 }
  0x29   : > { %p4616_p10 = pnand %p4615_p9, %p4614_p7  ;;  %p4621_p0 = por %p4620_p13, %p4619_p12 }
  0x2b   : > { %p4617_p11 = pneg %p4616_p10 }
  0x2d   : > { %p4622_p3 = pnand %p4621_p0, %p4617_p11 }
  0x2f   : > { %4625 = shalt.err (!%p4622_p3)
}
  0x30   : > { %s4750_s8 = smov 128   ;;  %s4751_s2 = smov 8  }
  0x31   : > { %4261 = dma.hbm_to_vmem [thread:$0]  (!%p4873_p2), %s245_s7, 8192, %s247_s10, %s234_s14, %s4750_s8, %s4750_s8, %s4751_s2  }
  0x32   : > { %s3807_s17 = sshll.u32 %s4864_s19, 4  ;;  %s4145_s25 = sshll.u32 %s4745_s26, 4 }
  0x33   : > { %s265_s12 = scalar_lea.hbm %s7308_s1, %s4145_s25  ;;  %s260_s15 = scalar_lea.vmem [#allocation6], %s3807_s17 }
  0x34   : > { %s266_s27 = sshll.u32 %s265_s12, 4  ;;  %s268_s16 = sshll.u32 %s260_s15, 4  ;;  %s267_s27 = int_to_ptr.hbm [resolvable:$true] %s266_s27  ;;  %s269_s16 = int_to_ptr.vmem [resolvable:$true] %s268_s16 }
  0x35   : > { %s257_s22 = scalar_lea.sflag [#allocation7], %s256_s13  ;;  %s4641_s30 = sshra.s32 %s267_s27, 4  ;;  %s4642_s30 = int_to_ptr.hbm [resolvable:$true] %s4641_s30 }
  0x36   : > { %s4643_s0 = scalar_lea.hbm %s4642_s30, 16  ;;  %s4648_s10 = scalar_lea.hbm %s7308_s1, 64 }
  0x37   : > { %p4644_p7 = scmp.ne.s32.totalorder %s4642_s30, %s4643_s0  ;;  %p4649_p12 = scmp.lt.s32.totalorder %s4642_s30, %s7308_s1 }
  0x38   : > { %p4650_p13 = scmp.lt.s32.totalorder %s4648_s10, %s4643_s0 }
  0x39   : > { %p4646_p10 = pnand %p4644_p7, %p4615_p9 }
  0x3a   : > { %p4651_p0 = por %p4650_p13, %p4649_p12 }
  0x3b   : > { %p4647_p11 = pneg %p4646_p10 }
  0x3d   : > { %p4652_p3 = pnand %p4651_p0, %p4647_p11 }
  0x3f   : > { %4655 = shalt.err (!%p4652_p3)
}
  0x40   : > { %4264 = dma.hbm_to_vmem [thread:$0]  (!%p4873_p2), %s267_s27, 256, %s269_s16, %s257_s22, %s4750_s8, %s4750_s8, %s4751_s2  }
  0x41   : > { %280 = sbr.rel (%p4836_p8) target bundleno = 1431 (0x597), region = 40 }
  0x46   : > { %s4911_s12 = sand.u32 1, %s4737_s24  }
  0x47   : > { %s3811_s17 = sshll.u32 %s4911_s12, 9  ;;  %s283_s13 = scalar_lea.sflag [#allocation4], %s4911_s12 }
  0x48   : > { %s4915_s20 = scalar_lea.vmem [#allocation3], %s3811_s17 }
  0x49   : > { %4716 = dma.done.wait (%p4823_p4), %s283_s13, 8192  }
  0x4a   : > { %4718 = vsyncadd (%p4823_p4), %s283_s13, 4294959104  ;;  %s292_s0 = sand.u32 1, %s4814_s4   ;;  %s3812_s2 = sshll.u32 %s4911_s12, 4 }
  0x4b   : > { %s293_s9 = scalar_lea.sflag [#allocation7], %s292_s0  ;;  %s4923_s11 = scalar_lea.vmem [#allocation6], %s3812_s2 }
  0x4c   : > { %4720 = dma.done.wait (%p4823_p4), %s293_s9, 256  }
  0x4d   : > { %4722 = vsyncadd (%p4823_p4), %s293_s9, 4294967040 }
  0x4e   : > { %4724 = dma.done.wait (%p49_p1), [#allocation7], 2048  }
  0x4f   : > { %4726 = vsyncadd (%p49_p1), [#allocation7], 4294965248  ;;  %v4217_v1 = vld [vmem:[#allocation8 + $0x38] sm:$0xff]  ;;  %v4216_v3 = vld [vmem:[#allocation8 + $0x30] sm:$0xff]  ;;  %vm1714_vm0 = vcmask 130112   ;;  %vm1718_vm1 = vcmask 195712  }
  0x50   : > { %v4225_v2 = vld [vmem:[#allocation8 + $0x78] sm:$0xff]  ;;  %862 = vmatpush.bf16.msra.mxu0 %v4217_v1  ;;  %4228 = vmatpush.bf16.msra.mxu2 %v4217_v1  ;;  %v4224_v4 = vld [vmem:[#allocation8 + $0x70] sm:$0xff]  ;;  %v4215_v5 = vld [vmem:[#allocation8 + $0x28] sm:$0xff]  ;;  %vm1722_vm2 = vcmask 261312   ;;  %vm1829_vm3 = vcmask 1041409   ;;  %vm1831_vm4 = vcmask 1042434  }
  0x51   : > { %1031 = vmatpush.bf16.msra.mxu1 %v4225_v2  ;;  %4236 = vmatpush.bf16.msra.mxu3 %v4225_v2  ;;  %v4223_v6 = vld [vmem:[#allocation8 + $0x68] sm:$0xff]  ;;  %v4214_v7 = vld [vmem:[#allocation8 + $0x20] sm:$0xff]  ;;  %v4213_v9 = vld [vmem:[#allocation8 + $0x18] sm:$0xff]  ;;  %vm1833_vm5 = vcmask 1043459   ;;  %vm1835_vm6 = vcmask 1044484   ;;  %vm1837_vm7 = vcmask 1045509  }
  0x52   : > { %v4222_v8 = vld [vmem:[#allocation8 + $0x60] sm:$0xff]  ;;  %v4221_v10 = vld [vmem:[#allocation8 + $0x58] sm:$0xff]  ;;  %v4212_v11 = vld [vmem:[#allocation8 + $0x10] sm:$0xff]  ;;  %vm1839_vm8 = vcmask 1046534   ;;  %vm1841_vm9 = vcmask 1047559   ;;  %vm1852_vm10 = vcmask 261120  }
  0x53   : > { %v4220_v12 = vld [vmem:[#allocation8 + $0x50] sm:$0xff]  ;;  %v4211_v13 = vld [vmem:[#allocation8 + $0x8] sm:$0xff]  ;;  %v4210_v15 = vld [vmem:[#allocation8] sm:$0xff]  ;;  %s3815_s15 = sshll.u32 %s4814_s4, 1  ;;  %s3814_s10 = sshll.u32 %s4911_s12, 5 }
  0x54   : > { %863 = vmatpush.bf16.msra.mxu0 %v4216_v3  ;;  %4229 = vmatpush.bf16.msra.mxu2 %v4216_v3  ;;  %v4219_v14 = vld [vmem:[#allocation8 + $0x48] sm:$0xff]  ;;  %v4218_v16 = vld [vmem:[#allocation8 + $0x40] sm:$0xff]  ;;  %v3827_v29 = vld [vmem:[%s4915_s20 + $0x10] sm:$0xf]  ;;  %p6778_p1 = scmp.lt.s32.totalorder %s3815_s15, 7  ;;  %s6901_s14 = scalar_lea.vmem [#allocation9], %s3814_s10 }
  0x55   : > { %1032 = vmatpush.bf16.msra.mxu1 %v4224_v4  ;;  %4237 = vmatpush.bf16.msra.mxu3 %v4224_v4  ;;  %v3819_v17 = vld [vmem:[%s4915_s20] sm:$0xf]  ;;  %v4147_v18 = vld [vmem:[%s4915_s20 + $0x4] sm:$0xf0]  ;;  %v4146_v21 = vld [vmem:[%s4915_s20 + $0x4] sm:$0xf] }
  0x56   : > { %v3947_v19 = vld [vmem:[%s4915_s20 + $0x100] sm:$0xf]  ;;  %v4179_v20 = vld [vmem:[%s4915_s20 + $0x104] sm:$0xf0]  ;;  %v3821_v22 = vld [vmem:[%s4915_s20 + $0x8] sm:$0xf0]  ;;  %v3820_v25 = vor.u32 %v4147_v18, %v3819_v17 }
  0x57   : > { %v4178_v23 = vld [vmem:[%s4915_s20 + $0x104] sm:$0xf]  ;;  %v3949_v24 = vld [vmem:[%s4915_s20 + $0x108] sm:$0xf0]  ;;  %v3948_v26 = vor.u32 %v4179_v20, %v3947_v19  ;;  %v3824_v27 = vor.u32 %v4146_v21, %v3821_v22  ;;  %v4149_v30 = vld [vmem:[%s4915_s20 + $0x14] sm:$0xf0] }
  0x58   : > { %864 = vmatpush.bf16.msra.mxu0 %v4215_v5  ;;  %4230 = vmatpush.bf16.msra.mxu2 %v4215_v5  ;;  %v3952_v28 = vor.u32 %v4178_v23, %v3949_v24  ;;  %v3955_v31 = vld [vmem:[%s4915_s20 + $0x110] sm:$0xf]  ;;  %v4181_v32 = vld [vmem:[%s4915_s20 + $0x114] sm:$0xf0]  ;;  %v4148_v33 = vld [vmem:[%s4915_s20 + $0x14] sm:$0xf]  ;;  %v3828_v37 = vor.u32 %v4149_v30, %v3827_v29 }
  0x59   : > { %1033 = vmatpush.bf16.msra.mxu1 %v4223_v6  ;;  %4238 = vmatpush.bf16.msra.mxu3 %v4223_v6  ;;  %v3829_v34 = vld [vmem:[%s4915_s20 + $0x18] sm:$0xf0]  ;;  %v4180_v35 = vld [vmem:[%s4915_s20 + $0x114] sm:$0xf]  ;;  %v3956_v38 = vor.u32 %v4181_v32, %v3955_v31  ;;  %v3835_v41 = vld [vmem:[%s4915_s20 + $0x20] sm:$0xf] }
  0x5a   : > { %v3957_v36 = vld [vmem:[%s4915_s20 + $0x118] sm:$0xf0]  ;;  %v3832_v39 = vor.u32 %v4148_v33, %v3829_v34  ;;  %v4151_v42 = vld [vmem:[%s4915_s20 + $0x24] sm:$0xf0]  ;;  %v3963_v43 = vld [vmem:[%s4915_s20 + $0x120] sm:$0xf] }
  0x5b   : > { %v3960_v40 = vor.u32 %v4180_v35, %v3957_v36  ;;  %v4183_v44 = vld [vmem:[%s4915_s20 + $0x124] sm:$0xf0]  ;;  %v4150_v45 = vld [vmem:[%s4915_s20 + $0x24] sm:$0xf]  ;;  %v3837_v46 = vld [vmem:[%s4915_s20 + $0x28] sm:$0xf0]  ;;  %v3836_v49 = vor.u32 %v4151_v42, %v3835_v41 }
  0x5c   : > { %865 = vmatpush.bf16.msra.mxu0 %v4214_v7  ;;  %4231 = vmatpush.bf16.msra.mxu2 %v4214_v7  ;;  %v4182_v47 = vld [vmem:[%s4915_s20 + $0x124] sm:$0xf]  ;;  %v3965_v48 = vld [vmem:[%s4915_s20 + $0x128] sm:$0xf0]  ;;  %v3964_v50 = vor.u32 %v4183_v44, %v3963_v43  ;;  %v3840_v51 = vor.u32 %v4150_v45, %v3837_v46  ;;  %v3843_v53 = vld [vmem:[%s4915_s20 + $0x30] sm:$0xf] }
  0x5d   : > { %1034 = vmatpush.bf16.msra.mxu1 %v4222_v8  ;;  %4239 = vmatpush.bf16.msra.mxu3 %v4222_v8  ;;  %v3968_v52 = vor.u32 %v4182_v47, %v3965_v48  ;;  %v4153_v54 = vld [vmem:[%s4915_s20 + $0x34] sm:$0xf0]  ;;  %v3971_v55 = vld [vmem:[%s4915_s20 + $0x130] sm:$0xf]  ;;  %v4152_v57 = vld [vmem:[%s4915_s20 + $0x34] sm:$0xf] }
  0x5e   : > { %v4185_v56 = vld [vmem:[%s4915_s20 + $0x134] sm:$0xf0]  ;;  %v3845_v58 = vld [vmem:[%s4915_s20 + $0x38] sm:$0xf0]  ;;  %v4184_v59 = vld [vmem:[%s4915_s20 + $0x134] sm:$0xf]  ;;  %v3844_v61 = vor.u32 %v4153_v54, %v3843_v53 }
  0x5f   : > { %v3973_v60 = vld [vmem:[%s4915_s20 + $0x138] sm:$0xf0]  ;;  %v3972_v62 = vor.u32 %v4185_v56, %v3971_v55  ;;  %v3848_v63 = vor.u32 %v4152_v57, %v3845_v58  ;;  %v3851_v1 = vld [vmem:[%s4915_s20 + $0x40] sm:$0xf]  ;;  %v4155_v2 = vld [vmem:[%s4915_s20 + $0x44] sm:$0xf0] }
  0x60   : > { %866 = vmatpush.bf16.msra.mxu0 %v4213_v9  ;;  %4232 = vmatpush.bf16.msra.mxu2 %v4213_v9  ;;  %v3976_v0 = vor.u32 %v4184_v59, %v3973_v60  ;;  %v3979_v3 = vld [vmem:[%s4915_s20 + $0x140] sm:$0xf]  ;;  %v4187_v4 = vld [vmem:[%s4915_s20 + $0x144] sm:$0xf0]  ;;  %v4154_v5 = vld [vmem:[%s4915_s20 + $0x44] sm:$0xf]  ;;  %v3852_v9 = vor.u32 %v4155_v2, %v3851_v1 }
  0x61   : > { %1035 = vmatpush.bf16.msra.mxu1 %v4221_v10  ;;  %4240 = vmatpush.bf16.msra.mxu3 %v4221_v10  ;;  %v3853_v6 = vld [vmem:[%s4915_s20 + $0x48] sm:$0xf0]  ;;  %v4186_v7 = vld [vmem:[%s4915_s20 + $0x144] sm:$0xf]  ;;  %v3980_v10 = vor.u32 %v4187_v4, %v3979_v3  ;;  %v4189_v17 = vld [vmem:[%s4915_s20 + $0x154] sm:$0xf0] }
  0x62   : > { %v3981_v8 = vld [vmem:[%s4915_s20 + $0x148] sm:$0xf0]  ;;  %v4156_v18 = vld [vmem:[%s4915_s20 + $0x54] sm:$0xf]  ;;  %v3861_v19 = vld [vmem:[%s4915_s20 + $0x58] sm:$0xf0] }
  0x63   : > { %v4188_v20 = vld [vmem:[%s4915_s20 + $0x154] sm:$0xf]  ;;  %v3989_v21 = vld [vmem:[%s4915_s20 + $0x158] sm:$0xf0]  ;;  %v3864_v24 = vor.u32 %v4156_v18, %v3861_v19  ;;  %v3995_v29 = vld [vmem:[%s4915_s20 + $0x160] sm:$0xf] }
  0x64   : > { %867 = vmatpush.bf16.msra.mxu0 %v4212_v11  ;;  %4233 = vmatpush.bf16.msra.mxu2 %v4212_v11  ;;  %v3856_v11 = vor.u32 %v4154_v5, %v3853_v6  ;;  %v4191_v30 = vld [vmem:[%s4915_s20 + $0x164] sm:$0xf0]  ;;  %v4158_v31 = vld [vmem:[%s4915_s20 + $0x64] sm:$0xf]  ;;  %v3869_v32 = vld [vmem:[%s4915_s20 + $0x68] sm:$0xf0] }
  0x65   : > { %1036 = vmatpush.bf16.msra.mxu1 %v4220_v12  ;;  %4241 = vmatpush.bf16.msra.mxu3 %v4220_v12  ;;  %v3984_v12 = vor.u32 %v4186_v7, %v3981_v8  ;;  %v4190_v33 = vld [vmem:[%s4915_s20 + $0x164] sm:$0xf]  ;;  %v3997_v34 = vld [vmem:[%s4915_s20 + $0x168] sm:$0xf0]  ;;  %v3996_v36 = vor.u32 %v4191_v30, %v3995_v29  ;;  %v4003_v41 = vld [vmem:[%s4915_s20 + $0x170] sm:$0xf] }
  0x66   : > { %v4193_v42 = vld [vmem:[%s4915_s20 + $0x174] sm:$0xf0]  ;;  %v4160_v43 = vld [vmem:[%s4915_s20 + $0x74] sm:$0xf]  ;;  %v3877_v44 = vld [vmem:[%s4915_s20 + $0x78] sm:$0xf0] }
  0x67   : > { %v4192_v45 = vld [vmem:[%s4915_s20 + $0x174] sm:$0xf]  ;;  %v4005_v46 = vld [vmem:[%s4915_s20 + $0x178] sm:$0xf0]  ;;  %v4004_v48 = vor.u32 %v4193_v42, %v4003_v41  ;;  %v4163_v53 = vld [vmem:[%s4915_s20 + $0x84] sm:$0xf0] }
  0x68   : > { %868 = vmatpush.bf16.msra.mxu0 %v4211_v13  ;;  %4234 = vmatpush.bf16.msra.mxu2 %v4211_v13  ;;  %v4752_v13 = vmov 0   ;;  %v4011_v54 = vld [vmem:[%s4915_s20 + $0x180] sm:$0xf]  ;;  %v4195_v55 = vld [vmem:[%s4915_s20 + $0x184] sm:$0xf0]  ;;  %s7607_s15 = smov (!%p6778_p1, %s3815_s15), 7 }
  0x69   : > { %1037 = vmatpush.bf16.msra.mxu1 %v4219_v14  ;;  %4242 = vmatpush.bf16.msra.mxu3 %v4219_v14  ;;  %v3859_v14 = vld [vmem:[%s4915_s20 + $0x50] sm:$0xf]  ;;  %v4162_v56 = vld [vmem:[%s4915_s20 + $0x84] sm:$0xf]  ;;  %v3885_v57 = vld [vmem:[%s4915_s20 + $0x88] sm:$0xf0] }
  0x6a   : > { %4313 = vset.pattern.permute.xlu1 %v4752_v13  ;;  %4315 = vset.pattern.permute.xlu0 %v4752_v13  ;;  %v4194_v58 = vld [vmem:[%s4915_s20 + $0x184] sm:$0xf]  ;;  %v4013_v59 = vld [vmem:[%s4915_s20 + $0x188] sm:$0xf0]  ;;  %v4019_v19 = vld [vmem:[%s4915_s20 + $0x190] sm:$0xf] }
  0x6b   : > { %4314 = vset.pattern.permute.xlu2 %v4752_v13  ;;  %v4016_v1 = vor.u32 %v4194_v58, %v4013_v59  ;;  %v5012_v4 = vld [vmem:[%s4923_s11 + $0x8] sm:$0xff]  ;;  %s3816_s22 = sshll.u32 %s7607_s15, 3  ;;  %s4227_s25 = sshll.u32 %s4814_s4, 5 }
  0x6c   : > { %869 = vmatpush.bf16.msra.mxu0 %v4210_v15  ;;  %4235 = vmatpush.bf16.msra.mxu2 %v4210_v15  ;;  %v4157_v15 = vld [vmem:[%s4915_s20 + $0x54] sm:$0xf0]  ;;  %v5016_v7 = vperm.slane %v5012_v4, 0  ;;  %v3901_v59 = vld [vmem:[%s4915_s20 + $0xa8] sm:$0xf0]  ;;  %s6841_s7 = scalar_lea.vmem %s7313_s6, %s3816_s22  ;;  %s3661_s13 = scalar_lea.hbm %s7312_s5, %s4227_s25 }
  0x6d   : > { %1038 = vmatpush.bf16.msra.mxu1 %v4218_v16  ;;  %4243 = vmatpush.bf16.msra.mxu3 %v4218_v16  ;;  %v3987_v16 = vld [vmem:[%s4915_s20 + $0x150] sm:$0xf]  ;;  %v3860_v22 = vor.u32 %v4157_v15, %v3859_v14  ;;  %s3664_s0 = sshll.u32 %s3661_s13, 4  ;;  %s3644_s2 = scalar_lea.sflag [#allocation5], %s4911_s12  ;;  %s3665_s0 = int_to_ptr.hbm [resolvable:$true] %s3664_s0 }
  0x6e   : > { %v3988_v23 = vor.u32 %v4189_v17, %v3987_v16  ;;  %v3891_v15 = vld [vmem:[%s4915_s20 + $0x90] sm:$0xf]  ;;  %v4165_v16 = vld [vmem:[%s4915_s20 + $0x94] sm:$0xf0]  ;;  %s4685_s9 = sshra.s32 %s3665_s0, 4  ;;  %s4691_s21 = scalar_lea.hbm %s7312_s5, 128  ;;  %s4686_s9 = int_to_ptr.hbm [resolvable:$true] %s4685_s9 }
  0x6f   : > { %870 = vmatmul.bf16.vlgmr.msra.gmra.mxu0 %v3820_v25  ;;  %950 = vmatmul.bf16.vlgmr.msra.gmra.mxu2 %v3948_v26  ;;  %v3992_v25 = vor.u32 %v4188_v20, %v3989_v21  ;;  %v4316_v26 = vld [vmem:[#allocation2] ss:$0 sm:$0xff]  ;;  %v4197_v20 = vld [vmem:[%s4915_s20 + $0x194] sm:$0xf0]  ;;  %v4164_v21 = vld [vmem:[%s4915_s20 + $0x94] sm:$0xf]  ;;  %p4692_p9 = scmp.lt.s32.totalorder %s4686_s9, %s7312_s5 }
  0x70   : > { %1039 = vmatmul.bf16.vlgmr.msra.gmra.mxu1 %v3824_v27  ;;  %1119 = vmatmul.bf16.vlgmr.msra.gmra.mxu3 %v3952_v28  ;;  %v3867_v27 = vld [vmem:[%s4915_s20 + $0x60] sm:$0xf]  ;;  %v4159_v28 = vld [vmem:[%s4915_s20 + $0x64] sm:$0xf0]  ;;  %v4020_v29 = vor.u32 %v4197_v20, %v4019_v19 }
  0x71   : > { %1578 = vperm.xlu1 %4313, %v4316_v26   ;;  %v3868_v35 = vor.u32 %v4159_v28, %v3867_v27  ;;  %v3892_v28 = vor.u32 %v4165_v16, %v3891_v15 }
  0x7f   : > { %875 = vmatmul.bf16.gmra.mxu0 %v3828_v37  ;;  %955 = vmatmul.bf16.gmra.mxu2 %v3956_v38  ;;  %v3872_v37 = vor.u32 %v4158_v31, %v3869_v32  ;;  %v4000_v38 = vor.u32 %v4190_v33, %v3997_v34 }
  0x80   : > { %1044 = vmatmul.bf16.gmra.mxu1 %v3832_v39  ;;  %1124 = vmatmul.bf16.gmra.mxu3 %v3960_v40  ;;  %v3875_v39 = vld [vmem:[%s4915_s20 + $0x70] sm:$0xf]  ;;  %v4161_v40 = vld [vmem:[%s4915_s20 + $0x74] sm:$0xf0] }
  0x81   : > { %v3876_v47 = vor.u32 %v4161_v40, %v3875_v39 }
  0x8f   : > { %880 = vmatmul.bf16.gmra.mxu0 %v3836_v49  ;;  %960 = vmatmul.bf16.gmra.mxu2 %v3964_v50  ;;  %v3880_v49 = vor.u32 %v4160_v43, %v3877_v44  ;;  %v4008_v50 = vor.u32 %v4192_v45, %v4005_v46 }
  0x90   : > { %1049 = vmatmul.bf16.gmra.mxu1 %v3840_v51  ;;  %1129 = vmatmul.bf16.gmra.mxu3 %v3968_v52  ;;  %v4998_v51 = vld [vmem:[%s4923_s11] sm:$0xff] }
  0x91   : > { %v3883_v52 = vld [vmem:[%s4915_s20 + $0x80] sm:$0xf] }
  0x92   : > { %v3884_v60 = vor.u32 %v4163_v53, %v3883_v52  ;;  %v4167_v52 = vld [vmem:[%s4915_s20 + $0xa4] sm:$0xf0] }
  0x9f   : > { %885 = vmatmul.bf16.gmra.mxu0 %v3844_v61  ;;  %965 = vmatmul.bf16.gmra.mxu2 %v3972_v62  ;;  %v4012_v61 = vor.u32 %v4195_v55, %v4011_v54  ;;  %v4027_v54 = vld [vmem:[%s4915_s20 + $0x1a0] sm:$0xf]  ;;  %v4199_v55 = vld [vmem:[%s4915_s20 + $0x1a4] sm:$0xf0] }
  0xa0   : > { %1054 = vmatmul.bf16.gmra.mxu1 %v3848_v63  ;;  %1134 = vmatmul.bf16.gmra.mxu3 %v3976_v0  ;;  %v5009_v63 = vperm.slane %v4998_v51, 0  ;;  %v3888_v0 = vor.u32 %v4162_v56, %v3885_v57  ;;  %v4166_v56 = vld [vmem:[%s4915_s20 + $0xa4] sm:$0xf] }
  0xaf   : > { %890 = vmatmul.bf16.gmra.mxu0 %v3852_v9  ;;  %970 = vmatmul.bf16.gmra.mxu2 %v3980_v10 }
  0xb0   : > { %1059 = vmatmul.bf16.gmra.mxu1 %v3856_v11  ;;  %1139 = vmatmul.bf16.gmra.mxu3 %v3984_v12  ;;  %v5021_v12 = vld [vmem:[%s7310_s3] ss:$0 sm:$0xff] }
  0xbf   : > { %895 = vmatmul.bf16.gmra.mxu0 %v3860_v22  ;;  %975 = vmatmul.bf16.gmra.mxu2 %v3988_v23  ;;  %v3893_v23 = vld [vmem:[%s4915_s20 + $0x98] sm:$0xf0] }
  0xc0   : > { %1064 = vmatmul.bf16.gmra.mxu1 %v3864_v24  ;;  %1144 = vmatmul.bf16.gmra.mxu3 %v3992_v25  ;;  %v4196_v24 = vld [vmem:[%s4915_s20 + $0x194] sm:$0xf]  ;;  %v4021_v25 = vld [vmem:[%s4915_s20 + $0x198] sm:$0xf0]  ;;  %v3896_v32 = vor.u32 %v4164_v21, %v3893_v23 }
  0xc1   : > { %v4024_v33 = vor.u32 %v4196_v24, %v4021_v25 }
  0xcf   : > { %900 = vmatmul.bf16.gmra.mxu0 %v3868_v35  ;;  %980 = vmatmul.bf16.gmra.mxu2 %v3996_v36 }
  0xd0   : > { %1069 = vmatmul.bf16.gmra.mxu1 %v3872_v37  ;;  %1149 = vmatmul.bf16.gmra.mxu3 %v4000_v38 }
  0xdf   : > { %905 = vmatmul.bf16.gmra.mxu0 %v3876_v47  ;;  %985 = vmatmul.bf16.gmra.mxu2 %v4004_v48 }
  0xe0   : > { %1074 = vmatmul.bf16.gmra.mxu1 %v3880_v49  ;;  %1154 = vmatmul.bf16.gmra.mxu3 %v4008_v50  ;;  %v3899_v50 = vld [vmem:[%s4915_s20 + $0xa0] sm:$0xf] }
  0xec   : > { %v871_v62 = vpop.f32.mrf.mxu0 }
  0xed   : > { %v1040_v2 = vpop.f32.mrf.mxu1 }
  0xee   : > { %v1041_v3 = vadd.f32 %v1040_v2, %v871_v62 }
  0xef   : > { %910 = vmatmul.bf16.gmra.mxu0 %v3884_v60  ;;  %990 = vmatmul.bf16.gmra.mxu2 %v4012_v61  ;;  %v4198_v60 = vld [vmem:[%s4915_s20 + $0x1a4] sm:$0xf]  ;;  %v4029_v61 = vld [vmem:[%s4915_s20 + $0x1a8] sm:$0xf0] }
  0xf0   : > { %v1250_v5 = vadd.f32 %v5009_v63, %v1041_v3  ;;  %1079 = vmatmul.bf16.gmra.mxu1 %v3888_v0  ;;  %1159 = vmatmul.bf16.gmra.mxu3 %v4016_v1  ;;  %v1204_v0 = vrot.slane %v4998_v51, 1  ;;  %v3900_v3 = vor.u32 %v4167_v52, %v3899_v50 }
  0xf2   : > { %4318 = vtanh.f32 %v1250_v5  ;;  %v951_v6 = vpop.f32.mrf.mxu2  ;;  %v4028_v5 = vor.u32 %v4199_v55, %v4027_v54  ;;  %v5052_v16 = vperm.slane %v1204_v0, 0 }
  0xf3   : > { %v1120_v8 = vpop.f32.mrf.mxu3 }
  0xf4   : > { %v1121_v9 = vadd.f32 %v1120_v8, %v951_v6  ;;  %v873_v10 = vpop.f32.mrf.mxu0 }
  0xf5   : > { %v1042_v11 = vpop.f32.mrf.mxu1 }
  0xf6   : > { %v1282_v13 = vadd.f32 %v5016_v7, %v1121_v9  ;;  %v1043_v14 = vadd.f32 %v1042_v11, %v873_v10  ;;  %v3904_v9 = vor.u32 %v4166_v56, %v3901_v59  ;;  %v4032_v10 = vor.u32 %v4198_v60, %v4029_v61 }
  0xf8   : > { %v4319_v17 = vpop.eup %4318  ;;  %4320 = vtanh.f32 %v1282_v13  ;;  %v1251_v18 = vadd.f32 %v5009_v63, %v1043_v14 }
  0xf9   : > { %v1382_v22 = vmul.f32 %v4319_v17, %v5021_v12  ;;  %v1211_v17 = vrot.slane %v5012_v4, 1 }
  0xfa   : > { %4322 = vtanh.f32 %v1251_v18  ;;  %v953_v26 = vpop.f32.mrf.mxu2 }
  0xfb   : > { %v1122_v27 = vpop.f32.mrf.mxu3  ;;  %1446 = vadd.xlane.f32.xlu0 %v1382_v22 }
  0xfc   : > { %v1123_v30 = vadd.f32 %v1122_v27, %v953_v26  ;;  %v876_v31 = vpop.f32.mrf.mxu0 }
  0xfd   : > { %v1045_v34 = vpop.f32.mrf.mxu1 }
  0xfe   : > { %v4321_v35 = vpop.eup %4320  ;;  %v1283_v36 = vadd.f32 %v5016_v7, %v1123_v30  ;;  %v1046_v37 = vadd.f32 %v1045_v34, %v876_v31  ;;  %v4169_v30 = vld [vmem:[%s4915_s20 + $0xb4] sm:$0xf0]  ;;  %v4035_v31 = vld [vmem:[%s4915_s20 + $0x1b0] sm:$0xf] }
  0xff   : > { %915 = vmatmul.bf16.gmra.mxu0 %v3892_v28  ;;  %995 = vmatmul.bf16.gmra.mxu2 %v4020_v29  ;;  %v1414_v38 = vmul.f32 %v4321_v35, %v5021_v12  ;;  %v3907_v29 = vld [vmem:[%s4915_s20 + $0xb0] sm:$0xf]  ;;  %v3909_v35 = vld [vmem:[%s4915_s20 + $0xb8] sm:$0xf0] }
 0x100   : > { %v4323_v39 = vpop.eup %4322  ;;  %4324 = vtanh.f32 %v1283_v36  ;;  %v1252_v40 = vadd.f32 %v5009_v63, %v1046_v37  ;;  %1084 = vmatmul.bf16.gmra.mxu1 %v3896_v32  ;;  %1164 = vmatmul.bf16.gmra.mxu3 %v4024_v33  ;;  %v4201_v32 = vld [vmem:[%s4915_s20 + $0x1b4] sm:$0xf0]  ;;  %v4168_v33 = vld [vmem:[%s4915_s20 + $0xb4] sm:$0xf]  ;;  %v4037_v37 = vld [vmem:[%s4915_s20 + $0x1b8] sm:$0xf0] }
 0x101   : > { %1510 = vadd.xlane.f32.xlu2 %v1414_v38  ;;  %v1383_v41 = vmul.f32 %v4323_v39, %v5021_v12  ;;  %v4200_v36 = vld [vmem:[%s4915_s20 + $0x1b4] sm:$0xf] }
 0x102   : > { %4326 = vtanh.f32 %v1252_v40  ;;  %v956_v42 = vpop.f32.mrf.mxu2 }
 0x103   : > { %v1125_v43 = vpop.f32.mrf.mxu3  ;;  %1448 = vadd.xlane.f32.xlu0 %v1383_v41  ;;  %v3908_v41 = vor.u32 %v4169_v30, %v3907_v29 }
 0x104   : > { %v1126_v44 = vadd.f32 %v1125_v43, %v956_v42  ;;  %v878_v45 = vpop.f32.mrf.mxu0  ;;  %v4036_v42 = vor.u32 %v4201_v32, %v4035_v31  ;;  %v1212_v31 = vrot.slane %v5012_v4, 2 }
 0x105   : > { %v1047_v46 = vpop.f32.mrf.mxu1 }
 0x106   : > { %v4325_v47 = vpop.eup %4324  ;;  %v1284_v48 = vadd.f32 %v5016_v7, %v1126_v44  ;;  %v1048_v49 = vadd.f32 %v1047_v46, %v878_v45  ;;  %v3912_v46 = vor.u32 %v4168_v33, %v3909_v35 }
 0x107   : > { %v1415_v58 = vmul.f32 %v4325_v47, %v5021_v12  ;;  %v4040_v47 = vor.u32 %v4200_v36, %v4037_v37  ;;  %v5096_v36 = vperm.slane %v1212_v31, 0  ;;  %v3933_v31 = vld [vmem:[%s4915_s20 + $0xe8] sm:$0xf0] }
 0x108   : > { %v4327_v53 = vpop.eup %4326  ;;  %4328 = vtanh.f32 %v1284_v48  ;;  %v1253_v1 = vadd.f32 %v5009_v63, %v1048_v49 }
 0x109   : > { %v1384_v57 = vmul.f32 %v4327_v53, %v5021_v12 }
 0x10a   : > { %v958_v62 = vpop.f32.mrf.mxu2  ;;  %4330 = vtanh.f32 %v1253_v1 }
 0x10b   : > { %v1127_v2 = vpop.f32.mrf.mxu3  ;;  %1450 = vadd.xlane.f32.xlu1 %v1384_v57  ;;  %1512 = vadd.xlane.f32.xlu0 %v1415_v58 }
 0x10c   : > { %v1128_v6 = vadd.f32 %v1127_v2, %v958_v62  ;;  %v881_v8 = vpop.f32.mrf.mxu0 }
 0x10d   : > { %v1050_v11 = vpop.f32.mrf.mxu1 }
 0x10e   : > { %v4329_v13 = vpop.eup %4328  ;;  %v1285_v14 = vadd.f32 %v5016_v7, %v1128_v6  ;;  %v1051_v15 = vadd.f32 %v1050_v11, %v881_v8  ;;  %v5057_v7 = vperm.slane %v1211_v17, 0  ;;  %v3915_v6 = vld [vmem:[%s4915_s20 + $0xc0] sm:$0xf]  ;;  %v4171_v8 = vld [vmem:[%s4915_s20 + $0xc4] sm:$0xf0] }
 0x10f   : > { %920 = vmatmul.bf16.gmra.mxu0 %v3900_v3  ;;  %1000 = vmatmul.bf16.gmra.mxu2 %v4028_v5  ;;  %v1416_v63 = vmul.f32 %v4329_v13, %v5021_v12  ;;  %v1205_v5 = vrot.slane %v4998_v51, 2  ;;  %v4043_v11 = vld [vmem:[%s4915_s20 + $0x1c0] sm:$0xf]  ;;  %v4203_v13 = vld [vmem:[%s4915_s20 + $0x1c4] sm:$0xf0] }
 0x110   : > { %4332 = vtanh.f32 %v1285_v14  ;;  %1089 = vmatmul.bf16.gmra.mxu1 %v3904_v9  ;;  %1169 = vmatmul.bf16.gmra.mxu3 %v4032_v10  ;;  %v1254_v18 = vadd.f32 %v5052_v16, %v1051_v15  ;;  %v4331_v23 = vpop.eup %4330  ;;  %v4170_v14 = vld [vmem:[%s4915_s20 + $0xc4] sm:$0xf]  ;;  %v3917_v17 = vld [vmem:[%s4915_s20 + $0xc8] sm:$0xf0] }
 0x111   : > { %v1385_v34 = vmul.f32 %v4331_v23, %v5021_v12 }
 0x112   : > { %v961_v19 = vpop.f32.mrf.mxu2  ;;  %4334 = vtanh.f32 %v1254_v18  ;;  %v4045_v18 = vld [vmem:[%s4915_s20 + $0x1c8] sm:$0xf0] }
 0x113   : > { %v1130_v20 = vpop.f32.mrf.mxu3  ;;  %1514 = vadd.xlane.f32.xlu1 %v1416_v63  ;;  %v4202_v63 = vld [vmem:[%s4915_s20 + $0x1c4] sm:$0xf] }
 0x114   : > { %v1131_v21 = vadd.f32 %v1130_v20, %v961_v19  ;;  %v883_v22 = vpop.f32.mrf.mxu0 }
 0x115   : > { %v1052_v24 = vpop.f32.mrf.mxu1 }
 0x116   : > { %v4333_v25 = vpop.eup %4332  ;;  %v1286_v26 = vadd.f32 %v5057_v7, %v1131_v21  ;;  %v1053_v27 = vadd.f32 %v1052_v24, %v883_v22  ;;  %v3916_v21 = vor.u32 %v4171_v8, %v3915_v6  ;;  %v4044_v22 = vor.u32 %v4203_v13, %v4043_v11 }
 0x117   : > { %v1417_v28 = vmul.f32 %v4333_v25, %v5021_v12  ;;  %v5089_v25 = vperm.slane %v1205_v5, 0 }
 0x118   : > { %4336 = vtanh.f32 %v1286_v26  ;;  %v1255_v38 = vadd.f32 %v5052_v16, %v1053_v27  ;;  %v4335_v43 = vpop.eup %4334  ;;  %v4048_v26 = vor.u32 %v4202_v63, %v4045_v18 }
 0x119   : > { %1516 = vadd.xlane.f32.xlu2 %v1417_v28  ;;  %v1386_v53 = vmul.f32 %v4335_v43, %v5021_v12 }
 0x11a   : > { %v963_v39 = vpop.f32.mrf.mxu2  ;;  %4338 = vtanh.f32 %v1255_v38 }
 0x11b   : > { %v1132_v40 = vpop.f32.mrf.mxu3  ;;  %1452 = vadd.xlane.f32.xlu1 %v1385_v34 }
 0x11c   : > { %v1133_v44 = vadd.f32 %v1132_v40, %v963_v39  ;;  %v886_v45 = vpop.f32.mrf.mxu0 }
 0x11d   : > { %v1055_v48 = vpop.f32.mrf.mxu1 }
 0x11e   : > { %v4337_v49 = vpop.eup %4336  ;;  %v1287_v50 = vadd.f32 %v5057_v7, %v1133_v44  ;;  %v1056_v52 = vadd.f32 %v1055_v48, %v886_v45  ;;  %v3923_v45 = vld [vmem:[%s4915_s20 + $0xd0] sm:$0xf] }
 0x11f   : > { %925 = vmatmul.bf16.gmra.mxu0 %v3908_v41  ;;  %1005 = vmatmul.bf16.gmra.mxu2 %v4036_v42  ;;  %v1418_v54 = vmul.f32 %v4337_v49, %v5021_v12  ;;  %v4051_v49 = vld [vmem:[%s4915_s20 + $0x1d0] sm:$0xf] }
 0x120   : > { %4340 = vtanh.f32 %v1287_v50  ;;  %v1256_v55 = vadd.f32 %v5052_v16, %v1056_v52  ;;  %1094 = vmatmul.bf16.gmra.mxu1 %v3912_v46  ;;  %1174 = vmatmul.bf16.gmra.mxu3 %v4040_v47  ;;  %v4339_v58 = vpop.eup %4338  ;;  %v4173_v46 = vld [vmem:[%s4915_s20 + $0xd4] sm:$0xf0]  ;;  %v4172_v52 = vld [vmem:[%s4915_s20 + $0xd4] sm:$0xf] }
 0x121   : > { %1454 = vadd.xlane.f32.xlu2 %v1386_v53  ;;  %1518 = vadd.xlane.f32.xlu0 %v1418_v54  ;;  %v1387_v2 = vmul.f32 %v4339_v58, %v5021_v12  ;;  %v4205_v50 = vld [vmem:[%s4915_s20 + $0x1d4] sm:$0xf0]  ;;  %v3925_v54 = vld [vmem:[%s4915_s20 + $0xd8] sm:$0xf0] }
 0x122   : > { %4342 = vtanh.f32 %v1256_v55  ;;  %v966_v56 = vpop.f32.mrf.mxu2  ;;  %v4204_v55 = vld [vmem:[%s4915_s20 + $0x1d4] sm:$0xf] }
 0x123   : > { %v1135_v57 = vpop.f32.mrf.mxu3 }
 0x124   : > { %v1136_v59 = vadd.f32 %v1135_v57, %v966_v56  ;;  %v888_v60 = vpop.f32.mrf.mxu0  ;;  %v4053_v56 = vld [vmem:[%s4915_s20 + $0x1d8] sm:$0xf0] }
 0x125   : > { %v1057_v61 = vpop.f32.mrf.mxu1 }
 0x126   : > { %v4341_v62 = vpop.eup %4340  ;;  %v1288_v0 = vadd.f32 %v5057_v7, %v1136_v59  ;;  %v1058_v1 = vadd.f32 %v1057_v61, %v888_v60  ;;  %v3924_v59 = vor.u32 %v4173_v46, %v3923_v45  ;;  %v4052_v60 = vor.u32 %v4205_v50, %v4051_v49 }
 0x127   : > { %v1419_v3 = vmul.f32 %v4341_v62, %v5021_v12  ;;  %v1213_v46 = vrot.slane %v5012_v4, 3 }
 0x128   : > { %v4343_v9 = vpop.eup %4342  ;;  %4344 = vtanh.f32 %v1288_v0  ;;  %v1257_v10 = vadd.f32 %v5052_v16, %v1058_v1  ;;  %v3920_v16 = vor.u32 %v4170_v14, %v3917_v17  ;;  %v3928_v0 = vor.u32 %v4172_v52, %v3925_v54 }
 0x129   : > { %1456 = vadd.xlane.f32.xlu2 %v1387_v2  ;;  %1520 = vadd.xlane.f32.xlu1 %v1419_v3  ;;  %v1388_v15 = vmul.f32 %v4343_v9, %v5021_v12  ;;  %v4056_v1 = vor.u32 %v4204_v55, %v4053_v56  ;;  %v5134_v52 = vperm.slane %v1213_v46, 0 }
 0x12a   : > { %4346 = vtanh.f32 %v1257_v10  ;;  %v968_v19 = vpop.f32.mrf.mxu2 }
 0x12b   : > { %v1137_v20 = vpop.f32.mrf.mxu3  ;;  %1458 = vadd.xlane.f32.xlu0 %v1388_v15 }
 0x12c   : > { %v1138_v23 = vadd.f32 %v1137_v20, %v968_v19  ;;  %v891_v24 = vpop.f32.mrf.mxu0 }
 0x12d   : > { %v1060_v27 = vpop.f32.mrf.mxu1 }
 0x12e   : > { %v4345_v28 = vpop.eup %4344  ;;  %v1289_v29 = vadd.f32 %v5057_v7, %v1138_v23  ;;  %v1061_v30 = vadd.f32 %v1060_v27, %v891_v24  ;;  %v3931_v23 = vld [vmem:[%s4915_s20 + $0xe0] sm:$0xf]  ;;  %v4175_v24 = vld [vmem:[%s4915_s20 + $0xe4] sm:$0xf0] }
 0x12f   : > { %930 = vmatmul.bf16.gmra.mxu0 %v3916_v21  ;;  %1010 = vmatmul.bf16.gmra.mxu2 %v4044_v22  ;;  %v1420_v32 = vmul.f32 %v4345_v28, %v5021_v12  ;;  %v1206_v22 = vrot.slane %v4998_v51, 3  ;;  %v4059_v27 = vld [vmem:[%s4915_s20 + $0x1e0] sm:$0xf]  ;;  %v4207_v28 = vld [vmem:[%s4915_s20 + $0x1e4] sm:$0xf0] }
 0x130   : > { %v4347_v33 = vpop.eup %4346  ;;  %4348 = vtanh.f32 %v1289_v29  ;;  %v1258_v34 = vadd.f32 %v5089_v25, %v1061_v30  ;;  %1099 = vmatmul.bf16.gmra.mxu1 %v3920_v16  ;;  %1179 = vmatmul.bf16.gmra.mxu3 %v4048_v26  ;;  %v4174_v29 = vld [vmem:[%s4915_s20 + $0xe4] sm:$0xf] }
 0x131   : > { %1522 = vadd.xlane.f32.xlu2 %v1420_v32  ;;  %v1389_v35 = vmul.f32 %v4347_v33, %v5021_v12  ;;  %v4206_v32 = vld [vmem:[%s4915_s20 + $0x1e4] sm:$0xf]  ;;  %v4061_v33 = vld [vmem:[%s4915_s20 + $0x1e8] sm:$0xf0] }
 0x132   : > { %4350 = vtanh.f32 %v1258_v34  ;;  %v971_v7 = vpop.f32.mrf.mxu2 }
 0x133   : > { %v1140_v37 = vpop.f32.mrf.mxu3  ;;  %1460 = vadd.xlane.f32.xlu1 %v1389_v35 }
 0x134   : > { %v1141_v38 = vadd.f32 %v1140_v37, %v971_v7  ;;  %v893_v39 = vpop.f32.mrf.mxu0  ;;  %v3932_v7 = vor.u32 %v4175_v24, %v3931_v23  ;;  %v4060_v37 = vor.u32 %v4207_v28, %v4059_v27 }
 0x135   : > { %v1062_v40 = vpop.f32.mrf.mxu1 }
 0x136   : > { %v4349_v41 = vpop.eup %4348  ;;  %v1290_v42 = vadd.f32 %v5096_v36, %v1141_v38  ;;  %v1063_v43 = vadd.f32 %v1062_v40, %v893_v39  ;;  %v5127_v40 = vperm.slane %v1206_v22, 0 }
 0x137   : > { %v1421_v44 = vmul.f32 %v4349_v41, %v5021_v12  ;;  %v4064_v41 = vor.u32 %v4206_v32, %v4061_v33 }
 0x138   : > { %v4351_v47 = vpop.eup %4350  ;;  %4352 = vtanh.f32 %v1290_v42  ;;  %v1259_v48 = vadd.f32 %v5089_v25, %v1063_v43 }
 0x139   : > { %1524 = vadd.xlane.f32.xlu0 %v1421_v44  ;;  %v1390_v53 = vmul.f32 %v4351_v47, %v5021_v12 }
 0x13a   : > { %4354 = vtanh.f32 %v1259_v48  ;;  %v973_v57 = vpop.f32.mrf.mxu2 }
 0x13b   : > { %v1142_v58 = vpop.f32.mrf.mxu3  ;;  %1462 = vadd.xlane.f32.xlu2 %v1390_v53 }
 0x13c   : > { %v1143_v61 = vadd.f32 %v1142_v58, %v973_v57  ;;  %v896_v62 = vpop.f32.mrf.mxu0 }
 0x13d   : > { %v1065_v2 = vpop.f32.mrf.mxu1 }
 0x13e   : > { %v4353_v3 = vpop.eup %4352  ;;  %v1291_v5 = vadd.f32 %v5096_v36, %v1143_v61  ;;  %v1066_v6 = vadd.f32 %v1065_v2, %v896_v62  ;;  %v3939_v61 = vld [vmem:[%s4915_s20 + $0xf0] sm:$0xf]  ;;  %v4177_v62 = vld [vmem:[%s4915_s20 + $0xf4] sm:$0xf0] }
 0x13f   : > { %935 = vmatmul.bf16.gmra.mxu0 %v3924_v59  ;;  %1015 = vmatmul.bf16.gmra.mxu2 %v4052_v60  ;;  %v1422_v8 = vmul.f32 %v4353_v3, %v5021_v12  ;;  %v4067_v2 = vld [vmem:[%s4915_s20 + $0x1f0] sm:$0xf]  ;;  %v4209_v3 = vld [vmem:[%s4915_s20 + $0x1f4] sm:$0xf0] }
 0x140   : > { %v4355_v9 = vpop.eup %4354  ;;  %4356 = vtanh.f32 %v1291_v5  ;;  %v1260_v10 = vadd.f32 %v5089_v25, %v1066_v6  ;;  %1104 = vmatmul.bf16.gmra.mxu1 %v3928_v0  ;;  %1184 = vmatmul.bf16.gmra.mxu3 %v4056_v1  ;;  %v4176_v5 = vld [vmem:[%s4915_s20 + $0xf4] sm:$0xf] }
 0x141   : > { %1526 = vadd.xlane.f32.xlu1 %v1422_v8  ;;  %v1391_v11 = vmul.f32 %v4355_v9, %v5021_v12  ;;  %v3941_v8 = vld [vmem:[%s4915_s20 + $0xf8] sm:$0xf0]  ;;  %v4208_v9 = vld [vmem:[%s4915_s20 + $0x1f4] sm:$0xf] }
 0x142   : > { %4358 = vtanh.f32 %v1260_v10  ;;  %v976_v13 = vpop.f32.mrf.mxu2  ;;  %v4069_v10 = vld [vmem:[%s4915_s20 + $0x1f8] sm:$0xf0] }
 0x143   : > { %v1145_v14 = vpop.f32.mrf.mxu3  ;;  %1464 = vadd.xlane.f32.xlu0 %v1391_v11 }
 0x144   : > { %v1146_v15 = vadd.f32 %v1145_v14, %v976_v13  ;;  %v898_v17 = vpop.f32.mrf.mxu0  ;;  %v3940_v14 = vor.u32 %v4177_v62, %v3939_v61 }
 0x145   : > { %v1067_v63 = vpop.f32.mrf.mxu1 }
 0x146   : > { %v4357_v18 = vpop.eup %4356  ;;  %v1292_v19 = vadd.f32 %v5096_v36, %v1146_v15  ;;  %v1068_v20 = vadd.f32 %v1067_v63, %v898_v17  ;;  %v4068_v15 = vor.u32 %v4209_v3, %v4067_v2 }
 0x147   : > { %v1423_v21 = vmul.f32 %v4357_v18, %v5021_v12  ;;  %v3944_v18 = vor.u32 %v4176_v5, %v3941_v8 }
 0x148   : > { %v4359_v16 = vpop.eup %4358  ;;  %4360 = vtanh.f32 %v1292_v19  ;;  %v1261_v26 = vadd.f32 %v5089_v25, %v1068_v20  ;;  %v3936_v25 = vor.u32 %v4174_v29, %v3933_v31  ;;  %v4072_v19 = vor.u32 %v4208_v9, %v4069_v10 }
 0x149   : > { %1528 = vadd.xlane.f32.xlu2 %v1423_v21  ;;  %v1392_v30 = vmul.f32 %v4359_v16, %v5021_v12 }
 0x14a   : > { %4362 = vtanh.f32 %v1261_v26  ;;  %v978_v34 = vpop.f32.mrf.mxu2 }
 0x14b   : > { %v1147_v35 = vpop.f32.mrf.mxu3  ;;  %1466 = vadd.xlane.f32.xlu1 %v1392_v30 }
 0x14c   : > { %v1148_v38 = vadd.f32 %v1147_v35, %v978_v34  ;;  %v901_v39 = vpop.f32.mrf.mxu0 }
 0x14d   : > { %v1070_v42 = vpop.f32.mrf.mxu1 }
 0x14e   : > { %v4361_v43 = vpop.eup %4360  ;;  %v1293_v44 = vadd.f32 %v5096_v36, %v1148_v38  ;;  %v1071_v45 = vadd.f32 %v1070_v42, %v901_v39  ;;  %v1207_v39 = vrot.slane %v4998_v51, 4 }
 0x14f   : > { %940 = vmatmul.bf16.gmra.mxu0 %v3932_v7  ;;  %1020 = vmatmul.bf16.gmra.mxu2 %v4060_v37  ;;  %v1424_v47 = vmul.f32 %v4361_v43, %v5021_v12 }
 0x150   : > { %v4363_v48 = vpop.eup %4362  ;;  %4364 = vtanh.f32 %v1293_v44  ;;  %v1262_v49 = vadd.f32 %v5127_v40, %v1071_v45  ;;  %1109 = vmatmul.bf16.gmra.mxu1 %v3936_v25  ;;  %1189 = vmatmul.bf16.gmra.mxu3 %v4064_v41  ;;  %v1222_v45 = vperm.slane %v1207_v39, 0 }
 0x151   : > { %1530 = vadd.xlane.f32.xlu0 %v1424_v47  ;;  %v1393_v50 = vmul.f32 %v4363_v48, %v5021_v12 }
 0x152   : > { %4366 = vtanh.f32 %v1262_v49  ;;  %v981_v36 = vpop.f32.mrf.mxu2 }
 0x153   : > { %v1150_v53 = vpop.f32.mrf.mxu3  ;;  %1468 = vadd.xlane.f32.xlu2 %v1393_v50  ;;  %v1214_v50 = vrot.slane %v5012_v4, 4 }
 0x154   : > { %v1151_v54 = vadd.f32 %v1150_v53, %v981_v36  ;;  %v903_v55 = vpop.f32.mrf.mxu0 }
 0x155   : > { %v1072_v56 = vpop.f32.mrf.mxu1 }
 0x156   : > { %v4365_v57 = vpop.eup %4364  ;;  %v1294_v58 = vadd.f32 %v5134_v52, %v1151_v54  ;;  %v1073_v59 = vadd.f32 %v1072_v56, %v903_v55  ;;  %v1230_v56 = vperm.slane %v1214_v50, 0 }
 0x157   : > { %v1425_v60 = vmul.f32 %v4365_v57, %v5021_v12 }
 0x158   : > { %v4367_v0 = vpop.eup %4366  ;;  %4368 = vtanh.f32 %v1294_v58  ;;  %v1263_v1 = vadd.f32 %v5127_v40, %v1073_v59 }
 0x159   : > { %1532 = vadd.xlane.f32.xlu1 %v1425_v60  ;;  %v1394_v6 = vmul.f32 %v4367_v0, %v5021_v12 }
 0x15a   : > { %4370 = vtanh.f32 %v1263_v1  ;;  %v983_v11 = vpop.f32.mrf.mxu2 }
 0x15b   : > { %v1152_v13 = vpop.f32.mrf.mxu3  ;;  %1470 = vadd.xlane.f32.xlu0 %v1394_v6 }
 0x15c   : > { %v1153_v17 = vadd.f32 %v1152_v13, %v983_v11  ;;  %v906_v63 = vpop.f32.mrf.mxu0 }
 0x15d   : > { %v1075_v20 = vpop.f32.mrf.mxu1 }
 0x15e   : > { %v4369_v21 = vpop.eup %4368  ;;  %v1295_v22 = vadd.f32 %v5134_v52, %v1153_v17  ;;  %v1076_v23 = vadd.f32 %v1075_v20, %v906_v63 }
 0x15f   : > { %945 = vmatmul.bf16.gmra.mxu0 %v3940_v14  ;;  %1025 = vmatmul.bf16.gmra.mxu2 %v4068_v15  ;;  %v1426_v24 = vmul.f32 %v4369_v21, %v5021_v12 }
 0x160   : > { %v4371_v16 = vpop.eup %4370  ;;  %4372 = vtanh.f32 %v1295_v22  ;;  %v1264_v26 = vadd.f32 %v5127_v40, %v1076_v23  ;;  %1114 = vmatmul.bf16.gmra.mxu1 %v3944_v18  ;;  %1194 = vmatmul.bf16.gmra.mxu3 %v4072_v19 }
 0x161   : > { %1534 = vadd.xlane.f32.xlu2 %v1426_v24  ;;  %v1395_v27 = vmul.f32 %v4371_v16, %v5021_v12 }
 0x162   : > { %4374 = vtanh.f32 %v1264_v26  ;;  %v986_v28 = vpop.f32.mrf.mxu2 }
 0x163   : > { %v1155_v29 = vpop.f32.mrf.mxu3  ;;  %1472 = vadd.xlane.f32.xlu1 %v1395_v27 }
 0x164   : > { %v1156_v30 = vadd.f32 %v1155_v29, %v986_v28  ;;  %v908_v31 = vpop.f32.mrf.mxu0 }
 0x165   : > { %v1077_v32 = vpop.f32.mrf.mxu1 }
 0x166   : > { %v4373_v33 = vpop.eup %4372  ;;  %v1296_v34 = vadd.f32 %v5134_v52, %v1156_v30  ;;  %v1078_v35 = vadd.f32 %v1077_v32, %v908_v31  ;;  %v1208_v30 = vrot.slane %v4998_v51, 5 }
 0x167   : > { %v1427_v7 = vmul.f32 %v4373_v33, %v5021_v12 }
 0x168   : > { %v4375_v37 = vpop.eup %4374  ;;  %4376 = vtanh.f32 %v1296_v34  ;;  %v1265_v38 = vadd.f32 %v5127_v40, %v1078_v35 }
 0x169   : > { %1536 = vadd.xlane.f32.xlu0 %v1427_v7  ;;  %v1396_v25 = vmul.f32 %v4375_v37, %v5021_v12  ;;  %v1223_v7 = vperm.slane %v1208_v30, 0 }
 0x16a   : > { %4378 = vtanh.f32 %v1265_v38  ;;  %v988_v41 = vpop.f32.mrf.mxu2 }
 0x16b   : > { %v1157_v42 = vpop.f32.mrf.mxu3  ;;  %1474 = vadd.xlane.f32.xlu2 %v1396_v25 }
 0x16c   : > { %v1158_v43 = vadd.f32 %v1157_v42, %v988_v41  ;;  %v911_v44 = vpop.f32.mrf.mxu0  ;;  %v1215_v41 = vrot.slane %v5012_v4, 5 }
 0x16d   : > { %v1080_v46 = vpop.f32.mrf.mxu1 }
 0x16e   : > { %v4377_v47 = vpop.eup %4376  ;;  %v1297_v48 = vadd.f32 %v5134_v52, %v1158_v43  ;;  %v1081_v49 = vadd.f32 %v1080_v46, %v911_v44  ;;  %v1231_v46 = vperm.slane %v1215_v41, 0 }
 0x16f   : > { %v1428_v40 = vmul.f32 %v4377_v47, %v5021_v12 }
 0x170   : > { %v4379_v36 = vpop.eup %4378  ;;  %4380 = vtanh.f32 %v1297_v48  ;;  %v1266_v53 = vadd.f32 %v1222_v45, %v1081_v49 }
 0x171   : > { %1538 = vadd.xlane.f32.xlu1 %v1428_v40  ;;  %v1397_v54 = vmul.f32 %v4379_v36, %v5021_v12 }
 0x172   : > { %4382 = vtanh.f32 %v1266_v53  ;;  %v991_v55 = vpop.f32.mrf.mxu2 }
 0x173   : > { %v1160_v57 = vpop.f32.mrf.mxu3  ;;  %1476 = vadd.xlane.f32.xlu0 %v1397_v54 }
 0x174   : > { %v1161_v58 = vadd.f32 %v1160_v57, %v991_v55  ;;  %v913_v59 = vpop.f32.mrf.mxu0 }
 0x175   : > { %v1082_v60 = vpop.f32.mrf.mxu1 }
 0x176   : > { %v4381_v52 = vpop.eup %4380  ;;  %v1298_v61 = vadd.f32 %v1230_v56, %v1161_v58  ;;  %v1083_v62 = vadd.f32 %v1082_v60, %v913_v59 }
 0x177   : > { %v1429_v0 = vmul.f32 %v4381_v52, %v5021_v12 }
 0x178   : > { %v4383_v1 = vpop.eup %4382  ;;  %4384 = vtanh.f32 %v1298_v61  ;;  %v1267_v2 = vadd.f32 %v1222_v45, %v1083_v62 }
 0x179   : > { %1540 = vadd.xlane.f32.xlu2 %v1429_v0  ;;  %v1398_v3 = vmul.f32 %v4383_v1, %v5021_v12 }
 0x17a   : > { %4386 = vtanh.f32 %v1267_v2  ;;  %v993_v5 = vpop.f32.mrf.mxu2 }
 0x17b   : > { %v1162_v6 = vpop.f32.mrf.mxu3  ;;  %1478 = vadd.xlane.f32.xlu1 %v1398_v3 }
 0x17c   : > { %v1163_v8 = vadd.f32 %v1162_v6, %v993_v5  ;;  %v916_v9 = vpop.f32.mrf.mxu0 }
 0x17d   : > { %v1085_v10 = vpop.f32.mrf.mxu1 }
 0x17e   : > { %v4385_v11 = vpop.eup %4384  ;;  %v1299_v13 = vadd.f32 %v1230_v56, %v1163_v8  ;;  %v1086_v14 = vadd.f32 %v1085_v10, %v916_v9 }
 0x17f   : > { %v1430_v15 = vmul.f32 %v4385_v11, %v5021_v12 }
 0x180   : > { %v4387_v17 = vpop.eup %4386  ;;  %4388 = vtanh.f32 %v1299_v13  ;;  %v1268_v63 = vadd.f32 %v1222_v45, %v1086_v14 }
 0x181   : > { %1542 = vadd.xlane.f32.xlu0 %v1430_v15  ;;  %v1399_v18 = vmul.f32 %v4387_v17, %v5021_v12 }
 0x182   : > { %4390 = vtanh.f32 %v1268_v63  ;;  %v996_v19 = vpop.f32.mrf.mxu2 }
 0x183   : > { %v1165_v20 = vpop.f32.mrf.mxu3  ;;  %1480 = vadd.xlane.f32.xlu2 %v1399_v18 }
 0x184   : > { %v1166_v21 = vadd.f32 %v1165_v20, %v996_v19  ;;  %v918_v22 = vpop.f32.mrf.mxu0  ;;  %v5177_v19 = vld [vmem:[%s4923_s11] sm:$0xff] }
 0x185   : > { %v1087_v23 = vpop.f32.mrf.mxu1  ;;  %v1209_v20 = vrot.slane %v5177_v19, 6 }
 0x186   : > { %v4389_v24 = vpop.eup %4388  ;;  %v1300_v16 = vadd.f32 %v1230_v56, %v1166_v21  ;;  %v1088_v26 = vadd.f32 %v1087_v23, %v918_v22 }
 0x187   : > { %v1431_v27 = vmul.f32 %v4389_v24, %v5021_v12 }
 0x188   : > { %v4391_v28 = vpop.eup %4390  ;;  %4392 = vtanh.f32 %v1300_v16  ;;  %v1269_v29 = vadd.f32 %v1222_v45, %v1088_v26  ;;  %v5181_v16 = vperm.slane %v1209_v20, 0 }
 0x189   : > { %1544 = vadd.xlane.f32.xlu1 %v1431_v27  ;;  %v1400_v31 = vmul.f32 %v4391_v28, %v5021_v12 }
 0x18a   : > { %4394 = vtanh.f32 %v1269_v29  ;;  %v998_v32 = vpop.f32.mrf.mxu2 }
 0x18b   : > { %v1167_v33 = vpop.f32.mrf.mxu3  ;;  %1482 = vadd.xlane.f32.xlu0 %v1400_v31  ;;  %v5184_v31 = vld [vmem:[%s4923_s11 + $0x8] sm:$0xff]  ;;  %s4687_s11 = scalar_lea.hbm %s4686_s9, 32 }
 0x18c   : > { %v1168_v34 = vadd.f32 %v1167_v33, %v998_v32  ;;  %v921_v35 = vpop.f32.mrf.mxu0  ;;  %v1216_v32 = vrot.slane %v5184_v31, 6  ;;  %p4688_p4 = scmp.ne.s32.totalorder %s4686_s9, %s4687_s11  ;;  %p4693_p7 = scmp.lt.s32.totalorder %s4691_s21, %s4687_s11 }
 0x18d   : > { %v1090_v37 = vpop.f32.mrf.mxu1 }
 0x18e   : > { %v4393_v38 = vpop.eup %4392  ;;  %v1301_v39 = vadd.f32 %v1230_v56, %v1168_v34  ;;  %v1091_v25 = vadd.f32 %v1090_v37, %v921_v35  ;;  %p4689_p8 = pnand %p4688_p4, %p4859_p5  ;;  %p4694_p10 = por %p4693_p7, %p4692_p9 }
 0x18f   : > { %v1432_v42 = vmul.f32 %v4393_v38, %v5021_v12  ;;  %v5190_v38 = vperm.slane %v1216_v32, 0 }
 0x190   : > { %v4395_v43 = vpop.eup %4394  ;;  %4396 = vtanh.f32 %v1301_v39  ;;  %v1270_v51 = vadd.f32 %v1223_v7, %v1091_v25  ;;  %p4690_p2 = pneg %p4689_p8 }
 0x191   : > { %1546 = vadd.xlane.f32.xlu2 %v1432_v42  ;;  %v1401_v44 = vmul.f32 %v4395_v43, %v5021_v12 }
 0x192   : > { %4398 = vtanh.f32 %v1270_v51  ;;  %v1001_v45 = vpop.f32.mrf.mxu2  ;;  %p4695_p11 = pnand %p4694_p10, %p4690_p2 }
 0x193   : > { %v1170_v47 = vpop.f32.mrf.mxu3  ;;  %1484 = vadd.xlane.f32.xlu1 %v1401_v44 }
 0x194   : > { %v1171_v48 = vadd.f32 %v1170_v47, %v1001_v45  ;;  %v923_v49 = vpop.f32.mrf.mxu0  ;;  %v5193_v45 = vpop.xlane.xlu0 %1446 }
 0x195   : > { %v1092_v50 = vpop.f32.mrf.mxu1 }
 0x196   : > { %v4397_v40 = vpop.eup %4396  ;;  %v1302_v36 = vadd.f32 %v1231_v46, %v1171_v48  ;;  %v1093_v53 = vadd.f32 %v1092_v50, %v923_v49  ;;  %v5203_v50 = vpop.permute.xlu1 %1578 }
 0x197   : > { %v1433_v4 = vmul.f32 %v4397_v40, %v5021_v12 }
 0x198   : > { %v4399_v54 = vpop.eup %4398  ;;  %4400 = vtanh.f32 %v1302_v36  ;;  %v1271_v55 = vadd.f32 %v1223_v7, %v1093_v53 }
 0x199   : > { %1548 = vadd.xlane.f32.xlu0 %v1433_v4  ;;  %v1402_v56 = vmul.f32 %v4399_v54, %v5021_v12 }
 0x19a   : > { %4402 = vtanh.f32 %v1271_v55  ;;  %v1003_v57 = vpop.f32.mrf.mxu2 }
 0x19b   : > { %v1172_v58 = vpop.f32.mrf.mxu3  ;;  %1486 = vadd.xlane.f32.xlu2 %v1402_v56  ;;  %v5205_v56 = vpop.xlane.xlu2 %1510 }
 0x19c   : > { %v1173_v59 = vadd.f32 %v1172_v58, %v1003_v57  ;;  %v926_v60 = vpop.f32.mrf.mxu0 }
 0x19d   : > { %v1095_v52 = vpop.f32.mrf.mxu1 }
 0x19e   : > { %v4401_v61 = vpop.eup %4400  ;;  %v1303_v62 = vadd.f32 %v1231_v46, %v1173_v59  ;;  %v1096_v0 = vadd.f32 %v1095_v52, %v926_v60 }
 0x19f   : > { %v1434_v1 = vmul.f32 %v4401_v61, %v5021_v12  ;;  %v5210_v61 = vpop.xlane.xlu0 %1448 }
 0x1a0   : > { %v4403_v2 = vpop.eup %4402  ;;  %4404 = vtanh.f32 %v1303_v62  ;;  %v1272_v3 = vadd.f32 %v1223_v7, %v1096_v0  ;;  %v5213_v0 = vpop.xlane.xlu1 %1450 }
 0x1a1   : > { %1550 = vadd.xlane.f32.xlu1 %v1434_v1  ;;  %v1403_v5 = vmul.f32 %v4403_v2, %v5021_v12 }
 0x1a2   : > { %4406 = vtanh.f32 %v1272_v3  ;;  %v1006_v6 = vpop.f32.mrf.mxu2 }
 0x1a3   : > { %v1175_v8 = vpop.f32.mrf.mxu3  ;;  %1488 = vadd.xlane.f32.xlu0 %v1403_v5 }
 0x1a4   : > { %v1176_v9 = vadd.f32 %v1175_v8, %v1006_v6  ;;  %v928_v10 = vpop.f32.mrf.mxu0 }
 0x1a5   : > { %v1097_v11 = vpop.f32.mrf.mxu1 }
 0x1a6   : > { %v4405_v13 = vpop.eup %4404  ;;  %v1304_v14 = vadd.f32 %v1231_v46, %v1176_v9  ;;  %v1098_v15 = vadd.f32 %v1097_v11, %v928_v10  ;;  %v5215_v9 = vpop.xlane.xlu2 %1516 }
 0x1a7   : > { %v1435_v17 = vmul.f32 %v4405_v13, %v5021_v12 }
 0x1a8   : > { %v4407_v63 = vpop.eup %4406  ;;  %4408 = vtanh.f32 %v1304_v14  ;;  %v1273_v18 = vadd.f32 %v1223_v7, %v1098_v15 }
 0x1a9   : > { %1552 = vadd.xlane.f32.xlu2 %v1435_v17  ;;  %v1404_v21 = vmul.f32 %v4407_v63, %v5021_v12  ;;  %v1210_v17 = vrot.slane %v5177_v19, 7 }
 0x1aa   : > { %4410 = vtanh.f32 %v1273_v18  ;;  %v1008_v22 = vpop.f32.mrf.mxu2 }
 0x1ab   : > { %v1177_v23 = vpop.f32.mrf.mxu3  ;;  %1490 = vadd.xlane.f32.xlu1 %v1404_v21  ;;  %v5222_v21 = vpop.xlane.xlu0 %1512 }
 0x1ac   : > { %v1178_v24 = vadd.f32 %v1177_v23, %v1008_v22  ;;  %v931_v26 = vpop.f32.mrf.mxu0  ;;  %v5224_v22 = vpop.xlane.xlu1 %1514 }
 0x1ad   : > { %v1100_v27 = vpop.f32.mrf.mxu1 }
 0x1ae   : > { %v4409_v28 = vpop.eup %4408  ;;  %v1305_v29 = vadd.f32 %v1231_v46, %v1178_v24  ;;  %v1101_v30 = vadd.f32 %v1100_v27, %v931_v26  ;;  %v5198_v46 = vld [vmem:[%s7310_s3] ss:$0 sm:$0xff]  ;;  %v5226_v24 = vperm.slane %v1210_v17, 0 }
 0x1af   : > { %v1436_v33 = vmul.f32 %v4409_v28, %v5021_v12 }
 0x1b0   : > { %v4411_v34 = vpop.eup %4410  ;;  %4412 = vtanh.f32 %v1305_v29  ;;  %v1274_v35 = vadd.f32 %v5181_v16, %v1101_v30  ;;  %v1217_v29 = vrot.slane %v5184_v31, 7 }
 0x1b1   : > { %1554 = vadd.xlane.f32.xlu0 %v1436_v33  ;;  %v1405_v7 = vmul.f32 %v4411_v34, %v5021_v12  ;;  %v5231_v33 = vpop.xlane.xlu2 %1454 }
 0x1b2   : > { %4414 = vtanh.f32 %v1274_v35  ;;  %v1011_v37 = vpop.f32.mrf.mxu2 }
 0x1b3   : > { %v1180_v39 = vpop.f32.mrf.mxu3  ;;  %1492 = vadd.xlane.f32.xlu2 %v1405_v7 }
 0x1b4   : > { %v1181_v25 = vadd.f32 %v1180_v39, %v1011_v37  ;;  %v933_v41 = vpop.f32.mrf.mxu0  ;;  %v5235_v37 = vperm.slane %v1217_v29, 0 }
 0x1b5   : > { %v1102_v42 = vpop.f32.mrf.mxu1 }
 0x1b6   : > { %v4413_v43 = vpop.eup %4412  ;;  %v1306_v51 = vadd.f32 %v5190_v38, %v1181_v25  ;;  %v1103_v44 = vadd.f32 %v1102_v42, %v933_v41 }
 0x1b7   : > { %v1437_v12 = vmul.f32 %v5198_v46, %v4413_v43  ;;  %v5239_v43 = vpop.xlane.xlu1 %1452 }
 0x1b8   : > { %v4415_v47 = vpop.eup %4414  ;;  %4416 = vtanh.f32 %v1306_v51  ;;  %v1275_v48 = vadd.f32 %v5181_v16, %v1103_v44 }
 0x1b9   : > { %1556 = vadd.xlane.f32.xlu1 %v1437_v12  ;;  %v1406_v49 = vmul.f32 %v5198_v46, %v4415_v47 }
 0x1ba   : > { %4418 = vtanh.f32 %v1275_v48  ;;  %v1013_v40 = vpop.f32.mrf.mxu2 }
 0x1bb   : > { %v1182_v36 = vpop.f32.mrf.mxu3  ;;  %1494 = vadd.xlane.f32.xlu0 %v1406_v49 }
 0x1bc   : > { %v1183_v53 = vadd.f32 %v1182_v36, %v1013_v40  ;;  %v936_v4 = vpop.f32.mrf.mxu0  ;;  %v5245_v40 = vpop.xlane.xlu2 %1456 }
 0x1bd   : > { %v1105_v54 = vpop.f32.mrf.mxu1 }
 0x1be   : > { %v4417_v55 = vpop.eup %4416  ;;  %v1307_v57 = vadd.f32 %v5190_v38, %v1183_v53  ;;  %v1106_v58 = vadd.f32 %v1105_v54, %v936_v4 }
 0x1bf   : > { %v1438_v59 = vmul.f32 %v5198_v46, %v4417_v55 }
 0x1c0   : > { %v4419_v60 = vpop.eup %4418  ;;  %4420 = vtanh.f32 %v1307_v57  ;;  %v1276_v52 = vadd.f32 %v5181_v16, %v1106_v58  ;;  %v5247_v58 = vpop.xlane.xlu1 %1520 }
 0x1c1   : > { %1558 = vadd.xlane.f32.xlu2 %v1438_v59  ;;  %v1407_v62 = vmul.f32 %v5198_v46, %v4419_v60 }
 0x1c2   : > { %4422 = vtanh.f32 %v1276_v52  ;;  %v1016_v1 = vpop.f32.mrf.mxu2 }
 0x1c3   : > { %v1185_v2 = vpop.f32.mrf.mxu3  ;;  %1496 = vadd.xlane.f32.xlu1 %v1407_v62 }
 0x1c4   : > { %v1186_v3 = vadd.f32 %v1185_v2, %v1016_v1  ;;  %v938_v5 = vpop.f32.mrf.mxu0 }
 0x1c5   : > { %v1107_v6 = vpop.f32.mrf.mxu1 }
 0x1c6   : > { %v4421_v8 = vpop.eup %4420  ;;  %v1308_v10 = vadd.f32 %v5190_v38, %v1186_v3  ;;  %v1108_v11 = vadd.f32 %v1107_v6, %v938_v5 }
 0x1c7   : > { %v1439_v13 = vmul.f32 %v5198_v46, %v4421_v8  ;;  %v5255_v8 = vpop.xlane.xlu2 %1522 }
 0x1c8   : > { %v4423_v14 = vpop.eup %4422  ;;  %4424 = vtanh.f32 %v1308_v10  ;;  %v1277_v15 = vadd.f32 %v5181_v16, %v1108_v11 }
 0x1c9   : > { %1560 = vadd.xlane.f32.xlu0 %v1439_v13  ;;  %v1408_v63 = vmul.f32 %v5198_v46, %v4423_v14 }
 0x1ca   : > { %4426 = vtanh.f32 %v1277_v15  ;;  %v1018_v18 = vpop.f32.mrf.mxu2  ;;  %v5257_v15 = vpop.xlane.xlu1 %1460 }
 0x1cb   : > { %v1187_v20 = vpop.f32.mrf.mxu3  ;;  %1498 = vadd.xlane.f32.xlu2 %v1408_v63 }
 0x1cc   : > { %v1188_v23 = vadd.f32 %v1187_v20, %v1018_v18  ;;  %v941_v26 = vpop.f32.mrf.mxu0 }
 0x1cd   : > { %v1110_v27 = vpop.f32.mrf.mxu1 }
 0x1ce   : > { %v4425_v28 = vpop.eup %4424  ;;  %v1309_v16 = vadd.f32 %v5190_v38, %v1188_v23  ;;  %v1111_v19 = vadd.f32 %v1110_v27, %v941_v26  ;;  %v5237_v38 = vpop.xlane.xlu0 %1518 }
 0x1cf   : > { %v1440_v30 = vmul.f32 %v5198_v46, %v4425_v28  ;;  %v5265_v29 = vpop.xlane.xlu2 %1462 }
 0x1d0   : > { %v4427_v32 = vpop.eup %4426  ;;  %4428 = vtanh.f32 %v1309_v16  ;;  %v1278_v34 = vadd.f32 %v5226_v24, %v1111_v19 }
 0x1d1   : > { %1562 = vadd.xlane.f32.xlu1 %v1440_v30  ;;  %v1409_v35 = vmul.f32 %v5198_v46, %v4427_v32 }
 0x1d2   : > { %4430 = vtanh.f32 %v1278_v34  ;;  %v1021_v7 = vpop.f32.mrf.mxu2  ;;  %v5267_v32 = vpop.xlane.xlu1 %1526 }
 0x1d3   : > { %v1190_v39 = vpop.f32.mrf.mxu3  ;;  %1500 = vadd.xlane.f32.xlu0 %v1409_v35 }
 0x1d4   : > { %v1191_v31 = vadd.f32 %v1190_v39, %v1021_v7  ;;  %v943_v25 = vpop.f32.mrf.mxu0 }
 0x1d5   : > { %v1112_v41 = vpop.f32.mrf.mxu1 }
 0x1d6   : > { %v4429_v42 = vpop.eup %4428  ;;  %v1310_v51 = vadd.f32 %v5235_v37, %v1191_v31  ;;  %v1113_v44 = vadd.f32 %v1112_v41, %v943_v25  ;;  %v5250_v52 = vpop.xlane.xlu0 %1458 }
 0x1d7   : > { %v1441_v12 = vmul.f32 %v5198_v46, %v4429_v42  ;;  %v5274_v31 = vpop.xlane.xlu2 %1528 }
 0x1d8   : > { %v4431_v47 = vpop.eup %4430  ;;  %4432 = vtanh.f32 %v1310_v51  ;;  %v1279_v48 = vadd.f32 %v5226_v24, %v1113_v44 }
 0x1d9   : > { %1564 = vadd.xlane.f32.xlu2 %v1441_v12  ;;  %v1410_v49 = vmul.f32 %v5198_v46, %v4431_v47 }
 0x1da   : > { %4434 = vtanh.f32 %v1279_v48  ;;  %v1023_v36 = vpop.f32.mrf.mxu2  ;;  %v5276_v41 = vpop.xlane.xlu1 %1466 }
 0x1db   : > { %v1192_v53 = vpop.f32.mrf.mxu3  ;;  %1502 = vadd.xlane.f32.xlu1 %v1410_v49 }
 0x1dc   : > { %v1193_v4 = vadd.f32 %v1192_v53, %v1023_v36  ;;  %v946_v54 = vpop.f32.mrf.mxu0 }
 0x1dd   : > { %v1115_v55 = vpop.f32.mrf.mxu1 }
 0x1de   : > { %v4433_v57 = vpop.eup %4432  ;;  %v1311_v59 = vadd.f32 %v5235_v37, %v1193_v4  ;;  %v1116_v60 = vadd.f32 %v1115_v55, %v946_v54  ;;  %v5260_v18 = vpop.xlane.xlu0 %1524 }
 0x1df   : > { %v1442_v62 = vmul.f32 %v5198_v46, %v4433_v57 }
 0x1e0   : > { %v4435_v1 = vpop.eup %4434  ;;  %4436 = vtanh.f32 %v1311_v59  ;;  %v1280_v2 = vadd.f32 %v5226_v24, %v1116_v60 }
 0x1e1   : > { %1566 = vadd.xlane.f32.xlu0 %v1442_v62  ;;  %v1411_v3 = vmul.f32 %v5198_v46, %v4435_v1 }
 0x1e2   : > { %4438 = vtanh.f32 %v1280_v2  ;;  %v1026_v5 = vpop.f32.mrf.mxu2  ;;  %v5283_v44 = vpop.xlane.xlu1 %1532 }
 0x1e3   : > { %v1195_v6 = vpop.f32.mrf.mxu3  ;;  %1504 = vadd.xlane.f32.xlu2 %v1411_v3 }
 0x1e4   : > { %v1196_v10 = vadd.f32 %v1195_v6, %v1026_v5  ;;  %v948_v11 = vpop.f32.mrf.mxu0 }
 0x1e5   : > { %v1117_v13 = vpop.f32.mrf.mxu1 }
 0x1e6   : > { %v4437_v14 = vpop.eup %4436  ;;  %v1312_v17 = vadd.f32 %v5235_v37, %v1196_v10  ;;  %v1118_v63 = vadd.f32 %v1117_v13, %v948_v11  ;;  %v5270_v35 = vpop.xlane.xlu0 %1464  ;;  %v1709_v10 = vlaneseq }
 0x1e7   : > { %v1443_v20 = vmul.f32 %v5198_v46, %v4437_v14 }
 0x1e8   : > { %v4439_v23 = vpop.eup %4438  ;;  %4440 = vtanh.f32 %v1312_v17  ;;  %v1281_v26 = vadd.f32 %v5226_v24, %v1118_v63  ;;  %v5329_v17 = vand.u32 127, %v1709_v10  ;;  %v5400_v10 = vadd.f32 %v5203_v50, %v5237_v38 }
 0x1e9   : > { %1568 = vadd.xlane.f32.xlu1 %v1443_v20  ;;  %v1412_v27 = vmul.f32 %v5198_v46, %v4439_v23  ;;  %v5336_v20 = vadd.f32 %v5203_v50, %v5210_v61  ;;  %v5340_v23 = vadd.f32 %v5203_v50, %v5193_v45  ;;  %v5361_v45 = vadd.f32 %v5203_v50, %v5224_v22 }
 0x1ea   : > { %4442 = vtanh.f32 %v1281_v26  ;;  %v1028_v28 = vpop.f32.mrf.mxu2  ;;  %v5289_v48 = vpop.xlane.xlu1 %1472  ;;  %v5332_v63 = vadd.s32 4294967288, %v5329_v17  ;;  %v5343_v26 = vadd.s32 4294967280, %v5329_v17  ;;  %7409 = vst [vmem:[#allocation22_spill] sm:$0xff] %v5400_v10 }
 0x1eb   : > { %v1197_v16 = vpop.f32.mrf.mxu3  ;;  %1506 = vadd.xlane.f32.xlu0 %v1412_v27  ;;  %v5347_v27 = vadd.f32 %v5203_v50, %v5213_v0  ;;  %7406 = vst [vmem:[#allocation19_spill] sm:$0xff] %v5361_v45 }
 0x1ec   : > { %v1198_v19 = vadd.f32 %v1197_v16, %v1028_v28  ;;  %v5351_v28 = vadd.f32 %v5203_v50, %v5205_v56  ;;  %v5355_v16 = vadd.f32 %v5203_v50, %v5222_v21  ;;  %v1713_v0 = vperm.slane %v5336_v20, %v5332_v63 }
 0x1ed   : > { %v5369_v56 = vadd.f32 %v5203_v50, %v5245_v40  ;;  %v1711_v21 = vperm.slane %v5340_v23, %v5329_v17  ;;  %v1717_v22 = vperm.slane %v5347_v27, %v5343_v26  ;;  %v5386_v40 = vadd.f32 %v5203_v50, %v5215_v9 }
 0x1ee   : > { %v4441_v30 = vpop.eup %4440  ;;  %v1313_v34 = vadd.f32 %v5235_v37, %v1198_v19  ;;  %v5278_v42 = vpop.xlane.xlu0 %1530  ;;  %7404 = vst [vmem:[#allocation17_spill] sm:$0xff] %v5351_v28 }
 0x1ef   : > { %v1444_v7 = vmul.f32 %v5198_v46, %v4441_v30  ;;  %v5281_v37 = vpop.xlane.xlu2 %1468  ;;  %7405 = vst [vmem:[#allocation18_spill] sm:$0xff] %v5355_v16  ;;  %v1715_v9 = vsel %vm1714_vm0, %v1713_v0, %v1711_v21  ;;  %v5424_v0 = vadd.f32 %v5203_v50, %v5260_v18  ;;  %v1780_v18 = vperm.slane %v5400_v10, %v5329_v17 }
 0x1f0   : > { %v4443_v24 = vpop.eup %4442  ;;  %4444 = vtanh.f32 %v1313_v34  ;;  %7407 = vst [vmem:[#allocation20_spill] sm:$0xff] %v5369_v56  ;;  %v5378_v34 = vadd.s32 4294967272, %v5329_v17  ;;  %v1719_v38 = vsel %vm1718_vm1, %v1717_v22, %v1715_v9 }
 0x1f1   : > { %1570 = vadd.xlane.f32.xlu2 %v1444_v7  ;;  %v1413_v39 = vmul.f32 %v5198_v46, %v4443_v24  ;;  %v1773_v7 = vperm.slane %v5351_v28, %v5329_v17  ;;  %v1774_v24 = vperm.slane %v5355_v16, %v5332_v63  ;;  %7408 = vst [vmem:[#allocation21_spill] sm:$0xff] %v5386_v40 }
 0x1f2   : > { %v5295_v53 = vpop.xlane.xlu1 %1538  ;;  %v5404_v28 = vadd.f32 %v5203_v50, %v5247_v58  ;;  %v5420_v58 = vadd.f32 %v5203_v50, %v5257_v15  ;;  %7414 = vst [vmem:[#allocation27_spill] sm:$0xff] %v5424_v0 }
 0x1f3   : > { %1508 = vadd.xlane.f32.xlu1 %v1413_v39  ;;  %v5390_v39 = vadd.f32 %v5203_v50, %v5231_v33  ;;  %v1725_v33 = vperm.slane %v5369_v56, %v5332_v63  ;;  %v1775_v21 = vsel %vm1714_vm0, %v1774_v24, %v1773_v7 }
 0x1f4   : > { %7410 = vst [vmem:[#allocation23_spill] sm:$0xff] %v5404_v28  ;;  %v1781_v7 = vperm.slane %v5404_v28, %v5332_v63  ;;  %v1729_v10 = vperm.slane %v5420_v58, %v5378_v34  ;;  %v1785_v28 = vperm.slane %v5424_v0, %v5378_v34  ;;  %v5476_v0 = vadd.f32 %v5203_v50, %v5281_v37 }
 0x1f5   : > { %7413 = vst [vmem:[#allocation26_spill] sm:$0xff] %v5420_v58  ;;  %v5472_v58 = vadd.f32 %v5203_v50, %v5278_v42 }
 0x1f6   : > { %v4445_v25 = vpop.eup %4444  ;;  %v5285_v12 = vpop.xlane.xlu0 %1470 }
 0x1f7   : > { %v1445_v51 = vmul.f32 %v5198_v46, %v4445_v25  ;;  %v5287_v47 = vpop.xlane.xlu2 %1534  ;;  %v1776_v25 = vperm.slane %v5361_v45, %v5343_v26  ;;  %v5411_v45 = vadd.f32 %v5203_v50, %v5250_v52  ;;  %v1778_v52 = vperm.slane %v5386_v40, %v5378_v34  ;;  %7417 = vst [vmem:[#allocation30_spill] sm:$0xff] %v5472_v58 }
 0x1f9   : > { %1572 = vadd.xlane.f32.xlu0 %v1445_v51  ;;  %v5396_v51 = vadd.f32 %v5203_v50, %v5239_v43  ;;  %7411 = vst [vmem:[#allocation24_spill] sm:$0xff] %v5411_v45  ;;  %v5415_v43 = vadd.f32 %v5203_v50, %v5255_v8  ;;  %v1724_v8 = vperm.slane %v5390_v39, %v5329_v17 }
 0x1fa   : > { %v5301_v54 = vpop.xlane.xlu1 %1478  ;;  %v1777_v22 = vsel %vm1718_vm1, %v1776_v25, %v1775_v21  ;;  %v1727_v40 = vperm.slane %v5411_v45, %v5343_v26  ;;  %v5449_v25 = vadd.f32 %v5203_v50, %v5270_v35  ;;  %v5468_v35 = vadd.f32 %v5203_v50, %v5265_v29 }
 0x1fb   : > { %7412 = vst [vmem:[#allocation25_spill] sm:$0xff] %v5415_v43  ;;  %v1721_v15 = vperm.slane %v5396_v51, %v5378_v34  ;;  %v1726_v9 = vsel %vm1714_vm0, %v1725_v33, %v1724_v8  ;;  %v1783_v56 = vperm.slane %v5415_v43, %v5343_v26  ;;  %v5459_v33 = vadd.f32 %v5203_v50, %v5274_v31 }
 0x1fc   : > { %v5463_v8 = vadd.f32 %v5203_v50, %v5276_v41  ;;  %v1779_v43 = vsel %vm1722_vm2, %v1778_v52, %v1777_v22  ;;  %v1782_v45 = vsel %vm1714_vm0, %v1781_v7, %v1780_v18  ;;  %v5482_v41 = vadd.f32 %v5203_v50, %v5267_v32 }
 0x1fd   : > { %7415 = vst [vmem:[#allocation28_spill] sm:$0xff] %v5459_v33  ;;  %v1723_v31 = vsel %vm1722_vm2, %v1721_v15, %v1719_v38  ;;  %v5486_v29 = vadd.f32 %v5203_v50, %v5283_v44  ;;  %v1728_v52 = vsel %vm1718_vm1, %v1727_v40, %v1726_v9  ;;  %v1784_v42 = vsel %vm1718_vm1, %v1783_v56, %v1782_v45 }
 0x1fe   : > { %v5291_v49 = vpop.xlane.xlu0 %1536  ;;  %7416 = vst [vmem:[#allocation29_spill] sm:$0xff] %v5463_v8  ;;  %v1732_v37 = vperm.slane %v5449_v25, %v5332_v63  ;;  %v1730_v38 = vsel %vm1722_vm2, %v1729_v10, %v1728_v52  ;;  %v1786_v22 = vsel %vm1722_vm2, %v1785_v28, %v1784_v42  ;;  %v1788_v32 = vperm.slane %v5459_v33, %v5332_v63 }
 0x1ff   : > { %v5293_v36 = vpop.xlane.xlu2 %1474  ;;  %7418 = vst [vmem:[#allocation31_spill] sm:$0xff] %v5482_v41  ;;  %v1734_v15 = vperm.slane %v5463_v8, %v5343_v26  ;;  %v1731_v44 = vperm.slane %v5468_v35, %v5329_v17  ;;  %v1790_v45 = vperm.slane %v5472_v58, %v5343_v26  ;;  %v1736_v56 = vperm.slane %v5476_v0, %v5378_v34 }
 0x200   : > { %7419 = vst [vmem:[#allocation32_spill] sm:$0xff] %v5486_v29  ;;  %v5506_v40 = vadd.f32 %v5203_v50, %v5289_v48  ;;  %v1787_v10 = vperm.slane %v5482_v41, %v5329_v17  ;;  %v1792_v18 = vperm.slane %v5486_v29, %v5378_v34  ;;  %v5516_v7 = vadd.f32 %v5203_v50, %v5291_v49 }
 0x201   : > { %v5520_v9 = vadd.f32 %v5203_v50, %v5293_v36  ;;  %v1733_v48 = vsel %vm1714_vm0, %v1732_v37, %v1731_v44  ;;  %v5527_v42 = vadd.f32 %v5203_v50, %v5285_v12  ;;  %v5531_v41 = vadd.f32 %v5203_v50, %v5295_v53 }
 0x202   : > { %v5307_v59 = vpop.xlane.xlu1 %1544  ;;  %v1830_v36 = vsel %vm1829_vm3, %v1730_v38, %v1723_v31  ;;  %v1789_v33 = vsel %vm1714_vm0, %v1788_v32, %v1787_v10  ;;  %v1735_v37 = vsel %vm1718_vm1, %v1734_v15, %v1733_v48  ;;  %v5544_v12 = vadd.f32 %v5203_v50, %v5287_v47 }
 0x203   : > { %7420 = vst [vmem:[#allocation33_spill] sm:$0xff] %v5531_v41  ;;  %v1843_v44 = vsel %vm1829_vm3, %v1786_v22, %v1779_v43  ;;  %v1791_v53 = vsel %vm1718_vm1, %v1790_v45, %v1789_v33  ;;  %v1737_v58 = vsel %vm1722_vm2, %v1736_v56, %v1735_v37  ;;  %v1795_v31 = vperm.slane %v5516_v7, %v5332_v63 }
 0x204   : > { %v1793_v8 = vsel %vm1722_vm2, %v1792_v18, %v1791_v53  ;;  %v1741_v38 = vperm.slane %v5520_v9, %v5343_v26  ;;  %v1738_v47 = vperm.slane %v5527_v42, %v5329_v17  ;;  %v1797_v43 = vperm.slane %v5531_v41, %v5343_v26 }
 0x205   : > { %v1794_v32 = vperm.slane %v5544_v12, %v5329_v17  ;;  %v5574_v45 = vadd.f32 %v5203_v50, %v5307_v59  ;;  %v1832_v48 = vsel %vm1831_vm4, %v1737_v58, %v1830_v36 }
 0x206   : > { %v5297_v4 = vpop.xlane.xlu0 %1476 }
 0x207   : > { %v5299_v46 = vpop.xlane.xlu2 %1540  ;;  %v5535_v49 = vadd.f32 %v5203_v50, %v5297_v4  ;;  %v1739_v4 = vperm.slane %v5506_v40, %v5332_v63  ;;  %7422 = vst [vmem:[#allocation35_spill] sm:$0xff] %v5574_v45 }
 0x208   : > { %v5570_v15 = vadd.f32 %v5203_v50, %v5299_v46 }
 0x209   : > { %v1743_v33 = vperm.slane %v5535_v49, %v5378_v34  ;;  %v1740_v10 = vsel %vm1714_vm0, %v1739_v4, %v1738_v47 }
 0x20a   : > { %v5313_v1 = vpop.xlane.xlu1 %1484  ;;  %7421 = vst [vmem:[#allocation34_spill] sm:$0xff] %v5570_v15  ;;  %v1742_v37 = vsel %vm1718_vm1, %v1741_v38, %v1740_v10  ;;  %v1799_v36 = vperm.slane %v5570_v15, %v5378_v34 }
 0x20b   : > { %v5591_v46 = vadd.f32 %v5203_v50, %v5313_v1  ;;  %v1744_v1 = vsel %vm1722_vm2, %v1743_v33, %v1742_v37 }
 0x20e   : > { %v5303_v55 = vpop.xlane.xlu0 %1542 }
 0x20f   : > { %v5305_v57 = vpop.xlane.xlu2 %1480 }
 0x210   : > { %v5564_v22 = vadd.f32 %v5203_v50, %v5305_v57  ;;  %v5583_v57 = vadd.f32 %v5203_v50, %v5301_v54  ;;  %v5600_v54 = vadd.f32 %v5203_v50, %v5303_v55  ;;  %v1802_v55 = vperm.slane %v5574_v45, %v5332_v63 }
 0x211   : > { %v1834_v45 = vsel %vm1833_vm5, %v1744_v1, %v1832_v48 }
 0x212   : > { %v1746_v47 = vperm.slane %v5564_v22, %v5332_v63 }
 0x214   : > { %v5319_v5 = vpop.xlane.xlu1 %1550 }
 0x216   : > { %v5309_v60 = vpop.xlane.xlu0 %1482 }
 0x217   : > { %v5311_v62 = vpop.xlane.xlu2 %1546  ;;  %v5578_v56 = vadd.f32 %v5203_v50, %v5309_v60  ;;  %v1796_v60 = vsel %vm1714_vm0, %v1795_v31, %v1794_v32  ;;  %v1801_v32 = vperm.slane %v5600_v54, %v5329_v17 }
 0x218   : > { %v5587_v18 = vadd.f32 %v5203_v50, %v5311_v62  ;;  %v5603_v62 = vsel %vm1831_vm4, %v1793_v8, %v1843_v44  ;;  %v1798_v4 = vsel %vm1718_vm1, %v1797_v43, %v1796_v60  ;;  %v1745_v44 = vperm.slane %v5583_v57, %v5329_v17 }
 0x219   : > { %v1748_v31 = vperm.slane %v5578_v56, %v5343_v26  ;;  %v1750_v43 = vperm.slane %v5591_v46, %v5378_v34 }
 0x21a   : > { %7423 = vst [vmem:[#allocation36_spill] sm:$0xff] %v5587_v18  ;;  %v1804_v38 = vperm.slane %v5587_v18, %v5343_v26  ;;  %v1747_v37 = vsel %vm1714_vm0, %v1746_v47, %v1745_v44  ;;  %v1803_v18 = vsel %vm1714_vm0, %v1802_v55, %v1801_v32 }
 0x21c   : > { %v1805_v41 = vsel %vm1718_vm1, %v1804_v38, %v1803_v18 }
 0x21e   : > { %v5315_v2 = vpop.xlane.xlu0 %1548  ;;  %v5325_v13 = vpop.xlane.xlu1 %1490 }
 0x21f   : > { %v5317_v3 = vpop.xlane.xlu2 %1486  ;;  %v5629_v33 = vadd.f32 %v5203_v50, %v5325_v13 }
 0x220   : > { %v5639_v10 = vadd.f32 %v5203_v50, %v5317_v3  ;;  %v1749_v3 = vsel %vm1718_vm1, %v1748_v31, %v1747_v37 }
 0x221   : > { %v1751_v47 = vsel %vm1722_vm2, %v1750_v43, %v1749_v3  ;;  %v1755_v48 = vperm.slane %v5629_v33, %v5343_v26 }
 0x222   : > { %v1836_v3 = vsel %vm1835_vm6, %v1751_v47, %v1834_v45 }
 0x226   : > { %v5321_v6 = vpop.xlane.xlu0 %1488 }
 0x227   : > { %v5323_v11 = vpop.xlane.xlu2 %1552  ;;  %v5619_v8 = vadd.f32 %v5203_v50, %v5321_v6  ;;  %v5635_v6 = vadd.f32 %v5203_v50, %v5315_v2  ;;  %v5652_v2 = vsel %vm1722_vm2, %v1799_v36, %v1798_v4  ;;  %v1752_v36 = vperm.slane %v5639_v10, %v5329_v17 }
 0x228   : > { %v5648_v13 = vadd.f32 %v5203_v50, %v5323_v11  ;;  %v5662_v11 = vadd.f32 %v5203_v50, %v5319_v5 }
 0x229   : > { %v1806_v1 = vperm.slane %v5635_v6, %v5378_v34 }
 0x22a   : > { %7424 = vst [vmem:[#allocation37_spill] sm:$0xff] %v5648_v13  ;;  %v1809_v5 = vperm.slane %v5648_v13, %v5332_v63 }
 0x22b   : > { %7425 = vst [vmem:[#allocation38_spill] sm:$0xff] %v5662_v11 }
 0x22c   : > { %v5363_v19 = vpop.xlane.xlu1 %1556 }
 0x22d   : > { %v5701_v13 = vadd.f32 %v5203_v50, %v5363_v19 }
 0x22e   : > { %v5327_v14 = vpop.xlane.xlu0 %1554 }
 0x22f   : > { %v5357_v61 = vpop.xlane.xlu2 %1492  ;;  %v5680_v44 = vadd.f32 %v5203_v50, %v5327_v14  ;;  %v1808_v14 = vperm.slane %v5662_v11, %v5329_v17  ;;  %7427 = vst [vmem:[#allocation40_spill] sm:$0xff] %v5701_v13 }
 0x230   : > { %v5643_v60 = vadd.f32 %v5203_v50, %v5357_v61  ;;  %v1753_v61 = vperm.slane %v5619_v8, %v5332_v63 }
 0x231   : > { %7426 = vst [vmem:[#allocation39_spill] sm:$0xff] %v5680_v44  ;;  %v1810_v47 = vsel %vm1714_vm0, %v1809_v5, %v1808_v14 }
 0x232   : > { %v1757_v55 = vperm.slane %v5643_v60, %v5378_v34  ;;  %v1754_v32 = vsel %vm1714_vm0, %v1753_v61, %v1752_v36 }
 0x236   : > { %v5371_v30 = vpop.xlane.xlu0 %1494  ;;  %v5440_v24 = vpop.xlane.xlu1 %1496 }
 0x237   : > { %v5431_v16 = vpop.xlane.xlu2 %1558  ;;  %v5674_v18 = vadd.f32 %v5203_v50, %v5440_v24  ;;  %v5689_v24 = vadd.f32 %v5203_v50, %v5371_v30  ;;  %v1807_v30 = vsel %vm1722_vm2, %v1806_v1, %v1805_v41 }
 0x239   : > { %v1759_v41 = vperm.slane %v5689_v24, %v5329_v17 }
 0x23e   : > { %v5451_v21 = vpop.xlane.xlu0 %1560 }
 0x23f   : > { %v5508_v28 = vpop.xlane.xlu2 %1498  ;;  %v5725_v1 = vadd.f32 %v5203_v50, %v5451_v21  ;;  %v5740_v21 = vadd.f32 %v5203_v50, %v5431_v16 }
 0x240   : > { %v5684_v38 = vadd.f32 %v5203_v50, %v5508_v28  ;;  %v1756_v28 = vsel %vm1718_vm1, %v1755_v48, %v1754_v32  ;;  %v1811_v48 = vperm.slane %v5680_v44, %v5343_v26 }
 0x241   : > { %v1758_v36 = vsel %vm1722_vm2, %v1757_v55, %v1756_v28  ;;  %7428 = vst [vmem:[#allocation41_spill] sm:$0xff] %v5725_v1 }
 0x242   : > { %v1762_v19 = vperm.slane %v5684_v38, %v5343_v26  ;;  %v1838_v14 = vsel %vm1837_vm7, %v1758_v36, %v1836_v3  ;;  %7430 = vst [vmem:[#allocation43_spill] sm:$0xff] %v5740_v21 }
 0x244   : > { %v5522_v52 = vpop.xlane.xlu1 %1562 }
 0x245   : > { %v5729_v55 = vadd.f32 %v5203_v50, %v5522_v52 }
 0x246   : > { %v5537_v29 = vpop.xlane.xlu0 %1500 }
 0x247   : > { %v5693_v37 = vadd.f32 %v5203_v50, %v5537_v29  ;;  %v1760_v29 = vperm.slane %v5674_v18, %v5332_v63  ;;  %7429 = vst [vmem:[#allocation42_spill] sm:$0xff] %v5729_v55 }
 0x249   : > { %v1764_v5 = vperm.slane %v5693_v37, %v5378_v34  ;;  %v1761_v52 = vsel %vm1714_vm0, %v1760_v29, %v1759_v41  ;;  %v1816_v29 = vperm.slane %v5725_v1, %v5332_v63  ;;  %v1815_v1 = vperm.slane %v5740_v21, %v5329_v17 }
 0x24a   : > { %v1763_v44 = vsel %vm1718_vm1, %v1762_v19, %v1761_v52 }
 0x24b   : > { %v1765_v19 = vsel %vm1722_vm2, %v1764_v5, %v1763_v44  ;;  %v1812_v44 = vsel %vm1718_vm1, %v1811_v48, %v1810_v47  ;;  %v1817_v15 = vsel %vm1714_vm0, %v1816_v29, %v1815_v1  ;;  %v1845_v1 = vsel %vm1833_vm5, %v5652_v2, %v5603_v62 }
 0x24c   : > { %v5593_v59 = vpop.xlane.xlu2 %1564 }
 0x24d   : > { %v5745_v28 = vadd.f32 %v5203_v50, %v5593_v59  ;;  %v1818_v59 = vperm.slane %v5729_v55, %v5343_v26 }
 0x24e   : > { %v1503_v53 = vpop.xlane.xlu1 %1502 }
 0x24f   : > { %7431 = vst [vmem:[#allocation44_spill] sm:$0xff] %v5745_v28  ;;  %v1820_v55 = vperm.slane %v5745_v28, %v5378_v34 }
 0x254   : > { %v5609_v58 = vpop.xlane.xlu0 %1566 }
 0x255   : > { %v5768_v52 = vadd.f32 %v5203_v50, %v5609_v58 }
 0x256   : > { %v1505_v4 = vpop.xlane.xlu2 %1504 }
 0x257   : > { %v5704_v61 = vadd.f32 %v5203_v50, %v1505_v4  ;;  %v5719_v4 = vadd.f32 %v5203_v50, %v1503_v53  ;;  %v1822_v47 = vperm.slane %v5768_v52, %v5329_v17 }
 0x259   : > { %v1767_v53 = vperm.slane %v5704_v61, %v5332_v63  ;;  %v1766_v3 = vperm.slane %v5719_v4, %v5329_v17 }
 0x25c   : > { %v1569_v31 = vpop.xlane.xlu1 %1568 }
 0x25d   : > { %v5753_v36 = vadd.f32 %v5203_v50, %v1569_v31  ;;  %v1768_v31 = vsel %vm1714_vm0, %v1767_v53, %v1766_v3  ;;  %v1840_v53 = vsel %vm1839_vm8, %v1765_v19, %v1838_v14 }
 0x25e   : > { %v1507_v43 = vpop.xlane.xlu0 %1506 }
 0x25f   : > { %v5711_v45 = vadd.f32 %v5203_v50, %v1507_v43  ;;  %v1813_v43 = vperm.slane %v5701_v13, %v5378_v34  ;;  %v1823_v58 = vperm.slane %v5753_v36, %v5332_v63 }
 0x261   : > { %v1769_v13 = vperm.slane %v5711_v45, %v5343_v26  ;;  %v1814_v3 = vsel %vm1722_vm2, %v1813_v43, %v1812_v44  ;;  %v1824_v29 = vsel %vm1714_vm0, %v1823_v58, %v1822_v47 }
 0x264   : > { %v1571_v32 = vpop.xlane.xlu2 %1570 }
 0x265   : > { %v5763_v41 = vadd.f32 %v5203_v50, %v1571_v32  ;;  %v1770_v32 = vsel %vm1718_vm1, %v1769_v13, %v1768_v31  ;;  %v1819_v31 = vsel %vm1718_vm1, %v1818_v59, %v1817_v15  ;;  %v1846_v59 = vsel %vm1835_vm6, %v1807_v30, %v1845_v1 }
 0x266   : > { %v1509_v11 = vpop.xlane.xlu1 %1508  ;;  %v1821_v43 = vsel %vm1722_vm2, %v1820_v55, %v1819_v31 }
 0x267   : > { %v5756_v16 = vadd.f32 %v5203_v50, %v1509_v11  ;;  %v1825_v21 = vperm.slane %v5763_v41, %v5343_v26 }
 0x269   : > { %v1771_v11 = vperm.slane %v5756_v16, %v5378_v34  ;;  %v1826_v19 = vsel %vm1718_vm1, %v1825_v21, %v1824_v29 }
 0x26b   : > { %v1772_v5 = vsel %vm1722_vm2, %v1771_v11, %v1770_v32 }
 0x26c   : > { %v1573_v28 = vpop.xlane.xlu0 %1572  ;;  %v1842_v13 = vsel %vm1841_vm9, %v1772_v5, %v1840_v53 }
 0x26d   : > { %v5792_v48 = vadd.f32 %v5203_v50, %v1573_v28  ;;  %v1853_v14 = vsel %vm1852_vm10, %v1842_v13, -inf  ;;  %v1847_v50 = vsel %vm1837_vm7, %v1814_v3, %v1846_v59 }
 0x26e   : > { %1854 = vmax.xlane.f32.xlu2 %v1853_v14  ;;  %v1848_v11 = vsel %vm1839_vm8, %v1821_v43, %v1847_v50 }
 0x26f   : > { %v1827_v15 = vperm.slane %v5792_v48, %v5378_v34 }
 0x271   : > { %v1828_v28 = vsel %vm1722_vm2, %v1827_v15, %v1826_v19 }
 0x272   : > { %v1849_v55 = vsel %vm1841_vm9, %v1828_v28, %v1848_v11 }
 0x273   : > { %v1856_v32 = vsel %vm1852_vm10, %v1849_v55, -inf }
 0x274   : > { %1857 = vmax.xlane.f32.xlu0 %v1856_v32 }
 0x2e1   : > { %v5809_v62 = vpop.xlane.xlu2 %1854 }
 0x2e2   : > { %v1861_v2 = vperm.slane %v5809_v62, 0  ;;  %v1862_v58 = vperm.slane %v5809_v62, 1  ;;  %v1863_v3 = vperm.slane %v5809_v62, 2 }
 0x2e4   : > { %v1895_v44 = vsub.f32 %v5347_v27, %v1861_v2  ;;  %v1893_v30 = vsub.f32 %v5340_v23, %v1861_v2  ;;  %v1894_v21 = vsub.f32 %v5336_v20, %v1861_v2  ;;  %v1897_v31 = vsub.f32 %v5390_v39, %v1862_v58  ;;  %v7432_v39 = vld [vmem:[#allocation24_spill] sm:$0xff] }
 0x2e5   : > { %v1896_v47 = vsub.f32 %v5396_v51, %v1861_v2  ;;  %v1902_v27 = vsub.f32 %v5449_v25, %v1863_v3  ;;  %v1864_v20 = vperm.slane %v5809_v62, 3  ;;  %v1899_v51 = vsub.f32 %v7432_v39, %v1862_v58  ;;  %v7433_v25 = vld [vmem:[#allocation20_spill] sm:$0xff] }
 0x2e6   : > { %v1961_v5 = vmul.f32 1.442695, %v1895_v44  ;;  %v1957_v53 = vmul.f32 1.442695, %v1893_v30  ;;  %v1959_v13 = vmul.f32 1.442695, %v1894_v21  ;;  %v1898_v59 = vsub.f32 %v7433_v25, %v1862_v58 }
 0x2e7   : > { %v1965_v14 = vmul.f32 1.442695, %v1897_v31  ;;  %v1963_v23 = vmul.f32 1.442695, %v1896_v47  ;;  %v1975_v1 = vmul.f32 1.442695, %v1902_v27  ;;  %v1905_v19 = vsub.f32 %v5527_v42, %v1864_v20 }
 0x2e8   : > { %4446 = vpow2.f32 %v1961_v5  ;;  %v1969_v50 = vmul.f32 1.442695, %v1899_v51  ;;  %v1967_v28 = vmul.f32 1.442695, %v1898_v59  ;;  %v1901_v44 = vsub.f32 %v5468_v35, %v1863_v3  ;;  %v7434_v42 = vld [vmem:[#allocation26_spill] sm:$0xff] }
 0x2e9   : > { %4448 = vpow2.f32 %v1957_v53  ;;  %v1981_v55 = vmul.f32 1.442695, %v1905_v19  ;;  %v1900_v30 = vsub.f32 %v7434_v42, %v1862_v58  ;;  %v1908_v21 = vsub.f32 %v5535_v49, %v1864_v20  ;;  %v7436_v49 = vld [vmem:[#allocation29_spill] sm:$0xff] }
 0x2ea   : > { %4450 = vpow2.f32 %v1959_v13  ;;  %v1973_v5 = vmul.f32 1.442695, %v1901_v44  ;;  %v1865_v31 = vperm.slane %v5809_v62, 4  ;;  %v1904_v58 = vsub.f32 %v5476_v0, %v1863_v3 }
 0x2eb   : > { %4452 = vpow2.f32 %v1965_v14  ;;  %v1971_v53 = vmul.f32 1.442695, %v1900_v30  ;;  %v1987_v47 = vmul.f32 1.442695, %v1908_v21  ;;  %v1903_v14 = vsub.f32 %v7436_v49, %v1863_v3 }
 0x2ec   : > { %4454 = vpow2.f32 %v1963_v23  ;;  %v1911_v23 = vsub.f32 %v5578_v56, %v1865_v31  ;;  %v1866_v25 = vperm.slane %v5809_v62, 5  ;;  %v1907_v3 = vsub.f32 %v5520_v9, %v1864_v20 }
 0x2ed   : > { %4456 = vpow2.f32 %v1975_v1  ;;  %v1979_v1 = vmul.f32 1.442695, %v1904_v58  ;;  %v1977_v39 = vmul.f32 1.442695, %v1903_v14  ;;  %v1906_v56 = vsub.f32 %v5506_v40, %v1864_v20 }
 0x2ee   : > { %v5820_v43 = vpop.eup %4446  ;;  %4458 = vpow2.f32 %v1969_v50  ;;  %v1993_v59 = vmul.f32 1.442695, %v1911_v23  ;;  %v1914_v50 = vsub.f32 %v5619_v8, %v1866_v25  ;;  %v1867_v42 = vperm.slane %v5809_v62, 6 }
 0x2ef   : > { %v5823_v29 = vpop.eup %4448  ;;  %2156 = vperm.xlu1 %4313, %v5820_v43   ;;  %4460 = vpow2.f32 %v1967_v28  ;;  %v1985_v28 = vmul.f32 1.442695, %v1907_v3  ;;  %v1910_v40 = vsub.f32 %v5564_v22, %v1865_v31  ;;  %v1909_v8 = vsub.f32 %v5583_v57, %v1865_v31 }
 0x2f0   : > { %v5826_v15 = vpop.eup %4450  ;;  %2150 = vperm.xlu2 %4314, %v5823_v29   ;;  %4462 = vpow2.f32 %v1981_v55  ;;  %v1983_v55 = vmul.f32 1.442695, %v1906_v56  ;;  %v1999_v30 = vmul.f32 1.442695, %v1914_v50  ;;  %v1917_v20 = vsub.f32 %v5689_v24, %v1867_v42 }
 0x2f1   : > { %2153 = vperm.xlu0 %4315, %v5826_v15   ;;  %v5833_v11 = vpop.eup %4452  ;;  %4464 = vpow2.f32 %v1973_v5  ;;  %v1991_v5 = vmul.f32 1.442695, %v1910_v40  ;;  %v1913_v22 = vsub.f32 %v5639_v10, %v1866_v25  ;;  %v1912_v57 = vsub.f32 %v5591_v46, %v1865_v31  ;;  %v5909_v31 = vpop.xlane.xlu0 %1857 }
 0x2f2   : > { %v5835_v32 = vpop.eup %4454  ;;  %4466 = vpow2.f32 %v1971_v53  ;;  %v1989_v53 = vmul.f32 1.442695, %v1909_v8  ;;  %v2005_v58 = vmul.f32 1.442695, %v1917_v20  ;;  %v1920_v24 = vsub.f32 %v5693_v37, %v1867_v42 }
 0x2f3   : > { %v5838_v2 = vpop.eup %4456  ;;  %4468 = vpow2.f32 %v1987_v47  ;;  %v1997_v23 = vmul.f32 1.442695, %v1913_v22  ;;  %v1916_v46 = vsub.f32 %v5643_v60, %v1866_v25  ;;  %v1915_v37 = vsub.f32 %v5629_v33, %v1866_v25  ;;  %v7442_v25 = vld [vmem:[#allocation18_spill] sm:$0xff] }
 0x2f4   : > { %v5845_v13 = vpop.eup %4458  ;;  %4470 = vpow2.f32 %v1979_v1  ;;  %v1995_v1 = vmul.f32 1.442695, %v1912_v57  ;;  %v2011_v3 = vmul.f32 1.442695, %v1920_v24  ;;  %v1919_v33 = vsub.f32 %v5684_v38, %v1867_v42 }
 0x2f5   : > { %v5848_v27 = vpop.eup %4460  ;;  %4472 = vpow2.f32 %v1977_v39  ;;  %v2003_v50 = vmul.f32 1.442695, %v1916_v46  ;;  %v1870_v22 = vperm.slane %v5909_v31, 1 }
 0x2f6   : > { %v5851_v35 = vpop.eup %4462  ;;  %4474 = vpow2.f32 %v1993_v59  ;;  %v1868_v59 = vperm.slane %v5809_v62, 7 }
 0x2f7   : > { %2162 = vperm.xlu1 %4313, %v5833_v11   ;;  %7435 = vst [vmem:[#allocation24_spill] sm:$0xff] %v5851_v35  ;;  %v5858_v51 = vpop.eup %4464  ;;  %4476 = vpow2.f32 %v1985_v28  ;;  %v2001_v28 = vmul.f32 1.442695, %v1915_v37 }
 0x2f8   : > { %2159 = vperm.xlu2 %4314, %v5835_v32   ;;  %v5861_v19 = vpop.eup %4466  ;;  %4478 = vpow2.f32 %v1983_v55  ;;  %v1923_v62 = vsub.f32 %v5711_v45, %v1868_v59  ;;  %v1918_v45 = vsub.f32 %v5674_v18, %v1867_v42  ;;  %v1922_v18 = vsub.f32 %v5704_v61, %v1868_v59  ;;  %v7446_v61 = vld [vmem:[#allocation17_spill] sm:$0xff] }
 0x2f9   : > { %2177 = vperm.xlu0 %4315, %v5838_v2   ;;  %v5864_v0 = vpop.eup %4468  ;;  %4480 = vpow2.f32 %v1999_v30  ;;  %v1869_v30 = vperm.slane %v5909_v31, 0  ;;  %v1921_v42 = vsub.f32 %v5719_v4, %v1868_v59  ;;  %v1924_v4 = vsub.f32 %v5756_v16, %v1868_v59  ;;  %v7449_v16 = vld [vmem:[#allocation21_spill] sm:$0xff] }
 0x2fa   : > { %7437 = vst [vmem:[#allocation20_spill] sm:$0xff] %v5864_v0  ;;  %v5871_v44 = vpop.eup %4470  ;;  %4482 = vpow2.f32 %v1991_v5  ;;  %v2017_v40 = vmul.f32 1.442695, %v1923_v62  ;;  %v2009_v5 = vmul.f32 1.442695, %v1919_v33  ;;  %v7447_v33 = vld [vmem:[#allocation27_spill] sm:$0xff] }
 0x2fb   : > { %v5874_v21 = vpop.eup %4472  ;;  %4484 = vpow2.f32 %v1989_v53  ;;  %v1926_v20 = vsub.f32 %v7442_v25, %v1869_v30  ;;  %v2007_v53 = vmul.f32 1.442695, %v1918_v45  ;;  %v2013_v46 = vmul.f32 1.442695, %v1921_v42 }
 0x2fc   : > { %v5877_v9 = vpop.eup %4474  ;;  %4486 = vpow2.f32 %v2005_v58  ;;  %v1932_v45 = vsub.f32 %v7447_v33, %v1870_v22  ;;  %v1928_v59 = vsub.f32 %v7449_v16, %v1869_v30 }
 0x2fd   : > { %7438 = vst [vmem:[#allocation26_spill] sm:$0xff] %v5877_v9  ;;  %v5884_v47 = vpop.eup %4476  ;;  %4488 = vpow2.f32 %v1997_v23  ;;  %v2023_v57 = vmul.f32 1.442695, %v1926_v20  ;;  %v7444_v23 = vld [vmem:[#allocation22_spill] sm:$0xff]  ;;  %v2019_v20 = vmul.f32 1.442695, %v1924_v4 }
 0x2fe   : > { %v5886_v49 = vpop.eup %4478  ;;  %4490 = vpow2.f32 %v1995_v1  ;;  %v1929_v1 = vsub.f32 %v7444_v23, %v1870_v22  ;;  %v7450_v23 = vld [vmem:[#allocation19_spill] sm:$0xff]  ;;  %v5968_v4 = vperm.slane %v5909_v31, 3 }
 0x2ff   : > { %2168 = vperm.xlu1 %4313, %v5845_v13   ;;  %v5889_v14 = vpop.eup %4480  ;;  %4492 = vpow2.f32 %v2011_v3  ;;  %v2015_v3 = vmul.f32 1.442695, %v1922_v18 }
 0x300   : > { %2165 = vperm.xlu2 %4314, %v5848_v27   ;;  %7439 = vst [vmem:[#allocation29_spill] sm:$0xff] %v5889_v14  ;;  %v5896_v39 = vpop.eup %4482  ;;  %4494 = vpow2.f32 %v2003_v50  ;;  %v2029_v62 = vmul.f32 1.442695, %v1929_v1  ;;  %v1927_v1 = vsub.f32 %v7450_v23, %v1869_v30  ;;  %v1938_v23 = vsub.f32 %v5516_v7, %v5968_v4 }
 0x301   : > { %2186 = vperm.xlu0 %4315, %v5851_v35   ;;  %v5899_v56 = vpop.eup %4484  ;;  %4496 = vpow2.f32 %v2001_v28 }
 0x302   : > { %v5902_v10 = vpop.eup %4486  ;;  %4498 = vpow2.f32 %v2017_v40  ;;  %v1925_v40 = vsub.f32 %v7446_v61, %v1869_v30  ;;  %v2025_v61 = vmul.f32 1.442695, %v1927_v1  ;;  %v7455_v30 = vld [vmem:[#allocation25_spill] sm:$0xff] }
 0x303   : > { %7440 = vst [vmem:[#allocation45_spill] sm:$0xff] %v5902_v10  ;;  %v5911_v55 = vpop.eup %4488  ;;  %4500 = vpow2.f32 %v2009_v5 }
 0x304   : > { %v5914_v8 = vpop.eup %4490  ;;  %4502 = vpow2.f32 %v2007_v53  ;;  %v2021_v25 = vmul.f32 1.442695, %v1925_v40  ;;  %v5952_v53 = vperm.slane %v5909_v31, 2 }
 0x305   : > { %v5917_v60 = vpop.eup %4492  ;;  %4504 = vpow2.f32 %v2023_v57  ;;  %v2035_v57 = vmul.f32 1.442695, %v1932_v45 }
 0x306   : > { %7441 = vst [vmem:[#allocation46_spill] sm:$0xff] %v5917_v60  ;;  %v5924_v58 = vpop.eup %4494  ;;  %4506 = vpow2.f32 %v2015_v3  ;;  %v7451_v3 = vld [vmem:[#allocation30_spill] sm:$0xff] }
 0x307   : > { %2174 = vperm.xlu1 %4313, %v5858_v51   ;;  %v5927_v24 = vpop.eup %4496  ;;  %4508 = vpow2.f32 %v2013_v46  ;;  %v1935_v46 = vsub.f32 %v7451_v3, %v5952_v53 }
 0x308   : > { %2171 = vperm.xlu2 %4314, %v5861_v19   ;;  %v5930_v38 = vpop.eup %4498  ;;  %4510 = vpow2.f32 %v2029_v62  ;;  %v2027_v62 = vmul.f32 1.442695, %v1928_v59 }
 0x309   : > { %2195 = vperm.xlu0 %4315, %v5864_v0   ;;  %7443 = vst [vmem:[#allocation18_spill] sm:$0xff] %v5930_v38  ;;  %v5937_v37 = vpop.eup %4500  ;;  %4512 = vpow2.f32 %v2021_v25  ;;  %v2041_v33 = vmul.f32 1.442695, %v1935_v46 }
 0x30a   : > { %v5939_v50 = vpop.eup %4502  ;;  %4514 = vpow2.f32 %v2019_v20  ;;  %v1931_v20 = vsub.f32 %v7455_v30, %v1870_v22 }
 0x30b   : > { %v5942_v28 = vpop.eup %4504  ;;  %4516 = vpow2.f32 %v2035_v57  ;;  %v7456_v57 = vld [vmem:[#allocation23_spill] sm:$0xff] }
 0x30c   : > { %7445 = vst [vmem:[#allocation22_spill] sm:$0xff] %v5942_v28  ;;  %v5949_v5 = vpop.eup %4506  ;;  %4518 = vpow2.f32 %v2027_v62  ;;  %v1930_v16 = vsub.f32 %v7456_v57, %v1870_v22  ;;  %v2033_v1 = vmul.f32 1.442695, %v1931_v20  ;;  %v2047_v62 = vmul.f32 1.442695, %v1938_v23  ;;  %v7460_v22 = vld [vmem:[#allocation28_spill] sm:$0xff] }
 0x30d   : > { %v5954_v18 = vpop.eup %4508  ;;  %4520 = vpow2.f32 %v2025_v61  ;;  %v1934_v7 = vsub.f32 %v7460_v22, %v5952_v53 }
 0x30e   : > { %v5957_v42 = vpop.eup %4510  ;;  %4522 = vpow2.f32 %v2041_v33  ;;  %v2031_v3 = vmul.f32 1.442695, %v1930_v16  ;;  %v7461_v33 = vld [vmem:[#allocation31_spill] sm:$0xff] }
 0x30f   : > { %2183 = vperm.xlu1 %4313, %v5871_v44   ;;  %7448 = vst [vmem:[#allocation17_spill] sm:$0xff] %v5957_v42  ;;  %v5965_v40 = vpop.eup %4512  ;;  %4524 = vpow2.f32 %v2033_v1  ;;  %v1933_v20 = vsub.f32 %v7461_v33, %v5952_v53  ;;  %v2039_v23 = vmul.f32 1.442695, %v1934_v7 }
 0x310   : > { %2180 = vperm.xlu2 %4314, %v5874_v21   ;;  %7452 = vst [vmem:[#allocation27_spill] sm:$0xff] %v5965_v40  ;;  %v5970_v45 = vpop.eup %4514  ;;  %4526 = vpow2.f32 %v2031_v3  ;;  %v1937_v3 = vsub.f32 %v5544_v12, %v5968_v4 }
 0x311   : > { %2204 = vperm.xlu0 %4315, %v5877_v9   ;;  %7453 = vst [vmem:[#allocation21_spill] sm:$0xff] %v5970_v45  ;;  %v5973_v25 = vpop.eup %4516  ;;  %4528 = vpow2.f32 %v2047_v62 }
 0x312   : > { %7454 = vst [vmem:[#allocation19_spill] sm:$0xff] %v5973_v25  ;;  %v5983_v46 = vpop.eup %4518  ;;  %4530 = vpow2.f32 %v2039_v23  ;;  %v6019_v23 = vperm.slane %v5909_v31, 5 }
 0x313   : > { %7457 = vst [vmem:[#allocation30_spill] sm:$0xff] %v5983_v46  ;;  %v5988_v30 = vpop.eup %4520 }
 0x314   : > { %7458 = vst [vmem:[#allocation25_spill] sm:$0xff] %v5988_v30  ;;  %v5991_v61 = vpop.eup %4522 }
 0x315   : > { %7459 = vst [vmem:[#allocation23_spill] sm:$0xff] %v5991_v61 }
 0x317   : > { %2192 = vperm.xlu1 %4313, %v5884_v47  }
 0x318   : > { %2189 = vperm.xlu2 %4314, %v5886_v49  }
 0x319   : > { %2213 = vperm.xlu0 %4315, %v5889_v14  }
 0x31f   : > { %2201 = vperm.xlu1 %4313, %v5896_v39  }
 0x320   : > { %2198 = vperm.xlu2 %4314, %v5899_v56  }
 0x321   : > { %2222 = vperm.xlu0 %4315, %v5902_v10  }
 0x327   : > { %2210 = vperm.xlu1 %4313, %v5911_v55  }
 0x328   : > { %2207 = vperm.xlu2 %4314, %v5914_v8  }
 0x329   : > { %2231 = vperm.xlu0 %4315, %v5917_v60  }
 0x32f   : > { %2219 = vperm.xlu1 %4313, %v5924_v58  }
 0x330   : > { %2216 = vperm.xlu2 %4314, %v5927_v24  }
 0x331   : > { %2240 = vperm.xlu0 %4315, %v5930_v38  }
 0x337   : > { %2228 = vperm.xlu1 %4313, %v5937_v37  }
 0x338   : > { %2225 = vperm.xlu2 %4314, %v5939_v50  }
 0x339   : > { %2249 = vperm.xlu0 %4315, %v5942_v28   ;;  %v6001_v28 = vpop.eup %4524 }
 0x33a   : > { %7462 = vst [vmem:[#allocation28_spill] sm:$0xff] %v6001_v28  ;;  %v6003_v1 = vpop.eup %4526 }
 0x33b   : > { %7463 = vst [vmem:[#allocation31_spill] sm:$0xff] %v6003_v1  ;;  %v6006_v22 = vpop.eup %4528 }
 0x33c   : > { %7464 = vst [vmem:[#allocation47_spill] sm:$0xff] %v6006_v22 }
 0x33f   : > { %2237 = vperm.xlu1 %4313, %v5949_v5  }
 0x340   : > { %2234 = vperm.xlu2 %4314, %v5954_v18  }
 0x341   : > { %2258 = vperm.xlu0 %4315, %v5957_v42   ;;  %v5986_v42 = vperm.slane %v5909_v31, 4 }
 0x343   : > { %v1941_v16 = vsub.f32 %v5600_v54, %v5986_v42  ;;  %v7465_v54 = vld [vmem:[#allocation32_spill] sm:$0xff]  ;;  %v1944_v33 = vsub.f32 %v5635_v6, %v5986_v42 }
 0x344   : > { %v1936_v62 = vsub.f32 %v7465_v54, %v5952_v53 }
 0x345   : > { %v2053_v38 = vmul.f32 1.442695, %v1941_v16  ;;  %v2059_v60 = vmul.f32 1.442695, %v1944_v33  ;;  %v7471_v33 = vld [vmem:[#allocation39_spill] sm:$0xff] }
 0x346   : > { %v2043_v16 = vmul.f32 1.442695, %v1936_v62 }
 0x347   : > { %2246 = vperm.xlu1 %4313, %v5965_v40  }
 0x348   : > { %2243 = vperm.xlu2 %4314, %v5970_v45  }
 0x349   : > { %2267 = vperm.xlu0 %4315, %v5973_v25   ;;  %v2037_v25 = vmul.f32 1.442695, %v1933_v20  ;;  %v2045_v20 = vmul.f32 1.442695, %v1937_v3  ;;  %v7470_v3 = vld [vmem:[#allocation33_spill] sm:$0xff] }
 0x34a   : > { %v5979_v59 = vpop.permute.xlu2 %2150  ;;  %v1939_v54 = vsub.f32 %v7470_v3, %v5968_v4 }
 0x34b   : > { %4532 = vpow2.f32 %v2037_v25 }
 0x34c   : > { %4534 = vpow2.f32 %v2053_v38  ;;  %v7469_v38 = vld [vmem:[#allocation34_spill] sm:$0xff] }
 0x34d   : > { %4536 = vpow2.f32 %v2045_v20  ;;  %v1940_v6 = vsub.f32 %v7469_v38, %v5968_v4  ;;  %v2341_v20 = vperm.slane %v5979_v59, %v5329_v17 }
 0x34e   : > { %4538 = vpow2.f32 %v2043_v16  ;;  %v6041_v16 = vperm.slane %v5909_v31, 6 }
 0x34f   : > { %2255 = vperm.xlu1 %4313, %v5983_v46   ;;  %4540 = vpow2.f32 %v2059_v60 }
 0x350   : > { %2252 = vperm.xlu2 %4314, %v5988_v30  }
 0x351   : > { %2276 = vperm.xlu0 %4315, %v5991_v61   ;;  %v6016_v61 = vpop.eup %4530 }
 0x352   : > { %v2160_v57 = vpop.permute.xlu2 %2159  ;;  %7466 = vst [vmem:[#allocation32_spill] sm:$0xff] %v6016_v61  ;;  %v6021_v12 = vpop.eup %4532 }
 0x353   : > { %7467 = vst [vmem:[#allocation48_spill] sm:$0xff] %v6021_v12  ;;  %v6024_v25 = vpop.eup %4534  ;;  %v2346_v60 = vperm.slane %v2160_v57, %v5378_v34 }
 0x354   : > { %7468 = vst [vmem:[#allocation49_spill] sm:$0xff] %v6024_v25 }
 0x357   : > { %2264 = vperm.xlu1 %4313, %v6001_v28   ;;  %v2051_v28 = vmul.f32 1.442695, %v1940_v6  ;;  %v7475_v6 = vld [vmem:[#allocation36_spill] sm:$0xff] }
 0x358   : > { %2261 = vperm.xlu2 %4314, %v6003_v1  }
 0x359   : > { %2285 = vperm.xlu0 %4315, %v6006_v22   ;;  %v1947_v22 = vsub.f32 %v7471_v33, %v6019_v23  ;;  %4542 = vpow2.f32 %v2051_v28 }
 0x35a   : > { %v2166_v7 = vpop.permute.xlu2 %2165 }
 0x35b   : > { %v2065_v3 = vmul.f32 1.442695, %v1947_v22  ;;  %v7476_v22 = vld [vmem:[#allocation35_spill] sm:$0xff] }
 0x35f   : > { %2273 = vperm.xlu1 %4313, %v6016_v61  }
 0x360   : > { %2270 = vperm.xlu2 %4314, %v6021_v12   ;;  %v6038_v12 = vpop.eup %4536 }
 0x361   : > { %2294 = vperm.xlu0 %4315, %v6024_v25   ;;  %v2157_v53 = vpop.permute.xlu1 %2156  ;;  %v2049_v25 = vmul.f32 1.442695, %v1939_v54  ;;  %7472 = vst [vmem:[#allocation34_spill] sm:$0xff] %v6038_v12  ;;  %v6045_v33 = vpop.eup %4538  ;;  %v1943_v54 = vsub.f32 %v7475_v6, %v5986_v42 }
 0x362   : > { %v2172_v62 = vpop.permute.xlu2 %2171  ;;  %v2344_v61 = vperm.slane %v2157_v53, %v5343_v26  ;;  %7473 = vst [vmem:[#allocation33_spill] sm:$0xff] %v6045_v33  ;;  %v6049_v59 = vpop.eup %4540 }
 0x363   : > { %v2154_v10 = vpop.permute.xlu0 %2153  ;;  %7474 = vst [vmem:[#allocation39_spill] sm:$0xff] %v6049_v59  ;;  %4544 = vpow2.f32 %v2049_v25  ;;  %v6067_v25 = vpop.eup %4542 }
 0x364   : > { %v2342_v38 = vperm.slane %v2154_v10, %v5332_v63  ;;  %4546 = vpow2.f32 %v2065_v3  ;;  %7478 = vst [vmem:[#allocation36_spill] sm:$0xff] %v6067_v25 }
 0x366   : > { %v2343_v4 = vsel %vm1714_vm0, %v2342_v38, %v2341_v20  ;;  %v1942_v20 = vsub.f32 %v7476_v22, %v5986_v42  ;;  %v6070_v42 = vperm.slane %v5909_v31, 7  ;;  %v7482_v31 = vld [vmem:[#allocation38_spill] sm:$0xff] }
 0x367   : > { %v2345_v53 = vsel %vm1718_vm1, %v2344_v61, %v2343_v4  ;;  %2282 = vperm.xlu1 %4313, %v6038_v12   ;;  %v2349_v61 = vperm.slane %v2166_v7, %v5332_v63 }
 0x368   : > { %v2347_v10 = vsel %vm1722_vm2, %v2346_v60, %v2345_v53  ;;  %2279 = vperm.xlu2 %4314, %v6045_v33   ;;  %v7477_v60 = vld [vmem:[#allocation41_spill] sm:$0xff]  ;;  %v2055_v12 = vmul.f32 1.442695, %v1942_v20  ;;  %v1945_v20 = vsub.f32 %v7482_v31, %v6019_v23 }
 0x369   : > { %2303 = vperm.xlu0 %4315, %v6049_v59   ;;  %v2163_v57 = vpop.permute.xlu1 %2162  ;;  %v1950_v28 = vsub.f32 %v7477_v60, %v6041_v16  ;;  %v2057_v59 = vmul.f32 1.442695, %v1943_v54  ;;  %v6072_v22 = vpop.eup %4544 }
 0x36a   : > { %v2348_v38 = vperm.slane %v2163_v57, %v5329_v17  ;;  %v6060_v4 = vpop.permute.xlu2 %2180  ;;  %7479 = vst [vmem:[#allocation35_spill] sm:$0xff] %v6072_v22  ;;  %v6075_v3 = vpop.eup %4546  ;;  %v7481_v57 = vld [vmem:[#allocation37_spill] sm:$0xff] }
 0x36b   : > { %v6064_v53 = vpop.permute.xlu0 %2177  ;;  %v2071_v7 = vmul.f32 1.442695, %v1950_v28  ;;  %7480 = vst [vmem:[#allocation41_spill] sm:$0xff] %v6075_v3  ;;  %4548 = vpow2.f32 %v2057_v59  ;;  %v1953_v28 = vsub.f32 %v5768_v52, %v6070_v42  ;;  %v2353_v59 = vperm.slane %v2172_v62, %v5378_v34  ;;  %v7486_v62 = vld [vmem:[#allocation43_spill] sm:$0xff] }
 0x36c   : > { %v2350_v6 = vsel %vm1714_vm0, %v2349_v61, %v2348_v38  ;;  %v1946_v61 = vsub.f32 %v7481_v57, %v6019_v23  ;;  %4550 = vpow2.f32 %v2055_v12  ;;  %v2356_v9 = vperm.slane %v6064_v53, %v5332_v63 }
 0x36d   : > { %4552 = vpow2.f32 %v2071_v7  ;;  %v2077_v31 = vmul.f32 1.442695, %v1953_v28  ;;  %v1956_v28 = vsub.f32 %v5792_v48, %v6070_v42  ;;  %v2358_v40 = vperm.slane %v6060_v4, %v5343_v26 }
 0x36f   : > { %2291 = vperm.xlu1 %4313, %v6067_v25  }
 0x370   : > { %2288 = vperm.xlu2 %4314, %v6072_v22   ;;  %v2061_v22 = vmul.f32 1.442695, %v1945_v20 }
 0x371   : > { %2312 = vperm.xlu0 %4315, %v6075_v3   ;;  %v2169_v54 = vpop.permute.xlu1 %2168  ;;  %v2063_v3 = vmul.f32 1.442695, %v1946_v61  ;;  %v6093_v33 = vpop.eup %4548 }
 0x372   : > { %v2351_v38 = vperm.slane %v2169_v54, %v5343_v26  ;;  %v6084_v60 = vpop.permute.xlu2 %2189  ;;  %7483 = vst [vmem:[#allocation37_spill] sm:$0xff] %v6093_v33  ;;  %v6098_v7 = vpop.eup %4550 }
 0x373   : > { %v6089_v25 = vpop.permute.xlu0 %2186  ;;  %7484 = vst [vmem:[#allocation38_spill] sm:$0xff] %v6098_v7  ;;  %v6101_v52 = vpop.eup %4552  ;;  %4554 = vpow2.f32 %v2063_v3 }
 0x374   : > { %v2352_v57 = vsel %vm1718_vm1, %v2351_v38, %v2350_v6  ;;  %7485 = vst [vmem:[#allocation50_spill] sm:$0xff] %v6101_v52  ;;  %v1949_v6 = vsub.f32 %v7486_v62, %v6041_v16  ;;  %4556 = vpow2.f32 %v2061_v22  ;;  %v2083_v62 = vmul.f32 1.442695, %v1956_v28 }
 0x375   : > { %v2354_v12 = vsel %vm1722_vm2, %v2353_v59, %v2352_v57  ;;  %4558 = vpow2.f32 %v2077_v31  ;;  %v2362_v1 = vperm.slane %v6089_v25, %v5329_v17 }
 0x376   : > { %v6096_v54 = vsel %vm1829_vm3, %v2354_v12, %v2347_v10  ;;  %v7487_v10 = vld [vmem:[#allocation40_spill] sm:$0xff]  ;;  %v2069_v3 = vmul.f32 1.442695, %v1949_v6  ;;  %v7492_v6 = vld [vmem:[#allocation42_spill] sm:$0xff] }
 0x377   : > { %2300 = vperm.xlu1 %4313, %v6093_v33   ;;  %v1948_v20 = vsub.f32 %v7487_v10, %v6019_v23  ;;  %v7491_v23 = vld [vmem:[#allocation44_spill] sm:$0xff]  ;;  %v1951_v10 = vsub.f32 %v7492_v6, %v6041_v16 }
 0x378   : > { %2297 = vperm.xlu2 %4314, %v6098_v7   ;;  %4560 = vpow2.f32 %v2069_v3  ;;  %v1952_v31 = vsub.f32 %v7491_v23, %v6041_v16  ;;  %v1955_v16 = vsub.f32 %v5763_v41, %v6070_v42 }
 0x379   : > { %2321 = vperm.xlu0 %4315, %v6101_v52   ;;  %v6107_v61 = vpop.permute.xlu1 %2174  ;;  %v2067_v57 = vmul.f32 1.442695, %v1948_v20  ;;  %v6117_v12 = vpop.eup %4554  ;;  %v2073_v33 = vmul.f32 1.442695, %v1951_v10 }
 0x37a   : > { %v6111_v38 = vpop.permute.xlu2 %2198  ;;  %7488 = vst [vmem:[#allocation43_spill] sm:$0xff] %v6117_v12  ;;  %v6119_v52 = vpop.eup %4556  ;;  %v2081_v10 = vmul.f32 1.442695, %v1955_v16 }
 0x37b   : > { %v6115_v59 = vpop.permute.xlu0 %2195  ;;  %7489 = vst [vmem:[#allocation40_spill] sm:$0xff] %v6119_v52  ;;  %v6122_v22 = vpop.eup %4558  ;;  %4562 = vpow2.f32 %v2067_v57  ;;  %v2369_v30 = vperm.slane %v6111_v38, %v5329_v17 }
 0x37c   : > { %7490 = vst [vmem:[#allocation51_spill] sm:$0xff] %v6122_v22  ;;  %4564 = vpow2.f32 %v2083_v62  ;;  %v1954_v62 = vsub.f32 %v5753_v36, %v6070_v42 }
 0x37f   : > { %2309 = vperm.xlu1 %4313, %v6117_v12   ;;  %v2075_v12 = vmul.f32 1.442695, %v1952_v31 }
 0x380   : > { %2306 = vperm.xlu2 %4314, %v6119_v52   ;;  %v6136_v52 = vpop.eup %4560 }
 0x381   : > { %2330 = vperm.xlu0 %4315, %v6122_v22   ;;  %v6128_v48 = vpop.permute.xlu1 %2183  ;;  %7493 = vst [vmem:[#allocation44_spill] sm:$0xff] %v6136_v52  ;;  %v6138_v3 = vpop.eup %4562  ;;  %4566 = vpow2.f32 %v2075_v12  ;;  %v2079_v22 = vmul.f32 1.442695, %v1954_v62 }
 0x382   : > { %v6132_v20 = vpop.permute.xlu2 %2207  ;;  %7494 = vst [vmem:[#allocation42_spill] sm:$0xff] %v6138_v3  ;;  %v6141_v23 = vpop.eup %4564  ;;  %4568 = vpow2.f32 %v2073_v33 }
 0x383   : > { %v6134_v28 = vpop.permute.xlu0 %2204  ;;  %7495 = vst [vmem:[#allocation52_spill] sm:$0xff] %v6141_v23  ;;  %4570 = vpow2.f32 %v2081_v10 }
 0x384   : > { %4572 = vpow2.f32 %v2079_v22  ;;  %v2363_v22 = vperm.slane %v6084_v60, %v5332_v63  ;;  %v2372_v53 = vperm.slane %v6134_v28, %v5343_v26 }
 0x386   : > { %v2364_v60 = vsel %vm1714_vm0, %v2363_v22, %v2362_v1 }
 0x387   : > { %2318 = vperm.xlu1 %4313, %v6136_v52   ;;  %v6151_v52 = vpop.eup %4566 }
 0x388   : > { %2315 = vperm.xlu2 %4314, %v6138_v3   ;;  %7496 = vst [vmem:[#allocation53_spill] sm:$0xff] %v6151_v52  ;;  %v6153_v7 = vpop.eup %4568 }
 0x389   : > { %2339 = vperm.xlu0 %4315, %v6141_v23   ;;  %v2193_v57 = vpop.permute.xlu1 %2192  ;;  %7497 = vst [vmem:[#allocation54_spill] sm:$0xff] %v6153_v7  ;;  %v6157_v23 = vpop.eup %4570 }
 0x38a   : > { %v6149_v31 = vpop.permute.xlu2 %2216  ;;  %7498 = vst [vmem:[#allocation55_spill] sm:$0xff] %v6157_v23  ;;  %v6159_v36 = vpop.eup %4572  ;;  %v2365_v0 = vperm.slane %v2193_v57, %v5343_v26 }
 0x38b   : > { %v2214_v6 = vpop.permute.xlu0 %2213  ;;  %7499 = vst [vmem:[#allocation56_spill] sm:$0xff] %v6159_v36 }
 0x38c   : > { %v2377_v57 = vperm.slane %v2214_v6, %v5332_v63 }
 0x38f   : > { %2327 = vperm.xlu1 %4313, %v6151_v52  }
 0x390   : > { %2324 = vperm.xlu2 %4314, %v6153_v7  }
 0x391   : > { %v2202_v41 = vpop.permute.xlu1 %2201 }
 0x392   : > { %v2226_v33 = vpop.permute.xlu2 %2225 }
 0x393   : > { %v2223_v12 = vpop.permute.xlu0 %2222  ;;  %v2384_v4 = vperm.slane %v2226_v33, %v5332_v63  ;;  %v2366_v33 = vsel %vm1718_vm1, %v2365_v0, %v2364_v60 }
 0x394   : > { %v2383_v38 = vperm.slane %v2223_v12, %v5329_v17 }
 0x397   : > { %2336 = vperm.xlu1 %4313, %v6157_v23   ;;  %v2355_v23 = vperm.slane %v6107_v61, %v5329_v17  ;;  %v2360_v61 = vperm.slane %v6128_v48, %v5378_v34 }
 0x398   : > { %2333 = vperm.xlu2 %4314, %v6159_v36   ;;  %v2370_v36 = vperm.slane %v2202_v41, %v5332_v63 }
 0x399   : > { %v2211_v42 = vpop.permute.xlu1 %2210  ;;  %v2357_v25 = vsel %vm1714_vm0, %v2356_v9, %v2355_v23  ;;  %v2367_v23 = vperm.slane %v6115_v59, %v5378_v34  ;;  %v2385_v59 = vsel %vm1714_vm0, %v2384_v4, %v2383_v38 }
 0x39a   : > { %v2235_v16 = vpop.permute.xlu2 %2234  ;;  %v2376_v41 = vperm.slane %v2211_v42, %v5329_v17  ;;  %v2371_v35 = vsel %vm1714_vm0, %v2370_v36, %v2369_v30  ;;  %v2359_v28 = vsel %vm1718_vm1, %v2358_v40, %v2357_v25  ;;  %v2374_v30 = vperm.slane %v6132_v20, %v5378_v34 }
 0x39b   : > { %v2232_v62 = vpop.permute.xlu0 %2231  ;;  %v2390_v1 = vperm.slane %v2235_v16, %v5329_v17  ;;  %v2373_v36 = vsel %vm1718_vm1, %v2372_v53, %v2371_v35  ;;  %v2361_v16 = vsel %vm1722_vm2, %v2360_v61, %v2359_v28  ;;  %v2379_v40 = vperm.slane %v6149_v31, %v5343_v26 }
 0x39c   : > { %v2378_v6 = vsel %vm1714_vm0, %v2377_v57, %v2376_v41  ;;  %v2368_v0 = vsel %vm1722_vm2, %v2367_v23, %v2366_v33  ;;  %v2375_v22 = vsel %vm1722_vm2, %v2374_v30, %v2373_v36  ;;  %v2454_v61 = vsel %vm1831_vm4, %v2361_v16, %v6096_v54 }
 0x39d   : > { %v2380_v60 = vsel %vm1718_vm1, %v2379_v40, %v2378_v6 }
 0x3a1   : > { %v2220_v3 = vpop.permute.xlu1 %2219 }
 0x3a2   : > { %v2244_v52 = vpop.permute.xlu2 %2243  ;;  %v2381_v42 = vperm.slane %v2220_v3, %v5378_v34  ;;  %v2388_v3 = vperm.slane %v2232_v62, %v5378_v34 }
 0x3a3   : > { %v2241_v14 = vpop.permute.xlu0 %2240  ;;  %v2395_v41 = vperm.slane %v2244_v52, %v5378_v34 }
 0x3a4   : > { %v2393_v20 = vperm.slane %v2241_v14, %v5343_v26  ;;  %v2382_v31 = vsel %vm1722_vm2, %v2381_v42, %v2380_v60  ;;  %v2455_v14 = vsel %vm1833_vm5, %v2368_v0, %v2454_v61 }
 0x3a9   : > { %v2229_v7 = vpop.permute.xlu1 %2228 }
 0x3aa   : > { %v2253_v10 = vpop.permute.xlu2 %2252  ;;  %v2386_v9 = vperm.slane %v2229_v7, %v5343_v26 }
 0x3ab   : > { %v2250_v46 = vpop.permute.xlu0 %2249 }
 0x3ac   : > { %v2387_v35 = vsel %vm1718_vm1, %v2386_v9, %v2385_v59  ;;  %v2398_v38 = vperm.slane %v2250_v46, %v5332_v63  ;;  %v2400_v9 = vperm.slane %v2253_v10, %v5343_v26 }
 0x3ad   : > { %v2389_v4 = vsel %vm1722_vm2, %v2388_v3, %v2387_v35 }
 0x3b1   : > { %v2238_v45 = vpop.permute.xlu1 %2237 }
 0x3b2   : > { %v2391_v48 = vperm.slane %v2238_v45, %v5332_v63  ;;  %v2262_v45 = vpop.permute.xlu2 %2261 }
 0x3b3   : > { %v2259_v12 = vpop.permute.xlu0 %2258 }
 0x3b4   : > { %v2392_v7 = vsel %vm1714_vm0, %v2391_v48, %v2390_v1  ;;  %v2456_v1 = vsel %vm1835_vm6, %v2375_v22, %v2455_v14  ;;  %v2404_v16 = vperm.slane %v2259_v12, %v5329_v17 }
 0x3b5   : > { %v2394_v25 = vsel %vm1718_vm1, %v2393_v20, %v2392_v7  ;;  %v2457_v48 = vsel %vm1837_vm7, %v2382_v31, %v2456_v1  ;;  %v2405_v7 = vperm.slane %v2262_v45, %v5332_v63 }
 0x3b6   : > { %v2396_v57 = vsel %vm1722_vm2, %v2395_v41, %v2394_v25  ;;  %v2458_v23 = vsel %vm1839_vm8, %v2389_v4, %v2457_v48 }
 0x3b7   : > { %v2459_v28 = vsel %vm1841_vm9, %v2396_v57, %v2458_v23  ;;  %v2406_v0 = vsel %vm1714_vm0, %v2405_v7, %v2404_v16 }
 0x3b8   : > { %v2469_v33 = vsel %vm1852_vm10, %v2459_v28, 0.0 }
 0x3b9   : > { %v2247_v53 = vpop.permute.xlu1 %2246 }
 0x3ba   : > { %v2397_v62 = vperm.slane %v2247_v53, %v5329_v17  ;;  %v2271_v46 = vpop.permute.xlu2 %2270 }
 0x3bb   : > { %v2268_v54 = vpop.permute.xlu0 %2267  ;;  %v2411_v23 = vperm.slane %v2271_v46, %v5329_v17 }
 0x3bc   : > { %v2399_v52 = vsel %vm1714_vm0, %v2398_v38, %v2397_v62  ;;  %v2409_v35 = vperm.slane %v2268_v54, %v5378_v34 }
 0x3bd   : > { %v2401_v30 = vsel %vm1718_vm1, %v2400_v9, %v2399_v52 }
 0x3c1   : > { %2470 = vadd.xlane.f32.xlu2 %v2469_v33  ;;  %v2256_v36 = vpop.permute.xlu1 %2255 }
 0x3c2   : > { %v2402_v6 = vperm.slane %v2256_v36, %v5378_v34  ;;  %v2280_v40 = vpop.permute.xlu2 %2279 }
 0x3c3   : > { %v2277_v42 = vpop.permute.xlu0 %2276 }
 0x3c4   : > { %v2403_v10 = vsel %vm1722_vm2, %v2402_v6, %v2401_v30  ;;  %v2414_v6 = vperm.slane %v2277_v42, %v5343_v26 }
 0x3c9   : > { %v2265_v59 = vpop.permute.xlu1 %2264 }
 0x3ca   : > { %v2407_v20 = vperm.slane %v2265_v59, %v5343_v26  ;;  %v2289_v31 = vpop.permute.xlu2 %2288 }
 0x3cb   : > { %v2286_v3 = vpop.permute.xlu0 %2285  ;;  %v2421_v42 = vperm.slane %v2289_v31, %v5343_v26 }
 0x3cc   : > { %v2408_v22 = vsel %vm1718_vm1, %v2407_v20, %v2406_v0 }
 0x3cd   : > { %v2410_v60 = vsel %vm1722_vm2, %v2409_v35, %v2408_v22 }
 0x3ce   : > { %v2460_v25 = vsel %vm1829_vm3, %v2410_v60, %v2403_v10  ;;  %v2419_v10 = vperm.slane %v2286_v3, %v5332_v63  ;;  %v2416_v60 = vperm.slane %v2280_v40, %v5378_v34 }
 0x3d1   : > { %v2274_v61 = vpop.permute.xlu1 %2273 }
 0x3d2   : > { %v2298_v12 = vpop.permute.xlu2 %2297  ;;  %v2412_v52 = vperm.slane %v2274_v61, %v5332_v63 }
 0x3d3   : > { %v2295_v45 = vpop.permute.xlu0 %2294  ;;  %v2426_v7 = vperm.slane %v2298_v12, %v5332_v63 }
 0x3d4   : > { %v2413_v33 = vsel %vm1714_vm0, %v2412_v52, %v2411_v23  ;;  %v2425_v16 = vperm.slane %v2295_v45, %v5329_v17 }
 0x3d5   : > { %v2415_v0 = vsel %vm1718_vm1, %v2414_v6, %v2413_v33 }
 0x3d6   : > { %v2427_v45 = vsel %vm1714_vm0, %v2426_v7, %v2425_v16 }
 0x3d9   : > { %v2283_v41 = vpop.permute.xlu1 %2282 }
 0x3da   : > { %v2307_v4 = vpop.permute.xlu2 %2306  ;;  %v2418_v28 = vperm.slane %v2283_v41, %v5329_v17 }
 0x3db   : > { %v2304_v14 = vpop.permute.xlu0 %2303  ;;  %v2432_v59 = vperm.slane %v2307_v4, %v5329_v17 }
 0x3dc   : > { %v2420_v35 = vsel %vm1714_vm0, %v2419_v10, %v2418_v28 }
 0x3e1   : > { %v2292_v53 = vpop.permute.xlu1 %2291 }
 0x3e2   : > { %v2316_v57 = vpop.permute.xlu2 %2315  ;;  %v2423_v3 = vperm.slane %v2292_v53, %v5378_v34 }
 0x3e3   : > { %v2313_v62 = vpop.permute.xlu0 %2312  ;;  %v2437_v31 = vperm.slane %v2316_v57, %v5378_v34 }
 0x3e4   : > { %v2435_v41 = vperm.slane %v2313_v62, %v5343_v26 }
 0x3e9   : > { %v2301_v38 = vpop.permute.xlu1 %2300 }
 0x3ea   : > { %v2325_v48 = vpop.permute.xlu2 %2324  ;;  %v2428_v20 = vperm.slane %v2301_v38, %v5343_v26  ;;  %v2417_v38 = vsel %vm1722_vm2, %v2416_v60, %v2415_v0 }
 0x3eb   : > { %v2322_v9 = vpop.permute.xlu0 %2321  ;;  %v2461_v6 = vsel %vm1831_vm4, %v2417_v38, %v2460_v25 }
 0x3ec   : > { %v2440_v12 = vperm.slane %v2322_v9, %v5332_v63  ;;  %v2429_v40 = vsel %vm1718_vm1, %v2428_v20, %v2427_v45  ;;  %v2442_v9 = vperm.slane %v2325_v48, %v5343_v26 }
 0x3f1   : > { %v2310_v1 = vpop.permute.xlu1 %2309 }
 0x3f2   : > { %v2433_v36 = vperm.slane %v2310_v1, %v5332_v63  ;;  %v2334_v4 = vpop.permute.xlu2 %2333  ;;  %v2430_v1 = vperm.slane %v2304_v14, %v5378_v34 }
 0x3f3   : > { %v2331_v30 = vpop.permute.xlu0 %2330  ;;  %v2447_v28 = vperm.slane %v2334_v4, %v5332_v63 }
 0x3f4   : > { %v2434_v61 = vsel %vm1714_vm0, %v2433_v36, %v2432_v59  ;;  %v2446_v14 = vperm.slane %v2331_v30, %v5329_v17  ;;  %v2431_v33 = vsel %vm1722_vm2, %v2430_v1, %v2429_v40 }
 0x3f5   : > { %v2436_v53 = vsel %vm1718_vm1, %v2435_v41, %v2434_v61 }
 0x3f6   : > { %v2438_v7 = vsel %vm1722_vm2, %v2437_v31, %v2436_v53  ;;  %v2448_v20 = vsel %vm1714_vm0, %v2447_v28, %v2446_v14 }
 0x3f9   : > { %v2319_v54 = vpop.permute.xlu1 %2318 }
 0x3fa   : > { %v2439_v22 = vperm.slane %v2319_v54, %v5329_v17  ;;  %v2422_v54 = vsel %vm1718_vm1, %v2421_v42, %v2420_v35 }
 0x3fb   : > { %v2424_v62 = vsel %vm1722_vm2, %v2423_v3, %v2422_v54  ;;  %v2340_v36 = vpop.permute.xlu0 %2339 }
 0x3fc   : > { %v2441_v52 = vsel %vm1714_vm0, %v2440_v12, %v2439_v22  ;;  %v2462_v16 = vsel %vm1833_vm5, %v2424_v62, %v2461_v6  ;;  %v2451_v30 = vperm.slane %v2340_v36, %v5378_v34 }
 0x3fd   : > { %v2443_v57 = vsel %vm1718_vm1, %v2442_v9, %v2441_v52 }
 0x401   : > { %v2328_v46 = vpop.permute.xlu1 %2327 }
 0x402   : > { %v2444_v23 = vperm.slane %v2328_v46, %v5378_v34  ;;  %v2463_v46 = vsel %vm1835_vm6, %v2431_v33, %v2462_v16 }
 0x403   : > { %v2464_v25 = vsel %vm1837_vm7, %v2438_v7, %v2463_v46  ;;  %v7502_v7 = vld [vmem:[#allocation20_spill] sm:$0xff]  ;;  %v7505_v46 = vld [vmem:[#allocation26_spill] sm:$0xff] }
 0x404   : > { %v2445_v59 = vsel %vm1722_vm2, %v2444_v23, %v2443_v57 }
 0x405   : > { %v2465_v22 = vsel %vm1839_vm8, %v2445_v59, %v2464_v25  ;;  %v7503_v59 = vld [vmem:[#allocation25_spill] sm:$0xff] }
 0x409   : > { %v2337_v10 = vpop.permute.xlu1 %2336 }
 0x40a   : > { %v2449_v48 = vperm.slane %v2337_v10, %v5343_v26 }
 0x40c   : > { %v2450_v0 = vsel %vm1718_vm1, %v2449_v48, %v2448_v20  ;;  %v7504_v20 = vld [vmem:[#allocation27_spill] sm:$0xff] }
 0x40d   : > { %v2452_v35 = vsel %vm1722_vm2, %v2451_v30, %v2450_v0 }
 0x40e   : > { %v2466_v60 = vsel %vm1841_vm9, %v2452_v35, %v2465_v22  ;;  %v7506_v35 = vld [vmem:[#allocation31_spill] sm:$0xff] }
 0x40f   : > { %v2472_v42 = vsel %vm1852_vm10, %v2466_v60, 0.0  ;;  %v7507_v60 = vld [vmem:[#allocation30_spill] sm:$0xff] }
 0x410   : > { %2473 = vadd.xlane.f32.xlu1 %v2472_v42 }
 0x434   : > { %v2471_v3 = vpop.xlane.xlu2 %2470 }
 0x435   : > { %4574 = vrcp.f32 %v2471_v3 }
 0x43b   : > { %v4575_v61 = vpop.eup %4574 }
 0x43c   : > { %v2477_v45 = vmul.f32 %v4575_v61, %v2471_v3  ;;  %v7508_v3 = vld [vmem:[#allocation29_spill] sm:$0xff] }
 0x43e   : > { %v2479_v41 = vsub.f32 2.0, %v2477_v45 }
 0x440   : > { %v2481_v12 = vmul.f32 %v4575_v61, %v2479_v41  ;;  %v7509_v41 = vld [vmem:[#allocation48_spill] sm:$0xff] }
 0x442   : > { %v2486_v4 = vperm.slane %v2481_v12, 1  ;;  %v2485_v38 = vperm.slane %v2481_v12, 0  ;;  %v2487_v31 = vperm.slane %v2481_v12, 2  ;;  %v2488_v62 = vperm.slane %v2481_v12, 3 }
 0x443   : > { %v2489_v9 = vperm.slane %v2481_v12, 4  ;;  %v2490_v28 = vperm.slane %v2481_v12, 5 }
 0x444   : > { %v2522_v1 = vmul.f32 %v5848_v27, %v2486_v4  ;;  %v2517_v54 = vmul.f32 %v5823_v29, %v2485_v38  ;;  %v2523_v40 = vmul.f32 %v5845_v13, %v2486_v4  ;;  %v2527_v53 = vmul.f32 %v5874_v21, %v2487_v31 }
 0x445   : > { %v2518_v52 = vmul.f32 %v5826_v15, %v2485_v38  ;;  %v2528_v23 = vmul.f32 %v5871_v44, %v2487_v31  ;;  %v2530_v27 = vmul.f32 %v5886_v49, %v2488_v62  ;;  %v2519_v29 = vmul.f32 %v5820_v43, %v2485_v38 }
 0x446   : > { %2736 = vperm.xlu2 %4314, %v2522_v1   ;;  %2711 = vperm.xlu0 %4315, %v2517_v54   ;;  %v2531_v13 = vmul.f32 %v5884_v47, %v2488_v62  ;;  %v2533_v21 = vmul.f32 %v5899_v56, %v2489_v9  ;;  %v2520_v15 = vmul.f32 %v5835_v32, %v2485_v38  ;;  %v7511_v1 = vld [vmem:[#allocation45_spill] sm:$0xff] }
 0x447   : > { %2741 = vperm.xlu1 %4313, %v2523_v40   ;;  %v2534_v44 = vmul.f32 %v5896_v39, %v2489_v9  ;;  %v2536_v49 = vmul.f32 %v5914_v8, %v2489_v9  ;;  %v2521_v43 = vmul.f32 %v5833_v11, %v2486_v4  ;;  %v2537_v47 = vmul.f32 %v5911_v55, %v2490_v28 }
 0x448   : > { %v2539_v14 = vmul.f32 %v5927_v24, %v2490_v28  ;;  %v2524_v56 = vmul.f32 %v5861_v19, %v2486_v4  ;;  %v2540_v32 = vmul.f32 %v5924_v58, %v2490_v28  ;;  %v2491_v39 = vperm.slane %v2481_v12, 6  ;;  %v7510_v4 = vld [vmem:[#allocation28_spill] sm:$0xff] }
 0x449   : > { %v2525_v8 = vmul.f32 %v5858_v51, %v2487_v31  ;;  %v2492_v55 = vperm.slane %v2481_v12, 7  ;;  %v2526_v19 = vmul.f32 %v5838_v2, %v2487_v31  ;;  %v7501_v51 = vld [vmem:[#allocation24_spill] sm:$0xff]  ;;  %v2532_v16 = vmul.f32 %v7502_v7, %v2488_v62  ;;  %v7512_v31 = vld [vmem:[#allocation33_spill] sm:$0xff] }
 0x44a   : > { %v2542_v33 = vmul.f32 %v5939_v50, %v2491_v39  ;;  %v2543_v11 = vmul.f32 %v5937_v37, %v2491_v39  ;;  %v7500_v50 = vld [vmem:[#allocation21_spill] sm:$0xff]  ;;  %v2529_v57 = vmul.f32 %v7501_v51, %v2488_v62  ;;  %v2535_v0 = vmul.f32 %v7505_v46, %v2489_v9  ;;  %v7514_v62 = vld [vmem:[#allocation46_spill] sm:$0xff]  ;;  %v7515_v9 = vld [vmem:[#allocation35_spill] sm:$0xff] }
 0x44b   : > { %v2545_v24 = vmul.f32 %v5954_v18, %v2492_v55  ;;  %v2546_v58 = vmul.f32 %v5949_v5, %v2492_v55  ;;  %v2548_v6 = vmul.f32 %v7500_v50, %v2492_v55  ;;  %v2538_v61 = vmul.f32 %v7508_v3, %v2490_v28  ;;  %v7517_v28 = vld [vmem:[#allocation18_spill] sm:$0xff]  ;;  %v7522_v46 = vld [vmem:[#allocation40_spill] sm:$0xff] }
 0x44c   : > { %v2541_v54 = vmul.f32 %v7511_v1, %v2491_v39 }
 0x44e   : > { %2761 = vperm.xlu2 %4314, %v2527_v53   ;;  %2716 = vperm.xlu0 %4315, %v2518_v52   ;;  %v7513_v52 = vld [vmem:[#allocation32_spill] sm:$0xff] }
 0x44f   : > { %2766 = vperm.xlu1 %4313, %v2528_v23  }
 0x456   : > { %2776 = vperm.xlu2 %4314, %v2530_v27   ;;  %2721 = vperm.xlu0 %4315, %v2519_v29   ;;  %v2544_v27 = vmul.f32 %v7514_v62, %v2491_v39  ;;  %v7518_v39 = vld [vmem:[#allocation38_spill] sm:$0xff] }
 0x457   : > { %2781 = vperm.xlu1 %4313, %v2531_v13  }
 0x45e   : > { %2791 = vperm.xlu2 %4314, %v2533_v21   ;;  %2726 = vperm.xlu0 %4315, %v2520_v15   ;;  %v7516_v15 = vld [vmem:[#allocation34_spill] sm:$0xff] }
 0x45f   : > { %2796 = vperm.xlu1 %4313, %v2534_v44  }
 0x466   : > { %2806 = vperm.xlu2 %4314, %v2536_v49   ;;  %2731 = vperm.xlu0 %4315, %v2521_v43   ;;  %v2547_v49 = vmul.f32 %v7517_v28, %v2492_v55 }
 0x467   : > { %2811 = vperm.xlu1 %4313, %v2537_v47  }
 0x46e   : > { %2821 = vperm.xlu2 %4314, %v2539_v14   ;;  %2746 = vperm.xlu0 %4315, %v2524_v56   ;;  %v350_v56 = vld [vmem:[%s4915_s20] sm:$0xff] }
 0x46f   : > { %2826 = vperm.xlu1 %4313, %v2540_v32   ;;  %v351_v32 = vld [vmem:[%s4915_s20 + $0x8] sm:$0xff]  ;;  %v2581_v55 = vunpack.c.l.bf16 %v350_v56  ;;  %v2582_v50 = vunpack.c.h.bf16 %v350_v56 }
 0x476   : > { %2836 = vperm.xlu2 %4314, %v2542_v33   ;;  %2751 = vperm.xlu0 %4315, %v2525_v8   ;;  %v7519_v8 = vld [vmem:[#allocation36_spill] sm:$0xff] }
 0x477   : > { %2841 = vperm.xlu1 %4313, %v2543_v11  }
 0x47e   : > { %2851 = vperm.xlu2 %4314, %v2545_v24   ;;  %2756 = vperm.xlu0 %4315, %v2526_v19   ;;  %v7520_v24 = vld [vmem:[#allocation22_spill] sm:$0xff] }
 0x47f   : > { %2856 = vperm.xlu1 %4313, %v2546_v58   ;;  %v2583_v58 = vunpack.c.l.bf16 %v351_v32 }
 0x483   : > { %v2474_v36 = vpop.xlane.xlu1 %2473 }
 0x484   : > { %4576 = vrcp.f32 %v2474_v36 }
 0x486   : > { %2866 = vperm.xlu2 %4314, %v2548_v6   ;;  %2771 = vperm.xlu0 %4315, %v2529_v57   ;;  %v2584_v6 = vunpack.c.h.bf16 %v351_v32 }
 0x48a   : > { %v4577_v37 = vpop.eup %4576 }
 0x48b   : > { %v2478_v10 = vmul.f32 %v4577_v37, %v2474_v36 }
 0x48d   : > { %v2480_v18 = vsub.f32 2.0, %v2478_v10 }
 0x48e   : > { %2786 = vperm.xlu0 %4315, %v2532_v16  }
 0x48f   : > { %v6315_v2 = vmul.f32 %v4577_v37, %v2480_v18  ;;  %v7521_v18 = vld [vmem:[#allocation37_spill] sm:$0xff] }
 0x491   : > { %v2493_v5 = vperm.slane %v6315_v2, 0  ;;  %v6322_v25 = vperm.slane %v6315_v2, 1  ;;  %v6329_v45 = vperm.slane %v6315_v2, 2  ;;  %v6344_v29 = vperm.slane %v6315_v2, 3 }
 0x492   : > { %v6354_v43 = vperm.slane %v6315_v2, 4  ;;  %v6368_v51 = vperm.slane %v6315_v2, 5  ;;  %v6399_v32 = vperm.slane %v6315_v2, 7 }
 0x493   : > { %v2551_v48 = vmul.f32 %v7503_v59, %v2493_v5  ;;  %v2549_v30 = vmul.f32 %v7504_v20, %v2493_v5  ;;  %v2554_v22 = vmul.f32 %v7506_v35, %v6322_v25  ;;  %v2552_v42 = vmul.f32 %v7507_v60, %v2493_v5  ;;  %v352_v59 = vld [vmem:[%s4915_s20 + $0x10] sm:$0xff]  ;;  %v7523_v60 = vld [vmem:[#allocation17_spill] sm:$0xff] }
 0x494   : > { %v2557_v12 = vmul.f32 %v7509_v41, %v6329_v45  ;;  %v2555_v38 = vmul.f32 %v7510_v4, %v6322_v25  ;;  %v2560_v53 = vmul.f32 %v7512_v31, %v6329_v45  ;;  %v2558_v23 = vmul.f32 %v7513_v52, %v6329_v45  ;;  %v353_v31 = vld [vmem:[%s4915_s20 + $0x18] sm:$0xff] }
 0x495   : > { %2881 = vperm.xlu2 %4314, %v2551_v48   ;;  %2871 = vperm.xlu1 %4313, %v2549_v30   ;;  %v2563_v21 = vmul.f32 %v7515_v9, %v6344_v29  ;;  %v2561_v44 = vmul.f32 %v7516_v15, %v6344_v29  ;;  %v2566_v33 = vmul.f32 %v7518_v39, %v6354_v43  ;;  %v2586_v41 = vunpack.c.h.bf16 %v352_v59  ;;  %v7526_v15 = vld [vmem:[#allocation19_spill] sm:$0xff] }
 0x496   : > { %2801 = vperm.xlu0 %4315, %v2535_v0   ;;  %v2564_v11 = vmul.f32 %v7519_v8, %v6344_v29  ;;  %v2550_v19 = vmul.f32 %v7520_v24, %v2493_v5  ;;  %v2567_v5 = vmul.f32 %v7521_v18, %v6354_v43  ;;  %v2569_v0 = vmul.f32 %v7522_v46, %v6368_v51  ;;  %v356_v18 = vld [vmem:[%s4915_s20 + $0x30] sm:$0xff] }
 0x497   : > { %v2588_v56 = vunpack.c.h.bf16 %v353_v31 }
 0x49d   : > { %2896 = vperm.xlu2 %4314, %v2554_v22   ;;  %2886 = vperm.xlu1 %4313, %v2552_v42   ;;  %v2553_v42 = vmul.f32 %v7523_v60, %v6322_v25  ;;  %v357_v60 = vld [vmem:[%s4915_s20 + $0x38] sm:$0xff] }
 0x49e   : > { %2816 = vperm.xlu0 %4315, %v2538_v61   ;;  %v2585_v61 = vunpack.c.l.bf16 %v352_v59 }
 0x4a0   : > { %v6336_v40 = vpop.permute.xlu2 %2736 }
 0x4a5   : > { %2911 = vperm.xlu2 %4314, %v2557_v12   ;;  %2901 = vperm.xlu1 %4313, %v2555_v38   ;;  %v6383_v12 = vperm.slane %v6315_v2, 6  ;;  %v7530_v2 = vld [vmem:[#allocation23_spill] sm:$0xff] }
 0x4a6   : > { %2831 = vperm.xlu0 %4315, %v2541_v54  }
 0x4a8   : > { %v6346_v13 = vpop.permute.xlu2 %2761 }
 0x4ad   : > { %2926 = vperm.xlu2 %4314, %v2560_v53   ;;  %2916 = vperm.xlu1 %4313, %v2558_v23   ;;  %v7524_v23 = vld [vmem:[#allocation50_spill] sm:$0xff] }
 0x4ae   : > { %2846 = vperm.xlu0 %4315, %v2544_v27   ;;  %v2574_v62 = vmul.f32 %v7524_v23, %v6383_v12  ;;  %v7525_v27 = vld [vmem:[#allocation43_spill] sm:$0xff] }
 0x4af   : > { %v2570_v9 = vmul.f32 %v7525_v27, %v6368_v51 }
 0x4b0   : > { %v6356_v14 = vpop.permute.xlu2 %2776 }
 0x4b5   : > { %2941 = vperm.xlu2 %4314, %v2563_v21   ;;  %2931 = vperm.xlu1 %4313, %v2561_v44   ;;  %v2556_v44 = vmul.f32 %v7526_v15, %v6322_v25  ;;  %v355_v25 = vld [vmem:[%s4915_s20 + $0x28] sm:$0xff]  ;;  %v2596_v15 = vunpack.c.h.bf16 %v357_v60 }
 0x4b6   : > { %2861 = vperm.xlu0 %4315, %v2547_v49   ;;  %v2587_v49 = vunpack.c.l.bf16 %v353_v31 }
 0x4b8   : > { %v2712_v47 = vpop.permute.xlu0 %2711  ;;  %v6377_v35 = vpop.permute.xlu2 %2791 }
 0x4b9   : > { %v6365_v36 = vpop.permute.xlu1 %2741  ;;  %v3029_v37 = vmul.f32 %v2712_v47, %v2581_v55  ;;  %v3030_v7 = vmul.f32 %v2712_v47, %v2582_v50  ;;  %v3513_v48 = vperm.slane %v2712_v47, %v5329_v17  ;;  %v7528_v55 = vld [vmem:[#allocation56_spill] sm:$0xff]  ;;  %v7529_v50 = vld [vmem:[#allocation41_spill] sm:$0xff] }
 0x4bd   : > { %2956 = vperm.xlu2 %4314, %v2566_v33   ;;  %2946 = vperm.xlu1 %4313, %v2564_v11  }
 0x4be   : > { %2876 = vperm.xlu0 %4315, %v2550_v19  }
 0x4c0   : > { %v2717_v57 = vpop.permute.xlu0 %2716  ;;  %v6396_v47 = vpop.permute.xlu2 %2806 }
 0x4c1   : > { %v3031_v10 = vmul.f32 %v2717_v57, %v2583_v58  ;;  %v3032_v16 = vmul.f32 %v2717_v57, %v2584_v6  ;;  %v3514_v30 = vperm.slane %v2717_v57, %v5332_v63  ;;  %v6385_v4 = vpop.permute.xlu1 %2766  ;;  %7527 = vst [vmem:[#allocation21_spill] sm:$0xff] %v6396_v47  ;;  %v2578_v58 = vmul.f32 %v7528_v55, %v6399_v32 }
 0x4c2   : > { %v2571_v6 = vmul.f32 %v7529_v50, %v6368_v51 }
 0x4c3   : > { %v3157_v20 = vadd.f32 %v3031_v10, %v3029_v37  ;;  %v3166_v22 = vadd.f32 %v3032_v16, %v3030_v7  ;;  %v3515_v3 = vsel %vm1714_vm0, %v3514_v30, %v3513_v48  ;;  %v2559_v37 = vmul.f32 %v7530_v2, %v6329_v45  ;;  %v354_v10 = vld [vmem:[%s4915_s20 + $0x20] sm:$0xff]  ;;  %v7532_v45 = vld [vmem:[#allocation55_spill] sm:$0xff] }
 0x4c4   : > { %v2591_v16 = vunpack.c.l.bf16 %v355_v25  ;;  %v2590_v59 = vunpack.c.h.bf16 %v354_v10  ;;  %v2592_v48 = vunpack.c.h.bf16 %v355_v25 }
 0x4c5   : > { %2971 = vperm.xlu2 %4314, %v2569_v0   ;;  %2961 = vperm.xlu1 %4313, %v2567_v5   ;;  %v2589_v5 = vunpack.c.l.bf16 %v354_v10  ;;  %v2593_v0 = vunpack.c.l.bf16 %v356_v18 }
 0x4c6   : > { %2891 = vperm.xlu0 %4315, %v2553_v42   ;;  %v3039_v46 = vmul.f32 %v6336_v40, %v2591_v16 }
 0x4c8   : > { %v2722_v38 = vpop.permute.xlu0 %2721 }
 0x4c9   : > { %v3033_v1 = vmul.f32 %v2722_v38, %v2585_v61  ;;  %v3034_v54 = vmul.f32 %v2722_v38, %v2586_v41  ;;  %v3516_v52 = vperm.slane %v2722_v38, %v5343_v26  ;;  %v6401_v8 = vpop.permute.xlu1 %2781  ;;  %v7533_v41 = vld [vmem:[#allocation54_spill] sm:$0xff] }
 0x4ca   : > { %v2575_v38 = vmul.f32 %v7533_v41, %v6383_v12 }
 0x4cb   : > { %v3158_v53 = vadd.f32 %v3157_v20, %v3033_v1  ;;  %v3167_v21 = vadd.f32 %v3166_v22, %v3034_v54  ;;  %v3517_v28 = vsel %vm1718_vm1, %v3516_v52, %v3515_v3  ;;  %v6414_v20 = vpop.permute.xlu2 %2821  ;;  %v2579_v22 = vmul.f32 %v7532_v45, %v6399_v32  ;;  %v7534_v52 = vld [vmem:[#allocation47_spill] sm:$0xff] }
 0x4cc   : > { %7531 = vst [vmem:[#allocation24_spill] sm:$0xff] %v6414_v20  ;;  %v3040_v1 = vmul.f32 %v6336_v40, %v2592_v48  ;;  %v2594_v54 = vunpack.c.h.bf16 %v356_v18  ;;  %v2562_v23 = vmul.f32 %v7534_v52, %v6344_v29  ;;  %v7537_v18 = vld [vmem:[#allocation49_spill] sm:$0xff] }
 0x4cd   : > { %2996 = vperm.xlu2 %4314, %v2574_v62   ;;  %2976 = vperm.xlu1 %4313, %v2570_v9   ;;  %v2595_v9 = vunpack.c.l.bf16 %v357_v60 }
 0x4ce   : > { %2906 = vperm.xlu0 %4315, %v2556_v44   ;;  %v3521_v44 = vperm.slane %v6336_v40, %v5332_v63 }
 0x4d0   : > { %v2727_v39 = vpop.permute.xlu0 %2726 }
 0x4d1   : > { %v3035_v33 = vmul.f32 %v2727_v39, %v2587_v49  ;;  %v3036_v11 = vmul.f32 %v2727_v39, %v2588_v56  ;;  %v3518_v19 = vperm.slane %v2727_v39, %v5378_v34  ;;  %v6423_v31 = vpop.permute.xlu1 %2796  ;;  %v3042_v56 = vmul.f32 %v6365_v36, %v2594_v54 }
 0x4d3   : > { %v3159_v24 = vadd.f32 %v3158_v53, %v3035_v33  ;;  %v3168_v57 = vadd.f32 %v3167_v21, %v3036_v11  ;;  %v3519_v7 = vsel %vm1722_vm2, %v3518_v19, %v3517_v28  ;;  %v3041_v28 = vmul.f32 %v6365_v36, %v2593_v0  ;;  %v6435_v55 = vpop.permute.xlu2 %2836 }
 0x4d4   : > { %v3523_v19 = vperm.slane %v6365_v36, %v5343_v26  ;;  %7535 = vst [vmem:[#allocation20_spill] sm:$0xff] %v6435_v55 }
 0x4d5   : > { %3016 = vperm.xlu2 %4314, %v2578_v58   ;;  %2981 = vperm.xlu1 %4313, %v2571_v6   ;;  %v3160_v42 = vrot.slane %v3159_v24, 4  ;;  %v3169_v53 = vrot.slane %v3168_v57, 4 }
 0x4d6   : > { %2921 = vperm.xlu0 %4315, %v2559_v37  }
 0x4d7   : > { %v3161_v49 = vadd.f32 %v3160_v42, %v3159_v24  ;;  %v3170_v39 = vadd.f32 %v3169_v53, %v3168_v57  ;;  %v7536_v24 = vld [vmem:[#allocation53_spill] sm:$0xff]  ;;  %v7538_v53 = vld [vmem:[#allocation39_spill] sm:$0xff] }
 0x4d8   : > { %v2732_v30 = vpop.permute.xlu0 %2731  ;;  %v2576_v37 = vmul.f32 %v7536_v24, %v6383_v12  ;;  %v2568_v52 = vmul.f32 %v7538_v53, %v6354_v43 }
 0x4d9   : > { %v3037_v3 = vmul.f32 %v2732_v30, %v2589_v5  ;;  %v3038_v61 = vmul.f32 %v2732_v30, %v2590_v59  ;;  %v3520_v27 = vperm.slane %v2732_v30, %v5329_v17  ;;  %v3162_v6 = vrot.slane %v3161_v49, 2  ;;  %v6444_v48 = vpop.permute.xlu1 %2811 }
 0x4da   : > { %v3171_v57 = vrot.slane %v3170_v39, 2  ;;  %v2565_v5 = vmul.f32 %v7537_v18, %v6354_v43  ;;  %v6476_v18 = vld [vmem:[%s4915_s20 + $0x70] sm:$0xff] }
 0x4db   : > { %v3175_v62 = vadd.f32 %v3039_v46, %v3037_v3  ;;  %v3184_v21 = vadd.f32 %v3040_v1, %v3038_v61  ;;  %v3522_v29 = vsel %vm1714_vm0, %v3521_v44, %v3520_v27  ;;  %v3163_v0 = vadd.f32 %v3162_v6, %v3161_v49  ;;  %v6451_v54 = vpop.permute.xlu2 %2851  ;;  %v359_v44 = vld [vmem:[%s4915_s20 + $0x48] sm:$0xff]  ;;  %v369_v49 = vld [vmem:[%s4915_s20 + $0x98] sm:$0xff]  ;;  %v6470_v6 = vld [vmem:[%s4915_s20 + $0xb0] sm:$0xff] }
 0x4dc   : > { %v3524_v10 = vsel %vm1718_vm1, %v3523_v19, %v3522_v29 }
 0x4dd   : > { %3021 = vperm.xlu2 %4314, %v2579_v22   ;;  %3001 = vperm.xlu1 %4313, %v2575_v38   ;;  %v3176_v11 = vadd.f32 %v3175_v62, %v3041_v28  ;;  %v3185_v58 = vadd.f32 %v3184_v21, %v3042_v56  ;;  %v3172_v22 = vadd.f32 %v3171_v57, %v3170_v39  ;;  %v3164_v41 = vrot.slane %v3163_v0, 1  ;;  %v360_v62 = vld [vmem:[%s4915_s20 + $0x50] sm:$0xff]  ;;  %v366_v28 = vld [vmem:[%s4915_s20 + $0x80] sm:$0xff] }
 0x4de   : > { %2936 = vperm.xlu0 %4315, %v2562_v23   ;;  %v2601_v43 = vunpack.c.l.bf16 %v360_v62  ;;  %v2602_v19 = vunpack.c.h.bf16 %v360_v62  ;;  %v2614_v57 = vunpack.c.h.bf16 %v366_v28  ;;  %v367_v62 = vld [vmem:[%s4915_s20 + $0x88] sm:$0xff] }
 0x4df   : > { %v3173_v1 = vrot.slane %v3172_v22, 1  ;;  %v3165_v21 = vadd.f32 %v3164_v41, %v3163_v0 }
 0x4e0   : > { %v2747_v33 = vpop.permute.xlu0 %2746  ;;  %v3050_v41 = vmul.f32 %v6346_v13, %v2602_v19 }
 0x4e1   : > { %v3043_v25 = vmul.f32 %v2747_v33, %v2595_v9  ;;  %v3044_v50 = vmul.f32 %v2747_v33, %v2596_v15  ;;  %v3525_v2 = vperm.slane %v2747_v33, %v5378_v34  ;;  %v363_v9 = vld [vmem:[%s4915_s20 + $0x68] sm:$0xff]  ;;  %v3174_v56 = vadd.f32 %v3173_v1, %v3172_v22  ;;  %v6460_v39 = vpop.permute.xlu1 %2826 }
 0x4e2   : > { %v2608_v24 = vunpack.c.h.bf16 %v363_v9 }
 0x4e3   : > { %v3177_v40 = vadd.f32 %v3176_v11, %v3043_v25  ;;  %v3186_v16 = vadd.f32 %v3185_v58, %v3044_v50  ;;  %v3526_v36 = vsel %vm1722_vm2, %v3525_v2, %v3524_v10  ;;  %v358_v25 = vld [vmem:[%s4915_s20 + $0x40] sm:$0xff]  ;;  %v2607_v58 = vunpack.c.l.bf16 %v363_v9  ;;  %v361_v50 = vld [vmem:[%s4915_s20 + $0x58] sm:$0xff] }
 0x4e4   : > { %v6447_v46 = vsel %vm1829_vm3, %v3526_v36, %v3519_v7  ;;  %v2599_v2 = vunpack.c.l.bf16 %v359_v44  ;;  %v2619_v10 = vunpack.c.l.bf16 %v369_v49  ;;  %v2600_v36 = vunpack.c.h.bf16 %v359_v44  ;;  %v7543_v44 = vld [vmem:[#allocation51_spill] sm:$0xff] }
 0x4e5   : > { %v3178_v59 = vrot.slane %v3177_v40, 4  ;;  %3006 = vperm.xlu1 %4313, %v2576_v37   ;;  %v3187_v30 = vrot.slane %v3186_v16, 4  ;;  %v2613_v37 = vunpack.c.l.bf16 %v366_v28  ;;  %v2604_v22 = vunpack.c.h.bf16 %v361_v50 }
 0x4e6   : > { %2951 = vperm.xlu0 %4315, %v2565_v5   ;;  %v6479_v5 = vld [vmem:[%s4915_s20 + $0xc8] sm:$0xff]  ;;  %v2598_v1 = vunpack.c.h.bf16 %v358_v25  ;;  %v2577_v28 = vmul.f32 %v7543_v44, %v6399_v32 }
 0x4e7   : > { %v3179_v45 = vadd.f32 %v3178_v59, %v3177_v40  ;;  %v3188_v60 = vadd.f32 %v3187_v30, %v3186_v16  ;;  %v2620_v16 = vunpack.c.h.bf16 %v369_v49  ;;  %v2597_v59 = vunpack.c.l.bf16 %v358_v25  ;;  %v7541_v30 = vld [vmem:[#allocation44_spill] sm:$0xff] }
 0x4e8   : > { %v6449_v42 = vpop.permute.xlu0 %2751  ;;  %v2573_v0 = vmul.f32 %v7541_v30, %v6383_v12  ;;  %v2609_v12 = vunpack.c.l.bf16 %v6476_v18  ;;  %v6504_v49 = vmul.f32 %v6356_v14, %v2607_v58  ;;  %v7545_v25 = vld [vmem:[#allocation52_spill] sm:$0xff]  ;;  %v6528_v30 = vld [vmem:[%s4915_s20 + $0xe0] sm:$0xff] }
 0x4e9   : > { %v3180_v3 = vrot.slane %v3179_v45, 2  ;;  %v3189_v61 = vrot.slane %v3188_v60, 2  ;;  %v3045_v9 = vmul.f32 %v6449_v42, %v2597_v59  ;;  %v6515_v19 = vmul.f32 %v7545_v25, %v6399_v32 }
 0x4ea   : > { %v3046_v58 = vmul.f32 %v6449_v42, %v2598_v1  ;;  %v3062_v59 = vmul.f32 %v6377_v35, %v2614_v57  ;;  %v3541_v32 = vperm.slane %v6377_v35, %v5329_v17  ;;  %v6534_v44 = vmul.f32 %v6396_v47, %v2620_v16 }
 0x4eb   : > { %v3181_v38 = vadd.f32 %v3180_v3, %v3179_v45  ;;  %v3190_v7 = vadd.f32 %v3189_v61, %v3188_v60  ;;  %v2603_v45 = vunpack.c.l.bf16 %v361_v50  ;;  %v2625_v60 = vunpack.c.l.bf16 %v6470_v6 }
 0x4ec   : > { %v2626_v3 = vunpack.c.h.bf16 %v6470_v6  ;;  %v3049_v61 = vmul.f32 %v6346_v13, %v2601_v43  ;;  %v2615_v6 = vunpack.c.l.bf16 %v367_v62  ;;  %v2637_v25 = vunpack.c.l.bf16 %v6528_v30 }
 0x4ed   : > { %v3182_v23 = vrot.slane %v3181_v38, 1  ;;  %v3191_v27 = vrot.slane %v3190_v7, 1  ;;  %v2638_v1 = vunpack.c.h.bf16 %v6528_v30 }
 0x4ee   : > { %2966 = vperm.xlu0 %4315, %v2568_v52   ;;  %v2610_v52 = vunpack.c.h.bf16 %v6476_v18  ;;  %v362_v18 = vld [vmem:[%s4915_s20 + $0x60] sm:$0xff]  ;;  %v3063_v16 = vmul.f32 %v6423_v31, %v2615_v6 }
 0x4ef   : > { %v3183_v15 = vadd.f32 %v3182_v23, %v3181_v38  ;;  %v3192_v33 = vadd.f32 %v3191_v27, %v3190_v7  ;;  %v6487_v38 = vpop.permute.xlu2 %2866  ;;  %v2632_v27 = vunpack.c.h.bf16 %v6479_v5 }
 0x4f0   : > { %v6462_v29 = vpop.permute.xlu0 %2756  ;;  %7542 = vst [vmem:[#allocation26_spill] sm:$0xff] %v6487_v38 }
 0x4f1   : > { %v6465_v11 = vsel %vm1829_vm3, %v3183_v15, %v3165_v21  ;;  %v6473_v40 = vsel %vm1829_vm3, %v3192_v33, %v3174_v56  ;;  %v3047_v7 = vmul.f32 %v6462_v29, %v2599_v2  ;;  %v3048_v21 = vmul.f32 %v6462_v29, %v2600_v36  ;;  %v7544_v33 = vld [vmem:[#allocation42_spill] sm:$0xff]  ;;  %v6519_v2 = vpop.permute.xlu1 %2841 }
 0x4f2   : > { %7539 = vst [vmem:[#allocation25_spill] sm:$0xff] %v6465_v11  ;;  %v6507_v56 = vmul.f32 %v6356_v14, %v2608_v24  ;;  %v6511_v43 = vmul.f32 %v7544_v33, %v6368_v51  ;;  %v3061_v51 = vmul.f32 %v6377_v35, %v2613_v37  ;;  %v2616_v36 = vunpack.c.h.bf16 %v367_v62  ;;  %v6542_v37 = vld [vmem:[%s4915_s20 + $0xf8] sm:$0xff] }
 0x4f3   : > { %7540 = vst [vmem:[#allocation27_spill] sm:$0xff] %v6473_v40  ;;  %v3193_v24 = vadd.f32 %v3047_v7, %v3045_v9  ;;  %v6539_v7 = vld [vmem:[%s4915_s20 + $0xa0] sm:$0xff]  ;;  %v3202_v57 = vadd.f32 %v3048_v21, %v3046_v58  ;;  %v3051_v9 = vmul.f32 %v6385_v4, %v2603_v45  ;;  %v3052_v35 = vmul.f32 %v6385_v4, %v2604_v22  ;;  %v6547_v62 = vld [vmem:[%s4915_s20 + $0xb8] sm:$0xff] }
 0x4f4   : > { %v2605_v33 = vunpack.c.l.bf16 %v362_v18  ;;  %v2621_v45 = vunpack.c.l.bf16 %v6539_v7  ;;  %v2622_v22 = vunpack.c.h.bf16 %v6539_v7  ;;  %v2643_v21 = vunpack.c.l.bf16 %v6542_v37 }
 0x4f5   : > { %v3194_v53 = vadd.f32 %v3193_v24, %v3049_v61  ;;  %v3203_v23 = vadd.f32 %v3202_v57, %v3050_v41  ;;  %v3057_v58 = vmul.f32 %v6401_v8, %v2609_v12  ;;  %v3064_v41 = vmul.f32 %v6423_v31, %v2616_v36  ;;  %v6578_v57 = vld [vmem:[%s4915_s20 + $0xd0] sm:$0xff] }
 0x4f6   : > { %2991 = vperm.xlu0 %4315, %v2573_v0   ;;  %v6531_v0 = vmul.f32 %v6396_v47, %v2619_v10  ;;  %v2606_v10 = vunpack.c.h.bf16 %v362_v18  ;;  %v6560_v18 = vmul.f32 %v6414_v20, %v2625_v60  ;;  %v365_v47 = vld [vmem:[%s4915_s20 + $0x78] sm:$0xff]  ;;  %v3542_v40 = vperm.slane %v6423_v31, %v5332_v63 }
 0x4f7   : > { %v6553_v50 = vpop.permute.xlu2 %2881  ;;  %v3195_v30 = vadd.f32 %v3194_v53, %v3051_v9  ;;  %v2611_v24 = vunpack.c.l.bf16 %v365_v47  ;;  %v7546_v12 = vunpack.c.l.bf16 %v6479_v5  ;;  %v6591_v36 = vmul.f32 %v6435_v55, %v2632_v27  ;;  %v379_v9 = vld [vmem:[%s4915_s20 + $0xe8] sm:$0xff] }
 0x4f8   : > { %v6499_v15 = vpop.permute.xlu0 %2771  ;;  %v6606_v11 = vadd.f32 %v3064_v41, %v3062_v59  ;;  %v2634_v27 = vunpack.c.h.bf16 %v6578_v57  ;;  %v2640_v59 = vunpack.c.h.bf16 %v379_v9 }
 0x4f9   : > { %v3053_v7 = vmul.f32 %v6499_v15, %v2605_v33  ;;  %v3054_v60 = vmul.f32 %v6499_v15, %v2606_v10  ;;  %v6588_v6 = vmul.f32 %v6435_v55, %v7546_v12  ;;  %7547 = vst [vmem:[#allocation31_spill] sm:$0xff] %v6591_v36  ;;  %v6594_v10 = vld [vmem:[%s4915_s20 + $0x110] sm:$0xff]  ;;  %v6596_v53 = vpop.permute.xlu1 %2856  ;;  %v6604_v12 = vadd.f32 %v3063_v16, %v3061_v51 }
 0x4fa   : > { %v3196_v36 = vrot.slane %v3195_v30, 4  ;;  %v2639_v51 = vunpack.c.l.bf16 %v379_v9  ;;  %v3528_v9 = vperm.slane %v6462_v29, %v5332_v63  ;;  %v7549_v29 = vunpack.c.h.bf16 %v6542_v37 }
 0x4fb   : > { %v3211_v33 = vadd.f32 %v6504_v49, %v3053_v7  ;;  %v3220_v5 = vadd.f32 %v6507_v56, %v3054_v60  ;;  %v2650_v56 = vunpack.c.h.bf16 %v6594_v10 }
 0x4fe   : > { %3011 = vperm.xlu0 %4315, %v2577_v28   ;;  %v6568_v28 = vmul.f32 %v6414_v20, %v2626_v3  ;;  %v3058_v3 = vmul.f32 %v6401_v8, %v2610_v52  ;;  %v2612_v20 = vunpack.c.h.bf16 %v365_v47  ;;  %v3204_v52 = vadd.f32 %v3203_v23, %v3052_v35 }
 0x4ff   : > { %v2633_v47 = vunpack.c.l.bf16 %v6578_v57  ;;  %v6611_v23 = vsel %vm1714_vm0, %v3542_v40, %v3541_v32  ;;  %v2649_v35 = vunpack.c.l.bf16 %v6594_v10  ;;  %v6617_v7 = vpop.permute.xlu2 %2896  ;;  %v3086_v40 = vmul.f32 %v6451_v54, %v2638_v1  ;;  %v368_v57 = vld [vmem:[%s4915_s20 + $0x90] sm:$0xff] }
 0x500   : > { %v6565_v61 = vpop.permute.xlu0 %2786  ;;  %v3205_v16 = vrot.slane %v3204_v52, 4  ;;  %7548 = vst [vmem:[#allocation30_spill] sm:$0xff] %v6617_v7  ;;  %v3212_v32 = vadd.f32 %v3211_v33, %v3057_v58  ;;  %v3221_v41 = vadd.f32 %v3220_v5, %v3058_v3  ;;  %v3197_v10 = vadd.f32 %v3196_v36, %v3195_v30  ;;  %v371_v30 = vld [vmem:[%s4915_s20 + $0xa8] sm:$0xff] }
 0x501   : > { %v3059_v31 = vmul.f32 %v6565_v61, %v2611_v24  ;;  %v3060_v49 = vmul.f32 %v6565_v61, %v2612_v20  ;;  %v3069_v24 = vmul.f32 %v6444_v48, %v2621_v45  ;;  %v3070_v7 = vmul.f32 %v6444_v48, %v2622_v22 }
 0x502   : > { %v6633_v58 = vmul.f32 %v6487_v38, %v2643_v21  ;;  %v3527_v3 = vperm.slane %v6449_v42, %v5329_v17  ;;  %v3206_v33 = vadd.f32 %v3205_v16, %v3204_v52  ;;  %v2617_v45 = vunpack.c.l.bf16 %v368_v57 }
 0x503   : > { %v3213_v55 = vadd.f32 %v3212_v32, %v3059_v31  ;;  %v3222_v1 = vadd.f32 %v3221_v41, %v3060_v49  ;;  %v6643_v22 = vmul.f32 %v6487_v38, %v7549_v29  ;;  %v7550_v31 = vunpack.c.l.bf16 %v6547_v62 }
 0x504   : > { %v7551_v42 = vunpack.c.h.bf16 %v6547_v62  ;;  %v6660_v37 = vmul.f32 %v6519_v2, %v2633_v47  ;;  %v3198_v16 = vrot.slane %v3197_v10, 2  ;;  %v3529_v32 = vsel %vm1714_vm0, %v3528_v9, %v3527_v3 }
 0x505   : > { %v6650_v21 = vmul.f32 %v6460_v39, %v7550_v31  ;;  %v3214_v41 = vrot.slane %v3213_v55, 4  ;;  %v3223_v29 = vrot.slane %v3222_v1, 4  ;;  %v2623_v31 = vunpack.c.l.bf16 %v371_v30 }
 0x506   : > { %2986 = vperm.xlu0 %4315, %v6511_v43   ;;  %v3085_v43 = vmul.f32 %v6451_v54, %v2637_v25  ;;  %v6655_v52 = vmul.f32 %v6460_v39, %v7551_v42  ;;  %v2624_v36 = vunpack.c.h.bf16 %v371_v30  ;;  %v6665_v62 = vmul.f32 %v6519_v2, %v2634_v27 }
 0x507   : > { %v6637_v5 = vpop.permute.xlu1 %2871  ;;  %v3207_v42 = vrot.slane %v3206_v33, 2  ;;  %v2618_v25 = vunpack.c.h.bf16 %v368_v57  ;;  %v6673_v9 = vmul.f32 %v6553_v50, %v2649_v35  ;;  %v3087_v3 = vmul.f32 %v6596_v53, %v2639_v51  ;;  %v6686_v38 = vpop.permute.xlu2 %2911 }
 0x508   : > { %v6619_v60 = vpop.permute.xlu0 %2801  ;;  %v3088_v27 = vmul.f32 %v6596_v53, %v2640_v59  ;;  %v3199_v30 = vadd.f32 %v3198_v16, %v3197_v10  ;;  %v7554_v57 = vperm.slane %v6346_v13, %v5343_v26  ;;  %v3534_v47 = vperm.slane %v6499_v15, %v5329_v17  ;;  %v374_v16 = vld [vmem:[%s4915_s20 + $0xc0] sm:$0xff] }
 0x509   : > { %v3065_v20 = vmul.f32 %v6619_v60, %v2617_v45  ;;  %7552 = vst [vmem:[#allocation29_spill] sm:$0xff] %v6673_v9  ;;  %v3215_v35 = vadd.f32 %v3214_v41, %v3213_v55  ;;  %v3224_v9 = vadd.f32 %v3223_v29, %v3222_v1  ;;  %v3563_v51 = vperm.slane %v6596_v53, %v5332_v63 }
 0x50a   : > { %v3531_v45 = vsel %vm1718_vm1, %v7554_v57, %v3529_v32  ;;  %v3208_v59 = vadd.f32 %v3207_v42, %v3206_v33  ;;  %v3066_v13 = vmul.f32 %v6619_v60, %v2618_v25  ;;  %v3572_v15 = vperm.slane %v6553_v50, %v5343_v26 }
 0x50b   : > { %v3230_v10 = vadd.f32 %v6604_v12, %v3065_v20  ;;  %v6697_v32 = vadd.f32 %v3087_v3, %v3085_v43  ;;  %v6699_v41 = vadd.f32 %v3088_v27, %v3086_v40  ;;  %v7555_v53 = vperm.slane %v6385_v4, %v5378_v34 }
 0x50c   : > { %v7556_v25 = vperm.slane %v6356_v14, %v5332_v63  ;;  %v3216_v29 = vrot.slane %v3215_v35, 2  ;;  %v3225_v43 = vrot.slane %v3224_v9, 2  ;;  %v2630_v40 = vunpack.c.h.bf16 %v374_v16 }
 0x50d   : > { %v3533_v33 = vsel %vm1722_vm2, %v7555_v53, %v3531_v45  ;;  %v3209_v42 = vrot.slane %v3208_v59, 1  ;;  %v3231_v14 = vadd.f32 %v3230_v10, %v6531_v0  ;;  %v3539_v27 = vperm.slane %v6565_v61, %v5378_v34 }
 0x50e   : > { %3026 = vperm.xlu0 %4315, %v6515_v19   ;;  %v6676_v19 = vmul.f32 %v6553_v50, %v2650_v56  ;;  %v3536_v12 = vsel %vm1714_vm0, %v7556_v25, %v3534_v47  ;;  %v3239_v47 = vadd.f32 %v6606_v11, %v3066_v13  ;;  %v3626_v3 = vsel %vm1831_vm4, %v3533_v33, %v6447_v46  ;;  %v6737_v13 = vld [vmem:[%s4915_s20 + $0x118] sm:$0xff]  ;;  %v7559_v25 = vld [vmem:[#allocation31_spill] sm:$0xff] }
 0x50f   : > { %v6709_v20 = vpop.permute.xlu1 %2886  ;;  %v3217_v46 = vadd.f32 %v3216_v29, %v3215_v35  ;;  %v3226_v10 = vadd.f32 %v3225_v43, %v3224_v9  ;;  %v2651_v53 = vunpack.c.l.bf16 %v6737_v13 }
 0x510   : > { %v6668_v49 = vpop.permute.xlu0 %2816  ;;  %7553 = vst [vmem:[#allocation48_spill] sm:$0xff] %v6676_v19 }
 0x511   : > { %v3071_v56 = vmul.f32 %v6668_v49, %v2623_v31  ;;  %v3072_v19 = vmul.f32 %v6668_v49, %v2624_v36  ;;  %v3200_v36 = vrot.slane %v3199_v30, 1  ;;  %v6712_v31 = vld [vmem:[%s4915_s20 + $0x100] sm:$0xff]  ;;  %v3218_v43 = vrot.slane %v3217_v46, 1 }
 0x512   : > { %v2645_v11 = vunpack.c.l.bf16 %v6712_v31 }
 0x513   : > { %v3247_v55 = vadd.f32 %v3071_v56, %v3069_v24  ;;  %v3256_v1 = vadd.f32 %v3072_v19, %v3070_v7  ;;  %v2629_v7 = vunpack.c.l.bf16 %v374_v16  ;;  %v7557_v24 = vperm.slane %v6451_v54, %v5329_v17  ;;  %v377_v16 = vld [vmem:[%s4915_s20 + $0xd8] sm:$0xff] }
 0x514   : > { %v3201_v45 = vadd.f32 %v3200_v36, %v3199_v30  ;;  %v7558_v56 = vperm.slane %v6401_v8, %v5343_v26  ;;  %v6742_v30 = vpop.permute.xlu2 %2926  ;;  %v3240_v8 = vadd.f32 %v3239_v47, %v6534_v44  ;;  %v2636_v29 = vunpack.c.h.bf16 %v377_v16 }
 0x515   : > { %v6718_v4 = vsel %vm1714_vm0, %v3563_v51, %v7557_v24  ;;  %v3248_v57 = vadd.f32 %v3247_v55, %v6560_v18  ;;  %v3257_v54 = vadd.f32 %v3256_v1, %v6568_v28  ;;  %v2646_v51 = vunpack.c.h.bf16 %v6712_v31  ;;  %v7560_v31 = vld [vmem:[#allocation25_spill] sm:$0xff] }
 0x516   : > { %v3538_v0 = vsel %vm1718_vm1, %v7558_v56, %v3536_v12  ;;  %v3210_v28 = vadd.f32 %v3209_v42, %v3208_v59  ;;  %v3232_v55 = vrot.slane %v3231_v14, 4  ;;  %v3544_v1 = vperm.slane %v6619_v60, %v5343_v26 }
 0x517   : > { %v3540_v36 = vsel %vm1722_vm2, %v3539_v27, %v3538_v0  ;;  %v3249_v9 = vadd.f32 %v3248_v57, %v6650_v21  ;;  %v3258_v35 = vadd.f32 %v3257_v54, %v6655_v52  ;;  %v2635_v12 = vunpack.c.l.bf16 %v377_v16  ;;  %v6760_v52 = vpop.permute.xlu1 %2901 }
 0x518   : > { %v6722_v19 = vpop.permute.xlu0 %2831  ;;  %v3227_v44 = vrot.slane %v3226_v10, 1  ;;  %v3478_v60 = vsel %vm1831_vm4, %v3201_v45, %v7560_v31  ;;  %v3233_v21 = vadd.f32 %v3232_v55, %v3231_v14  ;;  %v3241_v42 = vrot.slane %v3240_v8, 4 }
 0x519   : > { %v3077_v61 = vmul.f32 %v6722_v19, %v2629_v7  ;;  %v3078_v18 = vmul.f32 %v6722_v19, %v2630_v40  ;;  %v2652_v7 = vunpack.c.h.bf16 %v6737_v13  ;;  %v7561_v40 = vld [vmem:[#allocation27_spill] sm:$0xff]  ;;  %v3627_v27 = vsel %vm1833_vm5, %v3540_v36, %v3626_v3 }
 0x51a   : > { %v3485_v24 = vsel %vm1831_vm4, %v3210_v28, %v7561_v40  ;;  %v3250_v57 = vrot.slane %v3249_v9, 4  ;;  %v3259_v54 = vrot.slane %v3258_v35, 4  ;;  %v3549_v45 = vperm.slane %v6668_v49, %v5332_v63  ;;  %v7562_v28 = vld [vmem:[#allocation21_spill] sm:$0xff]  ;;  %v7566_v40 = vld [vmem:[#allocation24_spill] sm:$0xff] }
 0x51b   : > { %v3265_v33 = vadd.f32 %v6588_v6, %v3077_v61  ;;  %v3274_v59 = vadd.f32 %v7559_v25, %v3078_v18  ;;  %v3545_v6 = vsel %vm1718_vm1, %v3544_v1, %v6611_v23  ;;  %v3219_v23 = vadd.f32 %v3218_v43, %v3217_v46  ;;  %v380_v1 = vld [vmem:[%s4915_s20 + $0xf0] sm:$0xff] }
 0x51c   : > { %v3228_v18 = vadd.f32 %v3227_v44, %v3226_v10  ;;  %v6769_v16 = vmul.f32 %v6637_v5, %v2645_v11  ;;  %v7563_v3 = vperm.slane %v7562_v28, %v5378_v34  ;;  %v3234_v36 = vrot.slane %v3233_v21, 2 }
 0x51d   : > { %v3266_v56 = vadd.f32 %v3265_v33, %v6660_v37  ;;  %v3275_v14 = vadd.f32 %v3274_v59, %v6665_v62  ;;  %v3242_v49 = vadd.f32 %v3241_v42, %v3240_v8  ;;  %v3251_v37 = vadd.f32 %v3250_v57, %v3249_v9  ;;  %v6788_v8 = vpop.permute.xlu2 %2941 }
 0x51e   : > { %v3547_v55 = vsel %vm1722_vm2, %v7563_v3, %v3545_v6  ;;  %v3260_v62 = vadd.f32 %v3259_v54, %v3258_v35  ;;  %v7565_v11 = vperm.slane %v6444_v48, %v5329_v17  ;;  %v3555_v10 = vperm.slane %v6722_v19, %v5329_v17 }
 0x51f   : > { %v6791_v43 = vsel %vm1833_vm5, %v3219_v23, %v3478_v60  ;;  %v6794_v9 = vmul.f32 %v6637_v5, %v2646_v51  ;;  %v3569_v48 = vperm.slane %v6637_v5, %v5329_v17  ;;  %v3628_v35 = vsel %vm1835_vm6, %v3547_v55, %v3627_v27  ;;  %v6817_v23 = vpop.permute.xlu1 %2916  ;;  %v7576_v5 = vld [vmem:[#allocation48_spill] sm:$0xff] }
 0x520   : > { %v2847_v47 = vpop.permute.xlu0 %2846  ;;  %v3550_v46 = vsel %vm1714_vm0, %v3549_v45, %v7565_v11  ;;  %v3243_v44 = vrot.slane %v3242_v49, 2  ;;  %v7567_v19 = vperm.slane %v7566_v40, %v5343_v26  ;;  %v3252_v51 = vrot.slane %v3251_v37, 2  ;;  %v7568_v45 = vld [vmem:[#allocation20_spill] sm:$0xff] }
 0x521   : > { %v3083_v0 = vmul.f32 %v2847_v47, %v2635_v12  ;;  %v3084_v61 = vmul.f32 %v2847_v47, %v2636_v29  ;;  %v2641_v12 = vunpack.c.l.bf16 %v380_v1  ;;  %v2642_v29 = vunpack.c.h.bf16 %v380_v1 }
 0x522   : > { %v3552_v42 = vsel %vm1718_vm1, %v7567_v19, %v3550_v46  ;;  %v3261_v54 = vrot.slane %v3260_v62, 2  ;;  %v7570_v55 = vperm.slane %v6460_v39, %v5378_v34  ;;  %v3244_v46 = vadd.f32 %v3243_v44, %v3242_v49 }
 0x523   : > { %v3267_v25 = vadd.f32 %v3266_v56, %v3083_v0  ;;  %v3276_v31 = vadd.f32 %v3275_v14, %v3084_v61  ;;  %v7569_v56 = vperm.slane %v7568_v45, %v5332_v63  ;;  %v3560_v14 = vperm.slane %v2847_v47, %v5378_v34 }
 0x524   : > { %v6815_v0 = vsel %vm1833_vm5, %v3228_v18, %v3485_v24  ;;  %v3235_v61 = vadd.f32 %v3234_v36, %v3233_v21  ;;  %v3554_v1 = vsel %vm1722_vm2, %v7570_v55, %v3552_v42  ;;  %v7571_v47 = vperm.slane %v6519_v2, %v5343_v26  ;;  %v383_v36 = vld [vmem:[%s4915_s20 + $0x108] sm:$0xff] }
 0x525   : > { %v3268_v33 = vrot.slane %v3267_v25, 4  ;;  %v3277_v59 = vrot.slane %v3276_v31, 4  ;;  %v3557_v27 = vsel %vm1714_vm0, %v7569_v56, %v3555_v10  ;;  %v3253_v10 = vadd.f32 %v3252_v51, %v3251_v37 }
 0x526   : > { %v3559_v24 = vsel %vm1718_vm1, %v7571_v47, %v3557_v27  ;;  %v3262_v39 = vadd.f32 %v3261_v54, %v3260_v62  ;;  %v3629_v49 = vsel %vm1837_vm7, %v3554_v1, %v3628_v35  ;;  %v6847_v62 = vpop.permute.xlu2 %2956  ;;  %v2648_v19 = vunpack.c.h.bf16 %v383_v36 }
 0x527   : > { %v3269_v6 = vadd.f32 %v3268_v33, %v3267_v25  ;;  %v3278_v57 = vadd.f32 %v3277_v59, %v3276_v31  ;;  %v3561_v33 = vsel %vm1722_vm2, %v3560_v14, %v3559_v24  ;;  %7574 = vst [vmem:[#allocation28_spill] sm:$0xff] %v6847_v62  ;;  %v3099_v54 = vmul.f32 %v6709_v20, %v2651_v53  ;;  %v6859_v1 = vpop.permute.xlu1 %2931 }
 0x528   : > { %v2862_v60 = vpop.permute.xlu0 %2861  ;;  %v3100_v45 = vmul.f32 %v6709_v20, %v2652_v7 }
 0x529   : > { %v3089_v28 = vmul.f32 %v2862_v60, %v2641_v12  ;;  %v3090_v3 = vmul.f32 %v2862_v60, %v2642_v29  ;;  %v3270_v25 = vrot.slane %v3269_v6, 2  ;;  %v3279_v31 = vrot.slane %v3278_v57, 2 }
 0x52a   : > { %v3565_v11 = vperm.slane %v2862_v60, %v5343_v26  ;;  %v3236_v12 = vrot.slane %v3235_v61, 1  ;;  %v3263_v60 = vrot.slane %v3262_v39, 1 }
 0x52b   : > { %v3284_v21 = vadd.f32 %v6697_v32, %v3089_v28  ;;  %v3293_v18 = vadd.f32 %v6699_v41, %v3090_v3  ;;  %v3271_v44 = vadd.f32 %v3270_v25, %v3269_v6  ;;  %v3280_v40 = vadd.f32 %v3279_v31, %v3278_v57  ;;  %v7572_v32 = vld [vmem:[#allocation26_spill] sm:$0xff] }
 0x52c   : > { %v3566_v59 = vsel %vm1718_vm1, %v3565_v11, %v6718_v4  ;;  %v7573_v41 = vperm.slane %v7572_v32, %v5378_v34  ;;  %v2647_v4 = vunpack.c.l.bf16 %v383_v36  ;;  %v3245_v6 = vrot.slane %v3244_v46, 1 }
 0x52d   : > { %v3285_v2 = vadd.f32 %v3284_v21, %v6633_v58  ;;  %v3294_v29 = vadd.f32 %v3293_v18, %v6643_v22  ;;  %v3630_v58 = vsel %vm1839_vm8, %v3561_v33, %v3629_v49  ;;  %v3254_v57 = vrot.slane %v3253_v10, 1 }
 0x52e   : > { %v3568_v37 = vsel %vm1722_vm2, %v7573_v41, %v3566_v59  ;;  %v3237_v14 = vadd.f32 %v3236_v12, %v3235_v61  ;;  %v3272_v28 = vrot.slane %v3271_v44, 1  ;;  %v3281_v3 = vrot.slane %v3280_v40, 1  ;;  %v7575_v12 = vld [vmem:[#allocation29_spill] sm:$0xff]  ;;  %v6884_v50 = vpop.permute.xlu2 %2971  ;;  %v387_v41 = vld [vmem:[%s4915_s20 + $0x128] sm:$0xff] }
 0x52f   : > { %v3286_v35 = vrot.slane %v3285_v2, 4  ;;  %v3295_v22 = vrot.slane %v3294_v29, 4  ;;  %v3631_v51 = vsel %vm1841_vm9, %v3568_v37, %v3630_v58  ;;  %v3246_v47 = vadd.f32 %v3245_v6, %v3244_v46  ;;  %v390_v58 = vld [vmem:[%s4915_s20 + $0x140] sm:$0xff] }
 0x530   : > { %v2877_v42 = vpop.permute.xlu0 %2876  ;;  %3641 = vst.msk [vmem:[%s6841_s7] sm:$0xff] %vm1852_vm10, %v3631_v51  ;;  %v3255_v13 = vadd.f32 %v3254_v57, %v3253_v10  ;;  %v3264_v24 = vadd.f32 %v3263_v60, %v3262_v39  ;;  %v3273_v33 = vadd.f32 %v3272_v28, %v3271_v44  ;;  %v3282_v59 = vadd.f32 %v3281_v3, %v3280_v40  ;;  %v393_v51 = vld [vmem:[%s4915_s20 + $0x158] sm:$0xff] }
 0x531   : > { %v3287_v56 = vadd.f32 %v3286_v35, %v3285_v2  ;;  %v3296_v27 = vadd.f32 %v3295_v22, %v3294_v29  ;;  %v3095_v55 = vmul.f32 %v2877_v42, %v2647_v4  ;;  %v3096_v11 = vmul.f32 %v2877_v42, %v2648_v19 }
 0x532   : > { %v3570_v53 = vperm.slane %v2877_v42, %v5332_v63  ;;  %v3480_v46 = vsel %vm1835_vm6, %v3237_v14, %v6791_v43  ;;  %v3487_v2 = vsel %vm1835_vm6, %v3246_v47, %v6815_v0  ;;  %v3574_v37 = vperm.slane %v6709_v20, %v5378_v34  ;;  %v7577_v42 = vld [vmem:[#allocation30_spill] sm:$0xff]  ;;  %v396_v14 = vld [vmem:[%s4915_s20 + $0x170] sm:$0xff] }
 0x533   : > { %v3288_v25 = vrot.slane %v3287_v56, 2  ;;  %v3297_v31 = vrot.slane %v3296_v27, 2  ;;  %v3301_v7 = vadd.f32 %v3095_v55, %v6769_v16  ;;  %v3310_v61 = vadd.f32 %v3096_v11, %v6794_v9 }
 0x534   : > { %v3571_v36 = vsel %vm1714_vm0, %v3570_v53, %v3569_v48  ;;  %v3481_v29 = vsel %vm1837_vm7, %v3255_v13, %v3480_v46  ;;  %v3577_v6 = vperm.slane %v7577_v42, %v5332_v63  ;;  %v2655_v57 = vunpack.c.l.bf16 %v387_v41  ;;  %v399_v13 = vld [vmem:[%s4915_s20 + $0x188] sm:$0xff] }
 0x535   : > { %v3289_v21 = vadd.f32 %v3288_v25, %v3287_v56  ;;  %v3298_v18 = vadd.f32 %v3297_v31, %v3296_v27  ;;  %v3302_v49 = vadd.f32 %v3301_v7, %v7575_v12  ;;  %v3573_v16 = vsel %vm1718_vm1, %v3572_v15, %v3571_v36  ;;  %v391_v25 = vld [vmem:[%s4915_s20 + $0x148] sm:$0xff]  ;;  %v402_v12 = vld [vmem:[%s4915_s20 + $0x1a0] sm:$0xff] }
 0x536   : > { %v3311_v39 = vadd.f32 %v3310_v61, %v7576_v5  ;;  %v3488_v15 = vsel %vm1837_vm7, %v3264_v24, %v3487_v2  ;;  %v3482_v4 = vsel %vm1839_vm8, %v3273_v33, %v3481_v29  ;;  %v3575_v20 = vsel %vm1722_vm2, %v3574_v37, %v3573_v16  ;;  %v388_v24 = vld [vmem:[%s4915_s20 + $0x130] sm:$0xff]  ;;  %v6933_v16 = vpop.permute.xlu2 %2996  ;;  %v407_v2 = vld [vmem:[%s4915_s20 + $0x1c8] sm:$0xff]  ;;  %v386_v29 = vld [vmem:[%s4915_s20 + $0x120] sm:$0xff] }
 0x537   : > { %v3290_v9 = vrot.slane %v3289_v21, 1  ;;  %v3299_v10 = vrot.slane %v3298_v18, 1  ;;  %v6882_v44 = vadd.f32 %v3302_v49, %v3099_v54  ;;  %v3489_v0 = vsel %vm1839_vm8, %v3282_v59, %v3488_v15  ;;  %v6907_v54 = vpop.permute.xlu1 %2946  ;;  %7578 = vst [vmem:[#allocation45_spill] sm:$0xff] %v6933_v16 }
 0x538   : > { %v6877_v48 = vpop.permute.xlu0 %2891  ;;  %v6887_v32 = vadd.f32 %v3311_v39, %v3100_v45  ;;  %v2656_v60 = vunpack.c.h.bf16 %v387_v41  ;;  %v2661_v45 = vunpack.c.l.bf16 %v390_v58  ;;  %v2662_v27 = vunpack.c.h.bf16 %v390_v58  ;;  %v394_v58 = vld [vmem:[%s4915_s20 + $0x160] sm:$0xff] }
 0x539   : > { %v3291_v40 = vadd.f32 %v3290_v9, %v3289_v21  ;;  %v3300_v43 = vadd.f32 %v3299_v10, %v3298_v18  ;;  %v3576_v19 = vperm.slane %v6877_v48, %v5329_v17  ;;  %v3579_v28 = vperm.slane %v6760_v52, %v5343_v26 }
 0x53a   : > { %v2667_v55 = vunpack.c.l.bf16 %v393_v51  ;;  %v6919_v11 = vmul.f32 %v7577_v42, %v2655_v57  ;;  %v6922_v53 = vmul.f32 %v7577_v42, %v2656_v60  ;;  %v2668_v47 = vunpack.c.h.bf16 %v393_v51 }
 0x53b   : > { %v3483_v35 = vsel %vm1841_vm9, %v3291_v40, %v3482_v4  ;;  %v3490_v22 = vsel %vm1841_vm9, %v3300_v43, %v3489_v0  ;;  %v3578_v56 = vsel %vm1714_vm0, %v3577_v6, %v3576_v19  ;;  %v3109_v21 = vmul.f32 %v6686_v38, %v2661_v45 }
 0x53c   : > { %3509 = vst [vmem:[%s6901_s14] sm:$0xff] %v3483_v35  ;;  %v3580_v7 = vsel %vm1718_vm1, %v3579_v28, %v3578_v56  ;;  %v2673_v18 = vunpack.c.l.bf16 %v396_v14  ;;  %v2674_v61 = vunpack.c.h.bf16 %v396_v14  ;;  %v3110_v33 = vmul.f32 %v6686_v38, %v2662_v27 }
 0x53d   : > { %3510 = vst [vmem:[%s6901_s14 + $0x8] sm:$0xff] %v3490_v22  ;;  %v3583_v59 = vperm.slane %v6686_v38, %v5329_v17  ;;  %v2663_v49 = vunpack.c.l.bf16 %v391_v25  ;;  %v2679_v9 = vunpack.c.l.bf16 %v399_v13  ;;  %v2680_v10 = vunpack.c.h.bf16 %v399_v13  ;;  %v389_v13 = vld [vmem:[%s4915_s20 + $0x138] sm:$0xff] }
 0x53e   : > { %v2657_v5 = vunpack.c.l.bf16 %v388_v24  ;;  %v2664_v39 = vunpack.c.h.bf16 %v391_v25  ;;  %v6941_v15 = vmul.f32 %v6742_v30, %v2667_v55  ;;  %v6944_v40 = vmul.f32 %v6742_v30, %v2668_v47  ;;  %v411_v55 = vld [vmem:[%s4915_s20 + $0x1e8] sm:$0xff] }
 0x53f   : > { %v2658_v43 = vunpack.c.h.bf16 %v388_v24  ;;  %v6949_v41 = vmul.f32 %v6788_v8, %v2673_v18  ;;  %v6952_v37 = vmul.f32 %v6788_v8, %v2674_v61  ;;  %v2685_v4 = vunpack.c.l.bf16 %v402_v12  ;;  %v6958_v42 = vpop.permute.xlu1 %2961  ;;  %v397_v61 = vld [vmem:[%s4915_s20 + $0x178] sm:$0xff] }
 0x540   : > { %v6913_v3 = vpop.permute.xlu0 %2906  ;;  %v2686_v0 = vunpack.c.h.bf16 %v402_v12  ;;  %v3111_v22 = vmul.f32 %v6817_v23, %v2663_v49  ;;  %v2695_v19 = vunpack.c.l.bf16 %v407_v2  ;;  %v2653_v6 = vunpack.c.l.bf16 %v386_v29 }
 0x541   : > { %v3581_v31 = vperm.slane %v6913_v3, %v5378_v34  ;;  %v3112_v57 = vmul.f32 %v6817_v23, %v2664_v39  ;;  %v3584_v60 = vperm.slane %v6817_v23, %v5332_v63  ;;  %v2696_v51 = vunpack.c.h.bf16 %v407_v2 }
 0x542   : > { %v2654_v45 = vunpack.c.h.bf16 %v386_v29  ;;  %v6966_v56 = vmul.f32 %v6847_v62, %v2679_v9  ;;  %v6969_v27 = vmul.f32 %v6847_v62, %v2680_v10  ;;  %v2669_v14 = vunpack.c.l.bf16 %v394_v58  ;;  %v392_v29 = vld [vmem:[%s4915_s20 + $0x150] sm:$0xff] }
 0x543   : > { %v3582_v36 = vsel %vm1722_vm2, %v3581_v31, %v3580_v7  ;;  %v2670_v28 = vunpack.c.h.bf16 %v394_v58  ;;  %v3105_v31 = vmul.f32 %v6760_v52, %v2657_v5  ;;  %v3106_v47 = vmul.f32 %v6760_v52, %v2658_v43  ;;  %v6995_v5 = vpop.permute.xlu2 %3016 }
 0x544   : > { %v6936_v46 = vsel %vm1829_vm3, %v3582_v36, %v3575_v20  ;;  %v6977_v23 = vmul.f32 %v6884_v50, %v2685_v4  ;;  %v6981_v24 = vmul.f32 %v6884_v50, %v2686_v0  ;;  %v6985_v18 = vadd.f32 %v3111_v22, %v3109_v21  ;;  %v412_v22 = vld [vmem:[%s4915_s20 + $0x1f0] sm:$0xff] }
 0x545   : > { %7579 = vst [vmem:[#allocation33_spill] sm:$0xff] %v6936_v46  ;;  %v3101_v36 = vmul.f32 %v6877_v48, %v2653_v6  ;;  %v6989_v12 = vadd.f32 %v3112_v57, %v3110_v33  ;;  %v6992_v52 = vsel %vm1714_vm0, %v3584_v60, %v3583_v59  ;;  %v2703_v49 = vunpack.c.l.bf16 %v411_v55  ;;  %v400_v6 = vld [vmem:[%s4915_s20 + $0x190] sm:$0xff] }
 0x546   : > { %v3102_v9 = vmul.f32 %v6877_v48, %v2654_v45  ;;  %v2704_v10 = vunpack.c.h.bf16 %v411_v55  ;;  %v3304_v39 = vrot.slane %v6882_v44, 4  ;;  %v3313_v21 = vrot.slane %v6887_v32, 4 }
 0x547   : > { %v2659_v2 = vunpack.c.l.bf16 %v389_v13  ;;  %v7001_v33 = vmul.f32 %v6933_v16, %v2695_v19  ;;  %v2675_v59 = vunpack.c.l.bf16 %v397_v61  ;;  %v2676_v43 = vunpack.c.h.bf16 %v397_v61  ;;  %v7022_v25 = vpop.permute.xlu1 %2976 }
 0x548   : > { %v6960_v20 = vpop.permute.xlu0 %2921  ;;  %v2660_v4 = vunpack.c.h.bf16 %v389_v13  ;;  %v7004_v0 = vmul.f32 %v6933_v16, %v2696_v51  ;;  %v3117_v58 = vmul.f32 %v6859_v1, %v2669_v14  ;;  %v3319_v57 = vadd.f32 %v6919_v11, %v3101_v36  ;;  %v395_v13 = vld [vmem:[%s4915_s20 + $0x168] sm:$0xff] }
 0x549   : > { %v3118_v19 = vmul.f32 %v6859_v1, %v2670_v28  ;;  %v3328_v55 = vadd.f32 %v6922_v53, %v3102_v9  ;;  %v2665_v51 = vunpack.c.l.bf16 %v392_v29  ;;  %v3305_v61 = vadd.f32 %v3304_v39, %v6882_v44  ;;  %v403_v14 = vld [vmem:[%s4915_s20 + $0x1a8] sm:$0xff] }
 0x54a   : > { %7580 = vst [vmem:[#allocation32_spill] sm:$0xff] %v7004_v0  ;;  %v3314_v48 = vadd.f32 %v3313_v21, %v6887_v32  ;;  %v3107_v11 = vmul.f32 %v6913_v3, %v2659_v2  ;;  %v2666_v36 = vunpack.c.h.bf16 %v392_v29  ;;  %v2705_v35 = vunpack.c.l.bf16 %v412_v22  ;;  %v7028_v2 = vld [vmem:[%s4915_s20 + $0x1b0] sm:$0xff] }
 0x54b   : > { %v2706_v28 = vunpack.c.h.bf16 %v412_v22  ;;  %v2681_v38 = vunpack.c.l.bf16 %v400_v6  ;;  %v3108_v45 = vmul.f32 %v6913_v3, %v2660_v4  ;;  %v2682_v7 = vunpack.c.h.bf16 %v400_v6 }
 0x54c   : > { %v3320_v53 = vadd.f32 %v3319_v57, %v3105_v31  ;;  %v2671_v9 = vunpack.c.l.bf16 %v395_v13  ;;  %v2672_v16 = vunpack.c.h.bf16 %v395_v13  ;;  %v2687_v62 = vunpack.c.l.bf16 %v403_v14  ;;  %v7041_v57 = vpop.permute.xlu2 %3021 }
 0x54d   : > { %v2688_v44 = vunpack.c.h.bf16 %v403_v14  ;;  %v3329_v39 = vadd.f32 %v3328_v55, %v3106_v47  ;;  %v3113_v32 = vmul.f32 %v6960_v20, %v2665_v51  ;;  %v3306_v21 = vrot.slane %v3305_v61, 2 }
 0x54e   : > { %v3315_v46 = vrot.slane %v3314_v48, 2  ;;  %v3321_v0 = vadd.f32 %v3320_v53, %v3107_v11  ;;  %v3114_v29 = vmul.f32 %v6960_v20, %v2666_v36  ;;  %v7032_v22 = vmul.f32 %v6995_v5, %v2703_v49 }
 0x54f   : > { %v7035_v3 = vmul.f32 %v6995_v5, %v2704_v10  ;;  %v3330_v4 = vadd.f32 %v3329_v39, %v3108_v45  ;;  %v3123_v47 = vmul.f32 %v6907_v54, %v2675_v59  ;;  %v3124_v6 = vmul.f32 %v6907_v54, %v2676_v43 }
 0x550   : > { %v7012_v60 = vpop.permute.xlu0 %2936  ;;  %v2689_v10 = vunpack.c.l.bf16 %v7028_v2  ;;  %v2690_v45 = vunpack.c.h.bf16 %v7028_v2  ;;  %v3338_v59 = vadd.f32 %v6985_v18, %v3113_v32  ;;  %v3307_v43 = vadd.f32 %v3306_v21, %v3305_v61  ;;  %v7063_v18 = vpop.permute.xlu1 %2981  ;;  %v398_v61 = vld [vmem:[%s4915_s20 + $0x180] sm:$0xff] }
 0x551   : > { %v3119_v55 = vmul.f32 %v7012_v60, %v2671_v9  ;;  %v3120_v51 = vmul.f32 %v7012_v60, %v2672_v16  ;;  %v3316_v14 = vadd.f32 %v3315_v46, %v3314_v48  ;;  %v3322_v11 = vrot.slane %v3321_v0, 4  ;;  %v7066_v46 = vld [vmem:[%s4915_s20 + $0x1d0] sm:$0xff] }
 0x552   : > { %v3347_v36 = vadd.f32 %v6989_v12, %v3114_v29  ;;  %v7054_v16 = vmul.f32 %v7041_v57, %v2705_v35  ;;  %v7057_v53 = vmul.f32 %v7041_v57, %v2706_v28  ;;  %v3331_v39 = vrot.slane %v3330_v4, 4 }
 0x553   : > { %v3135_v2 = vmul.f32 %v7022_v25, %v2687_v62  ;;  %v3136_v31 = vmul.f32 %v7022_v25, %v2688_v44  ;;  %v3355_v48 = vadd.f32 %v3119_v55, %v3117_v58  ;;  %v3364_v12 = vadd.f32 %v3120_v51, %v3118_v19  ;;  %v406_v19 = vld [vmem:[%s4915_s20 + $0x1c0] sm:$0xff] }
 0x554   : > { %v7070_v35 = vmul.f32 %v6958_v42, %v2681_v38  ;;  %v7073_v28 = vmul.f32 %v6958_v42, %v2682_v7  ;;  %v3605_v32 = vperm.slane %v7022_v25, %v5332_v63  ;;  %v3339_v62 = vadd.f32 %v3338_v59, %v6941_v15 }
 0x555   : > { %v3308_v44 = vrot.slane %v3307_v43, 1  ;;  %v3317_v21 = vrot.slane %v3316_v14, 1  ;;  %v3323_v29 = vadd.f32 %v3322_v11, %v3321_v0  ;;  %v3348_v58 = vadd.f32 %v3347_v36, %v6944_v40  ;;  %v7087_v0 = vld [vmem:[%s4915_s20 + $0x1d8] sm:$0xff] }
 0x556   : > { %v3332_v38 = vadd.f32 %v3331_v39, %v3330_v4  ;;  %v2677_v51 = vunpack.c.l.bf16 %v398_v61  ;;  %v3391_v7 = vadd.f32 %v3135_v2, %v6977_v23  ;;  %v3400_v9 = vadd.f32 %v3136_v31, %v6981_v24  ;;  %v401_v39 = vld [vmem:[%s4915_s20 + $0x198] sm:$0xff] }
 0x557   : > { %v3356_v25 = vadd.f32 %v3355_v48, %v6949_v41  ;;  %v3365_v15 = vadd.f32 %v3364_v12, %v6952_v37  ;;  %v7581_v40 = vperm.slane %v6884_v50, %v5329_v17  ;;  %v3340_v11 = vrot.slane %v3339_v62, 4 }
 0x558   : > { %v7045_v13 = vpop.permute.xlu0 %2951  ;;  %v2678_v23 = vunpack.c.h.bf16 %v398_v61  ;;  %v7097_v24 = vadd.f32 %v3308_v44, %v3307_v43  ;;  %v7099_v41 = vadd.f32 %v3317_v21, %v3316_v14  ;;  %v3324_v37 = vrot.slane %v3323_v29, 2  ;;  %v7110_v55 = vpop.permute.xlu1 %3001 }
 0x559   : > { %v3606_v4 = vsel %vm1714_vm0, %v3605_v32, %v7581_v40  ;;  %v3349_v31 = vrot.slane %v3348_v58, 4  ;;  %v3333_v2 = vrot.slane %v3332_v38, 2  ;;  %v3125_v50 = vmul.f32 %v7045_v13, %v2677_v51 }
 0x55a   : > { %7582 = vst [vmem:[#allocation46_spill] sm:$0xff] %v7099_v41  ;;  %v3137_v32 = vmul.f32 %v7063_v18, %v2689_v10  ;;  %v3357_v40 = vadd.f32 %v3356_v25, %v3123_v47  ;;  %v3366_v49 = vadd.f32 %v3365_v15, %v3124_v6  ;;  %v2683_v61 = vunpack.c.l.bf16 %v401_v39 }
 0x55b   : > { %v3138_v43 = vmul.f32 %v7063_v18, %v2690_v45  ;;  %v3341_v44 = vadd.f32 %v3340_v11, %v3339_v62  ;;  %v3586_v14 = vperm.slane %v6960_v20, %v5343_v26  ;;  %v3126_v21 = vmul.f32 %v7045_v13, %v2678_v23 }
 0x55c   : > { %v3325_v36 = vadd.f32 %v3324_v37, %v3323_v29  ;;  %v3350_v48 = vadd.f32 %v3349_v31, %v3348_v58  ;;  %v2693_v12 = vunpack.c.l.bf16 %v406_v19  ;;  %v2694_v51 = vunpack.c.h.bf16 %v406_v19 }
 0x55d   : > { %v3334_v41 = vadd.f32 %v3333_v2, %v3332_v38  ;;  %v3591_v47 = vperm.slane %v7012_v60, %v5332_v63  ;;  %v3373_v6 = vadd.f32 %v6966_v56, %v3125_v50  ;;  %v2684_v10 = vunpack.c.h.bf16 %v401_v39 }
 0x55e   : > { %v7115_v45 = vadd.f32 %v3391_v7, %v3137_v32  ;;  %v3607_v20 = vperm.slane %v7063_v18, %v5343_v26  ;;  %v3358_v62 = vrot.slane %v3357_v40, 4  ;;  %v3367_v25 = vrot.slane %v3366_v49, 4 }
 0x55f   : > { %v3342_v58 = vrot.slane %v3341_v44, 2  ;;  %v3587_v19 = vsel %vm1718_vm1, %v3586_v14, %v6992_v52  ;;  %v3382_v38 = vadd.f32 %v6969_v27, %v3126_v21  ;;  %v3326_v15 = vrot.slane %v3325_v36, 1 }
 0x560   : > { %v7089_v59 = vpop.permute.xlu0 %2966  ;;  %v3351_v56 = vrot.slane %v3350_v48, 2  ;;  %v3335_v23 = vrot.slane %v3334_v41, 1  ;;  %v7583_v18 = vperm.slane %v6859_v1, %v5329_v17  ;;  %v3374_v37 = vadd.f32 %v3373_v6, %v7070_v35 }
 0x561   : > { %v3131_v60 = vmul.f32 %v7089_v59, %v2683_v61  ;;  %v3132_v52 = vmul.f32 %v7089_v59, %v2684_v10  ;;  %v7133_v31 = vadd.f32 %v3400_v9, %v3138_v43  ;;  %v7136_v27 = vsel %vm1718_vm1, %v3607_v20, %v3606_v4  ;;  %v7163_v10 = vpop.permute.xlu1 %3006 }
 0x562   : > { %v3592_v39 = vsel %vm1714_vm0, %v3591_v47, %v7583_v18  ;;  %v3359_v2 = vadd.f32 %v3358_v62, %v3357_v40  ;;  %v3368_v50 = vadd.f32 %v3367_v25, %v3366_v49  ;;  %v7584_v32 = vperm.slane %v6742_v30, %v5378_v34  ;;  %v7586_v40 = vld [vmem:[#allocation32_spill] sm:$0xff] }
 0x563   : > { %v3383_v1 = vadd.f32 %v3382_v38, %v7073_v28  ;;  %v3375_v14 = vadd.f32 %v3374_v37, %v3131_v60  ;;  %v7143_v21 = vadd.f32 %v3351_v56, %v3350_v48  ;;  %v7585_v9 = vperm.slane %v6788_v8, %v5343_v26  ;;  %v405_v56 = vld [vmem:[%s4915_s20 + $0x1b8] sm:$0xff] }
 0x564   : > { %v3589_v61 = vsel %vm1722_vm2, %v7584_v32, %v3587_v19  ;;  %v7151_v43 = vadd.f32 %v3326_v15, %v3325_v36  ;;  %v7153_v30 = vadd.f32 %v3335_v23, %v3334_v41  ;;  %v3597_v28 = vperm.slane %v7045_v13, %v5329_v17  ;;  %v7589_v41 = vld [vmem:[#allocation33_spill] sm:$0xff]  ;;  %v7593_v18 = vld [vmem:[#allocation28_spill] sm:$0xff] }
 0x565   : > { %v3594_v35 = vsel %vm1718_vm1, %v7585_v9, %v3592_v39  ;;  %v7587_v48 = vunpack.c.l.bf16 %v7066_v46  ;;  %v3360_v47 = vrot.slane %v3359_v2, 2  ;;  %v3369_v6 = vrot.slane %v3368_v50, 2 }
 0x566   : > { %v3633_v20 = vsel %vm1831_vm4, %v3589_v61, %v7589_v41  ;;  %v3614_v13 = vperm.slane %v7110_v55, %v5343_v26  ;;  %v7590_v62 = vperm.slane %v6907_v54, %v5378_v34  ;;  %v3353_v38 = vrot.slane %v7143_v21, 1 }
 0x567   : > { %v3145_v8 = vmul.f32 %v7110_v55, %v7587_v48  ;;  %v7592_v23 = vunpack.c.h.bf16 %v7087_v0  ;;  %v7594_v54 = vperm.slane %v7593_v18, %v5332_v63  ;;  %v7190_v32 = vadd.f32 %v3369_v6, %v3368_v50 }
 0x568   : > { %v7119_v29 = vpop.permute.xlu0 %2991  ;;  %v3596_v25 = vsel %vm1722_vm2, %v7590_v62, %v3594_v35  ;;  %v3602_v35 = vperm.slane %v7089_v59, %v5378_v34  ;;  %v3616_v50 = vperm.slane %v7163_v10, %v5378_v34  ;;  %v413_v62 = vld [vmem:[%s4915_s20 + $0x1f8] sm:$0xff] }
 0x569   : > { %v3141_v7 = vmul.f32 %v7119_v29, %v2693_v12  ;;  %v3142_v11 = vmul.f32 %v7119_v29, %v2694_v51  ;;  %v3343_v12 = vadd.f32 %v3342_v58, %v3341_v44  ;;  %v3384_v44 = vadd.f32 %v3383_v1, %v3132_v52  ;;  %v410_v58 = vld [vmem:[%s4915_s20 + $0x1e0] sm:$0xff]  ;;  %s3662_s20 = sshll.u32 %s6901_s14, 4  ;;  %s3663_s20 = int_to_ptr.vmem [resolvable:$true] %s3662_s20 }
 0x56a   : > { %v7588_v51 = vunpack.c.h.bf16 %v7066_v46  ;;  %v3376_v46 = vrot.slane %v3375_v14, 4  ;;  %v3599_v39 = vsel %vm1714_vm0, %v7594_v54, %v3597_v28  ;;  %v7188_v52 = vadd.f32 %v3360_v47, %v3359_v2 }
 0x56b   : > { %v3409_v4 = vadd.f32 %v7001_v33, %v3141_v7  ;;  %v3418_v49 = vadd.f32 %v7586_v40, %v3142_v11  ;;  %v3344_v19 = vrot.slane %v3343_v12, 1  ;;  %v7591_v7 = vunpack.c.l.bf16 %v7087_v0 }
 0x56c   : > { %v3146_v33 = vmul.f32 %v7110_v55, %v7588_v51  ;;  %v3148_v55 = vmul.f32 %v7163_v10, %v7592_v23  ;;  %v3385_v37 = vrot.slane %v3384_v44, 4  ;;  %v2701_v61 = vunpack.c.l.bf16 %v410_v58 }
 0x56d   : > { %v3410_v60 = vadd.f32 %v3409_v4, %v3145_v8  ;;  %v3147_v11 = vmul.f32 %v7163_v10, %v7591_v7  ;;  %v2702_v1 = vunpack.c.h.bf16 %v410_v58  ;;  %v3377_v9 = vadd.f32 %v3376_v46, %v3375_v14  ;;  %v7596_v46 = vld [vmem:[#allocation45_spill] sm:$0xff] }
 0x56e   : > { %v3419_v15 = vadd.f32 %v3418_v49, %v3146_v33  ;;  %v2691_v4 = vunpack.c.l.bf16 %v405_v56  ;;  %v2692_v0 = vunpack.c.h.bf16 %v405_v56  ;;  %v3634_v40 = vsel %vm1833_vm5, %v3596_v25, %v3633_v20 }
 0x56f   : > { %v3411_v49 = vadd.f32 %v3410_v60, %v3147_v11  ;;  %v3611_v28 = vperm.slane %v7119_v29, %v5329_v17  ;;  %v7197_v2 = vadd.f32 %v3344_v19, %v3343_v12  ;;  %v7595_v14 = vperm.slane %v6958_v42, %v5343_v26 }
 0x570   : > { %v7165_v36 = vpop.permute.xlu0 %3011  ;;  %v3420_v48 = vadd.f32 %v3419_v15, %v3148_v55  ;;  %v3386_v8 = vadd.f32 %v3385_v37, %v3384_v44  ;;  %v3362_v51 = vrot.slane %v7188_v52, 1  ;;  %v3371_v33 = vrot.slane %v7190_v32, 1 }
 0x571   : > { %v3601_v59 = vsel %vm1718_vm1, %v7595_v14, %v3599_v39  ;;  %v3149_v47 = vmul.f32 %v7165_v36, %v2701_v61  ;;  %v3150_v6 = vmul.f32 %v7165_v36, %v2702_v1  ;;  %v3378_v12 = vrot.slane %v3377_v9, 2 }
 0x572   : > { %v3603_v41 = vsel %vm1722_vm2, %v3602_v35, %v3601_v59  ;;  %v3412_v25 = vrot.slane %v3411_v49, 4  ;;  %v3421_v42 = vrot.slane %v3420_v48, 4  ;;  %v7597_v44 = vperm.slane %v7596_v46, %v5332_v63 }
 0x573   : > { %v3387_v60 = vrot.slane %v3386_v8, 2  ;;  %v3618_v15 = vperm.slane %v7165_v36, %v5329_v17  ;;  %v3427_v11 = vadd.f32 %v7032_v22, %v3149_v47  ;;  %v3436_v23 = vadd.f32 %v7035_v3, %v3150_v6 }
 0x574   : > { %v3613_v58 = vsel %vm1714_vm0, %v7597_v44, %v3611_v28  ;;  %v2707_v55 = vunpack.c.l.bf16 %v413_v62  ;;  %v2708_v18 = vunpack.c.h.bf16 %v413_v62  ;;  %v3379_v1 = vadd.f32 %v3378_v12, %v3377_v9 }
 0x575   : > { %v3615_v54 = vsel %vm1718_vm1, %v3614_v13, %v3613_v58  ;;  %v3635_v17 = vsel %vm1835_vm6, %v3603_v41, %v3634_v40  ;;  %v3413_v36 = vadd.f32 %v3412_v25, %v3411_v49  ;;  %v3388_v35 = vadd.f32 %v3387_v60, %v3386_v8 }
 0x576   : > { %v7598_v22 = vperm.slane %v6995_v5, %v5332_v63  ;;  %v3617_v13 = vsel %vm1722_vm2, %v3616_v50, %v3615_v54  ;;  %v3428_v28 = vadd.f32 %v3427_v11, %v7054_v16  ;;  %v7599_v63 = vperm.slane %v7041_v57, %v5343_v26 }
 0x577   : > { %v3414_v59 = vrot.slane %v3413_v36, 2  ;;  %v3380_v12 = vrot.slane %v3379_v1, 1  ;;  %v3363_v44 = vadd.f32 %v3362_v51, %v7188_v52  ;;  %v3372_v58 = vadd.f32 %v3371_v33, %v7190_v32 }
 0x578   : > { %v2987_v29 = vpop.permute.xlu0 %2986  ;;  %v3620_v3 = vsel %vm1714_vm0, %v7598_v22, %v3618_v15 }
 0x579   : > { %v3139_v20 = vmul.f32 %v2987_v29, %v2691_v4  ;;  %v3140_v10 = vmul.f32 %v2987_v29, %v2692_v0  ;;  %v3609_v19 = vperm.slane %v2987_v29, %v5378_v34  ;;  %v3622_v5 = vsel %vm1718_vm1, %v7599_v63, %v3620_v3 }
 0x57a   : > { %v3415_v57 = vadd.f32 %v3414_v59, %v3413_v36 }
 0x57b   : > { %v3393_v56 = vadd.f32 %v7115_v45, %v3139_v20  ;;  %v3402_v7 = vadd.f32 %v7133_v31, %v3140_v10  ;;  %v3610_v61 = vsel %vm1722_vm2, %v3609_v19, %v7136_v27  ;;  %v3422_v45 = vadd.f32 %v3421_v42, %v3420_v48 }
 0x57c   : > { %v3636_v0 = vsel %vm1837_vm7, %v3610_v61, %v3635_v17  ;;  %v3437_v27 = vadd.f32 %v3436_v23, %v7057_v53  ;;  %v3389_v53 = vrot.slane %v3388_v35, 1 }
 0x57d   : > { %v3394_v39 = vrot.slane %v3393_v56, 4  ;;  %v3403_v37 = vrot.slane %v3402_v7, 4  ;;  %v3423_v8 = vrot.slane %v3422_v45, 2  ;;  %v3637_v41 = vsel %vm1839_vm8, %v3617_v13, %v3636_v0 }
 0x57f   : > { %v3395_v31 = vadd.f32 %v3394_v39, %v3393_v56  ;;  %v3404_v4 = vadd.f32 %v3403_v37, %v3402_v7  ;;  %v3424_v42 = vadd.f32 %v3423_v8, %v3422_v45  ;;  %v3381_v56 = vadd.f32 %v3380_v12, %v3379_v1 }
 0x580   : > { %v3027_v9 = vpop.permute.xlu0 %3026  ;;  %v3390_v7 = vadd.f32 %v3389_v53, %v3388_v35 }
 0x581   : > { %v3396_v40 = vrot.slane %v3395_v31, 2  ;;  %v3405_v49 = vrot.slane %v3404_v4, 2  ;;  %v3155_v48 = vmul.f32 %v3027_v9, %v2707_v55  ;;  %v3156_v14 = vmul.f32 %v3027_v9, %v2708_v18 }
 0x582   : > { %v3623_v50 = vperm.slane %v3027_v9, %v5378_v34  ;;  %v3354_v34 = vadd.f32 %v3353_v38, %v7143_v21  ;;  %v3491_v21 = vsel %vm1829_vm3, %v7151_v43, %v7097_v24  ;;  %v7600_v38 = vld [vmem:[#allocation46_spill] sm:$0xff]  ;;  %v3416_v55 = vrot.slane %v3415_v57, 1 }
 0x583   : > { %v3397_v47 = vadd.f32 %v3396_v40, %v3395_v31  ;;  %v3406_v6 = vadd.f32 %v3405_v49, %v3404_v4  ;;  %v3429_v29 = vadd.f32 %v3428_v28, %v3155_v48  ;;  %v3438_v16 = vadd.f32 %v3437_v27, %v3156_v14 }
 0x584   : > { %v3624_v20 = vsel %vm1722_vm2, %v3623_v50, %v3622_v5  ;;  %v3498_v15 = vsel %vm1829_vm3, %v7153_v30, %v7600_v38  ;;  %v3492_v32 = vsel %vm1831_vm4, %v7197_v2, %v3491_v21  ;;  %v3425_v18 = vrot.slane %v3424_v42, 1 }
 0x585   : > { %v3398_v10 = vrot.slane %v3397_v47, 1  ;;  %v3407_v62 = vrot.slane %v3406_v6, 1  ;;  %v3430_v25 = vrot.slane %v3429_v29, 4  ;;  %v3439_v26 = vrot.slane %v3438_v16, 4 }
 0x586   : > { %v3638_v46 = vsel %vm1841_vm9, %v3624_v20, %v3637_v41  ;;  %v3499_v33 = vsel %vm1831_vm4, %v3354_v34, %v3498_v15  ;;  %v3493_v24 = vsel %vm1833_vm5, %v3363_v44, %v3492_v32  ;;  %v3417_v36 = vadd.f32 %v3416_v55, %v3415_v57 }
 0x587   : > { %v3431_v19 = vadd.f32 %v3430_v25, %v3429_v29  ;;  %v3440_v60 = vadd.f32 %v3439_v26, %v3438_v16  ;;  %3642 = vst.msk [vmem:[%s6841_s7 + $0x8] sm:$0xff] %vm1852_vm10, %v3638_v46  ;;  %v3399_v52 = vadd.f32 %v3398_v10, %v3397_v47  ;;  %v3408_v51 = vadd.f32 %v3407_v62, %v3406_v6 }
 0x588   : > { %v3500_v43 = vsel %vm1833_vm5, %v3372_v58, %v3499_v33  ;;  %v3494_v39 = vsel %vm1835_vm6, %v3381_v56, %v3493_v24  ;;  %v3426_v45 = vadd.f32 %v3425_v18, %v3424_v42 }
 0x589   : > { %v3432_v11 = vrot.slane %v3431_v19, 2  ;;  %v3441_v23 = vrot.slane %v3440_v60, 2  ;;  %v3501_v37 = vsel %vm1835_vm6, %v3390_v7, %v3500_v43  ;;  %v3495_v2 = vsel %vm1837_vm7, %v3399_v52, %v3494_v39 }
 0x58a   : > { %v3502_v61 = vsel %vm1837_vm7, %v3408_v51, %v3501_v37  ;;  %v3496_v3 = vsel %vm1839_vm8, %v3417_v36, %v3495_v2 }
 0x58b   : > { %v3433_v30 = vadd.f32 %v3432_v11, %v3431_v19  ;;  %v3442_v54 = vadd.f32 %v3441_v23, %v3440_v60  ;;  %v3503_v31 = vsel %vm1839_vm8, %v3426_v45, %v3502_v61 }
 0x58d   : > { %v3434_v1 = vrot.slane %v3433_v30, 1  ;;  %v3443_v17 = vrot.slane %v3442_v54, 1 }
 0x58f   : > { %v3435_v35 = vadd.f32 %v3434_v1, %v3433_v30  ;;  %v3444_v22 = vadd.f32 %v3443_v17, %v3442_v54 }
 0x591   : > { %v3497_v4 = vsel %vm1841_vm9, %v3435_v35, %v3496_v3  ;;  %v3504_v13 = vsel %vm1841_vm9, %v3444_v22, %v3503_v31 }
 0x592   : > { %3511 = vst [vmem:[%s6901_s14 + $0x10] sm:$0xff] %v3497_v4 }
 0x593   : > { %3512 = vst [vmem:[%s6901_s14 + $0x18] sm:$0xff] %v3504_v13 }
 0x594   : > { %4698 = shalt.err (!%p4695_p11)
}
 0x595   : > { %s4753_s12 = smov 256   ;;  %s4754_s16 = smov 16  }
 0x596   : > { %4252 = dma.vmem_to_hbm [thread:$0]  (%p4859_p5), %s3663_s20, 512, %s3665_s0, %s3644_s2, %s4753_s12, %s4753_s12, %s4754_s16  }
 0x597 PF: > { %p4272_p12 = scmp.ge.s32.totalorder %s4745_s26, 2  ;;  %s3683_s22 = sand.u32 1, %s4733_s23  }
 0x598   : > { %s3684_s30 = scalar_lea.sflag [#allocation5], %s3683_s22 }
 0x599   : > { %p4266_p13 = pnand %p4272_p12, %p4828_p6 }
 0x59b   : > { %p4267_p0 = pneg %p4266_p13 }
 0x59d   : > { %4728 = dma.done.wait (%p4267_p0), %s3684_s30, 512  }
 0x59e   : > { %4730 = vsyncadd (%p4267_p0), %s3684_s30, 4294966784  ;;  %s7601_s26 = sld [smem:[#allocation15_spill]]  ;;  %s7604_s23 = smov %s4737_s24 }
 0x59f   : > { %s7602_s19 = sld [smem:[#allocation14_spill]] }
 0x5a0   : > { %s7603_s25 = sld [smem:[#allocation16_spill]] }
 0x5a4   : > { %p25_p3 = scmp.ge.s32.totalorder %s7601_s26, 6  }
 0x5a5   : > { %s7605_s24 = smov %s7602_s19 }
 0x5a6   :  { %27 = sbr.rel (!%p25_p3) target bundleno = 10 (0xa), region = 114 }
 0x5ab   :  { %3698 = vsyncpa [#allocation4], 1 }
 0x5ac   :  { %3700 = vsyncpa [#allocation4 + $0x1], 1 }
 0x5ad   :  { %3701 = vsyncpa [#allocation7], 1 }
 0x5ae   :  { %3703 = vsyncpa [#allocation7 + $0x1], 1 }
 0x5af   :  { %3704 = vsyncpa [#allocation5], 1 }
 0x5b0   :  { %3706 = vsyncpa [#allocation5 + $0x1], 1 }

</bundles_post_ra>
